<compile_context>
chip_gen: v7x
topology: tpu7x:2x2x1
jax: 0.10.0
libtpu: 0.0.40
codegen_flags: <defaults>
</compile_context>

<pallas_src>
import numpy as np
import jax
import jax.numpy as jnp
from jax import lax
from jax.experimental import pallas as pl
from jax.experimental.pallas import tpu as pltpu

NX = 4
NY = 1                     # packed lane-dense output path assumes NY == 1
NNEUR = (64, 64)           # all entries must be equal (shared hidden scratch)
P_THRESH = 0.05
P_INDEX = 0
LN_EPS = 1e-5

B_BLOCK = 8                # sublane-full batch block (f32); grid axis = batch blocks
MXU_DTYPE = jnp.float32    # set to jnp.bfloat16 on v6e/v7x at production sizes
                           # (f32 accumulate kept via preferred_element_type)

_REFS_PER_LAYER = 7        # wx_f, wx_b, bias_f, bias_b, whh_bd, gamma, beta


def _sigmoid(x):
    # tanh-form sigmoid: single EUP tanh, no exp + full-precision divide.
    return 0.5 * jnp.tanh(0.5 * x) + 0.5


# ------------------------------ fused kernel --------------------------------

def rnn_fused_kernel(x_ref, *refs):
    """x_ref: (S, B, NX) time-major block.  Output block: (1, S, B)."""
    nl = len(NNEUR)
    wout_ref = refs[_REFS_PER_LAYER * nl]
    bout_ref = refs[_REFS_PER_LAYER * nl + 1]
    o_ref = refs[_REFS_PER_LAYER * nl + 2]
    h_scr = refs[_REFS_PER_LAYER * nl + 3]   # (S, B, 2H) fwd-time-indexed bank

    x = x_ref[...]
    S, B, _ = x.shape

    # ---- fused pressure gating: xg[t] = sum_j sigmoid(-|p_t - p_j|/th) * x[j]
    # VPU broadcast-FMAs; the (B,S,S) mask is never materialized in VMEM.
    p = x[:, :, P_INDEX]                                    # (S, B)
    inv_th = 1.0 / P_THRESH
    xg = None
    for j in range(S):
        w_j = _sigmoid(-jnp.abs(p - p[j:j + 1, :]) * inv_th)[:, :, None]
        term = w_j * x[j:j + 1, :, :]                       # (S, B, NX)
        xg = term if xg is None else xg + term

    cur = None                       # full-width layer output (S, B, 2H)
    for li, h in enumerate(NNEUR):
        (wxf_ref, wxb_ref, bf_ref, bb_ref, whh_ref,
         gamma_ref, beta_ref) = refs[_REFS_PER_LAYER * li:
                                     _REFS_PER_LAYER * (li + 1)]
        h2 = 2 * h

        # ---- input projections, gate-interleaved columns.
        # A[t]: fwd-gate contribution of input time t; Bm[t]: bwd-gate
        # contribution (disjoint column groups).
        if li == 0:
            # Din = NX = 4: VPU broadcast FMAs instead of a ~3%-utilized MXU op.
            A = bf_ref[...]
            Bm = bb_ref[...]
            for d in range(NX):
                xd = xg[:, :, d:d + 1]                      # (S, B, 1)
                A = A + xd * wxf_ref[d:d + 1, :][None]      # -> (S, B, 8H)
                Bm = Bm + xd * wxb_ref[d:d + 1, :][None]
        else:
            cur_m = cur.astype(MXU_DTYPE)
            A = jnp.einsum('sbd,dg->sbg', cur_m, wxf_ref[...].astype(MXU_DTYPE),
                           preferred_element_type=jnp.float32) + bf_ref[...]
            Bm = jnp.einsum('sbd,dg->sbg', cur_m, wxb_ref[...].astype(MXU_DTYPE),
                            preferred_element_type=jnp.float32) + bb_ref[...]

        # ---- precompute full gate pre-activations OFF the serial chain.
        gx = [A[k] + Bm[S - 1 - k] for k in range(S)]       # each (B, 8H)

        # ---- fused fwd+bwd recurrence: ONE (B,2H)x(2H,8H) matmul per step,
        # fully unrolled (S static & small), 128-lane-aligned gate slices,
        # single lane-dense hidden store per step.
        whh = whh_ref[...].astype(MXU_DTYPE)                # (2H, 8H), hoisted
        hc = jnp.zeros((B, h2), jnp.float32)                # [h_fwd | h_bwd]
        cc = jnp.zeros((B, h2), jnp.float32)                # [c_fwd | c_bwd]
        for k in range(S):
            gates = gx[k] + jnp.dot(hc.astype(MXU_DTYPE), whh,
                                    preferred_element_type=jnp.float32)
            ig = _sigmoid(gates[:, 0:h2])
            fg = _sigmoid(gates[:, h2:2 * h2])
            gg = jnp.tanh(gates[:, 2 * h2:3 * h2])
            og = _sigmoid(gates[:, 3 * h2:4 * h2])
            cc = fg * cc + ig * gg
            hc = og * jnp.tanh(cc)
            h_scr[k] = hc                                   # lane-dense store

        # ---- full-128-lane LayerNorm over concat(fwd, bwd).
        # hcat[t] = [h_fwd(t) | h_bwd(t)]; h_bwd(t) lives in h_scr[S-1-t].
        lane = lax.broadcasted_iota(jnp.int32, (B, h2), 1)
        fwd_lane = lane < h
        hcat = jnp.stack(
            [jnp.where(fwd_lane, h_scr[t], h_scr[S - 1 - t]) for t in range(S)],
            axis=0)                                          # (S, B, 2H)
        mean = jnp.mean(hcat, axis=-1, keepdims=True)
        dlt = hcat - mean
        var = jnp.mean(dlt * dlt, axis=-1, keepdims=True)
        cur = dlt * lax.rsqrt(var + LN_EPS) * gamma_ref[...] + beta_ref[...]

    # ---- output head (NY == 1): full-width multiply + one cross-lane reduce,
    # written as a lane-dense (S, B) block (no trailing-dim-1 masked stores).
    wv = wout_ref[...][None]                                 # (1, 1, 2H)
    y = jnp.sum(cur * wv, axis=-1) + bout_ref[...]           # (S, B)
    o_ref[0] = y


# --------------------------- weight repacking (wrapper) ----------------------

def _pack_bilstm(wih_f, whh_f, b_f, wih_b, whh_b, b_b):
    """Repack torch-layout per-direction LSTM weights into the fused layout.

    Gate-column order of the 8H axis: [i_f,i_b, f_f,f_b, g_f,g_b, o_f,o_b].
      wx_f   (Din, 8H): x @ wx_f -> fwd-gate pre-activations (bwd columns zero)
      wx_b   (Din, 8H): x @ wx_b -> bwd-gate pre-activations (fwd columns zero)
      bias_f (1,1,8H), bias_b (1,1,8H)
      whh_bd (2H, 8H): block-diagonal recurrent weight for h_cat = [h_f | h_b]
    """
    h4, din = wih_f.shape
    h = h4 // 4
    zx = jnp.zeros((din, h), jnp.float32)
    zh = jnp.zeros((h, h), jnp.float32)
    zb = jnp.zeros((h,), jnp.float32)

    fx = [wih_f[g * h:(g + 1) * h].T for g in range(4)]     # (Din, H) blocks
    bx = [wih_b[g * h:(g + 1) * h].T for g in range(4)]
    wx_f = jnp.concatenate([blk for g in range(4) for blk in (fx[g], zx)], axis=1)
    wx_b = jnp.concatenate([blk for g in range(4) for blk in (zx, bx[g])], axis=1)

    fh = [whh_f[g * h:(g + 1) * h].T for g in range(4)]     # (H, H) blocks
    bh = [whh_b[g * h:(g + 1) * h].T for g in range(4)]
    top = jnp.concatenate([blk for g in range(4) for blk in (fh[g], zh)], axis=1)
    bot = jnp.concatenate([blk for g in range(4) for blk in (zh, bh[g])], axis=1)
    whh_bd = jnp.concatenate([top, bot], axis=0)            # (2H, 8H)

    bias_f = jnp.concatenate(
        [v for g in range(4) for v in (b_f[g * h:(g + 1) * h], zb)]).reshape(1, 1, 8 * h)
    bias_b = jnp.concatenate(
        [v for g in range(4) for v in (zb, b_b[g * h:(g + 1) * h])]).reshape(1, 1, 8 * h)
    return wx_f, wx_b, bias_f, bias_b, whh_bd


def _bcast_spec(a):
    """Full-array block replicated across the batch grid axis."""
    zeros = (0,) * a.ndim
    return pl.BlockSpec(a.shape, lambda b: zeros)


# ------------------------------- forward wrapper -----------------------------

def rnn_new_forward(params, x):
    # x: (B, S, NX) -> (B, S, NY)
    assert len(set(NNEUR)) == 1, "shared hidden scratch assumes equal layer sizes"
    assert NY == 1, "packed lane-dense output path assumes NY == 1"
    B, S, _ = x.shape
    h = NNEUR[-1]

    # Pad batch to a sublane-full block and go time-major.
    b_pad = ((B + B_BLOCK - 1) // B_BLOCK) * B_BLOCK
    nb = b_pad // B_BLOCK
    xp = jnp.pad(x.astype(jnp.float32), ((0, b_pad - B), (0, 0), (0, 0)))
    x_tm = jnp.transpose(xp, (1, 0, 2))                      # (S, B_pad, NX)

    flat = []
    for lp in params['layers']:
        flat.extend(_pack_bilstm(lp['wih_f'], lp['whh_f'], lp['b_f'],
                                 lp['wih_b'], lp['whh_b'], lp['b_b']))
        flat.append(lp['gamma'])
        flat.append(lp['beta'])
    w_out = params['w_out']                                  # (1, 2H)
    b_out = params['b_out'].reshape(1, 1)

    in_arrays = [x_tm] + flat + [w_out, b_out]
    in_specs = [pl.BlockSpec((S, B_BLOCK, NX), lambda b: (0, b, 0))]
    in_specs += [_bcast_spec(a) for a in flat + [w_out, b_out]]

    # NOTE: for production batch/sequence sizes, re-derive B_BLOCK so the
    # double-buffered working set (x block + gate tensors + hidden bank +
    # layer outputs) fits within ~half the scoped VMEM limit (64 MiB on v7x).
    y = pl.pallas_call(
        rnn_fused_kernel,
        grid=(nb,),
        out_shape=jax.ShapeDtypeStruct((nb, S, B_BLOCK), jnp.float32),
        in_specs=in_specs,
        out_specs=pl.BlockSpec((1, S, B_BLOCK), lambda b: (b, 0, 0)),
        scratch_shapes=[pltpu.VMEM((S, B_BLOCK, 2 * h), jnp.float32)],
        compiler_params=pltpu.CompilerParams(
            dimension_semantics=("parallel",)),
    )(*in_arrays)

    y = jnp.transpose(y, (0, 2, 1)).reshape(b_pad, S)[:B]    # (B, S)
    return y[:, :, None]                                     # (B, S, NY)


# --------------------------- deterministic parameters ------------------------

def init_params(key):
    layers = []
    in_size = NX
    for hsz in NNEUR:
        k = 1.0 / float(hsz) ** 0.5
        key, *ks = jax.random.split(key, 9)

        def u(kk, shape):
            return jax.random.uniform(kk, shape, jnp.float32, -k, k)

        wih_f = u(ks[0], (4 * hsz, in_size))
        whh_f = u(ks[1], (4 * hsz, hsz))
        b_f = u(ks[2], (4 * hsz,)) + u(ks[3], (4 * hsz,))    # bias_ih + bias_hh
        wih_b = u(ks[4], (4 * hsz, in_size))
        whh_b = u(ks[5], (4 * hsz, hsz))
        b_b = u(ks[6], (4 * hsz,)) + u(ks[7], (4 * hsz,))
        layers.append(dict(
            wih_f=wih_f, whh_f=whh_f, b_f=b_f,
            wih_b=wih_b, whh_b=whh_b, b_b=b_b,
            gamma=jnp.ones((1, 1, 2 * hsz), jnp.float32),
            beta=jnp.zeros((1, 1, 2 * hsz), jnp.float32),
        ))
        in_size = 2 * hsz
    key, k1, k2 = jax.random.split(key, 3)
    kl = 1.0 / float(in_size) ** 0.5
    w_out = jax.random.uniform(k1, (NY, in_size), jnp.float32, -kl, kl)
    b_out = jax.random.uniform(k2, (NY,), jnp.float32, -kl, kl)
    return dict(layers=layers, w_out=w_out, b_out=b_out)


# ------------------------------ pure-JAX reference ---------------------------

def _lstm_dir_ref(x, wih, whh, b, reverse):
    B, S, _ = x.shape
    H = whh.shape[1]
    gx = jnp.einsum('bsd,gd->sbg', x, wih) + b               # (S, B, 4H)
    if reverse:
        gx = gx[::-1]

    def step(carry, g_t):
        h, c = carry
        gates = g_t + h @ whh.T
        i = jax.nn.sigmoid(gates[:, :H])
        f = jax.nn.sigmoid(gates[:, H:2 * H])
        g = jnp.tanh(gates[:, 2 * H:3 * H])
        o = jax.nn.sigmoid(gates[:, 3 * H:])
        c = f * c + i * g
        h = o * jnp.tanh(c)
        return (h, c), h

    _, hs = lax.scan(step, (jnp.zeros((B, H)), jnp.zeros((B, H))), gx)
    if reverse:
        hs = hs[::-1]
    return jnp.transpose(hs, (1, 0, 2))                      # (B, S, H)


def reference_forward(params, x):
    p = x[:, :, P_INDEX]
    mask = jax.nn.sigmoid(-jnp.abs(p[:, :, None] - p[:, None, :]) / P_THRESH)
    h = jnp.einsum('bij,bjk->bik', mask, x)
    for lp in params['layers']:
        hf = _lstm_dir_ref(h, lp['wih_f'], lp['whh_f'], lp['b_f'], False)
        hb = _lstm_dir_ref(h, lp['wih_b'], lp['whh_b'], lp['b_b'], True)
        out = jnp.concatenate([hf, hb], axis=-1)
        mean = jnp.mean(out, axis=-1, keepdims=True)
        var = jnp.mean((out - mean) ** 2, axis=-1, keepdims=True)
        h = (out - mean) * lax.rsqrt(var + LN_EPS) * lp['gamma'] + lp['beta']
    return jnp.einsum('bsd,nd->bsn', h, params['w_out']) + params['b_out']


# ------------------------------------ main -----------------------------------

if __name__ == "__main__":
    key = jax.random.PRNGKey(0)
    pkey, xkey = jax.random.split(key)
    params = init_params(pkey)

    B, S = 2, 8
    x = jax.random.normal(xkey, (B, S, NX), jnp.float32)

    out = jax.jit(rnn_new_forward)(params, x)
    out = jax.block_until_ready(out)
    assert out.shape == (B, S, NY)

    ref = reference_forward(params, x)
    np.testing.assert_allclose(np.asarray(out), np.asarray(ref),
                               atol=1e-2, rtol=1e-2)
    print("KERNEL_OK")
</pallas_src>

<mosaic_0001>
module attributes {stable_mosaic.version = 11 : i64} {
  func.func @rnn_fused_kernel(%arg0: i32, %arg1: memref<8x8x4xf32, #tpu.memory_space<vmem>>, %arg2: memref<4x512xf32, #tpu.memory_space<vmem>>, %arg3: memref<4x512xf32, #tpu.memory_space<vmem>>, %arg4: memref<1x1x512xf32, #tpu.memory_space<vmem>>, %arg5: memref<1x1x512xf32, #tpu.memory_space<vmem>>, %arg6: memref<128x512xf32, #tpu.memory_space<vmem>>, %arg7: memref<1x1x128xf32, #tpu.memory_space<vmem>>, %arg8: memref<1x1x128xf32, #tpu.memory_space<vmem>>, %arg9: memref<128x512xf32, #tpu.memory_space<vmem>>, %arg10: memref<128x512xf32, #tpu.memory_space<vmem>>, %arg11: memref<1x1x512xf32, #tpu.memory_space<vmem>>, %arg12: memref<1x1x512xf32, #tpu.memory_space<vmem>>, %arg13: memref<128x512xf32, #tpu.memory_space<vmem>>, %arg14: memref<1x1x128xf32, #tpu.memory_space<vmem>>, %arg15: memref<1x1x128xf32, #tpu.memory_space<vmem>>, %arg16: memref<1x128xf32, #tpu.memory_space<vmem>>, %arg17: memref<1x1xf32, #tpu.memory_space<vmem>>, %arg18: memref<1x8x8xf32, #tpu.memory_space<vmem>>, %arg19: memref<8x8x128xf32, #tpu.memory_space<vmem>>) attributes {dimension_semantics = [#tpu.dimension_semantics<parallel>], iteration_bounds = array<i64: 1>, scalar_prefetch = 0 : i64, scratch_operands = 1 : i64, tpu.core_type = #tpu.core_type<tc>, window_params = [{transform_indices = @transform_0, window_bounds = array<i64: 8, 8, 4>}, {pipeline_mode = #tpu.pipeline_mode<synchronous>, transform_indices = @transform_1, window_bounds = array<i64: 4, 512>}, {pipeline_mode = #tpu.pipeline_mode<synchronous>, transform_indices = @transform_2, window_bounds = array<i64: 4, 512>}, {pipeline_mode = #tpu.pipeline_mode<synchronous>, transform_indices = @transform_3, window_bounds = array<i64: 1, 1, 512>}, {pipeline_mode = #tpu.pipeline_mode<synchronous>, transform_indices = @transform_4, window_bounds = array<i64: 1, 1, 512>}, {pipeline_mode = #tpu.pipeline_mode<synchronous>, transform_indices = @transform_5, window_bounds = array<i64: 128, 512>}, {pipeline_mode = #tpu.pipeline_mode<synchronous>, transform_indices = @transform_6, window_bounds = array<i64: 1, 1, 128>}, {pipeline_mode = #tpu.pipeline_mode<synchronous>, transform_indices = @transform_7, window_bounds = array<i64: 1, 1, 128>}, {pipeline_mode = #tpu.pipeline_mode<synchronous>, transform_indices = @transform_8, window_bounds = array<i64: 128, 512>}, {pipeline_mode = #tpu.pipeline_mode<synchronous>, transform_indices = @transform_9, window_bounds = array<i64: 128, 512>}, {pipeline_mode = #tpu.pipeline_mode<synchronous>, transform_indices = @transform_10, window_bounds = array<i64: 1, 1, 512>}, {pipeline_mode = #tpu.pipeline_mode<synchronous>, transform_indices = @transform_11, window_bounds = array<i64: 1, 1, 512>}, {pipeline_mode = #tpu.pipeline_mode<synchronous>, transform_indices = @transform_12, window_bounds = array<i64: 128, 512>}, {pipeline_mode = #tpu.pipeline_mode<synchronous>, transform_indices = @transform_13, window_bounds = array<i64: 1, 1, 128>}, {pipeline_mode = #tpu.pipeline_mode<synchronous>, transform_indices = @transform_14, window_bounds = array<i64: 1, 1, 128>}, {pipeline_mode = #tpu.pipeline_mode<synchronous>, transform_indices = @transform_15, window_bounds = array<i64: 1, 128>}, {pipeline_mode = #tpu.pipeline_mode<synchronous>, transform_indices = @transform_16, window_bounds = array<i64: 1, 1>}, {transform_indices = @transform_17, window_bounds = array<i64: 1, 8, 8>}]} {
    %c0 = arith.constant 0 : index
    %c0_0 = arith.constant 0 : index
    %c0_1 = arith.constant 0 : index
    %0 = vector.load %arg1[%c0, %c0_0, %c0_1] : memref<8x8x4xf32, #tpu.memory_space<vmem>>, vector<8x8x4xf32>
    %1 = vector.extract_strided_slice %0 {offsets = [0, 0, 0], sizes = [8, 8, 1], strides = [1, 1, 1]} : vector<8x8x4xf32> to vector<8x8x1xf32>
    %2 = vector.shape_cast %1 : vector<8x8x1xf32> to vector<8x8xf32>
    %3 = vector.extract_strided_slice %2 {offsets = [0, 0], sizes = [1, 8], strides = [1, 1]} : vector<8x8xf32> to vector<1x8xf32>
    %4 = vector.broadcast %3 : vector<1x8xf32> to vector<8x8xf32>
    %5 = arith.subf %2, %4 : vector<8x8xf32>
    %6 = math.absf %5 : vector<8x8xf32>
    %cst = arith.constant 0.000000e+00 : f32
    %7 = vector.broadcast %cst : f32 to vector<8x8xf32>
    %8 = arith.subf %7, %6 : vector<8x8xf32>
    %cst_2 = arith.constant 2.000000e+01 : f32
    %9 = vector.broadcast %cst_2 : f32 to vector<8x8xf32>
    %10 = arith.mulf %8, %9 : vector<8x8xf32>
    %cst_3 = arith.constant 5.000000e-01 : f32
    %11 = vector.broadcast %cst_3 : f32 to vector<8x8xf32>
    %12 = arith.mulf %11, %10 : vector<8x8xf32>
    %13 = math.tanh %12 : vector<8x8xf32>
    %cst_4 = arith.constant 5.000000e-01 : f32
    %14 = vector.broadcast %cst_4 : f32 to vector<8x8xf32>
    %15 = arith.mulf %14, %13 : vector<8x8xf32>
    %cst_5 = arith.constant 5.000000e-01 : f32
    %16 = vector.broadcast %cst_5 : f32 to vector<8x8xf32>
    %17 = arith.addf %15, %16 : vector<8x8xf32>
    %18 = vector.shape_cast %17 : vector<8x8xf32> to vector<8x8x1xf32>
    %19 = vector.extract_strided_slice %0 {offsets = [0, 0, 0], sizes = [1, 8, 4], strides = [1, 1, 1]} : vector<8x8x4xf32> to vector<1x8x4xf32>
    %20 = vector.broadcast %18 : vector<8x8x1xf32> to vector<8x8x4xf32>
    %21 = vector.broadcast %19 : vector<1x8x4xf32> to vector<8x8x4xf32>
    %22 = arith.mulf %20, %21 : vector<8x8x4xf32>
    %23 = vector.extract_strided_slice %2 {offsets = [1, 0], sizes = [1, 8], strides = [1, 1]} : vector<8x8xf32> to vector<1x8xf32>
    %24 = vector.broadcast %23 : vector<1x8xf32> to vector<8x8xf32>
    %25 = arith.subf %2, %24 : vector<8x8xf32>
    %26 = math.absf %25 : vector<8x8xf32>
    %cst_6 = arith.constant 0.000000e+00 : f32
    %27 = vector.broadcast %cst_6 : f32 to vector<8x8xf32>
    %28 = arith.subf %27, %26 : vector<8x8xf32>
    %cst_7 = arith.constant 2.000000e+01 : f32
    %29 = vector.broadcast %cst_7 : f32 to vector<8x8xf32>
    %30 = arith.mulf %28, %29 : vector<8x8xf32>
    %cst_8 = arith.constant 5.000000e-01 : f32
    %31 = vector.broadcast %cst_8 : f32 to vector<8x8xf32>
    %32 = arith.mulf %31, %30 : vector<8x8xf32>
    %33 = math.tanh %32 : vector<8x8xf32>
    %cst_9 = arith.constant 5.000000e-01 : f32
    %34 = vector.broadcast %cst_9 : f32 to vector<8x8xf32>
    %35 = arith.mulf %34, %33 : vector<8x8xf32>
    %cst_10 = arith.constant 5.000000e-01 : f32
    %36 = vector.broadcast %cst_10 : f32 to vector<8x8xf32>
    %37 = arith.addf %35, %36 : vector<8x8xf32>
    %38 = vector.shape_cast %37 : vector<8x8xf32> to vector<8x8x1xf32>
    %39 = vector.extract_strided_slice %0 {offsets = [1, 0, 0], sizes = [1, 8, 4], strides = [1, 1, 1]} : vector<8x8x4xf32> to vector<1x8x4xf32>
    %40 = vector.broadcast %38 : vector<8x8x1xf32> to vector<8x8x4xf32>
    %41 = vector.broadcast %39 : vector<1x8x4xf32> to vector<8x8x4xf32>
    %42 = arith.mulf %40, %41 : vector<8x8x4xf32>
    %43 = arith.addf %22, %42 : vector<8x8x4xf32>
    %44 = vector.extract_strided_slice %2 {offsets = [2, 0], sizes = [1, 8], strides = [1, 1]} : vector<8x8xf32> to vector<1x8xf32>
    %45 = vector.broadcast %44 : vector<1x8xf32> to vector<8x8xf32>
    %46 = arith.subf %2, %45 : vector<8x8xf32>
    %47 = math.absf %46 : vector<8x8xf32>
    %cst_11 = arith.constant 0.000000e+00 : f32
    %48 = vector.broadcast %cst_11 : f32 to vector<8x8xf32>
    %49 = arith.subf %48, %47 : vector<8x8xf32>
    %cst_12 = arith.constant 2.000000e+01 : f32
    %50 = vector.broadcast %cst_12 : f32 to vector<8x8xf32>
    %51 = arith.mulf %49, %50 : vector<8x8xf32>
    %cst_13 = arith.constant 5.000000e-01 : f32
    %52 = vector.broadcast %cst_13 : f32 to vector<8x8xf32>
    %53 = arith.mulf %52, %51 : vector<8x8xf32>
    %54 = math.tanh %53 : vector<8x8xf32>
    %cst_14 = arith.constant 5.000000e-01 : f32
    %55 = vector.broadcast %cst_14 : f32 to vector<8x8xf32>
    %56 = arith.mulf %55, %54 : vector<8x8xf32>
    %cst_15 = arith.constant 5.000000e-01 : f32
    %57 = vector.broadcast %cst_15 : f32 to vector<8x8xf32>
    %58 = arith.addf %56, %57 : vector<8x8xf32>
    %59 = vector.shape_cast %58 : vector<8x8xf32> to vector<8x8x1xf32>
    %60 = vector.extract_strided_slice %0 {offsets = [2, 0, 0], sizes = [1, 8, 4], strides = [1, 1, 1]} : vector<8x8x4xf32> to vector<1x8x4xf32>
    %61 = vector.broadcast %59 : vector<8x8x1xf32> to vector<8x8x4xf32>
    %62 = vector.broadcast %60 : vector<1x8x4xf32> to vector<8x8x4xf32>
    %63 = arith.mulf %61, %62 : vector<8x8x4xf32>
    %64 = arith.addf %43, %63 : vector<8x8x4xf32>
    %65 = vector.extract_strided_slice %2 {offsets = [3, 0], sizes = [1, 8], strides = [1, 1]} : vector<8x8xf32> to vector<1x8xf32>
    %66 = vector.broadcast %65 : vector<1x8xf32> to vector<8x8xf32>
    %67 = arith.subf %2, %66 : vector<8x8xf32>
    %68 = math.absf %67 : vector<8x8xf32>
    %cst_16 = arith.constant 0.000000e+00 : f32
    %69 = vector.broadcast %cst_16 : f32 to vector<8x8xf32>
    %70 = arith.subf %69, %68 : vector<8x8xf32>
    %cst_17 = arith.constant 2.000000e+01 : f32
    %71 = vector.broadcast %cst_17 : f32 to vector<8x8xf32>
    %72 = arith.mulf %70, %71 : vector<8x8xf32>
    %cst_18 = arith.constant 5.000000e-01 : f32
    %73 = vector.broadcast %cst_18 : f32 to vector<8x8xf32>
    %74 = arith.mulf %73, %72 : vector<8x8xf32>
    %75 = math.tanh %74 : vector<8x8xf32>
    %cst_19 = arith.constant 5.000000e-01 : f32
    %76 = vector.broadcast %cst_19 : f32 to vector<8x8xf32>
    %77 = arith.mulf %76, %75 : vector<8x8xf32>
    %cst_20 = arith.constant 5.000000e-01 : f32
    %78 = vector.broadcast %cst_20 : f32 to vector<8x8xf32>
    %79 = arith.addf %77, %78 : vector<8x8xf32>
    %80 = vector.shape_cast %79 : vector<8x8xf32> to vector<8x8x1xf32>
    %81 = vector.extract_strided_slice %0 {offsets = [3, 0, 0], sizes = [1, 8, 4], strides = [1, 1, 1]} : vector<8x8x4xf32> to vector<1x8x4xf32>
    %82 = vector.broadcast %80 : vector<8x8x1xf32> to vector<8x8x4xf32>
    %83 = vector.broadcast %81 : vector<1x8x4xf32> to vector<8x8x4xf32>
    %84 = arith.mulf %82, %83 : vector<8x8x4xf32>
    %85 = arith.addf %64, %84 : vector<8x8x4xf32>
    %86 = vector.extract_strided_slice %2 {offsets = [4, 0], sizes = [1, 8], strides = [1, 1]} : vector<8x8xf32> to vector<1x8xf32>
    %87 = vector.broadcast %86 : vector<1x8xf32> to vector<8x8xf32>
    %88 = arith.subf %2, %87 : vector<8x8xf32>
    %89 = math.absf %88 : vector<8x8xf32>
    %cst_21 = arith.constant 0.000000e+00 : f32
    %90 = vector.broadcast %cst_21 : f32 to vector<8x8xf32>
    %91 = arith.subf %90, %89 : vector<8x8xf32>
    %cst_22 = arith.constant 2.000000e+01 : f32
    %92 = vector.broadcast %cst_22 : f32 to vector<8x8xf32>
    %93 = arith.mulf %91, %92 : vector<8x8xf32>
    %cst_23 = arith.constant 5.000000e-01 : f32
    %94 = vector.broadcast %cst_23 : f32 to vector<8x8xf32>
    %95 = arith.mulf %94, %93 : vector<8x8xf32>
    %96 = math.tanh %95 : vector<8x8xf32>
    %cst_24 = arith.constant 5.000000e-01 : f32
    %97 = vector.broadcast %cst_24 : f32 to vector<8x8xf32>
    %98 = arith.mulf %97, %96 : vector<8x8xf32>
    %cst_25 = arith.constant 5.000000e-01 : f32
    %99 = vector.broadcast %cst_25 : f32 to vector<8x8xf32>
    %100 = arith.addf %98, %99 : vector<8x8xf32>
    %101 = vector.shape_cast %100 : vector<8x8xf32> to vector<8x8x1xf32>
    %102 = vector.extract_strided_slice %0 {offsets = [4, 0, 0], sizes = [1, 8, 4], strides = [1, 1, 1]} : vector<8x8x4xf32> to vector<1x8x4xf32>
    %103 = vector.broadcast %101 : vector<8x8x1xf32> to vector<8x8x4xf32>
    %104 = vector.broadcast %102 : vector<1x8x4xf32> to vector<8x8x4xf32>
    %105 = arith.mulf %103, %104 : vector<8x8x4xf32>
    %106 = arith.addf %85, %105 : vector<8x8x4xf32>
    %107 = vector.extract_strided_slice %2 {offsets = [5, 0], sizes = [1, 8], strides = [1, 1]} : vector<8x8xf32> to vector<1x8xf32>
    %108 = vector.broadcast %107 : vector<1x8xf32> to vector<8x8xf32>
    %109 = arith.subf %2, %108 : vector<8x8xf32>
    %110 = math.absf %109 : vector<8x8xf32>
    %cst_26 = arith.constant 0.000000e+00 : f32
    %111 = vector.broadcast %cst_26 : f32 to vector<8x8xf32>
    %112 = arith.subf %111, %110 : vector<8x8xf32>
    %cst_27 = arith.constant 2.000000e+01 : f32
    %113 = vector.broadcast %cst_27 : f32 to vector<8x8xf32>
    %114 = arith.mulf %112, %113 : vector<8x8xf32>
    %cst_28 = arith.constant 5.000000e-01 : f32
    %115 = vector.broadcast %cst_28 : f32 to vector<8x8xf32>
    %116 = arith.mulf %115, %114 : vector<8x8xf32>
    %117 = math.tanh %116 : vector<8x8xf32>
    %cst_29 = arith.constant 5.000000e-01 : f32
    %118 = vector.broadcast %cst_29 : f32 to vector<8x8xf32>
    %119 = arith.mulf %118, %117 : vector<8x8xf32>
    %cst_30 = arith.constant 5.000000e-01 : f32
    %120 = vector.broadcast %cst_30 : f32 to vector<8x8xf32>
    %121 = arith.addf %119, %120 : vector<8x8xf32>
    %122 = vector.shape_cast %121 : vector<8x8xf32> to vector<8x8x1xf32>
    %123 = vector.extract_strided_slice %0 {offsets = [5, 0, 0], sizes = [1, 8, 4], strides = [1, 1, 1]} : vector<8x8x4xf32> to vector<1x8x4xf32>
    %124 = vector.broadcast %122 : vector<8x8x1xf32> to vector<8x8x4xf32>
    %125 = vector.broadcast %123 : vector<1x8x4xf32> to vector<8x8x4xf32>
    %126 = arith.mulf %124, %125 : vector<8x8x4xf32>
    %127 = arith.addf %106, %126 : vector<8x8x4xf32>
    %128 = vector.extract_strided_slice %2 {offsets = [6, 0], sizes = [1, 8], strides = [1, 1]} : vector<8x8xf32> to vector<1x8xf32>
    %129 = vector.broadcast %128 : vector<1x8xf32> to vector<8x8xf32>
    %130 = arith.subf %2, %129 : vector<8x8xf32>
    %131 = math.absf %130 : vector<8x8xf32>
    %cst_31 = arith.constant 0.000000e+00 : f32
    %132 = vector.broadcast %cst_31 : f32 to vector<8x8xf32>
    %133 = arith.subf %132, %131 : vector<8x8xf32>
    %cst_32 = arith.constant 2.000000e+01 : f32
    %134 = vector.broadcast %cst_32 : f32 to vector<8x8xf32>
    %135 = arith.mulf %133, %134 : vector<8x8xf32>
    %cst_33 = arith.constant 5.000000e-01 : f32
    %136 = vector.broadcast %cst_33 : f32 to vector<8x8xf32>
    %137 = arith.mulf %136, %135 : vector<8x8xf32>
    %138 = math.tanh %137 : vector<8x8xf32>
    %cst_34 = arith.constant 5.000000e-01 : f32
    %139 = vector.broadcast %cst_34 : f32 to vector<8x8xf32>
    %140 = arith.mulf %139, %138 : vector<8x8xf32>
    %cst_35 = arith.constant 5.000000e-01 : f32
    %141 = vector.broadcast %cst_35 : f32 to vector<8x8xf32>
    %142 = arith.addf %140, %141 : vector<8x8xf32>
    %143 = vector.shape_cast %142 : vector<8x8xf32> to vector<8x8x1xf32>
    %144 = vector.extract_strided_slice %0 {offsets = [6, 0, 0], sizes = [1, 8, 4], strides = [1, 1, 1]} : vector<8x8x4xf32> to vector<1x8x4xf32>
    %145 = vector.broadcast %143 : vector<8x8x1xf32> to vector<8x8x4xf32>
    %146 = vector.broadcast %144 : vector<1x8x4xf32> to vector<8x8x4xf32>
    %147 = arith.mulf %145, %146 : vector<8x8x4xf32>
    %148 = arith.addf %127, %147 : vector<8x8x4xf32>
    %149 = vector.extract_strided_slice %2 {offsets = [7, 0], sizes = [1, 8], strides = [1, 1]} : vector<8x8xf32> to vector<1x8xf32>
    %150 = vector.broadcast %149 : vector<1x8xf32> to vector<8x8xf32>
    %151 = arith.subf %2, %150 : vector<8x8xf32>
    %152 = math.absf %151 : vector<8x8xf32>
    %cst_36 = arith.constant 0.000000e+00 : f32
    %153 = vector.broadcast %cst_36 : f32 to vector<8x8xf32>
    %154 = arith.subf %153, %152 : vector<8x8xf32>
    %cst_37 = arith.constant 2.000000e+01 : f32
    %155 = vector.broadcast %cst_37 : f32 to vector<8x8xf32>
    %156 = arith.mulf %154, %155 : vector<8x8xf32>
    %cst_38 = arith.constant 5.000000e-01 : f32
    %157 = vector.broadcast %cst_38 : f32 to vector<8x8xf32>
    %158 = arith.mulf %157, %156 : vector<8x8xf32>
    %159 = math.tanh %158 : vector<8x8xf32>
    %cst_39 = arith.constant 5.000000e-01 : f32
    %160 = vector.broadcast %cst_39 : f32 to vector<8x8xf32>
    %161 = arith.mulf %160, %159 : vector<8x8xf32>
    %cst_40 = arith.constant 5.000000e-01 : f32
    %162 = vector.broadcast %cst_40 : f32 to vector<8x8xf32>
    %163 = arith.addf %161, %162 : vector<8x8xf32>
    %164 = vector.shape_cast %163 : vector<8x8xf32> to vector<8x8x1xf32>
    %165 = vector.extract_strided_slice %0 {offsets = [7, 0, 0], sizes = [1, 8, 4], strides = [1, 1, 1]} : vector<8x8x4xf32> to vector<1x8x4xf32>
    %166 = vector.broadcast %164 : vector<8x8x1xf32> to vector<8x8x4xf32>
    %167 = vector.broadcast %165 : vector<1x8x4xf32> to vector<8x8x4xf32>
    %168 = arith.mulf %166, %167 : vector<8x8x4xf32>
    %169 = arith.addf %148, %168 : vector<8x8x4xf32>
    %c0_41 = arith.constant 0 : index
    %c0_42 = arith.constant 0 : index
    %c0_43 = arith.constant 0 : index
    %170 = vector.load %arg4[%c0_41, %c0_42, %c0_43] : memref<1x1x512xf32, #tpu.memory_space<vmem>>, vector<1x1x512xf32>
    %c0_44 = arith.constant 0 : index
    %c0_45 = arith.constant 0 : index
    %c0_46 = arith.constant 0 : index
    %171 = vector.load %arg5[%c0_44, %c0_45, %c0_46] : memref<1x1x512xf32, #tpu.memory_space<vmem>>, vector<1x1x512xf32>
    %172 = vector.extract_strided_slice %169 {offsets = [0, 0, 0], sizes = [8, 8, 1], strides = [1, 1, 1]} : vector<8x8x4xf32> to vector<8x8x1xf32>
    %c0_47 = arith.constant 0 : index
    %c0_48 = arith.constant 0 : index
    %173 = vector.load %arg2[%c0_47, %c0_48] : memref<4x512xf32, #tpu.memory_space<vmem>>, vector<1x512xf32>
    %174 = vector.shape_cast %173 : vector<1x512xf32> to vector<1x1x512xf32>
    %175 = vector.broadcast %172 : vector<8x8x1xf32> to vector<8x8x512xf32>
    %176 = vector.broadcast %174 : vector<1x1x512xf32> to vector<8x8x512xf32>
    %177 = arith.mulf %175, %176 : vector<8x8x512xf32>
    %178 = vector.broadcast %170 : vector<1x1x512xf32> to vector<8x8x512xf32>
    %179 = arith.addf %178, %177 : vector<8x8x512xf32>
    %c0_49 = arith.constant 0 : index
    %c0_50 = arith.constant 0 : index
    %180 = vector.load %arg3[%c0_49, %c0_50] : memref<4x512xf32, #tpu.memory_space<vmem>>, vector<1x512xf32>
    %181 = vector.shape_cast %180 : vector<1x512xf32> to vector<1x1x512xf32>
    %182 = vector.broadcast %172 : vector<8x8x1xf32> to vector<8x8x512xf32>
    %183 = vector.broadcast %181 : vector<1x1x512xf32> to vector<8x8x512xf32>
    %184 = arith.mulf %182, %183 : vector<8x8x512xf32>
    %185 = vector.broadcast %171 : vector<1x1x512xf32> to vector<8x8x512xf32>
    %186 = arith.addf %185, %184 : vector<8x8x512xf32>
    %187 = vector.extract_strided_slice %169 {offsets = [0, 0, 1], sizes = [8, 8, 1], strides = [1, 1, 1]} : vector<8x8x4xf32> to vector<8x8x1xf32>
    %c1 = arith.constant 1 : index
    %c0_51 = arith.constant 0 : index
    %188 = vector.load %arg2[%c1, %c0_51] : memref<4x512xf32, #tpu.memory_space<vmem>>, vector<1x512xf32>
    %189 = vector.shape_cast %188 : vector<1x512xf32> to vector<1x1x512xf32>
    %190 = vector.broadcast %187 : vector<8x8x1xf32> to vector<8x8x512xf32>
    %191 = vector.broadcast %189 : vector<1x1x512xf32> to vector<8x8x512xf32>
    %192 = arith.mulf %190, %191 : vector<8x8x512xf32>
    %193 = arith.addf %179, %192 : vector<8x8x512xf32>
    %c1_52 = arith.constant 1 : index
    %c0_53 = arith.constant 0 : index
    %194 = vector.load %arg3[%c1_52, %c0_53] : memref<4x512xf32, #tpu.memory_space<vmem>>, vector<1x512xf32>
    %195 = vector.shape_cast %194 : vector<1x512xf32> to vector<1x1x512xf32>
    %196 = vector.broadcast %187 : vector<8x8x1xf32> to vector<8x8x512xf32>
    %197 = vector.broadcast %195 : vector<1x1x512xf32> to vector<8x8x512xf32>
    %198 = arith.mulf %196, %197 : vector<8x8x512xf32>
    %199 = arith.addf %186, %198 : vector<8x8x512xf32>
    %200 = vector.extract_strided_slice %169 {offsets = [0, 0, 2], sizes = [8, 8, 1], strides = [1, 1, 1]} : vector<8x8x4xf32> to vector<8x8x1xf32>
    %c2 = arith.constant 2 : index
    %c0_54 = arith.constant 0 : index
    %201 = vector.load %arg2[%c2, %c0_54] : memref<4x512xf32, #tpu.memory_space<vmem>>, vector<1x512xf32>
    %202 = vector.shape_cast %201 : vector<1x512xf32> to vector<1x1x512xf32>
    %203 = vector.broadcast %200 : vector<8x8x1xf32> to vector<8x8x512xf32>
    %204 = vector.broadcast %202 : vector<1x1x512xf32> to vector<8x8x512xf32>
    %205 = arith.mulf %203, %204 : vector<8x8x512xf32>
    %206 = arith.addf %193, %205 : vector<8x8x512xf32>
    %c2_55 = arith.constant 2 : index
    %c0_56 = arith.constant 0 : index
    %207 = vector.load %arg3[%c2_55, %c0_56] : memref<4x512xf32, #tpu.memory_space<vmem>>, vector<1x512xf32>
    %208 = vector.shape_cast %207 : vector<1x512xf32> to vector<1x1x512xf32>
    %209 = vector.broadcast %200 : vector<8x8x1xf32> to vector<8x8x512xf32>
    %210 = vector.broadcast %208 : vector<1x1x512xf32> to vector<8x8x512xf32>
    %211 = arith.mulf %209, %210 : vector<8x8x512xf32>
    %212 = arith.addf %199, %211 : vector<8x8x512xf32>
    %213 = vector.extract_strided_slice %169 {offsets = [0, 0, 3], sizes = [8, 8, 1], strides = [1, 1, 1]} : vector<8x8x4xf32> to vector<8x8x1xf32>
    %c3 = arith.constant 3 : index
    %c0_57 = arith.constant 0 : index
    %214 = vector.load %arg2[%c3, %c0_57] : memref<4x512xf32, #tpu.memory_space<vmem>>, vector<1x512xf32>
    %215 = vector.shape_cast %214 : vector<1x512xf32> to vector<1x1x512xf32>
    %216 = vector.broadcast %213 : vector<8x8x1xf32> to vector<8x8x512xf32>
    %217 = vector.broadcast %215 : vector<1x1x512xf32> to vector<8x8x512xf32>
    %218 = arith.mulf %216, %217 : vector<8x8x512xf32>
    %219 = arith.addf %206, %218 : vector<8x8x512xf32>
    %c3_58 = arith.constant 3 : index
    %c0_59 = arith.constant 0 : index
    %220 = vector.load %arg3[%c3_58, %c0_59] : memref<4x512xf32, #tpu.memory_space<vmem>>, vector<1x512xf32>
    %221 = vector.shape_cast %220 : vector<1x512xf32> to vector<1x1x512xf32>
    %222 = vector.broadcast %213 : vector<8x8x1xf32> to vector<8x8x512xf32>
    %223 = vector.broadcast %221 : vector<1x1x512xf32> to vector<8x8x512xf32>
    %224 = arith.mulf %222, %223 : vector<8x8x512xf32>
    %225 = arith.addf %212, %224 : vector<8x8x512xf32>
    %226 = vector.extract_strided_slice %219 {offsets = [0, 0, 0], sizes = [1, 8, 512], strides = [1, 1, 1]} : vector<8x8x512xf32> to vector<1x8x512xf32>
    %227 = vector.shape_cast %226 : vector<1x8x512xf32> to vector<8x512xf32>
    %228 = vector.extract_strided_slice %225 {offsets = [7, 0, 0], sizes = [1, 8, 512], strides = [1, 1, 1]} : vector<8x8x512xf32> to vector<1x8x512xf32>
    %229 = vector.shape_cast %228 : vector<1x8x512xf32> to vector<8x512xf32>
    %230 = arith.addf %227, %229 : vector<8x512xf32>
    %231 = vector.extract_strided_slice %219 {offsets = [1, 0, 0], sizes = [1, 8, 512], strides = [1, 1, 1]} : vector<8x8x512xf32> to vector<1x8x512xf32>
    %232 = vector.shape_cast %231 : vector<1x8x512xf32> to vector<8x512xf32>
    %233 = vector.extract_strided_slice %225 {offsets = [6, 0, 0], sizes = [1, 8, 512], strides = [1, 1, 1]} : vector<8x8x512xf32> to vector<1x8x512xf32>
    %234 = vector.shape_cast %233 : vector<1x8x512xf32> to vector<8x512xf32>
    %235 = arith.addf %232, %234 : vector<8x512xf32>
    %236 = vector.extract_strided_slice %219 {offsets = [2, 0, 0], sizes = [1, 8, 512], strides = [1, 1, 1]} : vector<8x8x512xf32> to vector<1x8x512xf32>
    %237 = vector.shape_cast %236 : vector<1x8x512xf32> to vector<8x512xf32>
    %238 = vector.extract_strided_slice %225 {offsets = [5, 0, 0], sizes = [1, 8, 512], strides = [1, 1, 1]} : vector<8x8x512xf32> to vector<1x8x512xf32>
    %239 = vector.shape_cast %238 : vector<1x8x512xf32> to vector<8x512xf32>
    %240 = arith.addf %237, %239 : vector<8x512xf32>
    %241 = vector.extract_strided_slice %219 {offsets = [3, 0, 0], sizes = [1, 8, 512], strides = [1, 1, 1]} : vector<8x8x512xf32> to vector<1x8x512xf32>
    %242 = vector.shape_cast %241 : vector<1x8x512xf32> to vector<8x512xf32>
    %243 = vector.extract_strided_slice %225 {offsets = [4, 0, 0], sizes = [1, 8, 512], strides = [1, 1, 1]} : vector<8x8x512xf32> to vector<1x8x512xf32>
    %244 = vector.shape_cast %243 : vector<1x8x512xf32> to vector<8x512xf32>
    %245 = arith.addf %242, %244 : vector<8x512xf32>
    %246 = vector.extract_strided_slice %219 {offsets = [4, 0, 0], sizes = [1, 8, 512], strides = [1, 1, 1]} : vector<8x8x512xf32> to vector<1x8x512xf32>
    %247 = vector.shape_cast %246 : vector<1x8x512xf32> to vector<8x512xf32>
    %248 = vector.extract_strided_slice %225 {offsets = [3, 0, 0], sizes = [1, 8, 512], strides = [1, 1, 1]} : vector<8x8x512xf32> to vector<1x8x512xf32>
    %249 = vector.shape_cast %248 : vector<1x8x512xf32> to vector<8x512xf32>
    %250 = arith.addf %247, %249 : vector<8x512xf32>
    %251 = vector.extract_strided_slice %219 {offsets = [5, 0, 0], sizes = [1, 8, 512], strides = [1, 1, 1]} : vector<8x8x512xf32> to vector<1x8x512xf32>
    %252 = vector.shape_cast %251 : vector<1x8x512xf32> to vector<8x512xf32>
    %253 = vector.extract_strided_slice %225 {offsets = [2, 0, 0], sizes = [1, 8, 512], strides = [1, 1, 1]} : vector<8x8x512xf32> to vector<1x8x512xf32>
    %254 = vector.shape_cast %253 : vector<1x8x512xf32> to vector<8x512xf32>
    %255 = arith.addf %252, %254 : vector<8x512xf32>
    %256 = vector.extract_strided_slice %219 {offsets = [6, 0, 0], sizes = [1, 8, 512], strides = [1, 1, 1]} : vector<8x8x512xf32> to vector<1x8x512xf32>
    %257 = vector.shape_cast %256 : vector<1x8x512xf32> to vector<8x512xf32>
    %258 = vector.extract_strided_slice %225 {offsets = [1, 0, 0], sizes = [1, 8, 512], strides = [1, 1, 1]} : vector<8x8x512xf32> to vector<1x8x512xf32>
    %259 = vector.shape_cast %258 : vector<1x8x512xf32> to vector<8x512xf32>
    %260 = arith.addf %257, %259 : vector<8x512xf32>
    %261 = vector.extract_strided_slice %219 {offsets = [7, 0, 0], sizes = [1, 8, 512], strides = [1, 1, 1]} : vector<8x8x512xf32> to vector<1x8x512xf32>
    %262 = vector.shape_cast %261 : vector<1x8x512xf32> to vector<8x512xf32>
    %263 = vector.extract_strided_slice %225 {offsets = [0, 0, 0], sizes = [1, 8, 512], strides = [1, 1, 1]} : vector<8x8x512xf32> to vector<1x8x512xf32>
    %264 = vector.shape_cast %263 : vector<1x8x512xf32> to vector<8x512xf32>
    %265 = arith.addf %262, %264 : vector<8x512xf32>
    %c0_60 = arith.constant 0 : index
    %c0_61 = arith.constant 0 : index
    %266 = vector.load %arg6[%c0_60, %c0_61] : memref<128x512xf32, #tpu.memory_space<vmem>>, vector<128x512xf32>
    %cst_62 = arith.constant 0.000000e+00 : f32
    %267 = vector.broadcast %cst_62 : f32 to vector<8x128xf32>
    %cst_63 = arith.constant 0.000000e+00 : f32
    %268 = vector.broadcast %cst_63 : f32 to vector<8x128xf32>
    %cst_64 = arith.constant dense<0.000000e+00> : vector<8x512xf32>
    %269 = tpu.matmul %267, %266, %cst_64 {dimension_numbers = #tpu.dot_dimension_numbers<[1], [0], [0], [1], [0, 0, 1, 1], [], []>} : vector<8x128xf32>, vector<128x512xf32>, vector<8x512xf32> -> vector<8x512xf32>
    %270 = arith.addf %230, %269 : vector<8x512xf32>
    %271 = vector.extract_strided_slice %270 {offsets = [0, 0], sizes = [8, 128], strides = [1, 1]} : vector<8x512xf32> to vector<8x128xf32>
    %cst_65 = arith.constant 5.000000e-01 : f32
    %272 = vector.broadcast %cst_65 : f32 to vector<8x128xf32>
    %273 = arith.mulf %272, %271 : vector<8x128xf32>
    %274 = math.tanh %273 : vector<8x128xf32>
    %cst_66 = arith.constant 5.000000e-01 : f32
    %275 = vector.broadcast %cst_66 : f32 to vector<8x128xf32>
    %276 = arith.mulf %275, %274 : vector<8x128xf32>
    %cst_67 = arith.constant 5.000000e-01 : f32
    %277 = vector.broadcast %cst_67 : f32 to vector<8x128xf32>
    %278 = arith.addf %276, %277 : vector<8x128xf32>
    %279 = vector.extract_strided_slice %270 {offsets = [0, 128], sizes = [8, 128], strides = [1, 1]} : vector<8x512xf32> to vector<8x128xf32>
    %cst_68 = arith.constant 5.000000e-01 : f32
    %280 = vector.broadcast %cst_68 : f32 to vector<8x128xf32>
    %281 = arith.mulf %280, %279 : vector<8x128xf32>
    %282 = math.tanh %281 : vector<8x128xf32>
    %cst_69 = arith.constant 5.000000e-01 : f32
    %283 = vector.broadcast %cst_69 : f32 to vector<8x128xf32>
    %284 = arith.mulf %283, %282 : vector<8x128xf32>
    %cst_70 = arith.constant 5.000000e-01 : f32
    %285 = vector.broadcast %cst_70 : f32 to vector<8x128xf32>
    %286 = arith.addf %284, %285 : vector<8x128xf32>
    %287 = vector.extract_strided_slice %270 {offsets = [0, 256], sizes = [8, 128], strides = [1, 1]} : vector<8x512xf32> to vector<8x128xf32>
    %288 = math.tanh %287 : vector<8x128xf32>
    %289 = vector.extract_strided_slice %270 {offsets = [0, 384], sizes = [8, 128], strides = [1, 1]} : vector<8x512xf32> to vector<8x128xf32>
    %cst_71 = arith.constant 5.000000e-01 : f32
    %290 = vector.broadcast %cst_71 : f32 to vector<8x128xf32>
    %291 = arith.mulf %290, %289 : vector<8x128xf32>
    %292 = math.tanh %291 : vector<8x128xf32>
    %cst_72 = arith.constant 5.000000e-01 : f32
    %293 = vector.broadcast %cst_72 : f32 to vector<8x128xf32>
    %294 = arith.mulf %293, %292 : vector<8x128xf32>
    %cst_73 = arith.constant 5.000000e-01 : f32
    %295 = vector.broadcast %cst_73 : f32 to vector<8x128xf32>
    %296 = arith.addf %294, %295 : vector<8x128xf32>
    %297 = arith.mulf %286, %268 : vector<8x128xf32>
    %298 = arith.mulf %278, %288 : vector<8x128xf32>
    %299 = arith.addf %297, %298 : vector<8x128xf32>
    %300 = math.tanh %299 : vector<8x128xf32>
    %301 = arith.mulf %296, %300 : vector<8x128xf32>
    %c0_74 = arith.constant 0 : index
    %c0_75 = arith.constant 0 : index
    %c0_76 = arith.constant 0 : index
    %302 = vector.load %arg19[%c0_74, %c0_75, %c0_76] : memref<8x8x128xf32, #tpu.memory_space<vmem>>, vector<1x8x128xf32>
    %303 = vector.shape_cast %302 : vector<1x8x128xf32> to vector<8x128xf32>
    %304 = vector.shape_cast %301 : vector<8x128xf32> to vector<1x8x128xf32>
    tpu.vector_store %arg19[%c0_74, %c0_75, %c0_76], %304 {strides = array<i32>} : memref<8x8x128xf32, #tpu.memory_space<vmem>>, vector<1x8x128xf32>,
    %cst_77 = arith.constant dense<0.000000e+00> : vector<8x512xf32>
    %305 = tpu.matmul %301, %266, %cst_77 {dimension_numbers = #tpu.dot_dimension_numbers<[1], [0], [0], [1], [0, 0, 1, 1], [], []>} : vector<8x128xf32>, vector<128x512xf32>, vector<8x512xf32> -> vector<8x512xf32>
    %306 = arith.addf %235, %305 : vector<8x512xf32>
    %307 = vector.extract_strided_slice %306 {offsets = [0, 0], sizes = [8, 128], strides = [1, 1]} : vector<8x512xf32> to vector<8x128xf32>
    %cst_78 = arith.constant 5.000000e-01 : f32
    %308 = vector.broadcast %cst_78 : f32 to vector<8x128xf32>
    %309 = arith.mulf %308, %307 : vector<8x128xf32>
    %310 = math.tanh %309 : vector<8x128xf32>
    %cst_79 = arith.constant 5.000000e-01 : f32
    %311 = vector.broadcast %cst_79 : f32 to vector<8x128xf32>
    %312 = arith.mulf %311, %310 : vector<8x128xf32>
    %cst_80 = arith.constant 5.000000e-01 : f32
    %313 = vector.broadcast %cst_80 : f32 to vector<8x128xf32>
    %314 = arith.addf %312, %313 : vector<8x128xf32>
    %315 = vector.extract_strided_slice %306 {offsets = [0, 128], sizes = [8, 128], strides = [1, 1]} : vector<8x512xf32> to vector<8x128xf32>
    %cst_81 = arith.constant 5.000000e-01 : f32
    %316 = vector.broadcast %cst_81 : f32 to vector<8x128xf32>
    %317 = arith.mulf %316, %315 : vector<8x128xf32>
    %318 = math.tanh %317 : vector<8x128xf32>
    %cst_82 = arith.constant 5.000000e-01 : f32
    %319 = vector.broadcast %cst_82 : f32 to vector<8x128xf32>
    %320 = arith.mulf %319, %318 : vector<8x128xf32>
    %cst_83 = arith.constant 5.000000e-01 : f32
    %321 = vector.broadcast %cst_83 : f32 to vector<8x128xf32>
    %322 = arith.addf %320, %321 : vector<8x128xf32>
    %323 = vector.extract_strided_slice %306 {offsets = [0, 256], sizes = [8, 128], strides = [1, 1]} : vector<8x512xf32> to vector<8x128xf32>
    %324 = math.tanh %323 : vector<8x128xf32>
    %325 = vector.extract_strided_slice %306 {offsets = [0, 384], sizes = [8, 128], strides = [1, 1]} : vector<8x512xf32> to vector<8x128xf32>
    %cst_84 = arith.constant 5.000000e-01 : f32
    %326 = vector.broadcast %cst_84 : f32 to vector<8x128xf32>
    %327 = arith.mulf %326, %325 : vector<8x128xf32>
    %328 = math.tanh %327 : vector<8x128xf32>
    %cst_85 = arith.constant 5.000000e-01 : f32
    %329 = vector.broadcast %cst_85 : f32 to vector<8x128xf32>
    %330 = arith.mulf %329, %328 : vector<8x128xf32>
    %cst_86 = arith.constant 5.000000e-01 : f32
    %331 = vector.broadcast %cst_86 : f32 to vector<8x128xf32>
    %332 = arith.addf %330, %331 : vector<8x128xf32>
    %333 = arith.mulf %322, %299 : vector<8x128xf32>
    %334 = arith.mulf %314, %324 : vector<8x128xf32>
    %335 = arith.addf %333, %334 : vector<8x128xf32>
    %336 = math.tanh %335 : vector<8x128xf32>
    %337 = arith.mulf %332, %336 : vector<8x128xf32>
    %c1_87 = arith.constant 1 : index
    %c0_88 = arith.constant 0 : index
    %c0_89 = arith.constant 0 : index
    %338 = vector.load %arg19[%c1_87, %c0_88, %c0_89] : memref<8x8x128xf32, #tpu.memory_space<vmem>>, vector<1x8x128xf32>
    %339 = vector.shape_cast %338 : vector<1x8x128xf32> to vector<8x128xf32>
    %340 = vector.shape_cast %337 : vector<8x128xf32> to vector<1x8x128xf32>
    tpu.vector_store %arg19[%c1_87, %c0_88, %c0_89], %340 {strides = array<i32>} : memref<8x8x128xf32, #tpu.memory_space<vmem>>, vector<1x8x128xf32>,
    %cst_90 = arith.constant dense<0.000000e+00> : vector<8x512xf32>
    %341 = tpu.matmul %337, %266, %cst_90 {dimension_numbers = #tpu.dot_dimension_numbers<[1], [0], [0], [1], [0, 0, 1, 1], [], []>} : vector<8x128xf32>, vector<128x512xf32>, vector<8x512xf32> -> vector<8x512xf32>
    %342 = arith.addf %240, %341 : vector<8x512xf32>
    %343 = vector.extract_strided_slice %342 {offsets = [0, 0], sizes = [8, 128], strides = [1, 1]} : vector<8x512xf32> to vector<8x128xf32>
    %cst_91 = arith.constant 5.000000e-01 : f32
    %344 = vector.broadcast %cst_91 : f32 to vector<8x128xf32>
    %345 = arith.mulf %344, %343 : vector<8x128xf32>
    %346 = math.tanh %345 : vector<8x128xf32>
    %cst_92 = arith.constant 5.000000e-01 : f32
    %347 = vector.broadcast %cst_92 : f32 to vector<8x128xf32>
    %348 = arith.mulf %347, %346 : vector<8x128xf32>
    %cst_93 = arith.constant 5.000000e-01 : f32
    %349 = vector.broadcast %cst_93 : f32 to vector<8x128xf32>
    %350 = arith.addf %348, %349 : vector<8x128xf32>
    %351 = vector.extract_strided_slice %342 {offsets = [0, 128], sizes = [8, 128], strides = [1, 1]} : vector<8x512xf32> to vector<8x128xf32>
    %cst_94 = arith.constant 5.000000e-01 : f32
    %352 = vector.broadcast %cst_94 : f32 to vector<8x128xf32>
    %353 = arith.mulf %352, %351 : vector<8x128xf32>
    %354 = math.tanh %353 : vector<8x128xf32>
    %cst_95 = arith.constant 5.000000e-01 : f32
    %355 = vector.broadcast %cst_95 : f32 to vector<8x128xf32>
    %356 = arith.mulf %355, %354 : vector<8x128xf32>
    %cst_96 = arith.constant 5.000000e-01 : f32
    %357 = vector.broadcast %cst_96 : f32 to vector<8x128xf32>
    %358 = arith.addf %356, %357 : vector<8x128xf32>
    %359 = vector.extract_strided_slice %342 {offsets = [0, 256], sizes = [8, 128], strides = [1, 1]} : vector<8x512xf32> to vector<8x128xf32>
    %360 = math.tanh %359 : vector<8x128xf32>
    %361 = vector.extract_strided_slice %342 {offsets = [0, 384], sizes = [8, 128], strides = [1, 1]} : vector<8x512xf32> to vector<8x128xf32>
    %cst_97 = arith.constant 5.000000e-01 : f32
    %362 = vector.broadcast %cst_97 : f32 to vector<8x128xf32>
    %363 = arith.mulf %362, %361 : vector<8x128xf32>
    %364 = math.tanh %363 : vector<8x128xf32>
    %cst_98 = arith.constant 5.000000e-01 : f32
    %365 = vector.broadcast %cst_98 : f32 to vector<8x128xf32>
    %366 = arith.mulf %365, %364 : vector<8x128xf32>
    %cst_99 = arith.constant 5.000000e-01 : f32
    %367 = vector.broadcast %cst_99 : f32 to vector<8x128xf32>
    %368 = arith.addf %366, %367 : vector<8x128xf32>
    %369 = arith.mulf %358, %335 : vector<8x128xf32>
    %370 = arith.mulf %350, %360 : vector<8x128xf32>
    %371 = arith.addf %369, %370 : vector<8x128xf32>
    %372 = math.tanh %371 : vector<8x128xf32>
    %373 = arith.mulf %368, %372 : vector<8x128xf32>
    %c2_100 = arith.constant 2 : index
    %c0_101 = arith.constant 0 : index
    %c0_102 = arith.constant 0 : index
    %374 = vector.load %arg19[%c2_100, %c0_101, %c0_102] : memref<8x8x128xf32, #tpu.memory_space<vmem>>, vector<1x8x128xf32>
    %375 = vector.shape_cast %374 : vector<1x8x128xf32> to vector<8x128xf32>
    %376 = vector.shape_cast %373 : vector<8x128xf32> to vector<1x8x128xf32>
    tpu.vector_store %arg19[%c2_100, %c0_101, %c0_102], %376 {strides = array<i32>} : memref<8x8x128xf32, #tpu.memory_space<vmem>>, vector<1x8x128xf32>,
    %cst_103 = arith.constant dense<0.000000e+00> : vector<8x512xf32>
    %377 = tpu.matmul %373, %266, %cst_103 {dimension_numbers = #tpu.dot_dimension_numbers<[1], [0], [0], [1], [0, 0, 1, 1], [], []>} : vector<8x128xf32>, vector<128x512xf32>, vector<8x512xf32> -> vector<8x512xf32>
    %378 = arith.addf %245, %377 : vector<8x512xf32>
    %379 = vector.extract_strided_slice %378 {offsets = [0, 0], sizes = [8, 128], strides = [1, 1]} : vector<8x512xf32> to vector<8x128xf32>
    %cst_104 = arith.constant 5.000000e-01 : f32
    %380 = vector.broadcast %cst_104 : f32 to vector<8x128xf32>
    %381 = arith.mulf %380, %379 : vector<8x128xf32>
    %382 = math.tanh %381 : vector<8x128xf32>
    %cst_105 = arith.constant 5.000000e-01 : f32
    %383 = vector.broadcast %cst_105 : f32 to vector<8x128xf32>
    %384 = arith.mulf %383, %382 : vector<8x128xf32>
    %cst_106 = arith.constant 5.000000e-01 : f32
    %385 = vector.broadcast %cst_106 : f32 to vector<8x128xf32>
    %386 = arith.addf %384, %385 : vector<8x128xf32>
    %387 = vector.extract_strided_slice %378 {offsets = [0, 128], sizes = [8, 128], strides = [1, 1]} : vector<8x512xf32> to vector<8x128xf32>
    %cst_107 = arith.constant 5.000000e-01 : f32
    %388 = vector.broadcast %cst_107 : f32 to vector<8x128xf32>
    %389 = arith.mulf %388, %387 : vector<8x128xf32>
    %390 = math.tanh %389 : vector<8x128xf32>
    %cst_108 = arith.constant 5.000000e-01 : f32
    %391 = vector.broadcast %cst_108 : f32 to vector<8x128xf32>
    %392 = arith.mulf %391, %390 : vector<8x128xf32>
    %cst_109 = arith.constant 5.000000e-01 : f32
    %393 = vector.broadcast %cst_109 : f32 to vector<8x128xf32>
    %394 = arith.addf %392, %393 : vector<8x128xf32>
    %395 = vector.extract_strided_slice %378 {offsets = [0, 256], sizes = [8, 128], strides = [1, 1]} : vector<8x512xf32> to vector<8x128xf32>
    %396 = math.tanh %395 : vector<8x128xf32>
    %397 = vector.extract_strided_slice %378 {offsets = [0, 384], sizes = [8, 128], strides = [1, 1]} : vector<8x512xf32> to vector<8x128xf32>
    %cst_110 = arith.constant 5.000000e-01 : f32
    %398 = vector.broadcast %cst_110 : f32 to vector<8x128xf32>
    %399 = arith.mulf %398, %397 : vector<8x128xf32>
    %400 = math.tanh %399 : vector<8x128xf32>
    %cst_111 = arith.constant 5.000000e-01 : f32
    %401 = vector.broadcast %cst_111 : f32 to vector<8x128xf32>
    %402 = arith.mulf %401, %400 : vector<8x128xf32>
    %cst_112 = arith.constant 5.000000e-01 : f32
    %403 = vector.broadcast %cst_112 : f32 to vector<8x128xf32>
    %404 = arith.addf %402, %403 : vector<8x128xf32>
    %405 = arith.mulf %394, %371 : vector<8x128xf32>
    %406 = arith.mulf %386, %396 : vector<8x128xf32>
    %407 = arith.addf %405, %406 : vector<8x128xf32>
    %408 = math.tanh %407 : vector<8x128xf32>
    %409 = arith.mulf %404, %408 : vector<8x128xf32>
    %c3_113 = arith.constant 3 : index
    %c0_114 = arith.constant 0 : index
    %c0_115 = arith.constant 0 : index
    %410 = vector.load %arg19[%c3_113, %c0_114, %c0_115] : memref<8x8x128xf32, #tpu.memory_space<vmem>>, vector<1x8x128xf32>
    %411 = vector.shape_cast %410 : vector<1x8x128xf32> to vector<8x128xf32>
    %412 = vector.shape_cast %409 : vector<8x128xf32> to vector<1x8x128xf32>
    tpu.vector_store %arg19[%c3_113, %c0_114, %c0_115], %412 {strides = array<i32>} : memref<8x8x128xf32, #tpu.memory_space<vmem>>, vector<1x8x128xf32>,
    %cst_116 = arith.constant dense<0.000000e+00> : vector<8x512xf32>
    %413 = tpu.matmul %409, %266, %cst_116 {dimension_numbers = #tpu.dot_dimension_numbers<[1], [0], [0], [1], [0, 0, 1, 1], [], []>} : vector<8x128xf32>, vector<128x512xf32>, vector<8x512xf32> -> vector<8x512xf32>
    %414 = arith.addf %250, %413 : vector<8x512xf32>
    %415 = vector.extract_strided_slice %414 {offsets = [0, 0], sizes = [8, 128], strides = [1, 1]} : vector<8x512xf32> to vector<8x128xf32>
    %cst_117 = arith.constant 5.000000e-01 : f32
    %416 = vector.broadcast %cst_117 : f32 to vector<8x128xf32>
    %417 = arith.mulf %416, %415 : vector<8x128xf32>
    %418 = math.tanh %417 : vector<8x128xf32>
    %cst_118 = arith.constant 5.000000e-01 : f32
    %419 = vector.broadcast %cst_118 : f32 to vector<8x128xf32>
    %420 = arith.mulf %419, %418 : vector<8x128xf32>
    %cst_119 = arith.constant 5.000000e-01 : f32
    %421 = vector.broadcast %cst_119 : f32 to vector<8x128xf32>
    %422 = arith.addf %420, %421 : vector<8x128xf32>
    %423 = vector.extract_strided_slice %414 {offsets = [0, 128], sizes = [8, 128], strides = [1, 1]} : vector<8x512xf32> to vector<8x128xf32>
    %cst_120 = arith.constant 5.000000e-01 : f32
    %424 = vector.broadcast %cst_120 : f32 to vector<8x128xf32>
    %425 = arith.mulf %424, %423 : vector<8x128xf32>
    %426 = math.tanh %425 : vector<8x128xf32>
    %cst_121 = arith.constant 5.000000e-01 : f32
    %427 = vector.broadcast %cst_121 : f32 to vector<8x128xf32>
    %428 = arith.mulf %427, %426 : vector<8x128xf32>
    %cst_122 = arith.constant 5.000000e-01 : f32
    %429 = vector.broadcast %cst_122 : f32 to vector<8x128xf32>
    %430 = arith.addf %428, %429 : vector<8x128xf32>
    %431 = vector.extract_strided_slice %414 {offsets = [0, 256], sizes = [8, 128], strides = [1, 1]} : vector<8x512xf32> to vector<8x128xf32>
    %432 = math.tanh %431 : vector<8x128xf32>
    %433 = vector.extract_strided_slice %414 {offsets = [0, 384], sizes = [8, 128], strides = [1, 1]} : vector<8x512xf32> to vector<8x128xf32>
    %cst_123 = arith.constant 5.000000e-01 : f32
    %434 = vector.broadcast %cst_123 : f32 to vector<8x128xf32>
    %435 = arith.mulf %434, %433 : vector<8x128xf32>
    %436 = math.tanh %435 : vector<8x128xf32>
    %cst_124 = arith.constant 5.000000e-01 : f32
    %437 = vector.broadcast %cst_124 : f32 to vector<8x128xf32>
    %438 = arith.mulf %437, %436 : vector<8x128xf32>
    %cst_125 = arith.constant 5.000000e-01 : f32
    %439 = vector.broadcast %cst_125 : f32 to vector<8x128xf32>
    %440 = arith.addf %438, %439 : vector<8x128xf32>
    %441 = arith.mulf %430, %407 : vector<8x128xf32>
    %442 = arith.mulf %422, %432 : vector<8x128xf32>
    %443 = arith.addf %441, %442 : vector<8x128xf32>
    %444 = math.tanh %443 : vector<8x128xf32>
    %445 = arith.mulf %440, %444 : vector<8x128xf32>
    %c4 = arith.constant 4 : index
    %c0_126 = arith.constant 0 : index
    %c0_127 = arith.constant 0 : index
    %446 = vector.load %arg19[%c4, %c0_126, %c0_127] : memref<8x8x128xf32, #tpu.memory_space<vmem>>, vector<1x8x128xf32>
    %447 = vector.shape_cast %446 : vector<1x8x128xf32> to vector<8x128xf32>
    %448 = vector.shape_cast %445 : vector<8x128xf32> to vector<1x8x128xf32>
    tpu.vector_store %arg19[%c4, %c0_126, %c0_127], %448 {strides = array<i32>} : memref<8x8x128xf32, #tpu.memory_space<vmem>>, vector<1x8x128xf32>,
    %cst_128 = arith.constant dense<0.000000e+00> : vector<8x512xf32>
    %449 = tpu.matmul %445, %266, %cst_128 {dimension_numbers = #tpu.dot_dimension_numbers<[1], [0], [0], [1], [0, 0, 1, 1], [], []>} : vector<8x128xf32>, vector<128x512xf32>, vector<8x512xf32> -> vector<8x512xf32>
    %450 = arith.addf %255, %449 : vector<8x512xf32>
    %451 = vector.extract_strided_slice %450 {offsets = [0, 0], sizes = [8, 128], strides = [1, 1]} : vector<8x512xf32> to vector<8x128xf32>
    %cst_129 = arith.constant 5.000000e-01 : f32
    %452 = vector.broadcast %cst_129 : f32 to vector<8x128xf32>
    %453 = arith.mulf %452, %451 : vector<8x128xf32>
    %454 = math.tanh %453 : vector<8x128xf32>
    %cst_130 = arith.constant 5.000000e-01 : f32
    %455 = vector.broadcast %cst_130 : f32 to vector<8x128xf32>
    %456 = arith.mulf %455, %454 : vector<8x128xf32>
    %cst_131 = arith.constant 5.000000e-01 : f32
    %457 = vector.broadcast %cst_131 : f32 to vector<8x128xf32>
    %458 = arith.addf %456, %457 : vector<8x128xf32>
    %459 = vector.extract_strided_slice %450 {offsets = [0, 128], sizes = [8, 128], strides = [1, 1]} : vector<8x512xf32> to vector<8x128xf32>
    %cst_132 = arith.constant 5.000000e-01 : f32
    %460 = vector.broadcast %cst_132 : f32 to vector<8x128xf32>
    %461 = arith.mulf %460, %459 : vector<8x128xf32>
    %462 = math.tanh %461 : vector<8x128xf32>
    %cst_133 = arith.constant 5.000000e-01 : f32
    %463 = vector.broadcast %cst_133 : f32 to vector<8x128xf32>
    %464 = arith.mulf %463, %462 : vector<8x128xf32>
    %cst_134 = arith.constant 5.000000e-01 : f32
    %465 = vector.broadcast %cst_134 : f32 to vector<8x128xf32>
    %466 = arith.addf %464, %465 : vector<8x128xf32>
    %467 = vector.extract_strided_slice %450 {offsets = [0, 256], sizes = [8, 128], strides = [1, 1]} : vector<8x512xf32> to vector<8x128xf32>
    %468 = math.tanh %467 : vector<8x128xf32>
    %469 = vector.extract_strided_slice %450 {offsets = [0, 384], sizes = [8, 128], strides = [1, 1]} : vector<8x512xf32> to vector<8x128xf32>
    %cst_135 = arith.constant 5.000000e-01 : f32
    %470 = vector.broadcast %cst_135 : f32 to vector<8x128xf32>
    %471 = arith.mulf %470, %469 : vector<8x128xf32>
    %472 = math.tanh %471 : vector<8x128xf32>
    %cst_136 = arith.constant 5.000000e-01 : f32
    %473 = vector.broadcast %cst_136 : f32 to vector<8x128xf32>
    %474 = arith.mulf %473, %472 : vector<8x128xf32>
    %cst_137 = arith.constant 5.000000e-01 : f32
    %475 = vector.broadcast %cst_137 : f32 to vector<8x128xf32>
    %476 = arith.addf %474, %475 : vector<8x128xf32>
    %477 = arith.mulf %466, %443 : vector<8x128xf32>
    %478 = arith.mulf %458, %468 : vector<8x128xf32>
    %479 = arith.addf %477, %478 : vector<8x128xf32>
    %480 = math.tanh %479 : vector<8x128xf32>
    %481 = arith.mulf %476, %480 : vector<8x128xf32>
    %c5 = arith.constant 5 : index
    %c0_138 = arith.constant 0 : index
    %c0_139 = arith.constant 0 : index
    %482 = vector.load %arg19[%c5, %c0_138, %c0_139] : memref<8x8x128xf32, #tpu.memory_space<vmem>>, vector<1x8x128xf32>
    %483 = vector.shape_cast %482 : vector<1x8x128xf32> to vector<8x128xf32>
    %484 = vector.shape_cast %481 : vector<8x128xf32> to vector<1x8x128xf32>
    tpu.vector_store %arg19[%c5, %c0_138, %c0_139], %484 {strides = array<i32>} : memref<8x8x128xf32, #tpu.memory_space<vmem>>, vector<1x8x128xf32>,
    %cst_140 = arith.constant dense<0.000000e+00> : vector<8x512xf32>
    %485 = tpu.matmul %481, %266, %cst_140 {dimension_numbers = #tpu.dot_dimension_numbers<[1], [0], [0], [1], [0, 0, 1, 1], [], []>} : vector<8x128xf32>, vector<128x512xf32>, vector<8x512xf32> -> vector<8x512xf32>
    %486 = arith.addf %260, %485 : vector<8x512xf32>
    %487 = vector.extract_strided_slice %486 {offsets = [0, 0], sizes = [8, 128], strides = [1, 1]} : vector<8x512xf32> to vector<8x128xf32>
    %cst_141 = arith.constant 5.000000e-01 : f32
    %488 = vector.broadcast %cst_141 : f32 to vector<8x128xf32>
    %489 = arith.mulf %488, %487 : vector<8x128xf32>
    %490 = math.tanh %489 : vector<8x128xf32>
    %cst_142 = arith.constant 5.000000e-01 : f32
    %491 = vector.broadcast %cst_142 : f32 to vector<8x128xf32>
    %492 = arith.mulf %491, %490 : vector<8x128xf32>
    %cst_143 = arith.constant 5.000000e-01 : f32
    %493 = vector.broadcast %cst_143 : f32 to vector<8x128xf32>
    %494 = arith.addf %492, %493 : vector<8x128xf32>
    %495 = vector.extract_strided_slice %486 {offsets = [0, 128], sizes = [8, 128], strides = [1, 1]} : vector<8x512xf32> to vector<8x128xf32>
    %cst_144 = arith.constant 5.000000e-01 : f32
    %496 = vector.broadcast %cst_144 : f32 to vector<8x128xf32>
    %497 = arith.mulf %496, %495 : vector<8x128xf32>
    %498 = math.tanh %497 : vector<8x128xf32>
    %cst_145 = arith.constant 5.000000e-01 : f32
    %499 = vector.broadcast %cst_145 : f32 to vector<8x128xf32>
    %500 = arith.mulf %499, %498 : vector<8x128xf32>
    %cst_146 = arith.constant 5.000000e-01 : f32
    %501 = vector.broadcast %cst_146 : f32 to vector<8x128xf32>
    %502 = arith.addf %500, %501 : vector<8x128xf32>
    %503 = vector.extract_strided_slice %486 {offsets = [0, 256], sizes = [8, 128], strides = [1, 1]} : vector<8x512xf32> to vector<8x128xf32>
    %504 = math.tanh %503 : vector<8x128xf32>
    %505 = vector.extract_strided_slice %486 {offsets = [0, 384], sizes = [8, 128], strides = [1, 1]} : vector<8x512xf32> to vector<8x128xf32>
    %cst_147 = arith.constant 5.000000e-01 : f32
    %506 = vector.broadcast %cst_147 : f32 to vector<8x128xf32>
    %507 = arith.mulf %506, %505 : vector<8x128xf32>
    %508 = math.tanh %507 : vector<8x128xf32>
    %cst_148 = arith.constant 5.000000e-01 : f32
    %509 = vector.broadcast %cst_148 : f32 to vector<8x128xf32>
    %510 = arith.mulf %509, %508 : vector<8x128xf32>
    %cst_149 = arith.constant 5.000000e-01 : f32
    %511 = vector.broadcast %cst_149 : f32 to vector<8x128xf32>
    %512 = arith.addf %510, %511 : vector<8x128xf32>
    %513 = arith.mulf %502, %479 : vector<8x128xf32>
    %514 = arith.mulf %494, %504 : vector<8x128xf32>
    %515 = arith.addf %513, %514 : vector<8x128xf32>
    %516 = math.tanh %515 : vector<8x128xf32>
    %517 = arith.mulf %512, %516 : vector<8x128xf32>
    %c6 = arith.constant 6 : index
    %c0_150 = arith.constant 0 : index
    %c0_151 = arith.constant 0 : index
    %518 = vector.load %arg19[%c6, %c0_150, %c0_151] : memref<8x8x128xf32, #tpu.memory_space<vmem>>, vector<1x8x128xf32>
    %519 = vector.shape_cast %518 : vector<1x8x128xf32> to vector<8x128xf32>
    %520 = vector.shape_cast %517 : vector<8x128xf32> to vector<1x8x128xf32>
    tpu.vector_store %arg19[%c6, %c0_150, %c0_151], %520 {strides = array<i32>} : memref<8x8x128xf32, #tpu.memory_space<vmem>>, vector<1x8x128xf32>,
    %cst_152 = arith.constant dense<0.000000e+00> : vector<8x512xf32>
    %521 = tpu.matmul %517, %266, %cst_152 {dimension_numbers = #tpu.dot_dimension_numbers<[1], [0], [0], [1], [0, 0, 1, 1], [], []>} : vector<8x128xf32>, vector<128x512xf32>, vector<8x512xf32> -> vector<8x512xf32>
    %522 = arith.addf %265, %521 : vector<8x512xf32>
    %523 = vector.extract_strided_slice %522 {offsets = [0, 0], sizes = [8, 128], strides = [1, 1]} : vector<8x512xf32> to vector<8x128xf32>
    %cst_153 = arith.constant 5.000000e-01 : f32
    %524 = vector.broadcast %cst_153 : f32 to vector<8x128xf32>
    %525 = arith.mulf %524, %523 : vector<8x128xf32>
    %526 = math.tanh %525 : vector<8x128xf32>
    %cst_154 = arith.constant 5.000000e-01 : f32
    %527 = vector.broadcast %cst_154 : f32 to vector<8x128xf32>
    %528 = arith.mulf %527, %526 : vector<8x128xf32>
    %cst_155 = arith.constant 5.000000e-01 : f32
    %529 = vector.broadcast %cst_155 : f32 to vector<8x128xf32>
    %530 = arith.addf %528, %529 : vector<8x128xf32>
    %531 = vector.extract_strided_slice %522 {offsets = [0, 128], sizes = [8, 128], strides = [1, 1]} : vector<8x512xf32> to vector<8x128xf32>
    %cst_156 = arith.constant 5.000000e-01 : f32
    %532 = vector.broadcast %cst_156 : f32 to vector<8x128xf32>
    %533 = arith.mulf %532, %531 : vector<8x128xf32>
    %534 = math.tanh %533 : vector<8x128xf32>
    %cst_157 = arith.constant 5.000000e-01 : f32
    %535 = vector.broadcast %cst_157 : f32 to vector<8x128xf32>
    %536 = arith.mulf %535, %534 : vector<8x128xf32>
    %cst_158 = arith.constant 5.000000e-01 : f32
    %537 = vector.broadcast %cst_158 : f32 to vector<8x128xf32>
    %538 = arith.addf %536, %537 : vector<8x128xf32>
    %539 = vector.extract_strided_slice %522 {offsets = [0, 256], sizes = [8, 128], strides = [1, 1]} : vector<8x512xf32> to vector<8x128xf32>
    %540 = math.tanh %539 : vector<8x128xf32>
    %541 = vector.extract_strided_slice %522 {offsets = [0, 384], sizes = [8, 128], strides = [1, 1]} : vector<8x512xf32> to vector<8x128xf32>
    %cst_159 = arith.constant 5.000000e-01 : f32
    %542 = vector.broadcast %cst_159 : f32 to vector<8x128xf32>
    %543 = arith.mulf %542, %541 : vector<8x128xf32>
    %544 = math.tanh %543 : vector<8x128xf32>
    %cst_160 = arith.constant 5.000000e-01 : f32
    %545 = vector.broadcast %cst_160 : f32 to vector<8x128xf32>
    %546 = arith.mulf %545, %544 : vector<8x128xf32>
    %cst_161 = arith.constant 5.000000e-01 : f32
    %547 = vector.broadcast %cst_161 : f32 to vector<8x128xf32>
    %548 = arith.addf %546, %547 : vector<8x128xf32>
    %549 = arith.mulf %538, %515 : vector<8x128xf32>
    %550 = arith.mulf %530, %540 : vector<8x128xf32>
    %551 = arith.addf %549, %550 : vector<8x128xf32>
    %552 = math.tanh %551 : vector<8x128xf32>
    %553 = arith.mulf %548, %552 : vector<8x128xf32>
    %c7 = arith.constant 7 : index
    %c0_162 = arith.constant 0 : index
    %c0_163 = arith.constant 0 : index
    %554 = vector.load %arg19[%c7, %c0_162, %c0_163] : memref<8x8x128xf32, #tpu.memory_space<vmem>>, vector<1x8x128xf32>
    %555 = vector.shape_cast %554 : vector<1x8x128xf32> to vector<8x128xf32>
    %556 = vector.shape_cast %553 : vector<8x128xf32> to vector<1x8x128xf32>
    tpu.vector_store %arg19[%c7, %c0_162, %c0_163], %556 {strides = array<i32>} : memref<8x8x128xf32, #tpu.memory_space<vmem>>, vector<1x8x128xf32>,
    %557 = tpu.iota {dimensions = array<i32: 1>} : vector<8x128xi32>
    %c64_i32 = arith.constant 64 : i32
    %558 = vector.broadcast %c64_i32 : i32 to vector<8x128xi32>
    %559 = arith.cmpi slt, %557, %558 : vector<8x128xi32>
    %c0_164 = arith.constant 0 : index
    %c0_165 = arith.constant 0 : index
    %c0_166 = arith.constant 0 : index
    %560 = vector.load %arg19[%c0_164, %c0_165, %c0_166] : memref<8x8x128xf32, #tpu.memory_space<vmem>>, vector<1x8x128xf32>
    %561 = vector.shape_cast %560 : vector<1x8x128xf32> to vector<8x128xf32>
    %c7_167 = arith.constant 7 : index
    %c0_168 = arith.constant 0 : index
    %c0_169 = arith.constant 0 : index
    %562 = vector.load %arg19[%c7_167, %c0_168, %c0_169] : memref<8x8x128xf32, #tpu.memory_space<vmem>>, vector<1x8x128xf32>
    %563 = vector.shape_cast %562 : vector<1x8x128xf32> to vector<8x128xf32>
    %564 = arith.select %559, %561, %563 : vector<8x128xi1>, vector<8x128xf32>
    %c1_170 = arith.constant 1 : index
    %c0_171 = arith.constant 0 : index
    %c0_172 = arith.constant 0 : index
    %565 = vector.load %arg19[%c1_170, %c0_171, %c0_172] : memref<8x8x128xf32, #tpu.memory_space<vmem>>, vector<1x8x128xf32>
    %566 = vector.shape_cast %565 : vector<1x8x128xf32> to vector<8x128xf32>
    %c6_173 = arith.constant 6 : index
    %c0_174 = arith.constant 0 : index
    %c0_175 = arith.constant 0 : index
    %567 = vector.load %arg19[%c6_173, %c0_174, %c0_175] : memref<8x8x128xf32, #tpu.memory_space<vmem>>, vector<1x8x128xf32>
    %568 = vector.shape_cast %567 : vector<1x8x128xf32> to vector<8x128xf32>
    %569 = arith.select %559, %566, %568 : vector<8x128xi1>, vector<8x128xf32>
    %c2_176 = arith.constant 2 : index
    %c0_177 = arith.constant 0 : index
    %c0_178 = arith.constant 0 : index
    %570 = vector.load %arg19[%c2_176, %c0_177, %c0_178] : memref<8x8x128xf32, #tpu.memory_space<vmem>>, vector<1x8x128xf32>
    %571 = vector.shape_cast %570 : vector<1x8x128xf32> to vector<8x128xf32>
    %c5_179 = arith.constant 5 : index
    %c0_180 = arith.constant 0 : index
    %c0_181 = arith.constant 0 : index
    %572 = vector.load %arg19[%c5_179, %c0_180, %c0_181] : memref<8x8x128xf32, #tpu.memory_space<vmem>>, vector<1x8x128xf32>
    %573 = vector.shape_cast %572 : vector<1x8x128xf32> to vector<8x128xf32>
    %574 = arith.select %559, %571, %573 : vector<8x128xi1>, vector<8x128xf32>
    %c3_182 = arith.constant 3 : index
    %c0_183 = arith.constant 0 : index
    %c0_184 = arith.constant 0 : index
    %575 = vector.load %arg19[%c3_182, %c0_183, %c0_184] : memref<8x8x128xf32, #tpu.memory_space<vmem>>, vector<1x8x128xf32>
    %576 = vector.shape_cast %575 : vector<1x8x128xf32> to vector<8x128xf32>
    %c4_185 = arith.constant 4 : index
    %c0_186 = arith.constant 0 : index
    %c0_187 = arith.constant 0 : index
    %577 = vector.load %arg19[%c4_185, %c0_186, %c0_187] : memref<8x8x128xf32, #tpu.memory_space<vmem>>, vector<1x8x128xf32>
    %578 = vector.shape_cast %577 : vector<1x8x128xf32> to vector<8x128xf32>
    %579 = arith.select %559, %576, %578 : vector<8x128xi1>, vector<8x128xf32>
    %c4_188 = arith.constant 4 : index
    %c0_189 = arith.constant 0 : index
    %c0_190 = arith.constant 0 : index
    %580 = vector.load %arg19[%c4_188, %c0_189, %c0_190] : memref<8x8x128xf32, #tpu.memory_space<vmem>>, vector<1x8x128xf32>
    %581 = vector.shape_cast %580 : vector<1x8x128xf32> to vector<8x128xf32>
    %c3_191 = arith.constant 3 : index
    %c0_192 = arith.constant 0 : index
    %c0_193 = arith.constant 0 : index
    %582 = vector.load %arg19[%c3_191, %c0_192, %c0_193] : memref<8x8x128xf32, #tpu.memory_space<vmem>>, vector<1x8x128xf32>
    %583 = vector.shape_cast %582 : vector<1x8x128xf32> to vector<8x128xf32>
    %584 = arith.select %559, %581, %583 : vector<8x128xi1>, vector<8x128xf32>
    %c5_194 = arith.constant 5 : index
    %c0_195 = arith.constant 0 : index
    %c0_196 = arith.constant 0 : index
    %585 = vector.load %arg19[%c5_194, %c0_195, %c0_196] : memref<8x8x128xf32, #tpu.memory_space<vmem>>, vector<1x8x128xf32>
    %586 = vector.shape_cast %585 : vector<1x8x128xf32> to vector<8x128xf32>
    %c2_197 = arith.constant 2 : index
    %c0_198 = arith.constant 0 : index
    %c0_199 = arith.constant 0 : index
    %587 = vector.load %arg19[%c2_197, %c0_198, %c0_199] : memref<8x8x128xf32, #tpu.memory_space<vmem>>, vector<1x8x128xf32>
    %588 = vector.shape_cast %587 : vector<1x8x128xf32> to vector<8x128xf32>
    %589 = arith.select %559, %586, %588 : vector<8x128xi1>, vector<8x128xf32>
    %c6_200 = arith.constant 6 : index
    %c0_201 = arith.constant 0 : index
    %c0_202 = arith.constant 0 : index
    %590 = vector.load %arg19[%c6_200, %c0_201, %c0_202] : memref<8x8x128xf32, #tpu.memory_space<vmem>>, vector<1x8x128xf32>
    %591 = vector.shape_cast %590 : vector<1x8x128xf32> to vector<8x128xf32>
    %c1_203 = arith.constant 1 : index
    %c0_204 = arith.constant 0 : index
    %c0_205 = arith.constant 0 : index
    %592 = vector.load %arg19[%c1_203, %c0_204, %c0_205] : memref<8x8x128xf32, #tpu.memory_space<vmem>>, vector<1x8x128xf32>
    %593 = vector.shape_cast %592 : vector<1x8x128xf32> to vector<8x128xf32>
    %594 = arith.select %559, %591, %593 : vector<8x128xi1>, vector<8x128xf32>
    %c7_206 = arith.constant 7 : index
    %c0_207 = arith.constant 0 : index
    %c0_208 = arith.constant 0 : index
    %595 = vector.load %arg19[%c7_206, %c0_207, %c0_208] : memref<8x8x128xf32, #tpu.memory_space<vmem>>, vector<1x8x128xf32>
    %596 = vector.shape_cast %595 : vector<1x8x128xf32> to vector<8x128xf32>
    %c0_209 = arith.constant 0 : index
    %c0_210 = arith.constant 0 : index
    %c0_211 = arith.constant 0 : index
    %597 = vector.load %arg19[%c0_209, %c0_210, %c0_211] : memref<8x8x128xf32, #tpu.memory_space<vmem>>, vector<1x8x128xf32>
    %598 = vector.shape_cast %597 : vector<1x8x128xf32> to vector<8x128xf32>
    %599 = arith.select %559, %596, %598 : vector<8x128xi1>, vector<8x128xf32>
    %600 = vector.shape_cast %564 : vector<8x128xf32> to vector<1x8x128xf32>
    %601 = vector.shape_cast %569 : vector<8x128xf32> to vector<1x8x128xf32>
    %602 = vector.shape_cast %574 : vector<8x128xf32> to vector<1x8x128xf32>
    %603 = vector.shape_cast %579 : vector<8x128xf32> to vector<1x8x128xf32>
    %604 = vector.shape_cast %584 : vector<8x128xf32> to vector<1x8x128xf32>
    %605 = vector.shape_cast %589 : vector<8x128xf32> to vector<1x8x128xf32>
    %606 = vector.shape_cast %594 : vector<8x128xf32> to vector<1x8x128xf32>
    %607 = vector.shape_cast %599 : vector<8x128xf32> to vector<1x8x128xf32>
    %608 = tpu.concatenate %600, %601, %602, %603, %604, %605, %606, %607 in 0 : vector<1x8x128xf32>, vector<1x8x128xf32>, vector<1x8x128xf32>, vector<1x8x128xf32>, vector<1x8x128xf32>, vector<1x8x128xf32>, vector<1x8x128xf32>, vector<1x8x128xf32> -> vector<8x8x128xf32>
    %cst_212 = arith.constant dense<0.000000e+00> : vector<8x8xf32>
    %609 = vector.multi_reduction <add>, %608, %cst_212 [2] : vector<8x8x128xf32> to vector<8x8xf32>
    %610 = vector.shape_cast %609 : vector<8x8xf32> to vector<8x8x1xf32>
    %cst_213 = arith.constant 1.280000e+02 : f32
    %611 = vector.broadcast %cst_213 : f32 to vector<8x8x1xf32>
    %612 = arith.divf %610, %611 : vector<8x8x1xf32>
    %613 = vector.broadcast %612 : vector<8x8x1xf32> to vector<8x8x128xf32>
    %614 = arith.subf %608, %613 : vector<8x8x128xf32>
    %615 = arith.mulf %614, %614 : vector<8x8x128xf32>
    %cst_214 = arith.constant dense<0.000000e+00> : vector<8x8xf32>
    %616 = vector.multi_reduction <add>, %615, %cst_214 [2] : vector<8x8x128xf32> to vector<8x8xf32>
    %617 = vector.shape_cast %616 : vector<8x8xf32> to vector<8x8x1xf32>
    %cst_215 = arith.constant 1.280000e+02 : f32
    %618 = vector.broadcast %cst_215 : f32 to vector<8x8x1xf32>
    %619 = arith.divf %617, %618 : vector<8x8x1xf32>
    %cst_216 = arith.constant 9.99999974E-6 : f32
    %620 = vector.broadcast %cst_216 : f32 to vector<8x8x1xf32>
    %621 = arith.addf %619, %620 : vector<8x8x1xf32>
    %622 = math.rsqrt %621 : vector<8x8x1xf32>
    %623 = vector.broadcast %622 : vector<8x8x1xf32> to vector<8x8x128xf32>
    %624 = arith.mulf %614, %623 : vector<8x8x128xf32>
    %c0_217 = arith.constant 0 : index
    %c0_218 = arith.constant 0 : index
    %c0_219 = arith.constant 0 : index
    %625 = vector.load %arg7[%c0_217, %c0_218, %c0_219] : memref<1x1x128xf32, #tpu.memory_space<vmem>>, vector<1x1x128xf32>
    %626 = vector.broadcast %625 : vector<1x1x128xf32> to vector<8x8x128xf32>
    %627 = arith.mulf %624, %626 : vector<8x8x128xf32>
    %c0_220 = arith.constant 0 : index
    %c0_221 = arith.constant 0 : index
    %c0_222 = arith.constant 0 : index
    %628 = vector.load %arg8[%c0_220, %c0_221, %c0_222] : memref<1x1x128xf32, #tpu.memory_space<vmem>>, vector<1x1x128xf32>
    %629 = vector.broadcast %628 : vector<1x1x128xf32> to vector<8x8x128xf32>
    %630 = arith.addf %627, %629 : vector<8x8x128xf32>
    %c0_223 = arith.constant 0 : index
    %c0_224 = arith.constant 0 : index
    %631 = vector.load %arg9[%c0_223, %c0_224] : memref<128x512xf32, #tpu.memory_space<vmem>>, vector<128x512xf32>
    "tpu.trace_start"() <{level = 10 : i32, message = "sbd,dg->sbg"}> : () -> ()
    %cst_225 = arith.constant dense<0.000000e+00> : vector<8x8x512xf32>
    %632 = tpu.matmul %630, %631, %cst_225 {dimension_numbers = #tpu.dot_dimension_numbers<[2], [0], [0, 1], [1], [0, 0, 0, 1, 1, 1], [], []>} : vector<8x8x128xf32>, vector<128x512xf32>, vector<8x8x512xf32> -> vector<8x8x512xf32>
    "tpu.trace_stop"() : () -> ()
    %c0_226 = arith.constant 0 : index
    %c0_227 = arith.constant 0 : index
    %c0_228 = arith.constant 0 : index
    %633 = vector.load %arg11[%c0_226, %c0_227, %c0_228] : memref<1x1x512xf32, #tpu.memory_space<vmem>>, vector<1x1x512xf32>
    %634 = vector.broadcast %633 : vector<1x1x512xf32> to vector<8x8x512xf32>
    %635 = arith.addf %632, %634 : vector<8x8x512xf32>
    %c0_229 = arith.constant 0 : index
    %c0_230 = arith.constant 0 : index
    %636 = vector.load %arg10[%c0_229, %c0_230] : memref<128x512xf32, #tpu.memory_space<vmem>>, vector<128x512xf32>
    "tpu.trace_start"() <{level = 10 : i32, message = "sbd,dg->sbg"}> : () -> ()
    %cst_231 = arith.constant dense<0.000000e+00> : vector<8x8x512xf32>
    %637 = tpu.matmul %630, %636, %cst_231 {dimension_numbers = #tpu.dot_dimension_numbers<[2], [0], [0, 1], [1], [0, 0, 0, 1, 1, 1], [], []>} : vector<8x8x128xf32>, vector<128x512xf32>, vector<8x8x512xf32> -> vector<8x8x512xf32>
    "tpu.trace_stop"() : () -> ()
    %c0_232 = arith.constant 0 : index
    %c0_233 = arith.constant 0 : index
    %c0_234 = arith.constant 0 : index
    %638 = vector.load %arg12[%c0_232, %c0_233, %c0_234] : memref<1x1x512xf32, #tpu.memory_space<vmem>>, vector<1x1x512xf32>
    %639 = vector.broadcast %638 : vector<1x1x512xf32> to vector<8x8x512xf32>
    %640 = arith.addf %637, %639 : vector<8x8x512xf32>
    %641 = vector.extract_strided_slice %635 {offsets = [0, 0, 0], sizes = [1, 8, 512], strides = [1, 1, 1]} : vector<8x8x512xf32> to vector<1x8x512xf32>
    %642 = vector.shape_cast %641 : vector<1x8x512xf32> to vector<8x512xf32>
    %643 = vector.extract_strided_slice %640 {offsets = [7, 0, 0], sizes = [1, 8, 512], strides = [1, 1, 1]} : vector<8x8x512xf32> to vector<1x8x512xf32>
    %644 = vector.shape_cast %643 : vector<1x8x512xf32> to vector<8x512xf32>
    %645 = arith.addf %642, %644 : vector<8x512xf32>
    %646 = vector.extract_strided_slice %635 {offsets = [1, 0, 0], sizes = [1, 8, 512], strides = [1, 1, 1]} : vector<8x8x512xf32> to vector<1x8x512xf32>
    %647 = vector.shape_cast %646 : vector<1x8x512xf32> to vector<8x512xf32>
    %648 = vector.extract_strided_slice %640 {offsets = [6, 0, 0], sizes = [1, 8, 512], strides = [1, 1, 1]} : vector<8x8x512xf32> to vector<1x8x512xf32>
    %649 = vector.shape_cast %648 : vector<1x8x512xf32> to vector<8x512xf32>
    %650 = arith.addf %647, %649 : vector<8x512xf32>
    %651 = vector.extract_strided_slice %635 {offsets = [2, 0, 0], sizes = [1, 8, 512], strides = [1, 1, 1]} : vector<8x8x512xf32> to vector<1x8x512xf32>
    %652 = vector.shape_cast %651 : vector<1x8x512xf32> to vector<8x512xf32>
    %653 = vector.extract_strided_slice %640 {offsets = [5, 0, 0], sizes = [1, 8, 512], strides = [1, 1, 1]} : vector<8x8x512xf32> to vector<1x8x512xf32>
    %654 = vector.shape_cast %653 : vector<1x8x512xf32> to vector<8x512xf32>
    %655 = arith.addf %652, %654 : vector<8x512xf32>
    %656 = vector.extract_strided_slice %635 {offsets = [3, 0, 0], sizes = [1, 8, 512], strides = [1, 1, 1]} : vector<8x8x512xf32> to vector<1x8x512xf32>
    %657 = vector.shape_cast %656 : vector<1x8x512xf32> to vector<8x512xf32>
    %658 = vector.extract_strided_slice %640 {offsets = [4, 0, 0], sizes = [1, 8, 512], strides = [1, 1, 1]} : vector<8x8x512xf32> to vector<1x8x512xf32>
    %659 = vector.shape_cast %658 : vector<1x8x512xf32> to vector<8x512xf32>
    %660 = arith.addf %657, %659 : vector<8x512xf32>
    %661 = vector.extract_strided_slice %635 {offsets = [4, 0, 0], sizes = [1, 8, 512], strides = [1, 1, 1]} : vector<8x8x512xf32> to vector<1x8x512xf32>
    %662 = vector.shape_cast %661 : vector<1x8x512xf32> to vector<8x512xf32>
    %663 = vector.extract_strided_slice %640 {offsets = [3, 0, 0], sizes = [1, 8, 512], strides = [1, 1, 1]} : vector<8x8x512xf32> to vector<1x8x512xf32>
    %664 = vector.shape_cast %663 : vector<1x8x512xf32> to vector<8x512xf32>
    %665 = arith.addf %662, %664 : vector<8x512xf32>
    %666 = vector.extract_strided_slice %635 {offsets = [5, 0, 0], sizes = [1, 8, 512], strides = [1, 1, 1]} : vector<8x8x512xf32> to vector<1x8x512xf32>
    %667 = vector.shape_cast %666 : vector<1x8x512xf32> to vector<8x512xf32>
    %668 = vector.extract_strided_slice %640 {offsets = [2, 0, 0], sizes = [1, 8, 512], strides = [1, 1, 1]} : vector<8x8x512xf32> to vector<1x8x512xf32>
    %669 = vector.shape_cast %668 : vector<1x8x512xf32> to vector<8x512xf32>
    %670 = arith.addf %667, %669 : vector<8x512xf32>
    %671 = vector.extract_strided_slice %635 {offsets = [6, 0, 0], sizes = [1, 8, 512], strides = [1, 1, 1]} : vector<8x8x512xf32> to vector<1x8x512xf32>
    %672 = vector.shape_cast %671 : vector<1x8x512xf32> to vector<8x512xf32>
    %673 = vector.extract_strided_slice %640 {offsets = [1, 0, 0], sizes = [1, 8, 512], strides = [1, 1, 1]} : vector<8x8x512xf32> to vector<1x8x512xf32>
    %674 = vector.shape_cast %673 : vector<1x8x512xf32> to vector<8x512xf32>
    %675 = arith.addf %672, %674 : vector<8x512xf32>
    %676 = vector.extract_strided_slice %635 {offsets = [7, 0, 0], sizes = [1, 8, 512], strides = [1, 1, 1]} : vector<8x8x512xf32> to vector<1x8x512xf32>
    %677 = vector.shape_cast %676 : vector<1x8x512xf32> to vector<8x512xf32>
    %678 = vector.extract_strided_slice %640 {offsets = [0, 0, 0], sizes = [1, 8, 512], strides = [1, 1, 1]} : vector<8x8x512xf32> to vector<1x8x512xf32>
    %679 = vector.shape_cast %678 : vector<1x8x512xf32> to vector<8x512xf32>
    %680 = arith.addf %677, %679 : vector<8x512xf32>
    %c0_235 = arith.constant 0 : index
    %c0_236 = arith.constant 0 : index
    %681 = vector.load %arg13[%c0_235, %c0_236] : memref<128x512xf32, #tpu.memory_space<vmem>>, vector<128x512xf32>
    %cst_237 = arith.constant 0.000000e+00 : f32
    %682 = vector.broadcast %cst_237 : f32 to vector<8x128xf32>
    %cst_238 = arith.constant 0.000000e+00 : f32
    %683 = vector.broadcast %cst_238 : f32 to vector<8x128xf32>
    %cst_239 = arith.constant dense<0.000000e+00> : vector<8x512xf32>
    %684 = tpu.matmul %682, %681, %cst_239 {dimension_numbers = #tpu.dot_dimension_numbers<[1], [0], [0], [1], [0, 0, 1, 1], [], []>} : vector<8x128xf32>, vector<128x512xf32>, vector<8x512xf32> -> vector<8x512xf32>
    %685 = arith.addf %645, %684 : vector<8x512xf32>
    %686 = vector.extract_strided_slice %685 {offsets = [0, 0], sizes = [8, 128], strides = [1, 1]} : vector<8x512xf32> to vector<8x128xf32>
    %cst_240 = arith.constant 5.000000e-01 : f32
    %687 = vector.broadcast %cst_240 : f32 to vector<8x128xf32>
    %688 = arith.mulf %687, %686 : vector<8x128xf32>
    %689 = math.tanh %688 : vector<8x128xf32>
    %cst_241 = arith.constant 5.000000e-01 : f32
    %690 = vector.broadcast %cst_241 : f32 to vector<8x128xf32>
    %691 = arith.mulf %690, %689 : vector<8x128xf32>
    %cst_242 = arith.constant 5.000000e-01 : f32
    %692 = vector.broadcast %cst_242 : f32 to vector<8x128xf32>
    %693 = arith.addf %691, %692 : vector<8x128xf32>
    %694 = vector.extract_strided_slice %685 {offsets = [0, 128], sizes = [8, 128], strides = [1, 1]} : vector<8x512xf32> to vector<8x128xf32>
    %cst_243 = arith.constant 5.000000e-01 : f32
    %695 = vector.broadcast %cst_243 : f32 to vector<8x128xf32>
    %696 = arith.mulf %695, %694 : vector<8x128xf32>
    %697 = math.tanh %696 : vector<8x128xf32>
    %cst_244 = arith.constant 5.000000e-01 : f32
    %698 = vector.broadcast %cst_244 : f32 to vector<8x128xf32>
    %699 = arith.mulf %698, %697 : vector<8x128xf32>
    %cst_245 = arith.constant 5.000000e-01 : f32
    %700 = vector.broadcast %cst_245 : f32 to vector<8x128xf32>
    %701 = arith.addf %699, %700 : vector<8x128xf32>
    %702 = vector.extract_strided_slice %685 {offsets = [0, 256], sizes = [8, 128], strides = [1, 1]} : vector<8x512xf32> to vector<8x128xf32>
    %703 = math.tanh %702 : vector<8x128xf32>
    %704 = vector.extract_strided_slice %685 {offsets = [0, 384], sizes = [8, 128], strides = [1, 1]} : vector<8x512xf32> to vector<8x128xf32>
    %cst_246 = arith.constant 5.000000e-01 : f32
    %705 = vector.broadcast %cst_246 : f32 to vector<8x128xf32>
    %706 = arith.mulf %705, %704 : vector<8x128xf32>
    %707 = math.tanh %706 : vector<8x128xf32>
    %cst_247 = arith.constant 5.000000e-01 : f32
    %708 = vector.broadcast %cst_247 : f32 to vector<8x128xf32>
    %709 = arith.mulf %708, %707 : vector<8x128xf32>
    %cst_248 = arith.constant 5.000000e-01 : f32
    %710 = vector.broadcast %cst_248 : f32 to vector<8x128xf32>
    %711 = arith.addf %709, %710 : vector<8x128xf32>
    %712 = arith.mulf %701, %683 : vector<8x128xf32>
    %713 = arith.mulf %693, %703 : vector<8x128xf32>
    %714 = arith.addf %712, %713 : vector<8x128xf32>
    %715 = math.tanh %714 : vector<8x128xf32>
    %716 = arith.mulf %711, %715 : vector<8x128xf32>
    %c0_249 = arith.constant 0 : index
    %c0_250 = arith.constant 0 : index
    %c0_251 = arith.constant 0 : index
    %717 = vector.load %arg19[%c0_249, %c0_250, %c0_251] : memref<8x8x128xf32, #tpu.memory_space<vmem>>, vector<1x8x128xf32>
    %718 = vector.shape_cast %717 : vector<1x8x128xf32> to vector<8x128xf32>
    %719 = vector.shape_cast %716 : vector<8x128xf32> to vector<1x8x128xf32>
    tpu.vector_store %arg19[%c0_249, %c0_250, %c0_251], %719 {strides = array<i32>} : memref<8x8x128xf32, #tpu.memory_space<vmem>>, vector<1x8x128xf32>,
    %cst_252 = arith.constant dense<0.000000e+00> : vector<8x512xf32>
    %720 = tpu.matmul %716, %681, %cst_252 {dimension_numbers = #tpu.dot_dimension_numbers<[1], [0], [0], [1], [0, 0, 1, 1], [], []>} : vector<8x128xf32>, vector<128x512xf32>, vector<8x512xf32> -> vector<8x512xf32>
    %721 = arith.addf %650, %720 : vector<8x512xf32>
    %722 = vector.extract_strided_slice %721 {offsets = [0, 0], sizes = [8, 128], strides = [1, 1]} : vector<8x512xf32> to vector<8x128xf32>
    %cst_253 = arith.constant 5.000000e-01 : f32
    %723 = vector.broadcast %cst_253 : f32 to vector<8x128xf32>
    %724 = arith.mulf %723, %722 : vector<8x128xf32>
    %725 = math.tanh %724 : vector<8x128xf32>
    %cst_254 = arith.constant 5.000000e-01 : f32
    %726 = vector.broadcast %cst_254 : f32 to vector<8x128xf32>
    %727 = arith.mulf %726, %725 : vector<8x128xf32>
    %cst_255 = arith.constant 5.000000e-01 : f32
    %728 = vector.broadcast %cst_255 : f32 to vector<8x128xf32>
    %729 = arith.addf %727, %728 : vector<8x128xf32>
    %730 = vector.extract_strided_slice %721 {offsets = [0, 128], sizes = [8, 128], strides = [1, 1]} : vector<8x512xf32> to vector<8x128xf32>
    %cst_256 = arith.constant 5.000000e-01 : f32
    %731 = vector.broadcast %cst_256 : f32 to vector<8x128xf32>
    %732 = arith.mulf %731, %730 : vector<8x128xf32>
    %733 = math.tanh %732 : vector<8x128xf32>
    %cst_257 = arith.constant 5.000000e-01 : f32
    %734 = vector.broadcast %cst_257 : f32 to vector<8x128xf32>
    %735 = arith.mulf %734, %733 : vector<8x128xf32>
    %cst_258 = arith.constant 5.000000e-01 : f32
    %736 = vector.broadcast %cst_258 : f32 to vector<8x128xf32>
    %737 = arith.addf %735, %736 : vector<8x128xf32>
    %738 = vector.extract_strided_slice %721 {offsets = [0, 256], sizes = [8, 128], strides = [1, 1]} : vector<8x512xf32> to vector<8x128xf32>
    %739 = math.tanh %738 : vector<8x128xf32>
    %740 = vector.extract_strided_slice %721 {offsets = [0, 384], sizes = [8, 128], strides = [1, 1]} : vector<8x512xf32> to vector<8x128xf32>
    %cst_259 = arith.constant 5.000000e-01 : f32
    %741 = vector.broadcast %cst_259 : f32 to vector<8x128xf32>
    %742 = arith.mulf %741, %740 : vector<8x128xf32>
    %743 = math.tanh %742 : vector<8x128xf32>
    %cst_260 = arith.constant 5.000000e-01 : f32
    %744 = vector.broadcast %cst_260 : f32 to vector<8x128xf32>
    %745 = arith.mulf %744, %743 : vector<8x128xf32>
    %cst_261 = arith.constant 5.000000e-01 : f32
    %746 = vector.broadcast %cst_261 : f32 to vector<8x128xf32>
    %747 = arith.addf %745, %746 : vector<8x128xf32>
    %748 = arith.mulf %737, %714 : vector<8x128xf32>
    %749 = arith.mulf %729, %739 : vector<8x128xf32>
    %750 = arith.addf %748, %749 : vector<8x128xf32>
    %751 = math.tanh %750 : vector<8x128xf32>
    %752 = arith.mulf %747, %751 : vector<8x128xf32>
    %c1_262 = arith.constant 1 : index
    %c0_263 = arith.constant 0 : index
    %c0_264 = arith.constant 0 : index
    %753 = vector.load %arg19[%c1_262, %c0_263, %c0_264] : memref<8x8x128xf32, #tpu.memory_space<vmem>>, vector<1x8x128xf32>
    %754 = vector.shape_cast %753 : vector<1x8x128xf32> to vector<8x128xf32>
    %755 = vector.shape_cast %752 : vector<8x128xf32> to vector<1x8x128xf32>
    tpu.vector_store %arg19[%c1_262, %c0_263, %c0_264], %755 {strides = array<i32>} : memref<8x8x128xf32, #tpu.memory_space<vmem>>, vector<1x8x128xf32>,
    %cst_265 = arith.constant dense<0.000000e+00> : vector<8x512xf32>
    %756 = tpu.matmul %752, %681, %cst_265 {dimension_numbers = #tpu.dot_dimension_numbers<[1], [0], [0], [1], [0, 0, 1, 1], [], []>} : vector<8x128xf32>, vector<128x512xf32>, vector<8x512xf32> -> vector<8x512xf32>
    %757 = arith.addf %655, %756 : vector<8x512xf32>
    %758 = vector.extract_strided_slice %757 {offsets = [0, 0], sizes = [8, 128], strides = [1, 1]} : vector<8x512xf32> to vector<8x128xf32>
    %cst_266 = arith.constant 5.000000e-01 : f32
    %759 = vector.broadcast %cst_266 : f32 to vector<8x128xf32>
    %760 = arith.mulf %759, %758 : vector<8x128xf32>
    %761 = math.tanh %760 : vector<8x128xf32>
    %cst_267 = arith.constant 5.000000e-01 : f32
    %762 = vector.broadcast %cst_267 : f32 to vector<8x128xf32>
    %763 = arith.mulf %762, %761 : vector<8x128xf32>
    %cst_268 = arith.constant 5.000000e-01 : f32
    %764 = vector.broadcast %cst_268 : f32 to vector<8x128xf32>
    %765 = arith.addf %763, %764 : vector<8x128xf32>
    %766 = vector.extract_strided_slice %757 {offsets = [0, 128], sizes = [8, 128], strides = [1, 1]} : vector<8x512xf32> to vector<8x128xf32>
    %cst_269 = arith.constant 5.000000e-01 : f32
    %767 = vector.broadcast %cst_269 : f32 to vector<8x128xf32>
    %768 = arith.mulf %767, %766 : vector<8x128xf32>
    %769 = math.tanh %768 : vector<8x128xf32>
    %cst_270 = arith.constant 5.000000e-01 : f32
    %770 = vector.broadcast %cst_270 : f32 to vector<8x128xf32>
    %771 = arith.mulf %770, %769 : vector<8x128xf32>
    %cst_271 = arith.constant 5.000000e-01 : f32
    %772 = vector.broadcast %cst_271 : f32 to vector<8x128xf32>
    %773 = arith.addf %771, %772 : vector<8x128xf32>
    %774 = vector.extract_strided_slice %757 {offsets = [0, 256], sizes = [8, 128], strides = [1, 1]} : vector<8x512xf32> to vector<8x128xf32>
    %775 = math.tanh %774 : vector<8x128xf32>
    %776 = vector.extract_strided_slice %757 {offsets = [0, 384], sizes = [8, 128], strides = [1, 1]} : vector<8x512xf32> to vector<8x128xf32>
    %cst_272 = arith.constant 5.000000e-01 : f32
    %777 = vector.broadcast %cst_272 : f32 to vector<8x128xf32>
    %778 = arith.mulf %777, %776 : vector<8x128xf32>
    %779 = math.tanh %778 : vector<8x128xf32>
    %cst_273 = arith.constant 5.000000e-01 : f32
    %780 = vector.broadcast %cst_273 : f32 to vector<8x128xf32>
    %781 = arith.mulf %780, %779 : vector<8x128xf32>
    %cst_274 = arith.constant 5.000000e-01 : f32
    %782 = vector.broadcast %cst_274 : f32 to vector<8x128xf32>
    %783 = arith.addf %781, %782 : vector<8x128xf32>
    %784 = arith.mulf %773, %750 : vector<8x128xf32>
    %785 = arith.mulf %765, %775 : vector<8x128xf32>
    %786 = arith.addf %784, %785 : vector<8x128xf32>
    %787 = math.tanh %786 : vector<8x128xf32>
    %788 = arith.mulf %783, %787 : vector<8x128xf32>
    %c2_275 = arith.constant 2 : index
    %c0_276 = arith.constant 0 : index
    %c0_277 = arith.constant 0 : index
    %789 = vector.load %arg19[%c2_275, %c0_276, %c0_277] : memref<8x8x128xf32, #tpu.memory_space<vmem>>, vector<1x8x128xf32>
    %790 = vector.shape_cast %789 : vector<1x8x128xf32> to vector<8x128xf32>
    %791 = vector.shape_cast %788 : vector<8x128xf32> to vector<1x8x128xf32>
    tpu.vector_store %arg19[%c2_275, %c0_276, %c0_277], %791 {strides = array<i32>} : memref<8x8x128xf32, #tpu.memory_space<vmem>>, vector<1x8x128xf32>,
    %cst_278 = arith.constant dense<0.000000e+00> : vector<8x512xf32>
    %792 = tpu.matmul %788, %681, %cst_278 {dimension_numbers = #tpu.dot_dimension_numbers<[1], [0], [0], [1], [0, 0, 1, 1], [], []>} : vector<8x128xf32>, vector<128x512xf32>, vector<8x512xf32> -> vector<8x512xf32>
    %793 = arith.addf %660, %792 : vector<8x512xf32>
    %794 = vector.extract_strided_slice %793 {offsets = [0, 0], sizes = [8, 128], strides = [1, 1]} : vector<8x512xf32> to vector<8x128xf32>
    %cst_279 = arith.constant 5.000000e-01 : f32
    %795 = vector.broadcast %cst_279 : f32 to vector<8x128xf32>
    %796 = arith.mulf %795, %794 : vector<8x128xf32>
    %797 = math.tanh %796 : vector<8x128xf32>
    %cst_280 = arith.constant 5.000000e-01 : f32
    %798 = vector.broadcast %cst_280 : f32 to vector<8x128xf32>
    %799 = arith.mulf %798, %797 : vector<8x128xf32>
    %cst_281 = arith.constant 5.000000e-01 : f32
    %800 = vector.broadcast %cst_281 : f32 to vector<8x128xf32>
    %801 = arith.addf %799, %800 : vector<8x128xf32>
    %802 = vector.extract_strided_slice %793 {offsets = [0, 128], sizes = [8, 128], strides = [1, 1]} : vector<8x512xf32> to vector<8x128xf32>
    %cst_282 = arith.constant 5.000000e-01 : f32
    %803 = vector.broadcast %cst_282 : f32 to vector<8x128xf32>
    %804 = arith.mulf %803, %802 : vector<8x128xf32>
    %805 = math.tanh %804 : vector<8x128xf32>
    %cst_283 = arith.constant 5.000000e-01 : f32
    %806 = vector.broadcast %cst_283 : f32 to vector<8x128xf32>
    %807 = arith.mulf %806, %805 : vector<8x128xf32>
    %cst_284 = arith.constant 5.000000e-01 : f32
    %808 = vector.broadcast %cst_284 : f32 to vector<8x128xf32>
    %809 = arith.addf %807, %808 : vector<8x128xf32>
    %810 = vector.extract_strided_slice %793 {offsets = [0, 256], sizes = [8, 128], strides = [1, 1]} : vector<8x512xf32> to vector<8x128xf32>
    %811 = math.tanh %810 : vector<8x128xf32>
    %812 = vector.extract_strided_slice %793 {offsets = [0, 384], sizes = [8, 128], strides = [1, 1]} : vector<8x512xf32> to vector<8x128xf32>
    %cst_285 = arith.constant 5.000000e-01 : f32
    %813 = vector.broadcast %cst_285 : f32 to vector<8x128xf32>
    %814 = arith.mulf %813, %812 : vector<8x128xf32>
    %815 = math.tanh %814 : vector<8x128xf32>
    %cst_286 = arith.constant 5.000000e-01 : f32
    %816 = vector.broadcast %cst_286 : f32 to vector<8x128xf32>
    %817 = arith.mulf %816, %815 : vector<8x128xf32>
    %cst_287 = arith.constant 5.000000e-01 : f32
    %818 = vector.broadcast %cst_287 : f32 to vector<8x128xf32>
    %819 = arith.addf %817, %818 : vector<8x128xf32>
    %820 = arith.mulf %809, %786 : vector<8x128xf32>
    %821 = arith.mulf %801, %811 : vector<8x128xf32>
    %822 = arith.addf %820, %821 : vector<8x128xf32>
    %823 = math.tanh %822 : vector<8x128xf32>
    %824 = arith.mulf %819, %823 : vector<8x128xf32>
    %c3_288 = arith.constant 3 : index
    %c0_289 = arith.constant 0 : index
    %c0_290 = arith.constant 0 : index
    %825 = vector.load %arg19[%c3_288, %c0_289, %c0_290] : memref<8x8x128xf32, #tpu.memory_space<vmem>>, vector<1x8x128xf32>
    %826 = vector.shape_cast %825 : vector<1x8x128xf32> to vector<8x128xf32>
    %827 = vector.shape_cast %824 : vector<8x128xf32> to vector<1x8x128xf32>
    tpu.vector_store %arg19[%c3_288, %c0_289, %c0_290], %827 {strides = array<i32>} : memref<8x8x128xf32, #tpu.memory_space<vmem>>, vector<1x8x128xf32>,
    %cst_291 = arith.constant dense<0.000000e+00> : vector<8x512xf32>
    %828 = tpu.matmul %824, %681, %cst_291 {dimension_numbers = #tpu.dot_dimension_numbers<[1], [0], [0], [1], [0, 0, 1, 1], [], []>} : vector<8x128xf32>, vector<128x512xf32>, vector<8x512xf32> -> vector<8x512xf32>
    %829 = arith.addf %665, %828 : vector<8x512xf32>
    %830 = vector.extract_strided_slice %829 {offsets = [0, 0], sizes = [8, 128], strides = [1, 1]} : vector<8x512xf32> to vector<8x128xf32>
    %cst_292 = arith.constant 5.000000e-01 : f32
    %831 = vector.broadcast %cst_292 : f32 to vector<8x128xf32>
    %832 = arith.mulf %831, %830 : vector<8x128xf32>
    %833 = math.tanh %832 : vector<8x128xf32>
    %cst_293 = arith.constant 5.000000e-01 : f32
    %834 = vector.broadcast %cst_293 : f32 to vector<8x128xf32>
    %835 = arith.mulf %834, %833 : vector<8x128xf32>
    %cst_294 = arith.constant 5.000000e-01 : f32
    %836 = vector.broadcast %cst_294 : f32 to vector<8x128xf32>
    %837 = arith.addf %835, %836 : vector<8x128xf32>
    %838 = vector.extract_strided_slice %829 {offsets = [0, 128], sizes = [8, 128], strides = [1, 1]} : vector<8x512xf32> to vector<8x128xf32>
    %cst_295 = arith.constant 5.000000e-01 : f32
    %839 = vector.broadcast %cst_295 : f32 to vector<8x128xf32>
    %840 = arith.mulf %839, %838 : vector<8x128xf32>
    %841 = math.tanh %840 : vector<8x128xf32>
    %cst_296 = arith.constant 5.000000e-01 : f32
    %842 = vector.broadcast %cst_296 : f32 to vector<8x128xf32>
    %843 = arith.mulf %842, %841 : vector<8x128xf32>
    %cst_297 = arith.constant 5.000000e-01 : f32
    %844 = vector.broadcast %cst_297 : f32 to vector<8x128xf32>
    %845 = arith.addf %843, %844 : vector<8x128xf32>
    %846 = vector.extract_strided_slice %829 {offsets = [0, 256], sizes = [8, 128], strides = [1, 1]} : vector<8x512xf32> to vector<8x128xf32>
    %847 = math.tanh %846 : vector<8x128xf32>
    %848 = vector.extract_strided_slice %829 {offsets = [0, 384], sizes = [8, 128], strides = [1, 1]} : vector<8x512xf32> to vector<8x128xf32>
    %cst_298 = arith.constant 5.000000e-01 : f32
    %849 = vector.broadcast %cst_298 : f32 to vector<8x128xf32>
    %850 = arith.mulf %849, %848 : vector<8x128xf32>
    %851 = math.tanh %850 : vector<8x128xf32>
    %cst_299 = arith.constant 5.000000e-01 : f32
    %852 = vector.broadcast %cst_299 : f32 to vector<8x128xf32>
    %853 = arith.mulf %852, %851 : vector<8x128xf32>
    %cst_300 = arith.constant 5.000000e-01 : f32
    %854 = vector.broadcast %cst_300 : f32 to vector<8x128xf32>
    %855 = arith.addf %853, %854 : vector<8x128xf32>
    %856 = arith.mulf %845, %822 : vector<8x128xf32>
    %857 = arith.mulf %837, %847 : vector<8x128xf32>
    %858 = arith.addf %856, %857 : vector<8x128xf32>
    %859 = math.tanh %858 : vector<8x128xf32>
    %860 = arith.mulf %855, %859 : vector<8x128xf32>
    %c4_301 = arith.constant 4 : index
    %c0_302 = arith.constant 0 : index
    %c0_303 = arith.constant 0 : index
    %861 = vector.load %arg19[%c4_301, %c0_302, %c0_303] : memref<8x8x128xf32, #tpu.memory_space<vmem>>, vector<1x8x128xf32>
    %862 = vector.shape_cast %861 : vector<1x8x128xf32> to vector<8x128xf32>
    %863 = vector.shape_cast %860 : vector<8x128xf32> to vector<1x8x128xf32>
    tpu.vector_store %arg19[%c4_301, %c0_302, %c0_303], %863 {strides = array<i32>} : memref<8x8x128xf32, #tpu.memory_space<vmem>>, vector<1x8x128xf32>,
    %cst_304 = arith.constant dense<0.000000e+00> : vector<8x512xf32>
    %864 = tpu.matmul %860, %681, %cst_304 {dimension_numbers = #tpu.dot_dimension_numbers<[1], [0], [0], [1], [0, 0, 1, 1], [], []>} : vector<8x128xf32>, vector<128x512xf32>, vector<8x512xf32> -> vector<8x512xf32>
    %865 = arith.addf %670, %864 : vector<8x512xf32>
    %866 = vector.extract_strided_slice %865 {offsets = [0, 0], sizes = [8, 128], strides = [1, 1]} : vector<8x512xf32> to vector<8x128xf32>
    %cst_305 = arith.constant 5.000000e-01 : f32
    %867 = vector.broadcast %cst_305 : f32 to vector<8x128xf32>
    %868 = arith.mulf %867, %866 : vector<8x128xf32>
    %869 = math.tanh %868 : vector<8x128xf32>
    %cst_306 = arith.constant 5.000000e-01 : f32
    %870 = vector.broadcast %cst_306 : f32 to vector<8x128xf32>
    %871 = arith.mulf %870, %869 : vector<8x128xf32>
    %cst_307 = arith.constant 5.000000e-01 : f32
    %872 = vector.broadcast %cst_307 : f32 to vector<8x128xf32>
    %873 = arith.addf %871, %872 : vector<8x128xf32>
    %874 = vector.extract_strided_slice %865 {offsets = [0, 128], sizes = [8, 128], strides = [1, 1]} : vector<8x512xf32> to vector<8x128xf32>
    %cst_308 = arith.constant 5.000000e-01 : f32
    %875 = vector.broadcast %cst_308 : f32 to vector<8x128xf32>
    %876 = arith.mulf %875, %874 : vector<8x128xf32>
    %877 = math.tanh %876 : vector<8x128xf32>
    %cst_309 = arith.constant 5.000000e-01 : f32
    %878 = vector.broadcast %cst_309 : f32 to vector<8x128xf32>
    %879 = arith.mulf %878, %877 : vector<8x128xf32>
    %cst_310 = arith.constant 5.000000e-01 : f32
    %880 = vector.broadcast %cst_310 : f32 to vector<8x128xf32>
    %881 = arith.addf %879, %880 : vector<8x128xf32>
    %882 = vector.extract_strided_slice %865 {offsets = [0, 256], sizes = [8, 128], strides = [1, 1]} : vector<8x512xf32> to vector<8x128xf32>
    %883 = math.tanh %882 : vector<8x128xf32>
    %884 = vector.extract_strided_slice %865 {offsets = [0, 384], sizes = [8, 128], strides = [1, 1]} : vector<8x512xf32> to vector<8x128xf32>
    %cst_311 = arith.constant 5.000000e-01 : f32
    %885 = vector.broadcast %cst_311 : f32 to vector<8x128xf32>
    %886 = arith.mulf %885, %884 : vector<8x128xf32>
    %887 = math.tanh %886 : vector<8x128xf32>
    %cst_312 = arith.constant 5.000000e-01 : f32
    %888 = vector.broadcast %cst_312 : f32 to vector<8x128xf32>
    %889 = arith.mulf %888, %887 : vector<8x128xf32>
    %cst_313 = arith.constant 5.000000e-01 : f32
    %890 = vector.broadcast %cst_313 : f32 to vector<8x128xf32>
    %891 = arith.addf %889, %890 : vector<8x128xf32>
    %892 = arith.mulf %881, %858 : vector<8x128xf32>
    %893 = arith.mulf %873, %883 : vector<8x128xf32>
    %894 = arith.addf %892, %893 : vector<8x128xf32>
    %895 = math.tanh %894 : vector<8x128xf32>
    %896 = arith.mulf %891, %895 : vector<8x128xf32>
    %c5_314 = arith.constant 5 : index
    %c0_315 = arith.constant 0 : index
    %c0_316 = arith.constant 0 : index
    %897 = vector.load %arg19[%c5_314, %c0_315, %c0_316] : memref<8x8x128xf32, #tpu.memory_space<vmem>>, vector<1x8x128xf32>
    %898 = vector.shape_cast %897 : vector<1x8x128xf32> to vector<8x128xf32>
    %899 = vector.shape_cast %896 : vector<8x128xf32> to vector<1x8x128xf32>
    tpu.vector_store %arg19[%c5_314, %c0_315, %c0_316], %899 {strides = array<i32>} : memref<8x8x128xf32, #tpu.memory_space<vmem>>, vector<1x8x128xf32>,
    %cst_317 = arith.constant dense<0.000000e+00> : vector<8x512xf32>
    %900 = tpu.matmul %896, %681, %cst_317 {dimension_numbers = #tpu.dot_dimension_numbers<[1], [0], [0], [1], [0, 0, 1, 1], [], []>} : vector<8x128xf32>, vector<128x512xf32>, vector<8x512xf32> -> vector<8x512xf32>
    %901 = arith.addf %675, %900 : vector<8x512xf32>
    %902 = vector.extract_strided_slice %901 {offsets = [0, 0], sizes = [8, 128], strides = [1, 1]} : vector<8x512xf32> to vector<8x128xf32>
    %cst_318 = arith.constant 5.000000e-01 : f32
    %903 = vector.broadcast %cst_318 : f32 to vector<8x128xf32>
    %904 = arith.mulf %903, %902 : vector<8x128xf32>
    %905 = math.tanh %904 : vector<8x128xf32>
    %cst_319 = arith.constant 5.000000e-01 : f32
    %906 = vector.broadcast %cst_319 : f32 to vector<8x128xf32>
    %907 = arith.mulf %906, %905 : vector<8x128xf32>
    %cst_320 = arith.constant 5.000000e-01 : f32
    %908 = vector.broadcast %cst_320 : f32 to vector<8x128xf32>
    %909 = arith.addf %907, %908 : vector<8x128xf32>
    %910 = vector.extract_strided_slice %901 {offsets = [0, 128], sizes = [8, 128], strides = [1, 1]} : vector<8x512xf32> to vector<8x128xf32>
    %cst_321 = arith.constant 5.000000e-01 : f32
    %911 = vector.broadcast %cst_321 : f32 to vector<8x128xf32>
    %912 = arith.mulf %911, %910 : vector<8x128xf32>
    %913 = math.tanh %912 : vector<8x128xf32>
    %cst_322 = arith.constant 5.000000e-01 : f32
    %914 = vector.broadcast %cst_322 : f32 to vector<8x128xf32>
    %915 = arith.mulf %914, %913 : vector<8x128xf32>
    %cst_323 = arith.constant 5.000000e-01 : f32
    %916 = vector.broadcast %cst_323 : f32 to vector<8x128xf32>
    %917 = arith.addf %915, %916 : vector<8x128xf32>
    %918 = vector.extract_strided_slice %901 {offsets = [0, 256], sizes = [8, 128], strides = [1, 1]} : vector<8x512xf32> to vector<8x128xf32>
    %919 = math.tanh %918 : vector<8x128xf32>
    %920 = vector.extract_strided_slice %901 {offsets = [0, 384], sizes = [8, 128], strides = [1, 1]} : vector<8x512xf32> to vector<8x128xf32>
    %cst_324 = arith.constant 5.000000e-01 : f32
    %921 = vector.broadcast %cst_324 : f32 to vector<8x128xf32>
    %922 = arith.mulf %921, %920 : vector<8x128xf32>
    %923 = math.tanh %922 : vector<8x128xf32>
    %cst_325 = arith.constant 5.000000e-01 : f32
    %924 = vector.broadcast %cst_325 : f32 to vector<8x128xf32>
    %925 = arith.mulf %924, %923 : vector<8x128xf32>
    %cst_326 = arith.constant 5.000000e-01 : f32
    %926 = vector.broadcast %cst_326 : f32 to vector<8x128xf32>
    %927 = arith.addf %925, %926 : vector<8x128xf32>
    %928 = arith.mulf %917, %894 : vector<8x128xf32>
    %929 = arith.mulf %909, %919 : vector<8x128xf32>
    %930 = arith.addf %928, %929 : vector<8x128xf32>
    %931 = math.tanh %930 : vector<8x128xf32>
    %932 = arith.mulf %927, %931 : vector<8x128xf32>
    %c6_327 = arith.constant 6 : index
    %c0_328 = arith.constant 0 : index
    %c0_329 = arith.constant 0 : index
    %933 = vector.load %arg19[%c6_327, %c0_328, %c0_329] : memref<8x8x128xf32, #tpu.memory_space<vmem>>, vector<1x8x128xf32>
    %934 = vector.shape_cast %933 : vector<1x8x128xf32> to vector<8x128xf32>
    %935 = vector.shape_cast %932 : vector<8x128xf32> to vector<1x8x128xf32>
    tpu.vector_store %arg19[%c6_327, %c0_328, %c0_329], %935 {strides = array<i32>} : memref<8x8x128xf32, #tpu.memory_space<vmem>>, vector<1x8x128xf32>,
    %cst_330 = arith.constant dense<0.000000e+00> : vector<8x512xf32>
    %936 = tpu.matmul %932, %681, %cst_330 {dimension_numbers = #tpu.dot_dimension_numbers<[1], [0], [0], [1], [0, 0, 1, 1], [], []>} : vector<8x128xf32>, vector<128x512xf32>, vector<8x512xf32> -> vector<8x512xf32>
    %937 = arith.addf %680, %936 : vector<8x512xf32>
    %938 = vector.extract_strided_slice %937 {offsets = [0, 0], sizes = [8, 128], strides = [1, 1]} : vector<8x512xf32> to vector<8x128xf32>
    %cst_331 = arith.constant 5.000000e-01 : f32
    %939 = vector.broadcast %cst_331 : f32 to vector<8x128xf32>
    %940 = arith.mulf %939, %938 : vector<8x128xf32>
    %941 = math.tanh %940 : vector<8x128xf32>
    %cst_332 = arith.constant 5.000000e-01 : f32
    %942 = vector.broadcast %cst_332 : f32 to vector<8x128xf32>
    %943 = arith.mulf %942, %941 : vector<8x128xf32>
    %cst_333 = arith.constant 5.000000e-01 : f32
    %944 = vector.broadcast %cst_333 : f32 to vector<8x128xf32>
    %945 = arith.addf %943, %944 : vector<8x128xf32>
    %946 = vector.extract_strided_slice %937 {offsets = [0, 128], sizes = [8, 128], strides = [1, 1]} : vector<8x512xf32> to vector<8x128xf32>
    %cst_334 = arith.constant 5.000000e-01 : f32
    %947 = vector.broadcast %cst_334 : f32 to vector<8x128xf32>
    %948 = arith.mulf %947, %946 : vector<8x128xf32>
    %949 = math.tanh %948 : vector<8x128xf32>
    %cst_335 = arith.constant 5.000000e-01 : f32
    %950 = vector.broadcast %cst_335 : f32 to vector<8x128xf32>
    %951 = arith.mulf %950, %949 : vector<8x128xf32>
    %cst_336 = arith.constant 5.000000e-01 : f32
    %952 = vector.broadcast %cst_336 : f32 to vector<8x128xf32>
    %953 = arith.addf %951, %952 : vector<8x128xf32>
    %954 = vector.extract_strided_slice %937 {offsets = [0, 256], sizes = [8, 128], strides = [1, 1]} : vector<8x512xf32> to vector<8x128xf32>
    %955 = math.tanh %954 : vector<8x128xf32>
    %956 = vector.extract_strided_slice %937 {offsets = [0, 384], sizes = [8, 128], strides = [1, 1]} : vector<8x512xf32> to vector<8x128xf32>
    %cst_337 = arith.constant 5.000000e-01 : f32
    %957 = vector.broadcast %cst_337 : f32 to vector<8x128xf32>
    %958 = arith.mulf %957, %956 : vector<8x128xf32>
    %959 = math.tanh %958 : vector<8x128xf32>
    %cst_338 = arith.constant 5.000000e-01 : f32
    %960 = vector.broadcast %cst_338 : f32 to vector<8x128xf32>
    %961 = arith.mulf %960, %959 : vector<8x128xf32>
    %cst_339 = arith.constant 5.000000e-01 : f32
    %962 = vector.broadcast %cst_339 : f32 to vector<8x128xf32>
    %963 = arith.addf %961, %962 : vector<8x128xf32>
    %964 = arith.mulf %953, %930 : vector<8x128xf32>
    %965 = arith.mulf %945, %955 : vector<8x128xf32>
    %966 = arith.addf %964, %965 : vector<8x128xf32>
    %967 = math.tanh %966 : vector<8x128xf32>
    %968 = arith.mulf %963, %967 : vector<8x128xf32>
    %c7_340 = arith.constant 7 : index
    %c0_341 = arith.constant 0 : index
    %c0_342 = arith.constant 0 : index
    %969 = vector.load %arg19[%c7_340, %c0_341, %c0_342] : memref<8x8x128xf32, #tpu.memory_space<vmem>>, vector<1x8x128xf32>
    %970 = vector.shape_cast %969 : vector<1x8x128xf32> to vector<8x128xf32>
    %971 = vector.shape_cast %968 : vector<8x128xf32> to vector<1x8x128xf32>
    tpu.vector_store %arg19[%c7_340, %c0_341, %c0_342], %971 {strides = array<i32>} : memref<8x8x128xf32, #tpu.memory_space<vmem>>, vector<1x8x128xf32>,
    %972 = tpu.iota {dimensions = array<i32: 1>} : vector<8x128xi32>
    %c64_i32_343 = arith.constant 64 : i32
    %973 = vector.broadcast %c64_i32_343 : i32 to vector<8x128xi32>
    %974 = arith.cmpi slt, %972, %973 : vector<8x128xi32>
    %c0_344 = arith.constant 0 : index
    %c0_345 = arith.constant 0 : index
    %c0_346 = arith.constant 0 : index
    %975 = vector.load %arg19[%c0_344, %c0_345, %c0_346] : memref<8x8x128xf32, #tpu.memory_space<vmem>>, vector<1x8x128xf32>
    %976 = vector.shape_cast %975 : vector<1x8x128xf32> to vector<8x128xf32>
    %c7_347 = arith.constant 7 : index
    %c0_348 = arith.constant 0 : index
    %c0_349 = arith.constant 0 : index
    %977 = vector.load %arg19[%c7_347, %c0_348, %c0_349] : memref<8x8x128xf32, #tpu.memory_space<vmem>>, vector<1x8x128xf32>
    %978 = vector.shape_cast %977 : vector<1x8x128xf32> to vector<8x128xf32>
    %979 = arith.select %974, %976, %978 : vector<8x128xi1>, vector<8x128xf32>
    %c1_350 = arith.constant 1 : index
    %c0_351 = arith.constant 0 : index
    %c0_352 = arith.constant 0 : index
    %980 = vector.load %arg19[%c1_350, %c0_351, %c0_352] : memref<8x8x128xf32, #tpu.memory_space<vmem>>, vector<1x8x128xf32>
    %981 = vector.shape_cast %980 : vector<1x8x128xf32> to vector<8x128xf32>
    %c6_353 = arith.constant 6 : index
    %c0_354 = arith.constant 0 : index
    %c0_355 = arith.constant 0 : index
    %982 = vector.load %arg19[%c6_353, %c0_354, %c0_355] : memref<8x8x128xf32, #tpu.memory_space<vmem>>, vector<1x8x128xf32>
    %983 = vector.shape_cast %982 : vector<1x8x128xf32> to vector<8x128xf32>
    %984 = arith.select %974, %981, %983 : vector<8x128xi1>, vector<8x128xf32>
    %c2_356 = arith.constant 2 : index
    %c0_357 = arith.constant 0 : index
    %c0_358 = arith.constant 0 : index
    %985 = vector.load %arg19[%c2_356, %c0_357, %c0_358] : memref<8x8x128xf32, #tpu.memory_space<vmem>>, vector<1x8x128xf32>
    %986 = vector.shape_cast %985 : vector<1x8x128xf32> to vector<8x128xf32>
    %c5_359 = arith.constant 5 : index
    %c0_360 = arith.constant 0 : index
    %c0_361 = arith.constant 0 : index
    %987 = vector.load %arg19[%c5_359, %c0_360, %c0_361] : memref<8x8x128xf32, #tpu.memory_space<vmem>>, vector<1x8x128xf32>
    %988 = vector.shape_cast %987 : vector<1x8x128xf32> to vector<8x128xf32>
    %989 = arith.select %974, %986, %988 : vector<8x128xi1>, vector<8x128xf32>
    %c3_362 = arith.constant 3 : index
    %c0_363 = arith.constant 0 : index
    %c0_364 = arith.constant 0 : index
    %990 = vector.load %arg19[%c3_362, %c0_363, %c0_364] : memref<8x8x128xf32, #tpu.memory_space<vmem>>, vector<1x8x128xf32>
    %991 = vector.shape_cast %990 : vector<1x8x128xf32> to vector<8x128xf32>
    %c4_365 = arith.constant 4 : index
    %c0_366 = arith.constant 0 : index
    %c0_367 = arith.constant 0 : index
    %992 = vector.load %arg19[%c4_365, %c0_366, %c0_367] : memref<8x8x128xf32, #tpu.memory_space<vmem>>, vector<1x8x128xf32>
    %993 = vector.shape_cast %992 : vector<1x8x128xf32> to vector<8x128xf32>
    %994 = arith.select %974, %991, %993 : vector<8x128xi1>, vector<8x128xf32>
    %c4_368 = arith.constant 4 : index
    %c0_369 = arith.constant 0 : index
    %c0_370 = arith.constant 0 : index
    %995 = vector.load %arg19[%c4_368, %c0_369, %c0_370] : memref<8x8x128xf32, #tpu.memory_space<vmem>>, vector<1x8x128xf32>
    %996 = vector.shape_cast %995 : vector<1x8x128xf32> to vector<8x128xf32>
    %c3_371 = arith.constant 3 : index
    %c0_372 = arith.constant 0 : index
    %c0_373 = arith.constant 0 : index
    %997 = vector.load %arg19[%c3_371, %c0_372, %c0_373] : memref<8x8x128xf32, #tpu.memory_space<vmem>>, vector<1x8x128xf32>
    %998 = vector.shape_cast %997 : vector<1x8x128xf32> to vector<8x128xf32>
    %999 = arith.select %974, %996, %998 : vector<8x128xi1>, vector<8x128xf32>
    %c5_374 = arith.constant 5 : index
    %c0_375 = arith.constant 0 : index
    %c0_376 = arith.constant 0 : index
    %1000 = vector.load %arg19[%c5_374, %c0_375, %c0_376] : memref<8x8x128xf32, #tpu.memory_space<vmem>>, vector<1x8x128xf32>
    %1001 = vector.shape_cast %1000 : vector<1x8x128xf32> to vector<8x128xf32>
    %c2_377 = arith.constant 2 : index
    %c0_378 = arith.constant 0 : index
    %c0_379 = arith.constant 0 : index
    %1002 = vector.load %arg19[%c2_377, %c0_378, %c0_379] : memref<8x8x128xf32, #tpu.memory_space<vmem>>, vector<1x8x128xf32>
    %1003 = vector.shape_cast %1002 : vector<1x8x128xf32> to vector<8x128xf32>
    %1004 = arith.select %974, %1001, %1003 : vector<8x128xi1>, vector<8x128xf32>
    %c6_380 = arith.constant 6 : index
    %c0_381 = arith.constant 0 : index
    %c0_382 = arith.constant 0 : index
    %1005 = vector.load %arg19[%c6_380, %c0_381, %c0_382] : memref<8x8x128xf32, #tpu.memory_space<vmem>>, vector<1x8x128xf32>
    %1006 = vector.shape_cast %1005 : vector<1x8x128xf32> to vector<8x128xf32>
    %c1_383 = arith.constant 1 : index
    %c0_384 = arith.constant 0 : index
    %c0_385 = arith.constant 0 : index
    %1007 = vector.load %arg19[%c1_383, %c0_384, %c0_385] : memref<8x8x128xf32, #tpu.memory_space<vmem>>, vector<1x8x128xf32>
    %1008 = vector.shape_cast %1007 : vector<1x8x128xf32> to vector<8x128xf32>
    %1009 = arith.select %974, %1006, %1008 : vector<8x128xi1>, vector<8x128xf32>
    %c7_386 = arith.constant 7 : index
    %c0_387 = arith.constant 0 : index
    %c0_388 = arith.constant 0 : index
    %1010 = vector.load %arg19[%c7_386, %c0_387, %c0_388] : memref<8x8x128xf32, #tpu.memory_space<vmem>>, vector<1x8x128xf32>
    %1011 = vector.shape_cast %1010 : vector<1x8x128xf32> to vector<8x128xf32>
    %c0_389 = arith.constant 0 : index
    %c0_390 = arith.constant 0 : index
    %c0_391 = arith.constant 0 : index
    %1012 = vector.load %arg19[%c0_389, %c0_390, %c0_391] : memref<8x8x128xf32, #tpu.memory_space<vmem>>, vector<1x8x128xf32>
    %1013 = vector.shape_cast %1012 : vector<1x8x128xf32> to vector<8x128xf32>
    %1014 = arith.select %974, %1011, %1013 : vector<8x128xi1>, vector<8x128xf32>
    %1015 = vector.shape_cast %979 : vector<8x128xf32> to vector<1x8x128xf32>
    %1016 = vector.shape_cast %984 : vector<8x128xf32> to vector<1x8x128xf32>
    %1017 = vector.shape_cast %989 : vector<8x128xf32> to vector<1x8x128xf32>
    %1018 = vector.shape_cast %994 : vector<8x128xf32> to vector<1x8x128xf32>
    %1019 = vector.shape_cast %999 : vector<8x128xf32> to vector<1x8x128xf32>
    %1020 = vector.shape_cast %1004 : vector<8x128xf32> to vector<1x8x128xf32>
    %1021 = vector.shape_cast %1009 : vector<8x128xf32> to vector<1x8x128xf32>
    %1022 = vector.shape_cast %1014 : vector<8x128xf32> to vector<1x8x128xf32>
    %1023 = tpu.concatenate %1015, %1016, %1017, %1018, %1019, %1020, %1021, %1022 in 0 : vector<1x8x128xf32>, vector<1x8x128xf32>, vector<1x8x128xf32>, vector<1x8x128xf32>, vector<1x8x128xf32>, vector<1x8x128xf32>, vector<1x8x128xf32>, vector<1x8x128xf32> -> vector<8x8x128xf32>
    %cst_392 = arith.constant dense<0.000000e+00> : vector<8x8xf32>
    %1024 = vector.multi_reduction <add>, %1023, %cst_392 [2] : vector<8x8x128xf32> to vector<8x8xf32>
    %1025 = vector.shape_cast %1024 : vector<8x8xf32> to vector<8x8x1xf32>
    %cst_393 = arith.constant 1.280000e+02 : f32
    %1026 = vector.broadcast %cst_393 : f32 to vector<8x8x1xf32>
    %1027 = arith.divf %1025, %1026 : vector<8x8x1xf32>
    %1028 = vector.broadcast %1027 : vector<8x8x1xf32> to vector<8x8x128xf32>
    %1029 = arith.subf %1023, %1028 : vector<8x8x128xf32>
    %1030 = arith.mulf %1029, %1029 : vector<8x8x128xf32>
    %cst_394 = arith.constant dense<0.000000e+00> : vector<8x8xf32>
    %1031 = vector.multi_reduction <add>, %1030, %cst_394 [2] : vector<8x8x128xf32> to vector<8x8xf32>
    %1032 = vector.shape_cast %1031 : vector<8x8xf32> to vector<8x8x1xf32>
    %cst_395 = arith.constant 1.280000e+02 : f32
    %1033 = vector.broadcast %cst_395 : f32 to vector<8x8x1xf32>
    %1034 = arith.divf %1032, %1033 : vector<8x8x1xf32>
    %cst_396 = arith.constant 9.99999974E-6 : f32
    %1035 = vector.broadcast %cst_396 : f32 to vector<8x8x1xf32>
    %1036 = arith.addf %1034, %1035 : vector<8x8x1xf32>
    %1037 = math.rsqrt %1036 : vector<8x8x1xf32>
    %1038 = vector.broadcast %1037 : vector<8x8x1xf32> to vector<8x8x128xf32>
    %1039 = arith.mulf %1029, %1038 : vector<8x8x128xf32>
    %c0_397 = arith.constant 0 : index
    %c0_398 = arith.constant 0 : index
    %c0_399 = arith.constant 0 : index
    %1040 = vector.load %arg14[%c0_397, %c0_398, %c0_399] : memref<1x1x128xf32, #tpu.memory_space<vmem>>, vector<1x1x128xf32>
    %1041 = vector.broadcast %1040 : vector<1x1x128xf32> to vector<8x8x128xf32>
    %1042 = arith.mulf %1039, %1041 : vector<8x8x128xf32>
    %c0_400 = arith.constant 0 : index
    %c0_401 = arith.constant 0 : index
    %c0_402 = arith.constant 0 : index
    %1043 = vector.load %arg15[%c0_400, %c0_401, %c0_402] : memref<1x1x128xf32, #tpu.memory_space<vmem>>, vector<1x1x128xf32>
    %1044 = vector.broadcast %1043 : vector<1x1x128xf32> to vector<8x8x128xf32>
    %1045 = arith.addf %1042, %1044 : vector<8x8x128xf32>
    %c0_403 = arith.constant 0 : index
    %c0_404 = arith.constant 0 : index
    %1046 = vector.load %arg16[%c0_403, %c0_404] : memref<1x128xf32, #tpu.memory_space<vmem>>, vector<1x128xf32>
    %1047 = vector.shape_cast %1046 : vector<1x128xf32> to vector<1x1x128xf32>
    %1048 = vector.broadcast %1047 : vector<1x1x128xf32> to vector<8x8x128xf32>
    %1049 = arith.mulf %1045, %1048 : vector<8x8x128xf32>
    %cst_405 = arith.constant dense<0.000000e+00> : vector<8x8xf32>
    %1050 = vector.multi_reduction <add>, %1049, %cst_405 [2] : vector<8x8x128xf32> to vector<8x8xf32>
    %c0_406 = arith.constant 0 : index
    %c0_407 = arith.constant 0 : index
    %1051 = vector.load %arg17[%c0_406, %c0_407] : memref<1x1xf32, #tpu.memory_space<vmem>>, vector<1x1xf32>
    %1052 = vector.broadcast %1051 : vector<1x1xf32> to vector<8x8xf32>
    %1053 = arith.addf %1050, %1052 : vector<8x8xf32>
    %c0_408 = arith.constant 0 : index
    %c0_409 = arith.constant 0 : index
    %c0_410 = arith.constant 0 : index
    %1054 = vector.load %arg18[%c0_408, %c0_409, %c0_410] : memref<1x8x8xf32, #tpu.memory_space<vmem>>, vector<1x8x8xf32>
    %1055 = vector.shape_cast %1054 : vector<1x8x8xf32> to vector<8x8xf32>
    %1056 = vector.shape_cast %1053 : vector<8x8xf32> to vector<1x8x8xf32>
    tpu.vector_store %arg18[%c0_408, %c0_409, %c0_410], %1056 {strides = array<i32>} : memref<1x8x8xf32, #tpu.memory_space<vmem>>, vector<1x8x8xf32>,
    return
  }
  func.func @transform_0(%arg0: i32) -> (i32, i32, i32) {
    %c0_i32 = arith.constant 0 : i32
    %c0_i32_0 = arith.constant 0 : i32
    %c0_i32_1 = arith.constant 0 : i32
    return %c0_i32, %arg0, %c0_i32_0 : i32, i32, i32
  }
  func.func @transform_1(%arg0: i32) -> (i32, i32) {
    %c0_i32 = arith.constant 0 : i32
    %c0_i32_0 = arith.constant 0 : i32
    %c0_i32_1 = arith.constant 0 : i32
    return %c0_i32, %c0_i32_0 : i32, i32
  }
  func.func @transform_2(%arg0: i32) -> (i32, i32) {
    %c0_i32 = arith.constant 0 : i32
    %c0_i32_0 = arith.constant 0 : i32
    %c0_i32_1 = arith.constant 0 : i32
    return %c0_i32, %c0_i32_0 : i32, i32
  }
  func.func @transform_3(%arg0: i32) -> (i32, i32, i32) {
    %c0_i32 = arith.constant 0 : i32
    %c0_i32_0 = arith.constant 0 : i32
    %c0_i32_1 = arith.constant 0 : i32
    %c0_i32_2 = arith.constant 0 : i32
    return %c0_i32, %c0_i32_0, %c0_i32_1 : i32, i32, i32
  }
  func.func @transform_4(%arg0: i32) -> (i32, i32, i32) {
    %c0_i32 = arith.constant 0 : i32
    %c0_i32_0 = arith.constant 0 : i32
    %c0_i32_1 = arith.constant 0 : i32
    %c0_i32_2 = arith.constant 0 : i32
    return %c0_i32, %c0_i32_0, %c0_i32_1 : i32, i32, i32
  }
  func.func @transform_5(%arg0: i32) -> (i32, i32) {
    %c0_i32 = arith.constant 0 : i32
    %c0_i32_0 = arith.constant 0 : i32
    %c0_i32_1 = arith.constant 0 : i32
    return %c0_i32, %c0_i32_0 : i32, i32
  }
  func.func @transform_6(%arg0: i32) -> (i32, i32, i32) {
    %c0_i32 = arith.constant 0 : i32
    %c0_i32_0 = arith.constant 0 : i32
    %c0_i32_1 = arith.constant 0 : i32
    %c0_i32_2 = arith.constant 0 : i32
    return %c0_i32, %c0_i32_0, %c0_i32_1 : i32, i32, i32
  }
  func.func @transform_7(%arg0: i32) -> (i32, i32, i32) {
    %c0_i32 = arith.constant 0 : i32
    %c0_i32_0 = arith.constant 0 : i32
    %c0_i32_1 = arith.constant 0 : i32
    %c0_i32_2 = arith.constant 0 : i32
    return %c0_i32, %c0_i32_0, %c0_i32_1 : i32, i32, i32
  }
  func.func @transform_8(%arg0: i32) -> (i32, i32) {
    %c0_i32 = arith.constant 0 : i32
    %c0_i32_0 = arith.constant 0 : i32
    %c0_i32_1 = arith.constant 0 : i32
    return %c0_i32, %c0_i32_0 : i32, i32
  }
  func.func @transform_9(%arg0: i32) -> (i32, i32) {
    %c0_i32 = arith.constant 0 : i32
    %c0_i32_0 = arith.constant 0 : i32
    %c0_i32_1 = arith.constant 0 : i32
    return %c0_i32, %c0_i32_0 : i32, i32
  }
  func.func @transform_10(%arg0: i32) -> (i32, i32, i32) {
    %c0_i32 = arith.constant 0 : i32
    %c0_i32_0 = arith.constant 0 : i32
    %c0_i32_1 = arith.constant 0 : i32
    %c0_i32_2 = arith.constant 0 : i32
    return %c0_i32, %c0_i32_0, %c0_i32_1 : i32, i32, i32
  }
  func.func @transform_11(%arg0: i32) -> (i32, i32, i32) {
    %c0_i32 = arith.constant 0 : i32
    %c0_i32_0 = arith.constant 0 : i32
    %c0_i32_1 = arith.constant 0 : i32
    %c0_i32_2 = arith.constant 0 : i32
    return %c0_i32, %c0_i32_0, %c0_i32_1 : i32, i32, i32
  }
  func.func @transform_12(%arg0: i32) -> (i32, i32) {
    %c0_i32 = arith.constant 0 : i32
    %c0_i32_0 = arith.constant 0 : i32
    %c0_i32_1 = arith.constant 0 : i32
    return %c0_i32, %c0_i32_0 : i32, i32
  }
  func.func @transform_13(%arg0: i32) -> (i32, i32, i32) {
    %c0_i32 = arith.constant 0 : i32
    %c0_i32_0 = arith.constant 0 : i32
    %c0_i32_1 = arith.constant 0 : i32
    %c0_i32_2 = arith.constant 0 : i32
    return %c0_i32, %c0_i32_0, %c0_i32_1 : i32, i32, i32
  }
  func.func @transform_14(%arg0: i32) -> (i32, i32, i32) {
    %c0_i32 = arith.constant 0 : i32
    %c0_i32_0 = arith.constant 0 : i32
    %c0_i32_1 = arith.constant 0 : i32
    %c0_i32_2 = arith.constant 0 : i32
    return %c0_i32, %c0_i32_0, %c0_i32_1 : i32, i32, i32
  }
  func.func @transform_15(%arg0: i32) -> (i32, i32) {
    %c0_i32 = arith.constant 0 : i32
    %c0_i32_0 = arith.constant 0 : i32
    %c0_i32_1 = arith.constant 0 : i32
    return %c0_i32, %c0_i32_0 : i32, i32
  }
  func.func @transform_16(%arg0: i32) -> (i32, i32) {
    %c0_i32 = arith.constant 0 : i32
    %c0_i32_0 = arith.constant 0 : i32
    %c0_i32_1 = arith.constant 0 : i32
    return %c0_i32, %c0_i32_0 : i32, i32
  }
  func.func @transform_17(%arg0: i32) -> (i32, i32, i32) {
    %c0_i32 = arith.constant 0 : i32
    %c0_i32_0 = arith.constant 0 : i32
    %c0_i32_1 = arith.constant 0 : i32
    return %arg0, %c0_i32, %c0_i32_0 : i32, i32, i32
  }
}

</mosaic_0001>

<bundles_post_ra>
// kernel: rnn_new_forward.1
= control target key start
LH: loop header
LB: loop body
LE: loop exit
PB: predicated region body
PF: predicated region fallthrough
CT: control target
= control target key end

     0   :  { %v10652_v0 = vmov 0   ;;  %v10650_v11 = vmov 0.0   ;;  %vm5716_vm1 = vcmask 1041409   ;;  %vm5718_vm2 = vcmask 1042434   ;;  %s10630_s0 = inlined_call_operand.vmem [shape: f32[8,8,4], index: 0, kind: input, shape index: {}]   ;;  %s10631_s5 = inlined_call_operand.vmem [shape: f32[128,512], index: 5, kind: input, shape index: {}]   ;;  %s10632_s1 = inlined_call_operand.vmem [shape: f32[4,512], index: 1, kind: input, shape index: {}]   ;;  %s10633_s2 = inlined_call_operand.vmem [shape: f32[4,512], index: 2, kind: input, shape index: {}]   ;;  %s10634_s3 = inlined_call_operand.vmem [shape: f32[1,1,512], index: 3, kind: input, shape index: {}]   ;;  %s10635_s4 = inlined_call_operand.vmem [shape: f32[1,1,512], index: 4, kind: input, shape index: {}]   ;;  %s10636_s8 = inlined_call_operand.vmem [shape: f32[128,512], index: 8, kind: input, shape index: {}]   ;;  %s10637_s9 = inlined_call_operand.vmem [shape: f32[128,512], index: 9, kind: input, shape index: {}]   ;;  %s10638_s6 = inlined_call_operand.vmem [shape: f32[1,1,128], index: 6, kind: input, shape index: {}]   ;;  %s10639_s7 = inlined_call_operand.vmem [shape: f32[1,1,128], index: 7, kind: input, shape index: {}]   ;;  %s10640_s12 = inlined_call_operand.vmem [shape: f32[128,512], index: 12, kind: input, shape index: {}]   ;;  %s10641_s10 = inlined_call_operand.vmem [shape: f32[1,1,512], index: 10, kind: input, shape index: {}]   ;;  %s10642_s11 = inlined_call_operand.vmem [shape: f32[1,1,512], index: 11, kind: input, shape index: {}]   ;;  %s10643_s13 = inlined_call_operand.vmem [shape: f32[1,1,128], index: 13, kind: input, shape index: {}]   ;;  %s10644_s14 = inlined_call_operand.vmem [shape: f32[1,1,128], index: 14, kind: input, shape index: {}]   ;;  %s10645_s15 = inlined_call_operand.vmem [shape: f32[1,128], index: 15, kind: input, shape index: {}]   ;;  %s10646_s16 = inlined_call_operand.<no memory space> [shape: f32[1,1], index: 16, kind: input, shape index: {}]   ;;  %s10647_s17 = inlined_call_operand.vmem [shape: f32[1,8,8], index: 17, kind: output, shape index: {}]  }
   0x1   :  { %10924 = sst [smem:[#allocation100_spill]] %s10630_s0  ;;  %7035 = vset.pattern.permute.xlu1 %v10652_v0  ;;  %7034 = vset.pattern.permute.xlu0 %v10652_v0  ;;  %vm5720_vm3 = vcmask 1043459   ;;  %vm5722_vm4 = vcmask 1044484   ;;  %vm5724_vm5 = vcmask 1045509   ;;  %vm5726_vm6 = vcmask 1046534  }
   0x2   :  { %10925 = sst [smem:[#allocation101_spill]] %s10631_s5  ;;  %s10926_s26 = sld [smem:[#allocation100_spill]]  ;;  %2052 = vmatprep.mubr.f32.mxu0 %v10650_v11  ;;  %2123 = vmatprep.mubr.f32.mxu1 %v10650_v11  ;;  %vm5728_vm7 = vcmask 1047559   ;;  %vm5731_vm8 = vcmask 64512  }
   0x3   :  { %s10927_s29 = sld [smem:[#allocation101_spill]] }
   0x8   :  { %v7499_v1 = vld [vmem:[%s10926_s26] sm:$0xff]  ;;  %v7504_v2 = vld [vmem:[%s10926_s26 + $0x8] sm:$0xff]  ;;  %v7509_v3 = vld [vmem:[%s10926_s26 + $0x38] sm:$0xff] }
   0x9   :  { %v178_v4 = vsub.f32 %v7499_v1, %v7504_v2  ;;  %v66_v5 = vsub.f32 %v7499_v1, %v7499_v1  ;;  %v185_v6 = vsub.f32 %v7509_v3, %v7504_v2  ;;  %v73_v7 = vsub.f32 %v7509_v3, %v7499_v1  ;;  %v7522_v8 = vld [vmem:[%s10926_s26 + $0x10] sm:$0xff]  ;;  %v7527_v9 = vld [vmem:[%s10926_s26 + $0x18] sm:$0xff]  ;;  %v7532_v10 = vld [vmem:[%s10926_s26 + $0x20] sm:$0xff] }
   0xa   :  { %v305_v12 = vsub.f32 %v7509_v3, %v7522_v8  ;;  %v298_v13 = vsub.f32 %v7499_v1, %v7522_v8  ;;  %v425_v14 = vsub.f32 %v7509_v3, %v7527_v9  ;;  %v418_v15 = vsub.f32 %v7499_v1, %v7527_v9  ;;  %v7551_v44 = vld [vmem:[%s10926_s26 + $0x28] sm:$0xff]  ;;  %v7556_v49 = vld [vmem:[%s10926_s26 + $0x30] sm:$0xff] }
   0xb   :  { %v186_v16 = vand.u32 2147483647, %v178_v4  ;;  %v74_v17 = vand.u32 2147483647, %v66_v5  ;;  %v193_v18 = vand.u32 2147483647, %v185_v6  ;;  %v545_v19 = vsub.f32 %v7509_v3, %v7532_v10 }
   0xc   :  { %v81_v20 = vand.u32 2147483647, %v73_v7  ;;  %v313_v21 = vand.u32 2147483647, %v305_v12  ;;  %v306_v22 = vand.u32 2147483647, %v298_v13  ;;  %v538_v23 = vsub.f32 %v7499_v1, %v7532_v10 }
   0xd   :  { %v194_v24 = vsub.f32 0.0, %v186_v16  ;;  %v82_v25 = vsub.f32 0.0, %v74_v17  ;;  %v201_v26 = vsub.f32 0.0, %v193_v18  ;;  %v433_v27 = vand.u32 2147483647, %v425_v14  ;;  %v1925_v18 = vld [vmem:[%s10927_s29 + $0x8] sm:$0xff] }
   0xe   :  { %v89_v28 = vsub.f32 0.0, %v81_v20  ;;  %v321_v29 = vsub.f32 0.0, %v313_v21  ;;  %v314_v30 = vsub.f32 0.0, %v306_v22  ;;  %v426_v31 = vand.u32 2147483647, %v418_v15 }
   0xf   :  { %v202_v32 = vmul.f32 20.0, %v194_v24  ;;  %v90_v33 = vmul.f32 20.0, %v82_v25  ;;  %v209_v34 = vmul.f32 20.0, %v201_v26  ;;  %v441_v35 = vsub.f32 0.0, %v433_v27  ;;  %v1928_v24 = vld [vmem:[%s10927_s29 + $0x20] sm:$0xff]  ;;  %v1927_v27 = vld [vmem:[%s10927_s29 + $0x18] sm:$0xff] }
  0x10   :  { %v97_v36 = vmul.f32 20.0, %v89_v28  ;;  %v329_v37 = vmul.f32 20.0, %v321_v29  ;;  %v322_v38 = vmul.f32 20.0, %v314_v30  ;;  %v434_v39 = vsub.f32 0.0, %v426_v31 }
  0x11   :  { %v210_v40 = vmul.f32 0.5, %v202_v32  ;;  %v98_v41 = vmul.f32 0.5, %v90_v33  ;;  %v217_v42 = vmul.f32 0.5, %v209_v34  ;;  %v449_v43 = vmul.f32 20.0, %v441_v35  ;;  %v1931_v33 = vld [vmem:[%s10927_s29 + $0x38] sm:$0xff] }
  0x12   :  { %v105_v45 = vmul.f32 0.5, %v97_v36  ;;  %v337_v46 = vmul.f32 0.5, %v329_v37  ;;  %v330_v47 = vmul.f32 0.5, %v322_v38  ;;  %v442_v48 = vmul.f32 20.0, %v434_v39 }
  0x13   :  { %7063 = vtanh.f32 %v210_v40  ;;  %v457_v50 = vmul.f32 0.5, %v449_v43  ;;  %v553_v51 = vand.u32 2147483647, %v545_v19  ;;  %v546_v52 = vand.u32 2147483647, %v538_v23  ;;  %v1929_v19 = vld [vmem:[%s10927_s29 + $0x28] sm:$0xff] }
  0x14   :  { %7065 = vtanh.f32 %v98_v41  ;;  %v450_v53 = vmul.f32 0.5, %v442_v48  ;;  %v665_v54 = vsub.f32 %v7509_v3, %v7551_v44  ;;  %v658_v55 = vsub.f32 %v7499_v1, %v7551_v44  ;;  %v1924_v23 = vld [vmem:[%s10927_s29] sm:$0xff]  ;;  %v1930_v43 = vld [vmem:[%s10927_s29 + $0x30] sm:$0xff] }
  0x15   :  { %7067 = vtanh.f32 %v217_v42  ;;  %v561_v56 = vsub.f32 0.0, %v553_v51  ;;  %v554_v57 = vsub.f32 0.0, %v546_v52  ;;  %v785_v58 = vsub.f32 %v7509_v3, %v7556_v49  ;;  %v1926_v42 = vld [vmem:[%s10927_s29 + $0x10] sm:$0xff]  ;;  %v1933_v51 = vld [vmem:[%s10927_s29 + $0x48] sm:$0xff] }
  0x16   :  { %7069 = vtanh.f32 %v105_v45  ;;  %v673_v59 = vand.u32 2147483647, %v665_v54  ;;  %v666_v60 = vand.u32 2147483647, %v658_v55  ;;  %v778_v61 = vsub.f32 %v7499_v1, %v7556_v49  ;;  %v1937_v52 = vld [vmem:[%s10927_s29 + $0x68] sm:$0xff] }
  0x17   :  { %7071 = vtanh.f32 %v337_v46  ;;  %v569_v62 = vmul.f32 20.0, %v561_v56  ;;  %v562_v63 = vmul.f32 20.0, %v554_v57  ;;  %v793_v4 = vand.u32 2147483647, %v785_v58  ;;  %v1936_v58 = vld [vmem:[%s10927_s29 + $0x60] sm:$0xff] }
  0x18   :  { %7073 = vtanh.f32 %v330_v47  ;;  %v681_v5 = vsub.f32 0.0, %v673_v59  ;;  %v674_v6 = vsub.f32 0.0, %v666_v60  ;;  %v786_v7 = vand.u32 2147483647, %v778_v61  ;;  %v1935_v59 = vld [vmem:[%s10927_s29 + $0x58] sm:$0xff] }
  0x19   :  { %7075 = vtanh.f32 %v457_v50  ;;  %v577_v12 = vmul.f32 0.5, %v569_v62  ;;  %v570_v13 = vmul.f32 0.5, %v562_v63  ;;  %v801_v14 = vsub.f32 0.0, %v793_v4  ;;  %v1939_v60 = vld [vmem:[%s10927_s29 + $0x78] sm:$0xff] }
  0x1a   :  { %7077 = vtanh.f32 %v450_v53  ;;  %v689_v15 = vmul.f32 20.0, %v681_v5  ;;  %v682_v16 = vmul.f32 20.0, %v674_v6  ;;  %v794_v17 = vsub.f32 0.0, %v786_v7  ;;  %v1932_v53 = vld [vmem:[%s10927_s29 + $0x40] sm:$0xff]  ;;  %v1934_v6 = vld [vmem:[%s10927_s29 + $0x50] sm:$0xff] }
  0x1b   :  { %v809_v20 = vmul.f32 20.0, %v801_v14  ;;  %v905_v21 = vsub.f32 %v7509_v3, %v7509_v3  ;;  %v898_v22 = vsub.f32 %v7499_v1, %v7509_v3  ;;  %7079 = vtanh.f32 %v577_v12  ;;  %v1938_v7 = vld [vmem:[%s10927_s29 + $0x70] sm:$0xff]  ;;  %v1941_v12 = vld [vmem:[%s10927_s29 + $0x88] sm:$0xff] }
  0x1c   :  { %v697_v25 = vmul.f32 0.5, %v689_v15  ;;  %v802_v26 = vmul.f32 20.0, %v794_v17  ;;  %v690_v29 = vmul.f32 0.5, %v682_v16  ;;  %v7585_v32 = vpack.c.bf16 %v1929_v19, %v1925_v18  ;;  %v1945_v17 = vld [vmem:[%s10927_s29 + $0xa8] sm:$0xff]  ;;  %v1940_v18 = vld [vmem:[%s10927_s29 + $0x80] sm:$0xff] }
  0x1d   :  { %v7064_v28 = vpop.eup %7063  ;;  %v913_v30 = vand.u32 2147483647, %v905_v21  ;;  %v906_v31 = vand.u32 2147483647, %v898_v22  ;;  %7081 = vtanh.f32 %v570_v13  ;;  %v817_v36 = vmul.f32 0.5, %v809_v20  ;;  %v1944_v19 = vld [vmem:[%s10927_s29 + $0xa0] sm:$0xff] }
  0x1e   :  { %10928 = vst [vmem:[#allocation4_spill] sm:$0xff] %v7585_v32  ;;  %v7066_v34 = vpop.eup %7065  ;;  %v226_v35 = vmul.f32 0.5, %v7064_v28  ;;  %v7590_v37 = vpack.c.bf16 %v1928_v24, %v1924_v23  ;;  %7083 = vtanh.f32 %v697_v25  ;;  %5750 = vmatprep.subr.bf16.mxu0 %v7585_v32  ;;  %v810_v48 = vmul.f32 0.5, %v802_v26  ;;  %v1943_v22 = vld [vmem:[%s10927_s29 + $0x98] sm:$0xff]  ;;  %v1942_v24 = vld [vmem:[%s10927_s29 + $0x90] sm:$0xff]  ;;  %v1949_v28 = vld [vmem:[%s10927_s29 + $0xc8] sm:$0xff] }
  0x1f   :  { %v7068_v38 = vpop.eup %7067  ;;  %v114_v39 = vmul.f32 0.5, %v7066_v34  ;;  %v921_v40 = vsub.f32 0.0, %v913_v30  ;;  %v914_v41 = vsub.f32 0.0, %v906_v31  ;;  %v7600_v50 = vpack.c.bf16 %v1931_v33, %v1927_v27  ;;  %v1947_v23 = vld [vmem:[%s10927_s29 + $0xb8] sm:$0xff]  ;;  %v1946_v27 = vld [vmem:[%s10927_s29 + $0xb0] sm:$0xff] }
  0x20   :  { %10929 = vst [vmem:[#allocation5_spill] sm:$0xff] %v7590_v37  ;;  %v7070_v45 = vpop.eup %7069  ;;  %v234_v46 = vadd.f32 0.5, %v226_v35  ;;  %v233_v47 = vmul.f32 0.5, %v7068_v38  ;;  %5752 = vmatpush1.bf16.msra.mxu0 %v7590_v37  ;;  %7085 = vtanh.f32 %v690_v29  ;;  %v7621_v5 = vpack.c.bf16 %v1930_v43, %v1926_v42  ;;  %v1953_v29 = vld [vmem:[%s10927_s29 + $0xe8] sm:$0xff]  ;;  %v1955_v38 = vld [vmem:[%s10927_s29 + $0xf8] sm:$0xff]  ;;  %v1948_v43 = vld [vmem:[%s10927_s29 + $0xc0] sm:$0xff] }
  0x21   :  { %10930 = vst [vmem:[#allocation6_spill] sm:$0xff] %v7600_v50  ;;  %v7072_v54 = vpop.eup %7071  ;;  %v122_v55 = vadd.f32 0.5, %v114_v39  ;;  %v121_v56 = vmul.f32 0.5, %v7070_v45  ;;  %v929_v57 = vmul.f32 20.0, %v921_v40  ;;  %v922_v4 = vmul.f32 20.0, %v914_v41  ;;  %5782 = vmatprep.subr.bf16.mxu1 %v7600_v50  ;;  %v1952_v45 = vld [vmem:[%s10927_s29 + $0xe0] sm:$0xff] }
  0x22   :  { %v7074_v61 = vpop.eup %7073  ;;  %244 = vperm.xlu1 %7035, %v234_v46   ;;  %v241_v62 = vadd.f32 0.5, %v233_v47  ;;  %v353_v63 = vmul.f32 0.5, %v7072_v54  ;;  %10931 = vst [vmem:[#allocation7_spill] sm:$0xff] %v7621_v5  ;;  %v7632_v16 = vpack.c.bf16 %v1937_v52, %v1933_v51  ;;  %7087 = vtanh.f32 %v817_v36  ;;  %5784 = vmatpush1.bf16.msra.mxu1 %v7621_v5  ;;  %v1951_v36 = vld [vmem:[%s10927_s29 + $0xd8] sm:$0xff]  ;;  %v1957_v52 = vld [vmem:[%s10927_s29 + $0x108] sm:$0xff] }
  0x23   :  { %v7076_v13 = vpop.eup %7075  ;;  %132 = vperm.xlu0 %7034, %v122_v55   ;;  %v129_v14 = vadd.f32 0.5, %v121_v56  ;;  %v346_v15 = vmul.f32 0.5, %v7074_v61  ;;  %v7644_v21 = vpack.c.bf16 %v1936_v58, %v1932_v53  ;;  %7089 = vtanh.f32 %v810_v48  ;;  %v1961_v53 = vld [vmem:[%s10927_s29 + $0x128] sm:$0xff]  ;;  %v1950_v56 = vld [vmem:[%s10927_s29 + $0xd0] sm:$0xff]  ;;  %v1959_v61 = vld [vmem:[%s10927_s29 + $0x118] sm:$0xff] }
  0x24   :  { %10932 = vst [vmem:[#allocation8_spill] sm:$0xff] %v7632_v16  ;;  %v7078_v20 = vpop.eup %7077  ;;  %v937_v25 = vmul.f32 0.5, %v929_v57  ;;  %5754 = vmatprep.subr.bf16.mxu0 %v7632_v16  ;;  %v7656_v26 = vpack.c.bf16 %v1939_v60, %v1935_v59  ;;  %v361_v31 = vadd.f32 0.5, %v353_v63  ;;  %v473_v33 = vmul.f32 0.5, %v7076_v13  ;;  %v1954_v57 = vld [vmem:[%s10927_s29 + $0xf0] sm:$0xff]  ;;  %v1960_v13 = vld [vmem:[%s10927_s29 + $0x120] sm:$0xff] }
  0x25   :  { %10933 = vst [vmem:[#allocation9_spill] sm:$0xff] %v7644_v21  ;;  %v7080_v30 = vpop.eup %7079  ;;  %v930_v34 = vmul.f32 0.5, %v922_v4  ;;  %5756 = vmatpush1.bf16.msra.mxu0 %v7644_v21  ;;  %v7668_v35 = vpack.c.bf16 %v1938_v7, %v1934_v6  ;;  %v354_v39 = vadd.f32 0.5, %v346_v15  ;;  %v466_v40 = vmul.f32 0.5, %v7078_v20  ;;  %v1965_v15 = vld [vmem:[%s10927_s29 + $0x148] sm:$0xff]  ;;  %v1962_v20 = vld [vmem:[%s10927_s29 + $0x130] sm:$0xff] }
  0x26   :  { %10934 = vst [vmem:[#allocation10_spill] sm:$0xff] %v7656_v26  ;;  %279 = vperm.xlu1 %7035, %v241_v62   ;;  %5786 = vmatprep.subr.bf16.mxu1 %v7656_v26  ;;  %v7677_v41 = vpack.c.bf16 %v1945_v17, %v1941_v12  ;;  %v7679_v42 = vpack.c.bf16 %v1944_v19, %v1940_v18  ;;  %7091 = vtanh.f32 %v937_v25  ;;  %v481_v58 = vadd.f32 0.5, %v473_v33  ;;  %v1963_v62 = vld [vmem:[%s10927_s29 + $0x138] sm:$0xff]  ;;  %v1956_v12 = vld [vmem:[%s10927_s29 + $0x100] sm:$0xff]  ;;  %v1969_v17 = vld [vmem:[%s10927_s29 + $0x168] sm:$0xff] }
  0x27   :  { %10935 = vst [vmem:[#allocation11_spill] sm:$0xff] %v7668_v35  ;;  %167 = vperm.xlu0 %7034, %v129_v14   ;;  %v7082_v46 = vpop.eup %7081  ;;  %5788 = vmatpush1.bf16.msra.mxu1 %v7668_v35  ;;  %v7688_v47 = vpack.c.bf16 %v1947_v23, %v1943_v22  ;;  %v7690_v48 = vpack.c.bf16 %v1946_v27, %v1942_v24  ;;  %v593_v59 = vmul.f32 0.5, %v7080_v30  ;;  %7093 = vtanh.f32 %v930_v34  ;;  %v1958_v19 = vld [vmem:[%s10927_s29 + $0x110] sm:$0xff]  ;;  %v1967_v27 = vld [vmem:[%s10927_s29 + $0x158] sm:$0xff]  ;;  %v1964_v34 = vld [vmem:[%s10927_s29 + $0x140] sm:$0xff] }
  0x28   :  { %10936 = vst [vmem:[#allocation12_spill] sm:$0xff] %v7677_v41  ;;  %10937 = vst [vmem:[#allocation13_spill] sm:$0xff] %v7679_v42  ;;  %v7692_v51 = vpack.c.bf16 %v1953_v29, %v1949_v28  ;;  %v7084_v54 = vpop.eup %7083  ;;  %5758 = vmatprep.subr.bf16.mxu0 %v7677_v41  ;;  %v7701_v55 = vpack.c.bf16 %v1955_v38, %v1951_v36  ;;  %v7710_v60 = vpack.c.bf16 %v1952_v45, %v1948_v43  ;;  %v1971_v28 = vld [vmem:[%s10927_s29 + $0x178] sm:$0xff]  ;;  %v1968_v36 = vld [vmem:[%s10927_s29 + $0x160] sm:$0xff] }
  0x29   :  { %10938 = vst [vmem:[#allocation14_spill] sm:$0xff] %v7688_v47  ;;  %10939 = vst [vmem:[#allocation15_spill] sm:$0xff] %v7690_v48  ;;  %5760 = vmatpush1.bf16.msra.mxu0 %v7679_v42  ;;  %v474_v4 = vadd.f32 0.5, %v466_v40  ;;  %v586_v6 = vmul.f32 0.5, %v7082_v46  ;;  %5790 = vmatprep.subr.bf16.mxu1 %v7688_v47  ;;  %v7719_v7 = vpack.c.bf16 %v1961_v53, %v1957_v52  ;;  %v601_v23 = vadd.f32 0.5, %v593_v59  ;;  %v1977_v40 = vld [vmem:[%s10927_s29 + $0x1a8] sm:$0xff] }
  0x2a   :  { %10940 = vst [vmem:[#allocation16_spill] sm:$0xff] %v7692_v51  ;;  %10941 = vst [vmem:[#allocation17_spill] sm:$0xff] %v7701_v55  ;;  %399 = vperm.xlu1 %7035, %v361_v31   ;;  %v7086_v63 = vpop.eup %7085  ;;  %5762 = vmatprep.subr.bf16.mxu0 %v7692_v51  ;;  %v7729_v14 = vpack.c.bf16 %v1954_v57, %v1950_v56  ;;  %v7738_v18 = vpack.c.bf16 %v1963_v62, %v1959_v61  ;;  %v713_v24 = vmul.f32 0.5, %v7084_v54  ;;  %v1966_v45 = vld [vmem:[%s10927_s29 + $0x150] sm:$0xff]  ;;  %v1975_v56 = vld [vmem:[%s10927_s29 + $0x198] sm:$0xff] }
  0x2b   :  { %10942 = vst [vmem:[#allocation18_spill] sm:$0xff] %v7710_v60  ;;  %364 = vperm.xlu0 %7034, %v354_v39   ;;  %10943 = vst [vmem:[#allocation19_spill] sm:$0xff] %v7719_v7  ;;  %5792 = vmatpush1.bf16.msra.mxu1 %v7690_v48  ;;  %v7747_v25 = vpack.c.bf16 %v1960_v13, %v1956_v12  ;;  %v594_v30 = vadd.f32 0.5, %v586_v6  ;;  %v706_v31 = vmul.f32 0.5, %v7086_v63  ;;  %v1973_v39 = vld [vmem:[%s10927_s29 + $0x188] sm:$0xff]  ;;  %v1970_v46 = vld [vmem:[%s10927_s29 + $0x170] sm:$0xff] }
  0x2c   :  { %10944 = vst [vmem:[#allocation20_spill] sm:$0xff] %v7729_v14  ;;  %5794 = vmatprep.subr.bf16.mxu1 %v7701_v55  ;;  %10945 = vst [vmem:[#allocation21_spill] sm:$0xff] %v7738_v18  ;;  %v7088_v22 = vpop.eup %7087  ;;  %v7756_v33 = vpack.c.bf16 %v1969_v17, %v1965_v15  ;;  %v7765_v38 = vpack.c.bf16 %v1962_v20, %v1958_v19  ;;  %v7774_v43 = vpack.c.bf16 %v1971_v28, %v1967_v27  ;;  %v1979_v57 = vld [vmem:[%s10927_s29 + $0x1b8] sm:$0xff]  ;;  %v1972_v63 = vld [vmem:[%s10927_s29 + $0x180] sm:$0xff] }
  0x2d   :  { %5764 = vmatpush1.bf16.msra.mxu0 %v7710_v60  ;;  %10946 = vst [vmem:[#allocation22_spill] sm:$0xff] %v7747_v25  ;;  %v7090_v29 = vpop.eup %7089  ;;  %v721_v52 = vadd.f32 0.5, %v713_v24  ;;  %v833_v53 = vmul.f32 0.5, %v7088_v22  ;;  %v7783_v54 = vpack.c.bf16 %v1968_v36, %v1964_v34  ;;  %v714_v59 = vadd.f32 0.5, %v706_v31  ;;  %v1981_v13 = vld [vmem:[%s10927_s29 + $0x1c8] sm:$0xff]  ;;  %v1974_v19 = vld [vmem:[%s10927_s29 + $0x190] sm:$0xff] }
  0x2e   :  { %519 = vperm.xlu1 %7035, %v481_v58   ;;  %5766 = vmatprep.subr.bf16.mxu0 %v7719_v7  ;;  %10947 = vst [vmem:[#allocation23_spill] sm:$0xff] %v7756_v33  ;;  %10948 = vst [vmem:[#allocation24_spill] sm:$0xff] %v7765_v38  ;;  %v826_v61 = vmul.f32 0.5, %v7090_v29  ;;  %v7792_v62 = vpack.c.bf16 %v1977_v40, %v1973_v39  ;;  %v7801_v12 = vpack.c.bf16 %v1970_v46, %v1966_v45  ;;  %v1985_v15 = vld [vmem:[%s10927_s29 + $0x1e8] sm:$0xff]  ;;  %v1978_v20 = vld [vmem:[%s10927_s29 + $0x1b0] sm:$0xff] }
  0x2f   :  { %484 = vperm.xlu0 %7034, %v474_v4   ;;  %5796 = vmatpush1.bf16.msra.mxu1 %v7729_v14  ;;  %10949 = vst [vmem:[#allocation25_spill] sm:$0xff] %v7774_v43  ;;  %10950 = vst [vmem:[#allocation26_spill] sm:$0xff] %v7783_v54  ;;  %v1976_v4 = vld [vmem:[%s10927_s29 + $0x1a0] sm:$0xff]  ;;  %v7810_v17 = vpack.c.bf16 %v1979_v57, %v1975_v56  ;;  %v841_v22 = vadd.f32 0.5, %v833_v53  ;;  %v1983_v27 = vld [vmem:[%s10927_s29 + $0x1d8] sm:$0xff]  ;;  %v7828_v31 = vpack.c.bf16 %v1985_v15, %v1981_v13 }
  0x30   :  { %5798 = vmatprep.subr.bf16.mxu1 %v7738_v18  ;;  %v7092_v58 = vpop.eup %7091  ;;  %10951 = vst [vmem:[#allocation27_spill] sm:$0xff] %v7792_v62  ;;  %10952 = vst [vmem:[#allocation28_spill] sm:$0xff] %v7801_v12  ;;  %v7819_v24 = vpack.c.bf16 %v1976_v4, %v1972_v63  ;;  %v1987_v28 = vld [vmem:[%s10927_s29 + $0x1f8] sm:$0xff]  ;;  %v834_v29 = vadd.f32 0.5, %v826_v61  ;;  %v1980_v34 = vld [vmem:[%s10927_s29 + $0x1c0] sm:$0xff]  ;;  %v7837_v39 = vpack.c.bf16 %v1978_v20, %v1974_v19 }
  0x31   :  { %5768 = vmatpush1.bf16.msra.mxu0 %v7747_v25  ;;  %v7094_v6 = vpop.eup %7093  ;;  %10953 = vst [vmem:[#allocation29_spill] sm:$0xff] %v7810_v17  ;;  %10955 = vst [vmem:[#allocation31_spill] sm:$0xff] %v7828_v31  ;;  %v1984_v36 = vld [vmem:[%s10927_s29 + $0x1e0] sm:$0xff]  ;;  %v7840_v40 = vpack.c.bf16 %v1987_v28, %v1983_v27  ;;  %v1982_v45 = vld [vmem:[%s10927_s29 + $0x1d0] sm:$0xff]  ;;  %v67_v4 = vsub.f32 %v7504_v2, %v7499_v1  ;;  %v304_v27 = vsub.f32 %v7556_v49, %v7522_v8 }
  0x32   :  { %639 = vperm.xlu1 %7035, %v601_v23   ;;  %5770 = vmatprep.subr.bf16.mxu0 %v7756_v33  ;;  %v953_v23 = vmul.f32 0.5, %v7092_v58  ;;  %10954 = vst [vmem:[#allocation30_spill] sm:$0xff] %v7819_v24  ;;  %10956 = vst [vmem:[#allocation32_spill] sm:$0xff] %v7837_v39  ;;  %v1986_v46 = vld [vmem:[%s10927_s29 + $0x1f0] sm:$0xff]  ;;  %v7849_v53 = vpack.c.bf16 %v1984_v36, %v1980_v34 }
  0x33   :  { %604 = vperm.xlu0 %7034, %v594_v30   ;;  %5800 = vmatpush1.bf16.msra.mxu1 %v7765_v38  ;;  %v946_v30 = vmul.f32 0.5, %v7094_v6  ;;  %10957 = vst [vmem:[#allocation33_spill] sm:$0xff] %v7840_v40  ;;  %v7853_v57 = vpack.c.bf16 %v1986_v46, %v1982_v45  ;;  %v184_v6 = vsub.f32 %v7556_v49, %v7504_v2  ;;  %v75_v19 = vand.u32 2147483647, %v67_v4 }
  0x34   :  { %5802 = vmatprep.subr.bf16.mxu1 %v7774_v43  ;;  %10958 = vst [vmem:[#allocation34_spill] sm:$0xff] %v7849_v53 }
  0x35   :  { %5772 = vmatpush1.bf16.msra.mxu0 %v7783_v54  ;;  %v954_v56 = vadd.f32 0.5, %v946_v30  ;;  %10959 = vst [vmem:[#allocation35_spill] sm:$0xff] %v7853_v57  ;;  %v192_v20 = vand.u32 2147483647, %v184_v6  ;;  %v83_v28 = vsub.f32 0.0, %v75_v19  ;;  %v424_v19 = vsub.f32 %v7556_v49, %v7527_v9 }
  0x36   :  { %759 = vperm.xlu1 %7035, %v721_v52   ;;  %5774 = vmatprep.subr.bf16.mxu0 %v7792_v62  ;;  %v961_v52 = vadd.f32 0.5, %v953_v23  ;;  %v312_v6 = vand.u32 2147483647, %v304_v27 }
  0x37   :  { %724 = vperm.xlu0 %7034, %v714_v59   ;;  %5804 = vmatpush1.bf16.msra.mxu1 %v7801_v12  ;;  %v200_v34 = vsub.f32 0.0, %v192_v20 }
  0x38   :  { %5806 = vmatprep.subr.bf16.mxu1 %v7810_v17 }
  0x39   :  { %5776 = vmatpush1.bf16.msra.mxu0 %v7819_v24 }
  0x3a   :  { %879 = vperm.xlu1 %7035, %v841_v22   ;;  %5778 = vmatprep.subr.bf16.mxu0 %v7828_v31 }
  0x3b   :  { %844 = vperm.xlu0 %7034, %v834_v29   ;;  %5808 = vmatpush1.bf16.msra.mxu1 %v7837_v39 }
  0x3c   :  { %5810 = vmatprep.subr.bf16.mxu1 %v7840_v40 }
  0x3d   :  { %5780 = vmatpush1.bf16.msra.mxu0 %v7849_v53 }
  0x3e   :  { %999 = vperm.xlu1 %7035, %v961_v52   ;;  %5814 = vmatprep.subr.bf16.mxu0 %v7585_v32  ;;  %v72_v52 = vsub.f32 %v7556_v49, %v7499_v1 }
  0x3f   :  { %964 = vperm.xlu0 %7034, %v954_v56   ;;  %5812 = vmatpush1.bf16.msra.mxu1 %v7853_v57 }
  0x40   :  { %2053 = vmatmul.mubr.f32.vlgmr.msra.gmra.mrb[0].mxu0 %v10650_v11  ;;  %5846 = vmatprep.subr.bf16.mxu1 %v7600_v50 }
  0x41   :  { %5816 = vmatpush1.bf16.msra.mxu0 %v7590_v37  ;;  %2217 = vmatprep.mubr.f32.mxu0 %v10650_v11 }
  0x42   :  { %2124 = vmatmul.mubr.f32.vlgmr.msra.gmra.mrb[0].mxu1 %v10650_v11  ;;  %5818 = vmatprep.subr.bf16.mxu0 %v7632_v16 }
  0x43   :  { %5848 = vmatpush1.bf16.msra.mxu1 %v7621_v5  ;;  %2288 = vmatprep.mubr.f32.mxu1 %v10650_v11  ;;  %v91_v11 = vmul.f32 20.0, %v83_v28 }
  0x44   :  { %5850 = vmatprep.subr.bf16.mxu1 %v7656_v26 }
  0x45   :  { %5820 = vmatpush1.bf16.msra.mxu0 %v7644_v21 }
  0x46   :  { %5822 = vmatprep.subr.bf16.mxu0 %v7677_v41 }
  0x47   :  { %5852 = vmatpush1.bf16.msra.mxu1 %v7668_v35 }
  0x48   :  { %5854 = vmatprep.subr.bf16.mxu1 %v7688_v47 }
  0x49   :  { %5824 = vmatpush1.bf16.msra.mxu0 %v7679_v42 }
  0x4a   :  { %5826 = vmatprep.subr.bf16.mxu0 %v7692_v51 }
  0x4b   :  { %5856 = vmatpush1.bf16.msra.mxu1 %v7690_v48 }
  0x4c   :  { %5858 = vmatprep.subr.bf16.mxu1 %v7701_v55 }
  0x4d   :  { %5828 = vmatpush1.bf16.msra.mxu0 %v7710_v60 }
  0x4e   :  { %5830 = vmatprep.subr.bf16.mxu0 %v7719_v7 }
  0x4f   :  { %5860 = vmatpush1.bf16.msra.mxu1 %v7729_v14 }
  0x50   :  { %5862 = vmatprep.subr.bf16.mxu1 %v7738_v18 }
  0x51   :  { %5832 = vmatpush1.bf16.msra.mxu0 %v7747_v25 }
  0x52   :  { %5834 = vmatprep.subr.bf16.mxu0 %v7756_v33 }
  0x53   :  { %5864 = vmatpush1.bf16.msra.mxu1 %v7765_v38 }
  0x54   :  { %5866 = vmatprep.subr.bf16.mxu1 %v7774_v43 }
  0x55   :  { %5836 = vmatpush1.bf16.msra.mxu0 %v7783_v54  ;;  %v5742_v54 = vld [vmem:[%s10633_s2 + $0x3] ss:$4 sm:$0xf] }
  0x56   :  { %5838 = vmatprep.subr.bf16.mxu0 %v7792_v62 }
  0x57   :  { %5868 = vmatpush1.bf16.msra.mxu1 %v7801_v12  ;;  %v5741_v12 = vld [vmem:[%s10632_s1 + $0x3] ss:$4 sm:$0xf] }
  0x58   :  { %5870 = vmatprep.subr.bf16.mxu1 %v7810_v17 }
  0x59   :  { %5840 = vmatpush1.bf16.msra.mxu0 %v7819_v24 }
  0x5a   :  { %5842 = vmatprep.subr.bf16.mxu0 %v7828_v31 }
  0x5b   :  { %5872 = vmatpush1.bf16.msra.mxu1 %v7837_v39 }
  0x5c   :  { %5874 = vmatprep.subr.bf16.mxu1 %v7840_v40  ;;  %v432_v40 = vand.u32 2147483647, %v424_v19 }
  0x5d   :  { %5844 = vmatpush1.bf16.msra.mxu0 %v7849_v53  ;;  %v320_v53 = vsub.f32 0.0, %v312_v6 }
  0x5e   :  { %5878 = vmatprep.subr.bf16.mxu0 %v7585_v32 }
  0x5f   :  { %5876 = vmatpush1.bf16.msra.mxu1 %v7853_v57  ;;  %v80_v57 = vand.u32 2147483647, %v72_v52  ;;  %v328_v19 = vmul.f32 20.0, %v320_v53 }
  0x60   :  { %5910 = vmatprep.subr.bf16.mxu1 %v7600_v50 }
  0xa1   :  { %v245_v58 = vpop.permute.xlu1 %244 }
  0xa2   :  { %v133_v59 = vpop.permute.xlu0 %132  ;;  %v282_v36 = vmul.f32 %v245_v58, %v7504_v2  ;;  %v208_v58 = vmul.f32 20.0, %v200_v34 }
  0xa3   :  { %v170_v45 = vmul.f32 %v133_v59, %v7499_v1 }
  0xa4   :  { %v216_v34 = vmul.f32 0.5, %v208_v58  ;;  %v664_v58 = vsub.f32 %v7556_v49, %v7551_v44 }
  0xa5   :  { %v280_v61 = vpop.permute.xlu1 %279  ;;  %v290_v0 = vadd.f32 %v282_v36, %v170_v45  ;;  %v299_v36 = vsub.f32 %v7504_v2, %v7522_v8 }
  0xa6   :  { %v168_v63 = vpop.permute.xlu0 %167  ;;  %v289_v29 = vmul.f32 %v280_v61, %v7504_v2 }
  0xa7   :  { %v177_v30 = vmul.f32 %v168_v63, %v7499_v1  ;;  %v179_v1 = vsub.f32 %v7504_v2, %v7504_v2 }
  0xa9   :  { %v400_v13 = vpop.permute.xlu1 %399  ;;  %v297_v63 = vadd.f32 %v289_v29, %v177_v30  ;;  %v99_v29 = vmul.f32 0.5, %v91_v11  ;;  %v187_v6 = vand.u32 2147483647, %v179_v1 }
  0xaa   :  { %v365_v15 = vpop.permute.xlu0 %364  ;;  %v409_v56 = vmul.f32 %v400_v13, %v7522_v8 }
  0xab   :  { %v402_v61 = vmul.f32 %v365_v15, %v7522_v8  ;;  %7095 = vtanh.f32 %v99_v29  ;;  %v672_v29 = vand.u32 2147483647, %v664_v58 }
  0xac   :  { %v417_v13 = vadd.f32 %v409_v56, %v297_v63  ;;  %v88_v56 = vsub.f32 0.0, %v80_v57  ;;  %7097 = vtanh.f32 %v216_v34  ;;  %v784_v34 = vsub.f32 %v7556_v49, %v7556_v49 }
  0xad   :  { %v520_v22 = vpop.permute.xlu1 %519  ;;  %v410_v15 = vadd.f32 %v402_v61, %v290_v0  ;;  %v440_v61 = vsub.f32 0.0, %v432_v40 }
  0xae   :  { %v485_v23 = vpop.permute.xlu0 %484  ;;  %v529_v20 = vmul.f32 %v520_v22, %v7527_v9  ;;  %v544_v22 = vsub.f32 %v7556_v49, %v7532_v10 }
  0xaf   :  { %v522_v59 = vmul.f32 %v485_v23, %v7527_v9 }
  0xb0   :  { %v537_v30 = vadd.f32 %v529_v20, %v417_v13  ;;  %v96_v13 = vmul.f32 20.0, %v88_v56 }
  0xb1   :  { %v640_v46 = vpop.permute.xlu1 %639  ;;  %v530_v45 = vadd.f32 %v522_v59, %v410_v15  ;;  %v307_v59 = vand.u32 2147483647, %v299_v36 }
  0xb2   :  { %v605_v4 = vpop.permute.xlu0 %604  ;;  %v649_v27 = vmul.f32 %v640_v46, %v7532_v10  ;;  %v104_v56 = vmul.f32 0.5, %v96_v13 }
  0xb3   :  { %v642_v28 = vmul.f32 %v605_v4, %v7532_v10 }
  0xb4   :  { %v657_v0 = vadd.f32 %v649_v27, %v537_v30  ;;  %v195_v27 = vsub.f32 0.0, %v187_v6 }
  0xb5   :  { %v760_v50 = vpop.permute.xlu1 %759  ;;  %v650_v63 = vadd.f32 %v642_v28, %v530_v45  ;;  %v336_v28 = vmul.f32 0.5, %v328_v19  ;;  %v680_v19 = vsub.f32 0.0, %v672_v29 }
  0xb6   :  { %v725_v32 = vpop.permute.xlu0 %724  ;;  %v769_v23 = vmul.f32 %v760_v50, %v7551_v44  ;;  %v552_v50 = vand.u32 2147483647, %v544_v22  ;;  %v448_v22 = vmul.f32 20.0, %v440_v61  ;;  %v203_v6 = vmul.f32 20.0, %v195_v27 }
  0xb7   :  { %v762_v46 = vmul.f32 %v725_v32, %v7551_v44  ;;  %v419_v32 = vsub.f32 %v7504_v2, %v7527_v9  ;;  %7099 = vtanh.f32 %v336_v28  ;;  %v688_v13 = vmul.f32 20.0, %v680_v19 }
  0xb8   :  { %v777_v8 = vadd.f32 %v769_v23, %v657_v0  ;;  %v560_v23 = vsub.f32 0.0, %v552_v50  ;;  %v539_v0 = vsub.f32 %v7504_v2, %v7532_v10  ;;  %v904_v50 = vsub.f32 %v7556_v49, %v7509_v3 }
  0xb9   :  { %v880_v52 = vpop.permute.xlu1 %879  ;;  %v770_v57 = vadd.f32 %v762_v46, %v650_v63  ;;  %v427_v9 = vand.u32 2147483647, %v419_v32  ;;  %7101 = vtanh.f32 %v104_v56  ;;  %v211_v58 = vmul.f32 0.5, %v203_v6 }
  0xba   :  { %v889_v4 = vmul.f32 %v880_v52, %v7556_v49  ;;  %v845_v11 = vpop.permute.xlu0 %844  ;;  %v315_v52 = vsub.f32 0.0, %v307_v59  ;;  %v659_v10 = vsub.f32 %v7504_v2, %v7551_v44  ;;  %v7096_v59 = vpop.eup %7095  ;;  %v10669_v32 = vmov 1  }
  0xbb   :  { %v882_v20 = vmul.f32 %v845_v11, %v7556_v49  ;;  %v568_v11 = vmul.f32 20.0, %v560_v23  ;;  %v435_v63 = vsub.f32 0.0, %v427_v9  ;;  %v696_v23 = vmul.f32 0.5, %v688_v13 }
  0xbc   :  { %v897_v53 = vadd.f32 %v889_v4, %v777_v8  ;;  %v456_v4 = vmul.f32 0.5, %v448_v22  ;;  %v323_v61 = vmul.f32 20.0, %v315_v52  ;;  %v547_v8 = vand.u32 2147483647, %v539_v0 }
  0xbd   :  { %v1000_v1 = vpop.permute.xlu1 %999  ;;  %v890_v30 = vadd.f32 %v882_v20, %v770_v57  ;;  %v792_v20 = vand.u32 2147483647, %v784_v34  ;;  %v7098_v57 = vpop.eup %7097  ;;  %v667_v28 = vand.u32 2147483647, %v659_v10  ;;  %v779_v22 = vsub.f32 %v7504_v2, %v7556_v49 }
  0xbe   :  { %v1009_v40 = vmul.f32 %v1000_v1, %v7509_v3  ;;  %v965_v15 = vpop.permute.xlu0 %964  ;;  %7103 = vtanh.f32 %v456_v4  ;;  %v576_v1 = vmul.f32 0.5, %v568_v11  ;;  %v331_v27 = vmul.f32 0.5, %v323_v61 }
  0xbf   :  { %v1002_v45 = vmul.f32 %v965_v15, %v7509_v3  ;;  %v912_v15 = vand.u32 2147483647, %v904_v50  ;;  %7105 = vtanh.f32 %v211_v58  ;;  %v555_v44 = vsub.f32 0.0, %v547_v8 }
  0xc0   :  { %v7932_v36 = vadd.f32 %v1009_v40, %v897_v53  ;;  %v443_v53 = vmul.f32 20.0, %v435_v63  ;;  %v800_v40 = vsub.f32 0.0, %v792_v20  ;;  %7107 = vtanh.f32 %v576_v1 }
  0xc1   :  { %v7936_v46 = vadd.f32 %v1002_v45, %v890_v30  ;;  %v115_v30 = vmul.f32 0.5, %v7096_v59  ;;  %v10665_v45 = vmov 2   ;;  %7109 = vtanh.f32 %v331_v27  ;;  %v7100_v34 = vpop.eup %7099 }
  0xc2   :  { %1058 = vperm.xlu1 %7035, %v7932_v36   ;;  %v451_v29 = vmul.f32 0.5, %v443_v53  ;;  %v808_v52 = vmul.f32 20.0, %v800_v40  ;;  %v920_v9 = vsub.f32 0.0, %v912_v15  ;;  %v563_v56 = vmul.f32 20.0, %v555_v44 }
  0xc3   :  { %1023 = vperm.xlu0 %7034, %v7936_v46   ;;  %v675_v6 = vsub.f32 0.0, %v667_v28  ;;  %v787_v49 = vand.u32 2147483647, %v779_v22  ;;  %v899_v0 = vsub.f32 %v7504_v2, %v7509_v3  ;;  %v123_v4 = vadd.f32 0.5, %v115_v30  ;;  %v7102_v19 = vpop.eup %7101 }
  0xc4   :  { %v232_v11 = vmul.f32 0.5, %v7098_v57  ;;  %7111 = vtanh.f32 %v696_v23  ;;  %v10667_v61 = vmov 3   ;;  %v816_v63 = vmul.f32 0.5, %v808_v52 }
  0xc5   :  { %7113 = vtanh.f32 %v451_v29  ;;  %v928_v20 = vmul.f32 20.0, %v920_v9  ;;  %v10960_v58 = vmov 0   ;;  %v571_v8 = vmul.f32 0.5, %v563_v56 }
  0xc6   :  { %7037 = vset.pattern.permute.xlu1 %v10669_v32  ;;  %v683_v10 = vmul.f32 20.0, %v675_v6  ;;  %v795_v59 = vsub.f32 0.0, %v787_v49  ;;  %v907_v1 = vand.u32 2147483647, %v899_v0  ;;  %v240_v2 = vadd.f32 0.5, %v232_v11 }
  0xc7   :  { %7036 = vset.pattern.permute.xlu0 %v10669_v32  ;;  %1305 = vperm.xlu1 %7037, %v7932_v36   ;;  %v352_v3 = vmul.f32 0.5, %v7100_v34  ;;  %v120_v57 = vmul.f32 0.5, %v7102_v19  ;;  %7115 = vtanh.f32 %v816_v63  ;;  %v936_v27 = vmul.f32 0.5, %v928_v20 }
  0xc8   :  { %1277 = vperm.xlu0 %7036, %v7936_v46   ;;  %v7104_v50 = vpop.eup %7103  ;;  %7117 = vtanh.f32 %v571_v8  ;;  %v691_v40 = vmul.f32 0.5, %v683_v10  ;;  %v803_v15 = vmul.f32 20.0, %v795_v59  ;;  %v915_v44 = vsub.f32 0.0, %v907_v1 }
  0xc9   :  { %v7106_v13 = vpop.eup %7105  ;;  %v128_v22 = vadd.f32 0.5, %v120_v57  ;;  %v472_v30 = vmul.f32 0.5, %v7104_v50  ;;  %7119 = vtanh.f32 %v936_v27 }
  0xca   :  { %v7108_v53 = vpop.eup %7107  ;;  %v227_v23 = vmul.f32 0.5, %v7106_v13  ;;  %7121 = vtanh.f32 %v691_v40  ;;  %v811_v52 = vmul.f32 0.5, %v803_v15  ;;  %v923_v9 = vmul.f32 20.0, %v915_v44 }
  0xcb   :  { %7038 = vset.pattern.permute.xlu1 %v10665_v45  ;;  %v7110_v28 = vpop.eup %7109  ;;  %v592_v6 = vmul.f32 0.5, %v7108_v53 }
  0xcc   :  { %7039 = vset.pattern.permute.xlu0 %v10665_v45  ;;  %1483 = vperm.xlu1 %7038, %v7936_v46   ;;  %v235_v56 = vadd.f32 0.5, %v227_v23  ;;  %v347_v49 = vmul.f32 0.5, %v7110_v28  ;;  %7123 = vtanh.f32 %v811_v52  ;;  %v931_v0 = vmul.f32 0.5, %v923_v9 }
  0xcd   :  { %1511 = vperm.xlu0 %7039, %v7932_v36   ;;  %v600_v11 = vadd.f32 0.5, %v592_v6 }
  0xce   :  { %v7112_v29 = vpop.eup %7111  ;;  %v355_v19 = vadd.f32 0.5, %v347_v49  ;;  %7125 = vtanh.f32 %v931_v0  ;;  %v1020_v49 = vld [vmem:[%s10632_s1] ss:$4 sm:$0xf] }
  0xcf   :  { %v7114_v34 = vpop.eup %7113  ;;  %v712_v63 = vmul.f32 0.5, %v7112_v29 }
  0xd0   :  { %7040 = vset.pattern.permute.xlu1 %v10667_v61  ;;  %v467_v20 = vmul.f32 0.5, %v7114_v34 }
  0xd1   :  { %7041 = vset.pattern.permute.xlu0 %v10960_v58  ;;  %1689 = vperm.xlu1 %7040, %v7936_v46   ;;  %v360_v46 = vadd.f32 0.5, %v352_v3  ;;  %v720_v10 = vadd.f32 0.5, %v712_v63  ;;  %v1019_v63 = vld [vmem:[%s10635_s4] sm:$0xf] }
  0xd2   :  { %137 = vperm.xlu0 %7041, %v123_v4   ;;  %v7116_v4 = vpop.eup %7115  ;;  %v475_v59 = vadd.f32 0.5, %v467_v20 }
  0xd3   :  { %v7118_v50 = vpop.eup %7117  ;;  %v832_v1 = vmul.f32 0.5, %v7116_v4 }
  0xd4   :  { %v7120_v8 = vpop.eup %7119 }
  0xd5   :  { %1717 = vperm.xlu1 %7040, %v7932_v36   ;;  %v480_v36 = vadd.f32 0.5, %v472_v30  ;;  %v7122_v3 = vpop.eup %7121  ;;  %v840_v57 = vadd.f32 0.5, %v832_v1  ;;  %v952_v27 = vmul.f32 0.5, %v7120_v8 }
  0xd6   :  { %274 = vperm.xlu0 %7041, %v240_v2   ;;  %v587_v2 = vmul.f32 0.5, %v7118_v50  ;;  %v707_v53 = vmul.f32 0.5, %v7122_v3  ;;  %v7124_v40 = vpop.eup %7123 }
  0xd7   :  { %v960_v15 = vadd.f32 0.5, %v952_v27  ;;  %v827_v28 = vmul.f32 0.5, %v7124_v40  ;;  %v5738_v27 = vld [vmem:[%s10633_s2 + $0x1] ss:$4 sm:$0xf] }
  0xd8   :  { %v595_v13 = vadd.f32 0.5, %v587_v2  ;;  %v715_v44 = vadd.f32 0.5, %v707_v53 }
  0xd9   :  { %7042 = vset.pattern.permute.xlu1 %v10960_v58 }
  0xda   :  { %394 = vperm.xlu0 %7041, %v360_v46   ;;  %162 = vperm.xlu1 %7042, %v128_v22   ;;  %v7126_v46 = vpop.eup %7125  ;;  %v835_v22 = vadd.f32 0.5, %v827_v28 }
  0xdb   :  { %v947_v30 = vmul.f32 0.5, %v7126_v46 }
  0xdd   :  { %v955_v23 = vadd.f32 0.5, %v947_v30 }
  0xde   :  { %514 = vperm.xlu0 %7041, %v480_v36   ;;  %249 = vperm.xlu1 %7042, %v235_v56   ;;  %v10664_v36 = vlaneseq }
  0xe0   :  { %v7972_v56 = vshrl.u32 %v10664_v36, 7  ;;  %v5740_v36 = vld [vmem:[%s10633_s2 + $0x2] ss:$4 sm:$0xf] }
  0xe2   :  { %634 = vperm.xlu0 %7041, %v600_v11   ;;  %369 = vperm.xlu1 %7042, %v355_v19   ;;  %10961 = vst [vmem:[#allocation36_spill] sm:$0xff] %v7972_v56  ;;  %v7975_v6 = vsub.s32 0, %v7972_v56  ;;  %v7981_v0 = vsub.s32 1, %v7972_v56  ;;  %v7984_v4 = vsub.s32 2, %v7972_v56  ;;  %v1018_v19 = vld [vmem:[%s10634_s3] sm:$0xf] }
  0xe3   :  { %v1167_v11 = vld [vmem:[%s10633_s2] ss:$4 sm:$0xf]  ;;  %v7996_v20 = vsub.s32 3, %v7972_v56 }
  0xe4   :  { %10962 = vst [vmem:[#allocation37_spill] sm:$0xff] %v7975_v6  ;;  %10963 = vst [vmem:[#allocation38_spill] sm:$0xff] %v7981_v0  ;;  %v7999_v50 = vrot.slane %v1020_v49, %v7975_v6  ;;  %v8002_v8 = vrot.slane %v1167_v11, %v7975_v6  ;;  %v8011_v1 = vrot.slane %v1167_v11, %v7981_v0 }
  0xe5   :  { %10964 = vst [vmem:[#allocation39_spill] sm:$0xff] %v7984_v4  ;;  %10965 = vst [vmem:[#allocation40_spill] sm:$0xff] %v7996_v20  ;;  %v8014_v2 = vrot.slane %v1020_v49, %v7984_v4  ;;  %v8028_v53 = vrot.slane %v1018_v19, %v7981_v0  ;;  %v8031_v40 = vrot.slane %v1167_v11, %v7984_v4 }
  0xe6   :  { %754 = vperm.xlu0 %7041, %v720_v10   ;;  %489 = vperm.xlu1 %7042, %v475_v59   ;;  %10966 = vst [vmem:[#allocation41_spill] sm:$0xff] %v7999_v50  ;;  %10967 = vst [vmem:[#allocation42_spill] sm:$0xff] %v8002_v8  ;;  %v5737_v10 = vld [vmem:[%s10632_s1 + $0x1] ss:$4 sm:$0xf]  ;;  %v8008_v59 = vrot.slane %v1020_v49, %v7981_v0  ;;  %v8039_v28 = vrot.slane %v1019_v63, %v7981_v0 }
  0xe7   :  { %10969 = vst [vmem:[#allocation44_spill] sm:$0xff] %v8011_v1  ;;  %10970 = vst [vmem:[#allocation45_spill] sm:$0xff] %v8014_v2  ;;  %v8042_v46 = vrot.slane %v1018_v19, %v7984_v4  ;;  %v8048_v30 = vrot.slane %v1020_v49, %v7996_v20  ;;  %v8057_v45 = vrot.slane %v1018_v19, %v7996_v20 }
  0xe8   :  { %10968 = vst [vmem:[#allocation43_spill] sm:$0xff] %v8008_v59  ;;  %10974 = vst [vmem:[#allocation49_spill] sm:$0xff] %v8028_v53  ;;  %v8060_v61 = vrot.slane %v1167_v11, %v7996_v20  ;;  %v8063_v32 = vrot.slane %v1019_v63, %v7996_v20  ;;  %v8066_v56 = vrot.slane %v5738_v27, %v7975_v6 }
  0xe9   :  { %10975 = vst [vmem:[#allocation50_spill] sm:$0xff] %v8031_v40  ;;  %10977 = vst [vmem:[#allocation52_spill] sm:$0xff] %v8039_v28  ;;  %v8069_v49 = vrot.slane %v5737_v10, %v7981_v0  ;;  %v8072_v31 = vrot.slane %v5738_v27, %v7981_v0  ;;  %v8075_v39 = vrot.slane %v5737_v10, %v7984_v4 }
  0xea   :  { %874 = vperm.xlu0 %7041, %v840_v57   ;;  %609 = vperm.xlu1 %7042, %v595_v13   ;;  %v8019_v57 = vrot.slane %v1018_v19, %v7975_v6  ;;  %v8022_v13 = vrot.slane %v1019_v63, %v7975_v6  ;;  %10978 = vst [vmem:[#allocation53_spill] sm:$0xff] %v8042_v46  ;;  %10980 = vst [vmem:[#allocation55_spill] sm:$0xff] %v8048_v30 }
  0xeb   :  { %10982 = vst [vmem:[#allocation57_spill] sm:$0xff] %v8057_v45  ;;  %10983 = vst [vmem:[#allocation58_spill] sm:$0xff] %v8060_v61  ;;  %v8081_v11 = vrot.slane %v5738_v27, %v7984_v4  ;;  %v8087_v24 = vrot.slane %v5738_v27, %v7996_v20  ;;  %v8092_v62 = vrot.slane %v5740_v36, %v7975_v6 }
  0xec   :  { %10972 = vst [vmem:[#allocation47_spill] sm:$0xff] %v8019_v57  ;;  %10973 = vst [vmem:[#allocation48_spill] sm:$0xff] %v8022_v13  ;;  %v8114_v25 = vrot.slane %v5740_v36, %v7984_v4  ;;  %v8120_v7 = vrot.slane %v5740_v36, %v7996_v20  ;;  %v8131_v51 = vrot.slane %v5741_v12, %v7975_v6 }
  0xed   :  { %10984 = vst [vmem:[#allocation59_spill] sm:$0xff] %v8063_v32  ;;  %10985 = vst [vmem:[#allocation60_spill] sm:$0xff] %v8066_v56  ;;  %v8155_v42 = vrot.slane %v5742_v54, %v7984_v4 }
  0xee   :  { %994 = vperm.xlu0 %7041, %v960_v15   ;;  %729 = vperm.xlu1 %7042, %v715_v44   ;;  %v5739_v44 = vld [vmem:[%s10632_s1 + $0x2] ss:$4 sm:$0xf]  ;;  %10986 = vst [vmem:[#allocation61_spill] sm:$0xff] %v8069_v49  ;;  %10987 = vst [vmem:[#allocation62_spill] sm:$0xff] %v8072_v31 }
  0xef   :  { %10988 = vst [vmem:[#allocation63_spill] sm:$0xff] %v8075_v39  ;;  %v8078_v19 = vrot.slane %v5739_v44, %v7975_v6  ;;  %10990 = vst [vmem:[#allocation65_spill] sm:$0xff] %v8081_v11  ;;  %v8101_v43 = vrot.slane %v5739_v44, %v7981_v0  ;;  %v8107_v27 = vrot.slane %v5739_v44, %v7984_v4 }
  0xf0   :  { %10992 = vst [vmem:[#allocation67_spill] sm:$0xff] %v8087_v24  ;;  %10994 = vst [vmem:[#allocation69_spill] sm:$0xff] %v8092_v62  ;;  %v8117_v18 = vrot.slane %v5739_v44, %v7996_v20  ;;  %v8134_v44 = vrot.slane %v5742_v54, %v7975_v6 }
  0xf1   :  { %10989 = vst [vmem:[#allocation64_spill] sm:$0xff] %v8078_v19  ;;  %10995 = vst [vmem:[#allocation70_spill] sm:$0xff] %v8101_v43 }
  0xf2   :  { %849 = vperm.xlu1 %7042, %v835_v22   ;;  %v8045_v22 = vrot.slane %v1019_v63, %v7984_v4  ;;  %v8084_v63 = vrot.slane %v5737_v10, %v7996_v20  ;;  %10997 = vst [vmem:[#allocation72_spill] sm:$0xff] %v8107_v27  ;;  %10999 = vst [vmem:[#allocation74_spill] sm:$0xff] %v8114_v25 }
  0xf3   :  { %11000 = vst [vmem:[#allocation75_spill] sm:$0xff] %v8117_v18  ;;  %11001 = vst [vmem:[#allocation76_spill] sm:$0xff] %v8120_v7 }
  0xf4   :  { %10979 = vst [vmem:[#allocation54_spill] sm:$0xff] %v8045_v22  ;;  %10991 = vst [vmem:[#allocation66_spill] sm:$0xff] %v8084_v63 }
  0xf5   :  { %11002 = vst [vmem:[#allocation77_spill] sm:$0xff] %v8134_v44  ;;  %11007 = vst [vmem:[#allocation82_spill] sm:$0xff] %v8155_v42 }
  0xf6   :  { %969 = vperm.xlu1 %7042, %v955_v23   ;;  %v8051_v23 = vrot.slane %v5737_v10, %v7975_v6  ;;  %v8104_v10 = vrot.slane %v5740_v36, %v7981_v0  ;;  %v8137_v36 = vrot.slane %v5741_v12, %v7981_v0 }
  0xf8   :  { %10981 = vst [vmem:[#allocation56_spill] sm:$0xff] %v8051_v23  ;;  %10996 = vst [vmem:[#allocation71_spill] sm:$0xff] %v8104_v10 }
  0xf9   :  { %11003 = vst [vmem:[#allocation78_spill] sm:$0xff] %v8137_v36 }
 0x113   :  { %v7963_v29 = vpop.f32.mrb[0].mxu0 }
 0x114   :  { %v7965_v52 = vpop.f32.mrb[1].mxu0 }
 0x115   :  { %v7967_v9 = vpop.f32.mrb[0].mxu1 }
 0x116   :  { %v7969_v34 = vpop.f32.mrb[1].mxu1 }
 0x141   :  { %v8016_v3 = vpop.permute.xlu1 %1058 }
 0x142   :  { %10971 = vst [vmem:[#allocation46_spill] sm:$0xff] %v8016_v3  ;;  %v8033_v15 = vpop.permute.xlu0 %1023  ;;  %v1217_v38 = vmul.f32 %v8002_v8, %v8016_v3  ;;  %v1218_v60 = vmul.f32 %v8011_v1, %v8016_v3  ;;  %v1219_v55 = vmul.f32 %v8031_v40, %v8016_v3  ;;  %v1220_v8 = vmul.f32 %v8060_v61, %v8016_v3 }
 0x143   :  { %10976 = vst [vmem:[#allocation51_spill] sm:$0xff] %v8033_v15  ;;  %v1082_v14 = vmul.f32 %v7999_v50, %v8033_v15  ;;  %v8140_v50 = vrot.slane %v5742_v54, %v7981_v0  ;;  %v1083_v1 = vmul.f32 %v8008_v59, %v8033_v15  ;;  %v1084_v40 = vmul.f32 %v8014_v2, %v8033_v15 }
 0x144   :  { %v8147_v3 = vrot.slane %v5741_v12, %v7984_v4  ;;  %v1085_v61 = vmul.f32 %v8048_v30, %v8033_v15  ;;  %v1270_v48 = vadd.f32 %v8022_v13, %v1217_v38  ;;  %v8158_v0 = vrot.slane %v5741_v12, %v7996_v20 }
 0x145   :  { %11004 = vst [vmem:[#allocation79_spill] sm:$0xff] %v8140_v50  ;;  %v8161_v59 = vrot.slane %v5742_v54, %v7996_v20  ;;  %v1135_v47 = vadd.f32 %v8019_v57, %v1082_v14  ;;  %v1271_v41 = vadd.f32 %v8039_v28, %v1218_v60  ;;  %v1272_v15 = vadd.f32 %v8045_v22, %v1219_v55 }
 0x146   :  { %v8089_v17 = vpop.permute.xlu1 %1305  ;;  %11005 = vst [vmem:[#allocation80_spill] sm:$0xff] %v8147_v3  ;;  %11008 = vst [vmem:[#allocation83_spill] sm:$0xff] %v8158_v0  ;;  %v1273_v30 = vadd.f32 %v8063_v32, %v1220_v8  ;;  %v1136_v14 = vadd.f32 %v8028_v53, %v1083_v1  ;;  %v1137_v55 = vadd.f32 %v8042_v46, %v1084_v40 }
 0x147   :  { %10993 = vst [vmem:[#allocation68_spill] sm:$0xff] %v8089_v17  ;;  %v8109_v33 = vpop.permute.xlu0 %1277  ;;  %11009 = vst [vmem:[#allocation84_spill] sm:$0xff] %v8161_v59  ;;  %v1444_v12 = vmul.f32 %v8066_v56, %v8089_v17  ;;  %v1445_v54 = vmul.f32 %v8072_v31, %v8089_v17  ;;  %v1446_v20 = vmul.f32 %v8081_v11, %v8089_v17 }
 0x148   :  { %10998 = vst [vmem:[#allocation73_spill] sm:$0xff] %v8109_v33  ;;  %v1329_v38 = vmul.f32 %v8051_v23, %v8109_v33  ;;  %v1330_v60 = vmul.f32 %v8069_v49, %v8109_v33  ;;  %v1138_v8 = vadd.f32 %v8057_v45, %v1085_v61  ;;  %v1331_v23 = vmul.f32 %v8075_v39, %v8109_v33 }
 0x149   :  { %v1332_v57 = vmul.f32 %v8084_v63, %v8109_v33  ;;  %v1447_v31 = vmul.f32 %v8087_v24, %v8089_v17  ;;  %v1476_v33 = vadd.f32 %v1444_v12, %v1270_v48  ;;  %v1477_v63 = vadd.f32 %v1445_v54, %v1271_v41 }
 0x14a   :  { %v1361_v46 = vadd.f32 %v1329_v38, %v1135_v47  ;;  %v1478_v49 = vadd.f32 %v1446_v20, %v1272_v15  ;;  %v1362_v39 = vadd.f32 %v1330_v60, %v1136_v14 }
 0x14b   :  { %v8151_v6 = vpop.permute.xlu1 %1483  ;;  %v1479_v11 = vadd.f32 %v1447_v31, %v1273_v30  ;;  %v1364_v60 = vadd.f32 %v1332_v57, %v1138_v8  ;;  %v8245_v57 = vld [vmem:[%s10926_s26 + $0x10] sm:$0xff] }
 0x14c   :  { %11006 = vst [vmem:[#allocation81_spill] sm:$0xff] %v8151_v6  ;;  %v8163_v2 = vpop.permute.xlu0 %1511  ;;  %v1535_v4 = vmul.f32 %v8078_v19, %v8151_v6  ;;  %v1536_v61 = vmul.f32 %v8101_v43, %v8151_v6  ;;  %v1537_v43 = vmul.f32 %v8107_v27, %v8151_v6  ;;  %11015 = vst [vmem:[#allocation90_spill] sm:$0xff] %v8245_v57 }
 0x14d   :  { %11010 = vst [vmem:[#allocation85_spill] sm:$0xff] %v8163_v2  ;;  %v1650_v53 = vmul.f32 %v8092_v62, %v8163_v2  ;;  %v1651_v40 = vmul.f32 %v8104_v10, %v8163_v2  ;;  %v1652_v19 = vmul.f32 %v8114_v25, %v8163_v2  ;;  %v1363_v10 = vadd.f32 %v1331_v23, %v1137_v55 }
 0x14e   :  { %v1567_v24 = vadd.f32 %v1535_v4, %v1361_v46  ;;  %v1653_v25 = vmul.f32 %v8120_v7, %v8163_v2  ;;  %v1568_v48 = vadd.f32 %v1536_v61, %v1362_v39  ;;  %v11033_v2 = vld [vmem:[#allocation20_spill] sm:$0xff] }
 0x14f   :  { %v1682_v41 = vadd.f32 %v1650_v53, %v1476_v33  ;;  %v1683_v20 = vadd.f32 %v1651_v40, %v1477_v63  ;;  %v1684_v15 = vadd.f32 %v1652_v19, %v1478_v49  ;;  %v1569_v23 = vadd.f32 %v1537_v43, %v1363_v10  ;;  %v8225_v63 = vld [vmem:[%s10926_s26 + $0x8] sm:$0xff]  ;;  %v8231_v43 = vld [vmem:[%s10926_s26] sm:$0xff] }
 0x150   :  { %v8190_v1 = vpop.permute.xlu1 %1689  ;;  %v1538_v33 = vmul.f32 %v8117_v18, %v8151_v6  ;;  %11013 = vst [vmem:[#allocation88_spill] sm:$0xff] %v8225_v63 }
 0x151   :  { %11011 = vst [vmem:[#allocation86_spill] sm:$0xff] %v8190_v1  ;;  %v138_v45 = vpop.permute.xlu0 %137  ;;  %v1741_v17 = vmul.f32 %v8131_v51, %v8190_v1  ;;  %v1742_v62 = vmul.f32 %v8137_v36, %v8190_v1  ;;  %v1743_v4 = vmul.f32 %v8147_v3, %v8190_v1 }
 0x153   :  { %v1773_v46 = vadd.f32 %v1741_v17, %v1567_v24  ;;  %v1774_v30 = vadd.f32 %v1742_v62, %v1568_v48  ;;  %v1685_v17 = vadd.f32 %v1653_v25, %v1479_v11  ;;  %v8236_v62 = vld [vmem:[%s10926_s26 + $0x28] sm:$0xff]  ;;  %v1775_v40 = vadd.f32 %v1743_v4, %v1569_v23 }
 0x154   :  { %v8208_v47 = vpop.permute.xlu1 %1717  ;;  %11014 = vst [vmem:[#allocation89_spill] sm:$0xff] %v8236_v62  ;;  %v71_v24 = vsub.f32 %v8236_v62, %v8231_v43  ;;  %v1744_v25 = vmul.f32 %v8158_v0, %v8190_v1  ;;  %v1570_v48 = vadd.f32 %v1538_v33, %v1364_v60  ;;  %v171_v4 = vmul.f32 %v8231_v43, %v138_v45  ;;  %v8257_v33 = vld [vmem:[%s10926_s26 + $0x18] sm:$0xff] }
 0x155   :  { %11012 = vst [vmem:[#allocation87_spill] sm:$0xff] %v8208_v47  ;;  %v275_v38 = vpop.permute.xlu0 %274  ;;  %v1856_v12 = vmul.f32 %v8134_v44, %v8208_v47  ;;  %v1857_v54 = vmul.f32 %v8140_v50, %v8208_v47  ;;  %v1858_v31 = vmul.f32 %v8155_v42, %v8208_v47  ;;  %v1859_v19 = vmul.f32 %v8161_v59, %v8208_v47 }
 0x156   :  { %v288_v14 = vmul.f32 %v8225_v63, %v275_v38  ;;  %v1776_v23 = vadd.f32 %v1744_v25, %v1570_v48  ;;  %11016 = vst [vmem:[#allocation91_spill] sm:$0xff] %v8257_v33 }
 0x157   :  { %v1888_v39 = vadd.f32 %v1856_v12, %v1682_v41  ;;  %v1889_v53 = vadd.f32 %v1857_v54, %v1683_v20  ;;  %v1890_v49 = vadd.f32 %v1858_v31, %v1684_v15  ;;  %v300_v20 = vsub.f32 %v8245_v57, %v8245_v57 }
 0x158   :  { %v1891_v54 = vadd.f32 %v1859_v19, %v1685_v17 }
 0x159   :  { %v1892_v10 = vadd.f32 %v1888_v39, %v1773_v46  ;;  %v395_v55 = vpop.permute.xlu0 %394  ;;  %v1893_v61 = vadd.f32 %v1889_v53, %v1774_v30  ;;  %v163_v41 = vpop.permute.xlu1 %162  ;;  %v1894_v12 = vadd.f32 %v1890_v49, %v1775_v40  ;;  %v308_v49 = vand.u32 2147483647, %v300_v20  ;;  %v8267_v40 = vld [vmem:[%s10926_s26 + $0x20] sm:$0xff] }
 0x15a   :  { %v408_v11 = vmul.f32 %v8245_v57, %v395_v55  ;;  %v176_v8 = vmul.f32 %v8231_v43, %v163_v41  ;;  %v79_v55 = vand.u32 2147483647, %v71_v24  ;;  %v1895_v19 = vadd.f32 %v1891_v54, %v1776_v23  ;;  %11017 = vst [vmem:[#allocation92_spill] sm:$0xff] %v8267_v40 }
 0x15b   :  { %v2130_v15 = vadd.f32 %v7963_v29, %v1892_v10  ;;  %v2131_v38 = vadd.f32 %v7965_v52, %v1893_v61  ;;  %v2132_v45 = vadd.f32 %v7967_v9, %v1894_v12  ;;  %v316_v9 = vsub.f32 0.0, %v308_v49 }
 0x15c   :  { %v296_v31 = vadd.f32 %v288_v14, %v176_v8  ;;  %v420_v14 = vsub.f32 %v8245_v57, %v8257_v33  ;;  %v87_v61 = vsub.f32 0.0, %v79_v55  ;;  %v2133_v8 = vadd.f32 %v7969_v34, %v1895_v19 }
 0x15d   :  { %v2134_v46 = vmul.f32 0.5, %v2130_v15  ;;  %v2138_v30 = vmul.f32 0.5, %v2131_v38  ;;  %v515_v39 = vpop.permute.xlu0 %514  ;;  %v250_v53 = vpop.permute.xlu1 %249  ;;  %v540_v38 = vsub.f32 %v8245_v57, %v8267_v40  ;;  %v324_v23 = vmul.f32 20.0, %v316_v9 }
 0x15e   :  { %v416_v41 = vadd.f32 %v408_v11, %v296_v31  ;;  %v528_v29 = vmul.f32 %v8257_v33, %v515_v39  ;;  %v283_v52 = vmul.f32 %v8225_v63, %v250_v53  ;;  %v428_v48 = vand.u32 2147483647, %v420_v14 }
 0x15f   :  { %7127 = vtanh.f32 %v2134_v46  ;;  %v68_v31 = vsub.f32 %v8245_v57, %v8231_v43  ;;  %v2143_v39 = vmul.f32 0.5, %v2133_v8  ;;  %v660_v14 = vsub.f32 %v8245_v57, %v8236_v62 }
 0x160   :  { %7129 = vtanh.f32 %v2138_v30  ;;  %v536_v60 = vadd.f32 %v528_v29, %v416_v41  ;;  %v291_v17 = vadd.f32 %v283_v52, %v171_v4  ;;  %v95_v4 = vmul.f32 20.0, %v87_v61 }
 0x161   :  { %v635_v24 = vpop.permute.xlu0 %634  ;;  %v370_v10 = vpop.permute.xlu1 %369  ;;  %7131 = vtanh.f32 %v2132_v45  ;;  %v436_v53 = vsub.f32 0.0, %v428_v48  ;;  %v548_v41 = vand.u32 2147483647, %v540_v38  ;;  %v76_v19 = vand.u32 2147483647, %v68_v31 }
 0x162   :  { %v648_v25 = vmul.f32 %v8267_v40, %v635_v24  ;;  %v403_v11 = vmul.f32 %v8245_v57, %v370_v10  ;;  %v103_v45 = vmul.f32 0.5, %v95_v4  ;;  %v8283_v24 = vld [vmem:[%s10926_s26 + $0x30] sm:$0xff]  ;;  %7133 = vtanh.f32 %v2143_v39  ;;  %v8294_v39 = vld [vmem:[%s10926_s26 + $0x38] sm:$0xff] }
 0x163   :  { %11018 = vst [vmem:[#allocation93_spill] sm:$0xff] %v8283_v24  ;;  %v444_v9 = vmul.f32 20.0, %v436_v53  ;;  %v180_v8 = vsub.f32 %v8245_v57, %v8225_v63  ;;  %v556_v38 = vsub.f32 0.0, %v548_v41  ;;  %11019 = vst [vmem:[#allocation94_spill] sm:$0xff] %v8294_v39 }
 0x164   :  { %v656_v20 = vadd.f32 %v648_v25, %v536_v60  ;;  %v411_v15 = vadd.f32 %v403_v11, %v291_v17  ;;  %v332_v25 = vmul.f32 0.5, %v324_v23  ;;  %7135 = vtanh.f32 %v103_v45 }
 0x165   :  { %v755_v12 = vpop.permute.xlu0 %754  ;;  %v490_v54 = vpop.permute.xlu1 %489 }
 0x166   :  { %v768_v46 = vmul.f32 %v8236_v62, %v755_v12  ;;  %v523_v30 = vmul.f32 %v8257_v33, %v490_v54  ;;  %7137 = vtanh.f32 %v332_v25 }
 0x168   :  { %v776_v34 = vadd.f32 %v768_v46, %v656_v20  ;;  %v531_v55 = vadd.f32 %v523_v30, %v411_v15  ;;  %v668_v46 = vand.u32 2147483647, %v660_v14  ;;  %v780_v30 = vsub.f32 %v8245_v57, %v8283_v24 }
 0x169   :  { %v7128_v29 = vpop.eup %7127  ;;  %v875_v52 = vpop.permute.xlu0 %874  ;;  %v452_v14 = vmul.f32 0.5, %v444_v9  ;;  %v303_v9 = vsub.f32 %v8236_v62, %v8245_v57 }
 0x16a   :  { %v610_v49 = vpop.permute.xlu1 %609  ;;  %v7130_v60 = vpop.eup %7129  ;;  %v2136_v17 = vmul.f32 0.5, %v7128_v29  ;;  %v888_v10 = vmul.f32 %v8283_v24, %v875_v52  ;;  %v188_v29 = vand.u32 2147483647, %v180_v8  ;;  %v183_v52 = vsub.f32 %v8236_v62, %v8225_v63 }
 0x16b   :  { %v643_v61 = vmul.f32 %v8267_v40, %v610_v49  ;;  %v2140_v11 = vmul.f32 0.5, %v7130_v60  ;;  %v7132_v12 = vpop.eup %7131  ;;  %v564_v60 = vmul.f32 20.0, %v556_v38 }
 0x16c   :  { %v2137_v48 = vadd.f32 0.5, %v2136_v17  ;;  %v896_v20 = vadd.f32 %v888_v10, %v776_v34  ;;  %v196_v8 = vsub.f32 0.0, %v188_v29  ;;  %v7134_v38 = vpop.eup %7133 }
 0x16d   :  { %v651_v15 = vadd.f32 %v643_v61, %v531_v55  ;;  %v2141_v54 = vadd.f32 0.5, %v2140_v11  ;;  %v995_v4 = vpop.permute.xlu0 %994  ;;  %v84_v55 = vsub.f32 0.0, %v76_v19  ;;  %v676_v61 = vsub.f32 0.0, %v668_v46 }
 0x16e   :  { %v730_v31 = vpop.permute.xlu1 %729  ;;  %v2148_v23 = vmul.f32 %v7132_v12, %v2137_v48  ;;  %v1008_v53 = vmul.f32 %v8294_v39, %v995_v4  ;;  %v788_v11 = vand.u32 2147483647, %v780_v30  ;;  %v900_v48 = vsub.f32 %v8245_v57, %v8294_v39 }
 0x16f   :  { %v763_v34 = vmul.f32 %v8236_v62, %v730_v31  ;;  %v2147_v41 = vmul.f32 0.0, %v2141_v54  ;;  %v92_v25 = vmul.f32 20.0, %v84_v55  ;;  %v572_v54 = vmul.f32 0.5, %v564_v60 }
 0x170   :  { %v8300_v49 = vadd.f32 %v1008_v53, %v896_v20  ;;  %v191_v20 = vand.u32 2147483647, %v183_v52  ;;  %v684_v4 = vmul.f32 20.0, %v676_v61  ;;  %v796_v31 = vsub.f32 0.0, %v788_v11  ;;  %v7136_v53 = vpop.eup %7135 }
 0x171   :  { %v771_v45 = vadd.f32 %v763_v34, %v651_v15  ;;  %v8302_v17 = vadd.f32 %v2148_v23, %v2147_v41  ;;  %v908_v46 = vand.u32 2147483647, %v900_v48  ;;  %v11021_v23 = vmov 1   ;;  %v7138_v60 = vpop.eup %7137 }
 0x172   :  { %v850_v10 = vpop.permute.xlu1 %849  ;;  %1053 = vperm.xlu0 %7041, %v8300_v49   ;;  %v100_v34 = vmul.f32 0.5, %v92_v25  ;;  %v204_v55 = vmul.f32 20.0, %v196_v8  ;;  %v199_v41 = vsub.f32 0.0, %v191_v20  ;;  %v2145_v29 = vmul.f32 0.5, %v7134_v38 }
 0x173   :  { %11020 = vst [vmem:[#allocation95_spill] sm:$0xff] %v8302_v17  ;;  %v883_v19 = vmul.f32 %v8283_v24, %v850_v10  ;;  %7139 = vtanh.f32 %v8302_v17  ;;  %v692_v10 = vmul.f32 0.5, %v684_v4  ;;  %v804_v61 = vmul.f32 20.0, %v796_v31 }
 0x174   :  { %7141 = vtanh.f32 %v452_v14  ;;  %v423_v14 = vsub.f32 %v8236_v62, %v8257_v33  ;;  %v916_v11 = vsub.f32 0.0, %v908_v46  ;;  %v119_v48 = vmul.f32 0.5, %v7136_v53 }
 0x175   :  { %v891_v15 = vadd.f32 %v883_v19, %v771_v45  ;;  %v311_v45 = vand.u32 2147483647, %v303_v9  ;;  %7143 = vtanh.f32 %v572_v54  ;;  %v11022_v19 = vmov 3  }
 0x176   :  { %v970_v12 = vpop.permute.xlu1 %969  ;;  %7044 = vset.pattern.permute.xlu0 %v11021_v23  ;;  %7145 = vtanh.f32 %v100_v34  ;;  %v2146_v25 = vadd.f32 0.5, %v2145_v29  ;;  %v207_v8 = vmul.f32 20.0, %v199_v41  ;;  %v812_v38 = vmul.f32 0.5, %v804_v61 }
 0x177   :  { %v1003_v30 = vmul.f32 %v8294_v39, %v970_v12  ;;  %1301 = vperm.xlu0 %7044, %v8300_v49   ;;  %v212_v12 = vmul.f32 0.5, %v204_v55  ;;  %v319_v20 = vsub.f32 0.0, %v311_v45  ;;  %7147 = vtanh.f32 %v692_v10 }
 0x178   :  { %v543_v54 = vsub.f32 %v8236_v62, %v8267_v40  ;;  %v127_v46 = vadd.f32 0.5, %v119_v48  ;;  %v348_v53 = vmul.f32 0.5, %v7138_v60  ;;  %v215_v34 = vmul.f32 0.5, %v207_v8 }
 0x179   :  { %v1011_v52 = vadd.f32 %v1003_v30, %v891_v15  ;;  %v431_v15 = vand.u32 2147483647, %v423_v14  ;;  %v924_v30 = vmul.f32 20.0, %v916_v11  ;;  %7149 = vtanh.f32 %v212_v12 }
 0x17a   :  { %v327_v55 = vmul.f32 20.0, %v319_v20  ;;  %7151 = vtanh.f32 %v812_v38  ;;  %v551_v45 = vand.u32 2147483647, %v543_v54  ;;  %v663_v14 = vsub.f32 %v8236_v62, %v8236_v62  ;;  %v11026_v54 = vld [vmem:[#allocation12_spill] sm:$0xff] }
 0x17b   :  { %1028 = vperm.xlu1 %7042, %v1011_v52   ;;  %7046 = vset.pattern.permute.xlu0 %v11022_v19  ;;  %v439_v41 = vsub.f32 0.0, %v431_v15  ;;  %v932_v29 = vmul.f32 0.5, %v924_v30  ;;  %v356_v60 = vadd.f32 0.5, %v348_v53  ;;  %v11024_v11 = vmov 2  }
 0x17c   :  { %1693 = vperm.xlu0 %7046, %v1011_v52   ;;  %7153 = vtanh.f32 %v215_v34  ;;  %v335_v48 = vmul.f32 0.5, %v327_v55  ;;  %v559_v8 = vsub.f32 0.0, %v551_v45  ;;  %v671_v20 = vand.u32 2147483647, %v663_v14 }
 0x17d   :  { %v7140_v9 = vpop.eup %7139  ;;  %v447_v12 = vmul.f32 20.0, %v439_v41  ;;  %7155 = vtanh.f32 %v932_v29  ;;  %v783_v15 = vsub.f32 %v8236_v62, %v8283_v24  ;;  %v903_v41 = vsub.f32 %v8236_v62, %v8294_v39  ;;  %v11028_v29 = vld [vmem:[#allocation13_spill] sm:$0xff] }
 0x17e   :  { %v7142_v4 = vpop.eup %7141  ;;  %v8319_v31 = vmul.f32 %v7140_v9, %v2146_v25  ;;  %v11025_v9 = vmov 0.0   ;;  %7157 = vtanh.f32 %v335_v48  ;;  %v567_v53 = vmul.f32 20.0, %v559_v8  ;;  %v11030_v48 = vld [vmem:[#allocation16_spill] sm:$0xff] }
 0x17f   :  { %7043 = vset.pattern.permute.xlu1 %v11021_v23  ;;  %v468_v10 = vmul.f32 0.5, %v7142_v4  ;;  %v7144_v61 = vpop.eup %7143  ;;  %v11027_v4 = vld [vmem:[#allocation14_spill] sm:$0xff]  ;;  %v679_v34 = vsub.f32 0.0, %v671_v20  ;;  %v791_v55 = vand.u32 2147483647, %v783_v15 }
 0x180   :  { %11023 = vst [vmem:[#allocation96_spill] sm:$0xff] %v8319_v31  ;;  %1281 = vperm.xlu1 %7043, %v1011_v52   ;;  %2218 = vmatmul.mubr.f32.vlgmr.msra.gmra.mrb[2].mxu0 %v8319_v31  ;;  %v7146_v25 = vpop.eup %7145  ;;  %v588_v30 = vmul.f32 0.5, %v7144_v61  ;;  %v11029_v61 = vld [vmem:[#allocation15_spill] sm:$0xff]  ;;  %v575_v8 = vmul.f32 0.5, %v567_v53  ;;  %v911_v1 = vand.u32 2147483647, %v903_v41 }
 0x181   :  { %2289 = vmatmul.mubr.f32.vlgmr.msra.gmra.mrb[2].mxu1 %v8319_v31  ;;  %7049 = vset.pattern.permute.xlu0 %v10960_v58  ;;  %v476_v38 = vadd.f32 0.5, %v468_v10  ;;  %v116_v14 = vmul.f32 0.5, %v7146_v25  ;;  %v687_v20 = vmul.f32 20.0, %v679_v34  ;;  %v799_v15 = vsub.f32 0.0, %v791_v55  ;;  %v11032_v25 = vld [vmem:[#allocation18_spill] sm:$0xff] }
 0x182   :  { %5880 = vmatpush1.bf16.msra.mxu0 %v7590_v37  ;;  %157 = vperm.xlu0 %7049, %v127_v46   ;;  %v455_v46 = vmul.f32 0.5, %v447_v12  ;;  %v11031_v12 = vld [vmem:[#allocation17_spill] sm:$0xff]  ;;  %v919_v34 = vsub.f32 0.0, %v911_v1  ;;  %v11036_v55 = vld [vmem:[#allocation22_spill] sm:$0xff] }
 0x183   :  { %5912 = vmatpush1.bf16.msra.mxu1 %v7621_v5  ;;  %5882 = vmatprep.subr.bf16.mxu0 %v7632_v16  ;;  %v807_v53 = vmul.f32 20.0, %v799_v15  ;;  %v11040_v15 = vld [vmem:[#allocation26_spill] sm:$0xff]  ;;  %v11066_v5 = vld [vmem:[#allocation56_spill] sm:$0xff] }
 0x184   :  { %7045 = vset.pattern.permute.xlu1 %v11024_v11  ;;  %5914 = vmatprep.subr.bf16.mxu1 %v7656_v26  ;;  %7159 = vtanh.f32 %v455_v46  ;;  %v11035_v46 = vld [vmem:[#allocation21_spill] sm:$0xff]  ;;  %v11065_v26 = vld [vmem:[#allocation47_spill] sm:$0xff] }
 0x185   :  { %1487 = vperm.xlu1 %7045, %v1011_v52   ;;  %2383 = vmatprep.mubr.f32.mxu0 %v11025_v9  ;;  %v7148_v52 = vpop.eup %7147  ;;  %7161 = vtanh.f32 %v575_v8  ;;  %v815_v8 = vmul.f32 0.5, %v807_v53 }
 0x186   :  { %5884 = vmatpush1.bf16.msra.mxu0 %v7644_v21  ;;  %374 = vperm.xlu0 %7049, %v356_v60   ;;  %v7150_v45 = vpop.eup %7149  ;;  %v596_v60 = vadd.f32 0.5, %v588_v30  ;;  %v708_v10 = vmul.f32 0.5, %v7148_v52  ;;  %v124_v30 = vadd.f32 0.5, %v116_v14 }
 0x187   :  { %5916 = vmatpush1.bf16.msra.mxu1 %v7668_v35  ;;  %5886 = vmatprep.subr.bf16.mxu0 %v11026_v54  ;;  %v7152_v31 = vpop.eup %7151  ;;  %v228_v52 = vmul.f32 0.5, %v7150_v45  ;;  %v11061_v35 = vld [vmem:[#allocation45_spill] sm:$0xff] }
 0x188   :  { %5918 = vmatprep.subr.bf16.mxu1 %v11027_v4  ;;  %2454 = vmatprep.mubr.f32.mxu1 %v11025_v9  ;;  %v716_v47 = vadd.f32 0.5, %v708_v10  ;;  %v828_v6 = vmul.f32 0.5, %v7152_v31  ;;  %v11037_v10 = vld [vmem:[#allocation24_spill] sm:$0xff] }
 0x189   :  { %1507 = vperm.xlu1 %7045, %v8300_v49   ;;  %v236_v45 = vadd.f32 0.5, %v228_v52 }
 0x18a   :  { %5888 = vmatpush1.bf16.msra.mxu0 %v11028_v29  ;;  %494 = vperm.xlu0 %7049, %v476_v38   ;;  %v7154_v38 = vpop.eup %7153  ;;  %v836_v31 = vadd.f32 0.5, %v828_v6  ;;  %v11042_v6 = vld [vmem:[#allocation27_spill] sm:$0xff]  ;;  %v11060_v29 = vld [vmem:[#allocation41_spill] sm:$0xff] }
 0x18b   :  { %5920 = vmatpush1.bf16.msra.mxu1 %v11029_v61  ;;  %5890 = vmatprep.subr.bf16.mxu0 %v11030_v48  ;;  %v11034_v48 = vld [vmem:[#allocation19_spill] sm:$0xff]  ;;  %v231_v14 = vmul.f32 0.5, %v7154_v38 }
 0x18c   :  { %5922 = vmatprep.subr.bf16.mxu1 %v11031_v12  ;;  %v7156_v12 = vpop.eup %7155 }
 0x18d   :  { %7047 = vset.pattern.permute.xlu1 %v11022_v19  ;;  %v7158_v41 = vpop.eup %7157  ;;  %v11068_v19 = vld [vmem:[#allocation61_spill] sm:$0xff] }
 0x18e   :  { %1713 = vperm.xlu1 %7047, %v8300_v49   ;;  %5892 = vmatpush1.bf16.msra.mxu0 %v11032_v25  ;;  %v695_v49 = vmul.f32 0.5, %v687_v20  ;;  %v927_v20 = vmul.f32 20.0, %v919_v34  ;;  %v7160_v1 = vpop.eup %7159 }
 0x18f   :  { %614 = vperm.xlu0 %7049, %v596_v60   ;;  %5924 = vmatpush1.bf16.msra.mxu1 %v11033_v2  ;;  %v948_v60 = vmul.f32 0.5, %v7156_v12  ;;  %v11043_v12 = vld [vmem:[#allocation29_spill] sm:$0xff]  ;;  %v471_v53 = vmul.f32 0.5, %v7160_v1  ;;  %v7162_v34 = vpop.eup %7161  ;;  %v11051_v1 = vld [vmem:[#allocation6_spill] sm:$0xff] }
 0x190   :  { %5894 = vmatprep.subr.bf16.mxu0 %v11034_v48  ;;  %5926 = vmatprep.subr.bf16.mxu1 %v11035_v46  ;;  %v11038_v48 = vld [vmem:[#allocation23_spill] sm:$0xff]  ;;  %v11039_v46 = vld [vmem:[#allocation25_spill] sm:$0xff]  ;;  %7163 = vtanh.f32 %v695_v49  ;;  %v935_v52 = vmul.f32 0.5, %v927_v20  ;;  %v11049_v20 = vld [vmem:[#allocation4_spill] sm:$0xff] }
 0x191   :  { %v956_v38 = vadd.f32 0.5, %v948_v60  ;;  %7165 = vtanh.f32 %v815_v8  ;;  %v479_v60 = vadd.f32 0.5, %v471_v53  ;;  %v591_v8 = vmul.f32 0.5, %v7162_v34 }
 0x192   :  { %7048 = vset.pattern.permute.xlu1 %v10960_v58  ;;  %5896 = vmatpush1.bf16.msra.mxu0 %v11036_v55  ;;  %v239_v55 = vadd.f32 0.5, %v231_v14  ;;  %v11047_v14 = vld [vmem:[#allocation33_spill] sm:$0xff]  ;;  %7167 = vtanh.f32 %v935_v52 }
 0x193   :  { %142 = vperm.xlu1 %7048, %v124_v30   ;;  %734 = vperm.xlu0 %7049, %v716_v47   ;;  %v351_v30 = vmul.f32 0.5, %v7158_v41  ;;  %v11041_v47 = vld [vmem:[#allocation28_spill] sm:$0xff]  ;;  %v11046_v41 = vld [vmem:[#allocation31_spill] sm:$0xff]  ;;  %v11069_v58 = vld [vmem:[#allocation53_spill] sm:$0xff] }
 0x194   :  { %5928 = vmatpush1.bf16.msra.mxu1 %v11037_v10  ;;  %5898 = vmatprep.subr.bf16.mxu0 %v11038_v48  ;;  %v11058_v48 = vld [vmem:[#allocation67_spill] sm:$0xff] }
 0x195   :  { %5930 = vmatprep.subr.bf16.mxu1 %v11039_v46  ;;  %v11044_v46 = vld [vmem:[#allocation30_spill] sm:$0xff]  ;;  %v359_v49 = vadd.f32 0.5, %v351_v30  ;;  %v599_v30 = vadd.f32 0.5, %v591_v8 }
 0x196   :  { %5900 = vmatpush1.bf16.msra.mxu0 %v11040_v15 }
 0x197   :  { %254 = vperm.xlu1 %7048, %v236_v45   ;;  %854 = vperm.xlu0 %7049, %v836_v31   ;;  %v11045_v45 = vld [vmem:[#allocation32_spill] sm:$0xff]  ;;  %v11048_v31 = vld [vmem:[#allocation34_spill] sm:$0xff] }
 0x198   :  { %5932 = vmatpush1.bf16.msra.mxu1 %v11041_v47  ;;  %5902 = vmatprep.subr.bf16.mxu0 %v11042_v6  ;;  %v11057_v47 = vld [vmem:[#allocation62_spill] sm:$0xff] }
 0x199   :  { %5934 = vmatprep.subr.bf16.mxu1 %v11043_v12  ;;  %v11056_v12 = vld [vmem:[#allocation65_spill] sm:$0xff] }
 0x19a   :  { %5904 = vmatpush1.bf16.msra.mxu0 %v11044_v46  ;;  %v7164_v46 = vpop.eup %7163 }
 0x19b   :  { %269 = vperm.xlu1 %7048, %v239_v55   ;;  %974 = vperm.xlu0 %7049, %v956_v38   ;;  %v11050_v55 = vld [vmem:[#allocation35_spill] sm:$0xff]  ;;  %v711_v38 = vmul.f32 0.5, %v7164_v46  ;;  %v11054_v46 = vld [vmem:[#allocation44_spill] sm:$0xff] }
 0x19c   :  { %5936 = vmatpush1.bf16.msra.mxu1 %v11045_v45  ;;  %5906 = vmatprep.subr.bf16.mxu0 %v11046_v41  ;;  %v7166_v45 = vpop.eup %7165 }
 0x19d   :  { %5938 = vmatprep.subr.bf16.mxu1 %v11047_v14  ;;  %v719_v41 = vadd.f32 0.5, %v711_v38  ;;  %v831_v14 = vmul.f32 0.5, %v7166_v45  ;;  %v7168_v52 = vpop.eup %7167  ;;  %v11055_v45 = vld [vmem:[#allocation58_spill] sm:$0xff] }
 0x19e   :  { %5908 = vmatpush1.bf16.msra.mxu0 %v11048_v31 }
 0x19f   :  { %389 = vperm.xlu1 %7048, %v359_v49   ;;  %5942 = vmatprep.subr.bf16.mxu0 %v11049_v20  ;;  %v839_v31 = vadd.f32 0.5, %v831_v14  ;;  %v951_v49 = vmul.f32 0.5, %v7168_v52  ;;  %v11052_v20 = vld [vmem:[#allocation42_spill] sm:$0xff] }
 0x1a0   :  { %5940 = vmatpush1.bf16.msra.mxu1 %v11050_v55 }
 0x1a1   :  { %5974 = vmatprep.subr.bf16.mxu1 %v11051_v1  ;;  %v959_v53 = vadd.f32 0.5, %v951_v49 }
 0x1a3   :  { %509 = vperm.xlu1 %7048, %v479_v60   ;;  %v11053_v60 = vld [vmem:[#allocation50_spill] sm:$0xff] }
 0x1a7   :  { %629 = vperm.xlu1 %7048, %v599_v30  }
 0x1ab   :  { %749 = vperm.xlu1 %7048, %v719_v41   ;;  %v69_v41 = vsub.f32 %v8257_v33, %v8231_v43 }
 0x1ad   :  { %v8396_v2 = vand.u32 2147483647, %v69_v41 }
 0x1af   :  { %869 = vperm.xlu1 %7048, %v839_v31   ;;  %11059 = vst [vmem:[#allocation97_spill] sm:$0xff] %v8396_v2  ;;  %v11072_v2 = vld [vmem:[#allocation66_spill] sm:$0xff] }
 0x1b3   :  { %989 = vperm.xlu1 %7048, %v959_v53  }
 0x1f1   :  { %v8370_v34 = vpop.permute.xlu0 %1053 }
 0x1f2   :  { %v1213_v55 = vmul.f32 %v11052_v20, %v8370_v34  ;;  %v1215_v8 = vmul.f32 %v11053_v60, %v8370_v34  ;;  %v1214_v30 = vmul.f32 %v11054_v46, %v8370_v34  ;;  %v1216_v38 = vmul.f32 %v11055_v45, %v8370_v34 }
 0x1f3   :  { %v1106_v41 = vmul.f32 %v11060_v29, %v8370_v34 }
 0x1f4   :  { %v1266_v31 = vadd.f32 %v8022_v13, %v1213_v55  ;;  %v1268_v52 = vadd.f32 %v8045_v22, %v1215_v8  ;;  %v1267_v49 = vadd.f32 %v8039_v28, %v1214_v30  ;;  %v1269_v53 = vadd.f32 %v8063_v32, %v1216_v38 }
 0x1f5   :  { %v182_v55 = vsub.f32 %v8267_v40, %v8225_v63 }
 0x1f6   :  { %v8382_v14 = vpop.permute.xlu0 %1301 }
 0x1f7   :  { %v1440_v1 = vmul.f32 %v8066_v56, %v8382_v14  ;;  %v1442_v6 = vmul.f32 %v11056_v12, %v8382_v14  ;;  %v1441_v15 = vmul.f32 %v11057_v47, %v8382_v14  ;;  %v1443_v10 = vmul.f32 %v11058_v48, %v8382_v14 }
 0x1f8   :  { %v1353_v37 = vmul.f32 %v11066_v5, %v8382_v14 }
 0x1f9   :  { %v8402_v30 = vadd.f32 %v1440_v1, %v1266_v31  ;;  %v8404_v38 = vadd.f32 %v1442_v6, %v1268_v52  ;;  %v8406_v25 = vadd.f32 %v1441_v15, %v1267_v49  ;;  %v8408_v61 = vadd.f32 %v1443_v10, %v1269_v53  ;;  %v11062_v1 = vld [vmem:[#allocation43_spill] sm:$0xff] }
 0x1fa   :  { %v8400_v8 = vpop.permute.xlu1 %1028  ;;  %v8421_v15 = vand.u32 2147483647, %v182_v55  ;;  %v11064_v10 = vld [vmem:[#allocation55_spill] sm:$0xff]  ;;  %v1108_v53 = vmul.f32 %v11061_v35, %v8370_v34  ;;  %v1159_v55 = vadd.f32 %v11065_v26, %v1106_v41 }
 0x1fb   :  { %v1086_v4 = vmul.f32 %v11060_v29, %v8400_v8  ;;  %v8414_v54 = vpop.permute.xlu0 %1693  ;;  %v1088_v21 = vmul.f32 %v11061_v35, %v8400_v8  ;;  %v1087_v31 = vmul.f32 %v11062_v1, %v8400_v8  ;;  %v1089_v52 = vmul.f32 %v11064_v10, %v8400_v8 }
 0x1fc   :  { %11063 = vst [vmem:[#allocation98_spill] sm:$0xff] %v8421_v15  ;;  %v8431_v29 = vmul.f32 %v11062_v1, %v8370_v34  ;;  %v1193_v6 = vmul.f32 %v11052_v20, %v8400_v8  ;;  %v1745_v35 = vmul.f32 %v8131_v51, %v8414_v54  ;;  %v11067_v1 = vld [vmem:[#allocation63_spill] sm:$0xff]  ;;  %v11070_v20 = vld [vmem:[#allocation49_spill] sm:$0xff]  ;;  %v1385_v23 = vadd.f32 %v1353_v37, %v1159_v55 }
 0x1fd   :  { %v1139_v16 = vadd.f32 %v11065_v26, %v1086_v4  ;;  %v1141_v41 = vadd.f32 %v11069_v58, %v1088_v21  ;;  %v1747_v26 = vmul.f32 %v8147_v3, %v8414_v54  ;;  %v1140_v11 = vadd.f32 %v11070_v20, %v1087_v31  ;;  %v11071_v15 = vld [vmem:[#allocation57_spill] sm:$0xff] }
 0x1fe   :  { %v1142_v24 = vadd.f32 %v11071_v15, %v1089_v52  ;;  %v1748_v40 = vmul.f32 %v8158_v0, %v8414_v54  ;;  %v1246_v48 = vadd.f32 %v8022_v13, %v1193_v6  ;;  %v1161_v63 = vadd.f32 %v11069_v58, %v1108_v53  ;;  %v11073_v0 = vld [vmem:[#allocation64_spill] sm:$0xff]  ;;  %v11074_v6 = vld [vmem:[#allocation70_spill] sm:$0xff] }
 0x1ff   :  { %v8433_v9 = vpop.permute.xlu1 %1281  ;;  %v1195_v52 = vmul.f32 %v11053_v60, %v8400_v8  ;;  %v1355_v15 = vmul.f32 %v11067_v1, %v8382_v14 }
 0x200   :  { %v1333_v49 = vmul.f32 %v11066_v5, %v8433_v9  ;;  %v1335_v17 = vmul.f32 %v11067_v1, %v8433_v9  ;;  %v1334_v4 = vmul.f32 %v11068_v19, %v8433_v9  ;;  %v1746_v5 = vmul.f32 %v8137_v36, %v8414_v54 }
 0x201   :  { %v158_v39 = vpop.permute.xlu0 %157  ;;  %v1336_v62 = vmul.f32 %v11072_v2, %v8433_v9  ;;  %v1420_v31 = vmul.f32 %v8066_v56, %v8433_v9  ;;  %v1387_v13 = vadd.f32 %v1355_v15, %v1161_v63  ;;  %v1422_v1 = vmul.f32 %v11056_v12, %v8433_v9 }
 0x202   :  { %v1365_v32 = vadd.f32 %v1333_v49, %v1139_v16  ;;  %v1367_v21 = vadd.f32 %v1335_v17, %v1141_v41  ;;  %v1366_v55 = vadd.f32 %v1334_v4, %v1140_v11  ;;  %v11075_v41 = vld [vmem:[#allocation69_spill] sm:$0xff]  ;;  %v8483_v58 = vmul.f32 %v8231_v43, %v158_v39 }
 0x203   :  { %v1368_v53 = vadd.f32 %v1336_v62, %v1142_v24  ;;  %v1452_v33 = vadd.f32 %v1420_v31, %v1246_v48  ;;  %v1248_v62 = vadd.f32 %v8045_v22, %v1195_v52  ;;  %v11076_v24 = vld [vmem:[#allocation74_spill] sm:$0xff] }
 0x204   :  { %v8463_v37 = vpop.permute.xlu1 %1487 }
 0x205   :  { %v1539_v16 = vmul.f32 %v11073_v0, %v8463_v37  ;;  %v1541_v17 = vmul.f32 %v8107_v27, %v8463_v37  ;;  %v1540_v49 = vmul.f32 %v11074_v6, %v8463_v37  ;;  %v1542_v11 = vmul.f32 %v8117_v18, %v8463_v37  ;;  %v375_v4 = vpop.permute.xlu0 %374 }
 0x206   :  { %v1626_v56 = vmul.f32 %v11075_v41, %v8463_v37  ;;  %v1832_v18 = vmul.f32 %v8134_v44, %v8414_v54  ;;  %v1628_v63 = vmul.f32 %v11076_v24, %v8463_v37  ;;  %v8497_v48 = vmul.f32 %v8245_v57, %v375_v4 }
 0x207   :  { %v1571_v60 = vadd.f32 %v1539_v16, %v1365_v32  ;;  %v1573_v2 = vadd.f32 %v1541_v17, %v1367_v21  ;;  %v1572_v10 = vadd.f32 %v1540_v49, %v1366_v55  ;;  %v1574_v32 = vadd.f32 %v1542_v11, %v1368_v53  ;;  %v11077_v55 = vld [vmem:[#allocation71_spill] sm:$0xff] }
 0x208   :  { %v8485_v45 = vpop.permute.xlu1 %1507  ;;  %v1658_v21 = vadd.f32 %v1626_v56, %v1452_v33  ;;  %v1454_v17 = vadd.f32 %v1422_v1, %v1248_v62 }
 0x209   :  { %v1646_v15 = vmul.f32 %v11075_v41, %v8485_v45  ;;  %v1648_v39 = vmul.f32 %v11076_v24, %v8485_v45  ;;  %v495_v31 = vpop.permute.xlu0 %494  ;;  %v1647_v16 = vmul.f32 %v11077_v55, %v8485_v45  ;;  %v1649_v52 = vmul.f32 %v8120_v7, %v8485_v45 }
 0x20a   :  { %v1777_v12 = vadd.f32 %v1745_v35, %v1571_v60  ;;  %v1779_v22 = vadd.f32 %v1747_v26, %v1573_v2  ;;  %v1778_v56 = vadd.f32 %v1746_v5, %v1572_v10  ;;  %v1559_v4 = vmul.f32 %v11073_v0, %v8485_v45 }
 0x20b   :  { %v1678_v49 = vadd.f32 %v1646_v15, %v8402_v30  ;;  %v1680_v41 = vadd.f32 %v1648_v39, %v8404_v38  ;;  %v1679_v11 = vadd.f32 %v1647_v16, %v8406_v25  ;;  %v1681_v33 = vadd.f32 %v1649_v52, %v8408_v61 }
 0x20c   :  { %v1780_v24 = vadd.f32 %v1748_v40, %v1574_v32  ;;  %v1864_v57 = vadd.f32 %v1832_v18, %v1658_v21  ;;  %v1561_v1 = vmul.f32 %v8107_v27, %v8485_v45  ;;  %v1660_v62 = vadd.f32 %v1628_v63, %v1454_v17 }
 0x20d   :  { %v1714_v53 = vpop.permute.xlu1 %1713  ;;  %v1591_v61 = vadd.f32 %v1559_v4, %v1385_v23  ;;  %v1834_v18 = vmul.f32 %v8155_v42, %v8414_v54  ;;  %v1160_v32 = vadd.f32 %v11070_v20, %v8431_v29  ;;  %v1194_v21 = vmul.f32 %v11054_v46, %v8400_v8 }
 0x20e   :  { %v615_v30 = vpop.permute.xlu0 %614  ;;  %v1852_v35 = vmul.f32 %v8134_v44, %v1714_v53  ;;  %v1854_v26 = vmul.f32 %v8155_v42, %v1714_v53  ;;  %v1853_v2 = vmul.f32 %v8140_v50, %v1714_v53  ;;  %v1855_v5 = vmul.f32 %v8161_v59, %v1714_v53 }
 0x20f   :  { %v1765_v25 = vmul.f32 %v8131_v51, %v1714_v53  ;;  %v1593_v60 = vadd.f32 %v1561_v1, %v1387_v13  ;;  %v1767_v39 = vmul.f32 %v8147_v3, %v1714_v53  ;;  %v1866_v4 = vadd.f32 %v1834_v18, %v1660_v62  ;;  %v11082_v18 = vld [vmem:[#allocation91_spill] sm:$0xff] }
 0x210   :  { %v1884_v40 = vadd.f32 %v1852_v35, %v1678_v49  ;;  %v1886_v38 = vadd.f32 %v1854_v26, %v1680_v41  ;;  %v1885_v10 = vadd.f32 %v1853_v2, %v1679_v11  ;;  %v1887_v63 = vadd.f32 %v1855_v5, %v1681_v33  ;;  %v11080_v5 = vld [vmem:[#allocation55_spill] sm:$0xff] }
 0x211   :  { %v1797_v15 = vadd.f32 %v1765_v25, %v1591_v61  ;;  %v1799_v33 = vadd.f32 %v1767_v39, %v1593_v60  ;;  %v1247_v29 = vadd.f32 %v8039_v28, %v1194_v21  ;;  %v1354_v1 = vmul.f32 %v11068_v19, %v8382_v14  ;;  %v11081_v25 = vld [vmem:[#allocation58_spill] sm:$0xff]  ;;  %v11085_v39 = vld [vmem:[#allocation67_spill] sm:$0xff] }
 0x212   :  { %v143_v23 = vpop.permute.xlu1 %142  ;;  %v735_v16 = vpop.permute.xlu0 %734  ;;  %v8523_v52 = vadd.f32 %v1884_v40, %v1777_v12  ;;  %v8525_v13 = vadd.f32 %v1886_v38, %v1779_v22  ;;  %v8527_v17 = vadd.f32 %v1885_v10, %v1778_v56  ;;  %v8529_v41 = vadd.f32 %v1887_v63, %v1780_v24  ;;  %v11083_v38 = vld [vmem:[#allocation88_spill] sm:$0xff]  ;;  %v11084_v63 = vld [vmem:[#allocation66_spill] sm:$0xff] }
 0x213   :  { %v172_v49 = vmul.f32 %v8231_v43, %v143_v23  ;;  %v8532_v11 = vadd.f32 %v1864_v57, %v1797_v15  ;;  %v1421_v12 = vmul.f32 %v11057_v47, %v8433_v9  ;;  %v1560_v22 = vmul.f32 %v11074_v6, %v8485_v45 }
 0x214   :  { %v8541_v56 = vadd.f32 %v1866_v4, %v1799_v33  ;;  %v1627_v24 = vmul.f32 %v11077_v55, %v8463_v37  ;;  %v1766_v57 = vmul.f32 %v8137_v36, %v1714_v53  ;;  %v1833_v62 = vmul.f32 %v8140_v50, %v8414_v54  ;;  %v11086_v4 = vld [vmem:[#allocation57_spill] sm:$0xff] }
 0x215   :  { %11078 = vst [vmem:[#allocation61_spill] sm:$0xff] %v8532_v11  ;;  %v1386_v26 = vadd.f32 %v1354_v1, %v1160_v32  ;;  %v1453_v2 = vadd.f32 %v1421_v12, %v1247_v29  ;;  %v1109_v61 = vmul.f32 %v11080_v5, %v8370_v34  ;;  %v1196_v60 = vmul.f32 %v11081_v25, %v8400_v8  ;;  %v11087_v1 = vld [vmem:[#allocation59_spill] sm:$0xff] }
 0x216   :  { %11079 = vst [vmem:[#allocation99_spill] sm:$0xff] %v8541_v56  ;;  %v255_v35 = vpop.permute.xlu1 %254  ;;  %v524_v40 = vmul.f32 %v11082_v18, %v495_v31  ;;  %v1356_v15 = vmul.f32 %v11084_v63, %v8382_v14  ;;  %v1423_v21 = vmul.f32 %v11085_v39, %v8433_v9  ;;  %v855_v23 = vpop.permute.xlu0 %854  ;;  %v11088_v8 = vld [vmem:[#allocation75_spill] sm:$0xff]  ;;  %v1629_v31 = vmul.f32 %v8120_v7, %v8463_v37 }
 0x217   :  { %v284_v10 = vmul.f32 %v11083_v38, %v255_v35  ;;  %v1592_v33 = vadd.f32 %v1560_v22, %v1386_v26  ;;  %v1659_v32 = vadd.f32 %v1627_v24, %v1453_v2  ;;  %v1162_v29 = vadd.f32 %v11086_v4, %v1109_v61  ;;  %v11089_v35 = vld [vmem:[#allocation83_spill] sm:$0xff]  ;;  %v11090_v24 = vld [vmem:[#allocation92_spill] sm:$0xff] }
 0x218   :  { %v1249_v34 = vadd.f32 %v11087_v1, %v1196_v60  ;;  %v1562_v56 = vmul.f32 %v11088_v8, %v8485_v45  ;;  %v1768_v11 = vmul.f32 %v11089_v35, %v1714_v53  ;;  %v644_v26 = vmul.f32 %v11090_v24, %v615_v30  ;;  %v11095_v30 = vld [vmem:[#allocation90_spill] sm:$0xff] }
 0x219   :  { %v292_v12 = vadd.f32 %v284_v10, %v172_v49  ;;  %v1798_v50 = vadd.f32 %v1766_v57, %v1592_v33  ;;  %v1865_v42 = vadd.f32 %v1833_v62, %v1659_v32  ;;  %v1388_v9 = vadd.f32 %v1356_v15, %v1162_v29  ;;  %v11092_v57 = vld [vmem:[#allocation89_spill] sm:$0xff] }
 0x21a   :  { %v270_v14 = vpop.permute.xlu1 %269  ;;  %v1455_v44 = vadd.f32 %v1423_v21, %v1249_v34  ;;  %v1835_v49 = vmul.f32 %v8161_v59, %v8414_v54  ;;  %v764_v62 = vmul.f32 %v11092_v57, %v735_v16  ;;  %v11093_v10 = vld [vmem:[#allocation97_spill] sm:$0xff]  ;;  %v975_v33 = vpop.permute.xlu0 %974  ;;  %v11096_v32 = vsub.f32 %v11090_v24, %v11095_v30  ;;  %v11098_v16 = vld [vmem:[#allocation98_spill] sm:$0xff] }
 0x21b   :  { %v412_v22 = vadd.f32 %v8497_v48, %v292_v12  ;;  %v287_v2 = vmul.f32 %v11083_v38, %v270_v14  ;;  %v8570_v45 = vadd.f32 %v1865_v42, %v1798_v50  ;;  %v1594_v61 = vadd.f32 %v1562_v56, %v1388_v9  ;;  %v11100_v9 = vld [vmem:[#allocation94_spill] sm:$0xff] }
 0x21c   :  { %v1661_v37 = vadd.f32 %v1629_v31, %v1455_v44  ;;  %v11094_v15 = vsub.f32 0.0, %v11093_v10  ;;  %v310_v29 = vand.u32 2147483647, %v11096_v32  ;;  %v422_v42 = vsub.f32 %v11090_v24, %v11082_v18 }
 0x21d   :  { %11091 = vst [vmem:[#allocation91_spill] sm:$0xff] %v8570_v45  ;;  %v532_v60 = vadd.f32 %v524_v40, %v412_v22  ;;  %v295_v53 = vadd.f32 %v287_v2, %v8483_v58  ;;  %v1800_v50 = vadd.f32 %v1768_v11, %v1594_v61  ;;  %v11097_v58 = vld [vmem:[#allocation93_spill] sm:$0xff]  ;;  %v198_v34 = vsub.f32 0.0, %v11098_v16 }
 0x21e   :  { %v93_v21 = vmul.f32 20.0, %v11094_v15  ;;  %v390_v48 = vpop.permute.xlu1 %389  ;;  %v1867_v54 = vadd.f32 %v1835_v49, %v1661_v37  ;;  %v884_v40 = vmul.f32 %v11097_v58, %v855_v23  ;;  %v1004_v22 = vmul.f32 %v11100_v9, %v975_v33  ;;  %v11143_v45 = vld [vmem:[#allocation41_spill] sm:$0xff] }
 0x21f   :  { %v652_v44 = vadd.f32 %v644_v26, %v532_v60  ;;  %v407_v56 = vmul.f32 %v11095_v30, %v390_v48  ;;  %v318_v10 = vsub.f32 0.0, %v310_v29  ;;  %v430_v15 = vand.u32 2147483647, %v422_v42 }
 0x220   :  { %v8584_v12 = vadd.f32 %v1867_v54, %v1800_v50  ;;  %v542_v11 = vsub.f32 %v11090_v24, %v11090_v24  ;;  %v101_v61 = vmul.f32 0.5, %v93_v21  ;;  %v206_v37 = vmul.f32 20.0, %v198_v34 }
 0x221   :  { %v772_v31 = vadd.f32 %v764_v62, %v652_v44  ;;  %v415_v14 = vadd.f32 %v407_v56, %v295_v53  ;;  %v70_v62 = vsub.f32 %v11090_v24, %v8231_v43  ;;  %v326_v48 = vmul.f32 20.0, %v318_v10 }
 0x222   :  { %11099 = vst [vmem:[#allocation88_spill] sm:$0xff] %v8584_v12  ;;  %v510_v2 = vpop.permute.xlu1 %509  ;;  %v438_v33 = vsub.f32 0.0, %v430_v15  ;;  %v550_v32 = vand.u32 2147483647, %v542_v11  ;;  %7169 = vtanh.f32 %v101_v61  ;;  %v214_v42 = vmul.f32 0.5, %v206_v37 }
 0x223   :  { %v892_v49 = vadd.f32 %v884_v40, %v772_v31  ;;  %v527_v26 = vmul.f32 %v11082_v18, %v510_v2  ;;  %v662_v21 = vsub.f32 %v11090_v24, %v11092_v57  ;;  %v78_v54 = vand.u32 2147483647, %v70_v62 }
 0x224   :  { %v181_v56 = vsub.f32 %v11082_v18, %v11083_v38  ;;  %v334_v43 = vmul.f32 0.5, %v326_v48  ;;  %v446_v40 = vmul.f32 20.0, %v438_v33  ;;  %v558_v16 = vsub.f32 0.0, %v550_v32 }
 0x225   :  { %v535_v23 = vadd.f32 %v527_v26, %v415_v14  ;;  %v8590_v60 = vadd.f32 %v1004_v22, %v892_v49  ;;  %v11101_v31 = vmov 1   ;;  %7171 = vtanh.f32 %v214_v42 }
 0x226   :  { %v630_v53 = vpop.permute.xlu1 %629  ;;  %v670_v14 = vand.u32 2147483647, %v662_v21  ;;  %v782_v22 = vsub.f32 %v11090_v24, %v11097_v58  ;;  %v86_v10 = vsub.f32 0.0, %v78_v54  ;;  %v301_v15 = vsub.f32 %v11082_v18, %v11095_v30 }
 0x227   :  { %v647_v29 = vmul.f32 %v11090_v24, %v630_v53  ;;  %1033 = vperm.xlu0 %7049, %v8590_v60   ;;  %v189_v11 = vand.u32 2147483647, %v181_v56  ;;  %7173 = vtanh.f32 %v334_v43  ;;  %v454_v49 = vmul.f32 0.5, %v446_v40 }
 0x228   :  { %v566_v26 = vmul.f32 20.0, %v558_v16  ;;  %v678_v61 = vsub.f32 0.0, %v670_v14  ;;  %v790_v37 = vand.u32 2147483647, %v782_v22  ;;  %v11102_v62 = vmov 2  }
 0x229   :  { %v655_v50 = vadd.f32 %v647_v29, %v535_v23  ;;  %v902_v23 = vsub.f32 %v11090_v24, %v11100_v9  ;;  %v309_v33 = vand.u32 2147483647, %v301_v15  ;;  %v421_v30 = vsub.f32 %v11082_v18, %v11082_v18  ;;  %v8619_v18 = vld [vmem:[%s10926_s26 + $0x18] sm:$0xff] }
 0x22a   :  { %v750_v44 = vpop.permute.xlu1 %749  ;;  %v94_v29 = vmul.f32 20.0, %v86_v10  ;;  %v197_v42 = vsub.f32 0.0, %v189_v11  ;;  %7175 = vtanh.f32 %v454_v49  ;;  %v574_v21 = vmul.f32 0.5, %v566_v26  ;;  %11103 = vst [vmem:[#allocation92_spill] sm:$0xff] %v8619_v18 }
 0x22b   :  { %v767_v34 = vmul.f32 %v11092_v57, %v750_v44  ;;  %7050 = vset.pattern.permute.xlu0 %v11101_v31  ;;  %v686_v54 = vmul.f32 20.0, %v678_v61  ;;  %v798_v44 = vsub.f32 0.0, %v790_v37  ;;  %v910_v56 = vand.u32 2147483647, %v902_v23 }
 0x22c   :  { %1285 = vperm.xlu0 %7050, %v8590_v60   ;;  %v7170_v53 = vpop.eup %7169  ;;  %v429_v14 = vand.u32 2147483647, %v421_v30  ;;  %v102_v22 = vmul.f32 0.5, %v94_v29  ;;  %v541_v10 = vsub.f32 %v8619_v18, %v11090_v24  ;;  %7177 = vtanh.f32 %v574_v21  ;;  %v8628_v24 = vld [vmem:[%s10926_s26 + $0x28] sm:$0xff] }
 0x22d   :  { %v775_v2 = vadd.f32 %v767_v34, %v655_v50  ;;  %v117_v43 = vmul.f32 0.5, %v7170_v53  ;;  %v317_v34 = vsub.f32 0.0, %v309_v33  ;;  %v694_v15 = vmul.f32 0.5, %v686_v54  ;;  %11104 = vst [vmem:[#allocation89_spill] sm:$0xff] %v8628_v24 }
 0x22e   :  { %v870_v38 = vpop.permute.xlu1 %869  ;;  %v918_v11 = vsub.f32 0.0, %v910_v56  ;;  %v437_v37 = vsub.f32 0.0, %v429_v14  ;;  %7179 = vtanh.f32 %v102_v22  ;;  %v549_v53 = vand.u32 2147483647, %v541_v10 }
 0x22f   :  { %v887_v57 = vmul.f32 %v11097_v58, %v870_v38  ;;  %v7172_v40 = vpop.eup %7171  ;;  %v806_v38 = vmul.f32 20.0, %v798_v44  ;;  %v125_v26 = vadd.f32 0.5, %v117_v43  ;;  %v325_v61 = vmul.f32 20.0, %v317_v34 }
 0x230   :  { %7053 = vset.pattern.permute.xlu0 %v11102_v62  ;;  %v11105_v33 = vmov 0   ;;  %7181 = vtanh.f32 %v694_v15  ;;  %v445_v54 = vmul.f32 20.0, %v437_v37  ;;  %v557_v44 = vsub.f32 0.0, %v549_v53 }
 0x231   :  { %v895_v48 = vadd.f32 %v887_v57, %v775_v2  ;;  %v205_v2 = vmul.f32 20.0, %v197_v42  ;;  %v7174_v49 = vpop.eup %7173  ;;  %v230_v57 = vmul.f32 0.5, %v7172_v40  ;;  %v814_v30 = vmul.f32 0.5, %v806_v38 }
 0x232   :  { %v990_v32 = vpop.permute.xlu1 %989  ;;  %v350_v21 = vmul.f32 0.5, %v7174_v49  ;;  %v781_v43 = vsub.f32 %v8619_v18, %v11097_v58  ;;  %v565_v10 = vmul.f32 20.0, %v557_v44 }
 0x233   :  { %v1007_v50 = vmul.f32 %v11100_v9, %v990_v32  ;;  %v213_v23 = vmul.f32 0.5, %v205_v2  ;;  %v926_v32 = vmul.f32 20.0, %v918_v11  ;;  %v238_v42 = vadd.f32 0.5, %v230_v57 }
 0x234   :  { %v7176_v29 = vpop.eup %7175  ;;  %v358_v34 = vadd.f32 0.5, %v350_v21  ;;  %v453_v2 = vmul.f32 0.5, %v445_v54  ;;  %v789_v38 = vand.u32 2147483647, %v781_v43  ;;  %v901_v11 = vsub.f32 %v8619_v18, %v11100_v9 }
 0x235   :  { %v8614_v16 = vadd.f32 %v1007_v50, %v895_v48  ;;  %v661_v48 = vsub.f32 %v8619_v18, %v8628_v24  ;;  %v333_v50 = vmul.f32 0.5, %v325_v61  ;;  %7183 = vtanh.f32 %v213_v23 }
 0x236   :  { %7185 = vtanh.f32 %v814_v30  ;;  %v934_v40 = vmul.f32 0.5, %v926_v32  ;;  %v470_v14 = vmul.f32 0.5, %v7176_v29  ;;  %v7178_v22 = vpop.eup %7177  ;;  %v11106_v61 = vmov 3  }
 0x237   :  { %1048 = vperm.xlu1 %7048, %v8614_v16   ;;  %1503 = vperm.xlu0 %7053, %v8614_v16   ;;  %v669_v56 = vand.u32 2147483647, %v661_v48  ;;  %7187 = vtanh.f32 %v333_v50  ;;  %v573_v37 = vmul.f32 0.5, %v565_v10  ;;  %v797_v53 = vsub.f32 0.0, %v789_v38 }
 0x238   :  { %7189 = vtanh.f32 %v934_v40  ;;  %v7180_v58 = vpop.eup %7179  ;;  %v478_v49 = vadd.f32 0.5, %v470_v14  ;;  %v909_v48 = vand.u32 2147483647, %v901_v11 }
 0x239   :  { %v677_v15 = vsub.f32 0.0, %v669_v56  ;;  %7191 = vtanh.f32 %v453_v2  ;;  %v118_v30 = vmul.f32 0.5, %v7180_v58  ;;  %v805_v50 = vmul.f32 20.0, %v797_v53 }
 0x23a   :  { %v7182_v57 = vpop.eup %7181  ;;  %7193 = vtanh.f32 %v573_v37  ;;  %v917_v54 = vsub.f32 0.0, %v909_v48 }
 0x23b   :  { %7051 = vset.pattern.permute.xlu1 %v11101_v31  ;;  %7055 = vset.pattern.permute.xlu0 %v11105_v33  ;;  %v685_v23 = vmul.f32 20.0, %v677_v15  ;;  %v710_v9 = vmul.f32 0.5, %v7182_v57  ;;  %v126_v56 = vadd.f32 0.5, %v118_v30  ;;  %v813_v14 = vmul.f32 0.5, %v805_v50 }
 0x23c   :  { %1297 = vperm.xlu1 %7051, %v8614_v16   ;;  %147 = vperm.xlu0 %7055, %v125_v26   ;;  %v590_v26 = vmul.f32 0.5, %v7178_v22  ;;  %v925_v22 = vmul.f32 20.0, %v917_v54 }
 0x23d   :  { %v693_v21 = vmul.f32 0.5, %v685_v23 }
 0x23e   :  { %v598_v29 = vadd.f32 0.5, %v590_v26  ;;  %v933_v11 = vmul.f32 0.5, %v925_v22 }
 0x23f   :  { %v7184_v32 = vpop.eup %7183  ;;  %7195 = vtanh.f32 %v693_v21 }
 0x240   :  { %7052 = vset.pattern.permute.xlu1 %v11102_v62  ;;  %264 = vperm.xlu0 %7055, %v238_v42   ;;  %v7186_v42 = vpop.eup %7185  ;;  %v229_v43 = vmul.f32 0.5, %v7184_v32  ;;  %7197 = vtanh.f32 %v813_v14 }
 0x241   :  { %1491 = vperm.xlu1 %7052, %v8590_v60   ;;  %v7188_v44 = vpop.eup %7187  ;;  %v830_v40 = vmul.f32 0.5, %v7186_v42  ;;  %7199 = vtanh.f32 %v933_v11 }
 0x242   :  { %v237_v10 = vadd.f32 0.5, %v229_v43 }
 0x243   :  { %v838_v15 = vadd.f32 0.5, %v830_v40 }
 0x244   :  { %384 = vperm.xlu0 %7055, %v358_v34   ;;  %v7190_v34 = vpop.eup %7189 }
 0x245   :  { %7054 = vset.pattern.permute.xlu1 %v11106_v61  ;;  %v7192_v2 = vpop.eup %7191  ;;  %v950_v38 = vmul.f32 0.5, %v7190_v34 }
 0x246   :  { %1697 = vperm.xlu1 %7054, %v8590_v60   ;;  %v718_v60 = vadd.f32 0.5, %v710_v9  ;;  %v7194_v26 = vpop.eup %7193 }
 0x247   :  { %v958_v23 = vadd.f32 0.5, %v950_v38  ;;  %v589_v50 = vmul.f32 0.5, %v7194_v26 }
 0x248   :  { %504 = vperm.xlu0 %7055, %v478_v49   ;;  %v469_v49 = vmul.f32 0.5, %v7192_v2 }
 0x249   :  { %v7196_v54 = vpop.eup %7195 }
 0x24a   :  { %1709 = vperm.xlu1 %7054, %v8614_v16   ;;  %v349_v16 = vmul.f32 0.5, %v7188_v44  ;;  %v477_v21 = vadd.f32 0.5, %v469_v49  ;;  %v11107_v49 = vld [vmem:[#allocation95_spill] sm:$0xff] }
 0x24c   :  { %624 = vperm.xlu0 %7055, %v598_v29   ;;  %v357_v58 = vadd.f32 0.5, %v349_v16 }
 0x24e   :  { %7056 = vset.pattern.permute.xlu1 %v11105_v33 }
 0x24f   :  { %152 = vperm.xlu1 %7056, %v126_v56   ;;  %v709_v56 = vmul.f32 0.5, %v7196_v54  ;;  %v11116_v54 = vld [vmem:[#allocation11_spill] sm:$0xff] }
 0x250   :  { %744 = vperm.xlu0 %7055, %v718_v60  }
 0x251   :  { %v717_v43 = vadd.f32 0.5, %v709_v56  ;;  %v11119_v56 = vld [vmem:[#allocation13_spill] sm:$0xff] }
 0x253   :  { %259 = vperm.xlu1 %7056, %v237_v10   ;;  %v2219_v57 = vpop.f32.mrb[2].mxu0 }
 0x254   :  { %v2290_v37 = vpop.f32.mrb[2].mxu1  ;;  %864 = vperm.xlu0 %7055, %v838_v15   ;;  %v2295_v53 = vadd.f32 %v2219_v57, %v8523_v52  ;;  %v2221_v30 = vpop.f32.mrb[3].mxu0  ;;  %v597_v52 = vadd.f32 0.5, %v589_v50  ;;  %v11115_v50 = vld [vmem:[#allocation9_spill] sm:$0xff] }
 0x255   :  { %v2297_v48 = vadd.f32 %v2290_v37, %v8525_v13  ;;  %v2292_v32 = vpop.f32.mrb[3].mxu1  ;;  %v2296_v29 = vadd.f32 %v2221_v30, %v8527_v17  ;;  %v7198_v13 = vpop.eup %7197 }
 0x256   :  { %v2298_v9 = vadd.f32 %v2292_v32, %v8529_v41  ;;  %v2299_v42 = vmul.f32 0.5, %v2295_v53  ;;  %v829_v17 = vmul.f32 0.5, %v7198_v13  ;;  %v7200_v60 = vpop.eup %7199  ;;  %v11110_v32 = vld [vmem:[#allocation5_spill] sm:$0xff]  ;;  %v11120_v13 = vld [vmem:[#allocation15_spill] sm:$0xff] }
 0x257   :  { %379 = vperm.xlu1 %7056, %v357_v58   ;;  %v2303_v44 = vmul.f32 0.5, %v2296_v29  ;;  %v949_v14 = vmul.f32 0.5, %v7200_v60  ;;  %v11111_v29 = vld [vmem:[#allocation7_spill] sm:$0xff]  ;;  %v11123_v60 = vld [vmem:[#allocation18_spill] sm:$0xff] }
 0x258   :  { %984 = vperm.xlu0 %7055, %v958_v23   ;;  %7201 = vtanh.f32 %v2299_v42  ;;  %v2308_v41 = vmul.f32 0.5, %v2298_v9  ;;  %v837_v34 = vadd.f32 0.5, %v829_v17  ;;  %v11112_v9 = vld [vmem:[#allocation8_spill] sm:$0xff]  ;;  %v11113_v42 = vld [vmem:[#allocation10_spill] sm:$0xff]  ;;  %v11122_v17 = vld [vmem:[#allocation17_spill] sm:$0xff] }
 0x259   :  { %7203 = vtanh.f32 %v2303_v44  ;;  %v957_v11 = vadd.f32 0.5, %v949_v14  ;;  %v11117_v44 = vld [vmem:[#allocation12_spill] sm:$0xff]  ;;  %v11127_v14 = vld [vmem:[#allocation22_spill] sm:$0xff] }
 0x25a   :  { %7205 = vtanh.f32 %v2297_v48 }
 0x25b   :  { %499 = vperm.xlu1 %7056, %v477_v21   ;;  %7207 = vtanh.f32 %v2308_v41  ;;  %v11114_v21 = vmov 0.0   ;;  %v11124_v41 = vld [vmem:[#allocation20_spill] sm:$0xff] }
 0x25f   :  { %619 = vperm.xlu1 %7056, %v597_v52   ;;  %v11118_v52 = vld [vmem:[#allocation14_spill] sm:$0xff] }
 0x262   :  { %v7202_v40 = vpop.eup %7201 }
 0x263   :  { %739 = vperm.xlu1 %7056, %v717_v43   ;;  %v7204_v22 = vpop.eup %7203  ;;  %v2301_v2 = vmul.f32 0.5, %v7202_v40  ;;  %v11121_v43 = vld [vmem:[#allocation16_spill] sm:$0xff]  ;;  %v11125_v40 = vld [vmem:[#allocation19_spill] sm:$0xff] }
 0x264   :  { %v2305_v10 = vmul.f32 0.5, %v7204_v22  ;;  %v7206_v15 = vpop.eup %7205  ;;  %v11128_v22 = vld [vmem:[#allocation24_spill] sm:$0xff] }
 0x265   :  { %v2302_v16 = vadd.f32 0.5, %v2301_v2  ;;  %v7208_v37 = vpop.eup %7207  ;;  %v11129_v2 = vld [vmem:[#allocation23_spill] sm:$0xff] }
 0x266   :  { %v2306_v38 = vadd.f32 0.5, %v2305_v10  ;;  %v2310_v23 = vmul.f32 0.5, %v7208_v37  ;;  %v11130_v10 = vld [vmem:[#allocation25_spill] sm:$0xff] }
 0x267   :  { %859 = vperm.xlu1 %7056, %v837_v34   ;;  %v2313_v58 = vmul.f32 %v7206_v15, %v2302_v16  ;;  %v11126_v34 = vld [vmem:[#allocation21_spill] sm:$0xff]  ;;  %v11131_v16 = vld [vmem:[#allocation26_spill] sm:$0xff]  ;;  %v11132_v15 = vld [vmem:[#allocation28_spill] sm:$0xff] }
 0x268   :  { %v2312_v26 = vmul.f32 %v2306_v38, %v11107_v49  ;;  %v2311_v53 = vadd.f32 0.5, %v2310_v23  ;;  %v11133_v38 = vld [vmem:[#allocation27_spill] sm:$0xff]  ;;  %v11136_v49 = vld [vmem:[#allocation32_spill] sm:$0xff]  ;;  %v11138_v37 = vld [vmem:[#allocation33_spill] sm:$0xff] }
 0x269   :  { %v11139_v23 = vld [vmem:[#allocation34_spill] sm:$0xff] }
 0x26a   :  { %v8650_v57 = vadd.f32 %v2313_v58, %v2312_v26  ;;  %v11135_v58 = vld [vmem:[#allocation30_spill] sm:$0xff]  ;;  %v11137_v26 = vld [vmem:[#allocation31_spill] sm:$0xff] }
 0x26b   :  { %979 = vperm.xlu1 %7056, %v957_v11   ;;  %v11134_v11 = vld [vmem:[#allocation29_spill] sm:$0xff] }
 0x26c   :  { %11108 = vst [vmem:[#allocation97_spill] sm:$0xff] %v8650_v57  ;;  %7209 = vtanh.f32 %v8650_v57 }
 0x276   :  { %v7210_v48 = vpop.eup %7209 }
 0x277   :  { %v8653_v30 = vmul.f32 %v7210_v48, %v2311_v53  ;;  %v11140_v53 = vld [vmem:[#allocation35_spill] sm:$0xff]  ;;  %v11141_v48 = vld [vmem:[#allocation4_spill] sm:$0xff] }
 0x279   :  { %11109 = vst [vmem:[#allocation90_spill] sm:$0xff] %v8653_v30  ;;  %2384 = vmatmul.mubr.f32.vlgmr.msra.gmra.mrb[4].mxu0 %v8653_v30  ;;  %2455 = vmatmul.mubr.f32.vlgmr.msra.gmra.mrb[4].mxu1 %v8653_v30  ;;  %v11142_v30 = vld [vmem:[#allocation6_spill] sm:$0xff] }
 0x27a   :  { %5944 = vmatpush1.bf16.msra.mxu0 %v11110_v32  ;;  %5976 = vmatpush1.bf16.msra.mxu1 %v11111_v29 }
 0x27b   :  { %5946 = vmatprep.subr.bf16.mxu0 %v11112_v9  ;;  %5978 = vmatprep.subr.bf16.mxu1 %v11113_v42 }
 0x27c   :  { %2549 = vmatprep.mubr.f32.mxu0 %v11114_v21  ;;  %2620 = vmatprep.mubr.f32.mxu1 %v11114_v21 }
 0x27e   :  { %5948 = vmatpush1.bf16.msra.mxu0 %v11115_v50  ;;  %5980 = vmatpush1.bf16.msra.mxu1 %v11116_v54 }
 0x27f   :  { %5950 = vmatprep.subr.bf16.mxu0 %v11117_v44  ;;  %5982 = vmatprep.subr.bf16.mxu1 %v11118_v52  ;;  %v11152_v44 = vld [vmem:[#allocation56_spill] sm:$0xff] }
 0x282   :  { %5952 = vmatpush1.bf16.msra.mxu0 %v11119_v56  ;;  %5984 = vmatpush1.bf16.msra.mxu1 %v11120_v13 }
 0x283   :  { %5954 = vmatprep.subr.bf16.mxu0 %v11121_v43  ;;  %5986 = vmatprep.subr.bf16.mxu1 %v11122_v17  ;;  %v11151_v43 = vld [vmem:[#allocation54_spill] sm:$0xff] }
 0x286   :  { %5956 = vmatpush1.bf16.msra.mxu0 %v11123_v60  ;;  %5988 = vmatpush1.bf16.msra.mxu1 %v11124_v41  ;;  %v11150_v60 = vld [vmem:[#allocation48_spill] sm:$0xff] }
 0x287   :  { %5958 = vmatprep.subr.bf16.mxu0 %v11125_v40  ;;  %5990 = vmatprep.subr.bf16.mxu1 %v11126_v34 }
 0x28a   :  { %5960 = vmatpush1.bf16.msra.mxu0 %v11127_v14  ;;  %5992 = vmatpush1.bf16.msra.mxu1 %v11128_v22 }
 0x28b   :  { %5962 = vmatprep.subr.bf16.mxu0 %v11129_v2  ;;  %5994 = vmatprep.subr.bf16.mxu1 %v11130_v10 }
 0x28e   :  { %5964 = vmatpush1.bf16.msra.mxu0 %v11131_v16  ;;  %5996 = vmatpush1.bf16.msra.mxu1 %v11132_v15 }
 0x28f   :  { %5966 = vmatprep.subr.bf16.mxu0 %v11133_v38  ;;  %5998 = vmatprep.subr.bf16.mxu1 %v11134_v11  ;;  %v11144_v11 = vld [vmem:[#allocation45_spill] sm:$0xff] }
 0x292   :  { %5968 = vmatpush1.bf16.msra.mxu0 %v11135_v58  ;;  %6000 = vmatpush1.bf16.msra.mxu1 %v11136_v49  ;;  %v11145_v58 = vld [vmem:[#allocation43_spill] sm:$0xff] }
 0x293   :  { %5970 = vmatprep.subr.bf16.mxu0 %v11137_v26  ;;  %6002 = vmatprep.subr.bf16.mxu1 %v11138_v37  ;;  %v11146_v26 = vld [vmem:[#allocation42_spill] sm:$0xff] }
 0x294   :  { %v11147_v37 = vld [vmem:[#allocation50_spill] sm:$0xff] }
 0x296   :  { %5972 = vmatpush1.bf16.msra.mxu0 %v11139_v23  ;;  %6004 = vmatpush1.bf16.msra.mxu1 %v11140_v53 }
 0x297   :  { %6006 = vmatprep.subr.bf16.mxu0 %v11141_v48  ;;  %6038 = vmatprep.subr.bf16.mxu1 %v11142_v30  ;;  %v11148_v48 = vld [vmem:[#allocation47_spill] sm:$0xff]  ;;  %v11149_v30 = vld [vmem:[#allocation53_spill] sm:$0xff] }
 0x2a6   :  { %v1034_v12 = vpop.permute.xlu0 %1033 }
 0x2a7   :  { %v1090_v38 = vmul.f32 %v11143_v45, %v1034_v12  ;;  %v1092_v15 = vmul.f32 %v11144_v11, %v1034_v12  ;;  %v1091_v16 = vmul.f32 %v11145_v58, %v1034_v12  ;;  %v1093_v49 = vmul.f32 %v11080_v5, %v1034_v12 }
 0x2a8   :  { %v1197_v10 = vmul.f32 %v11146_v26, %v1034_v12  ;;  %v1199_v2 = vmul.f32 %v11147_v37, %v1034_v12  ;;  %v1198_v23 = vmul.f32 %v11054_v46, %v1034_v12  ;;  %v1200_v53 = vmul.f32 %v11081_v25, %v1034_v12  ;;  %v11153_v12 = vld [vmem:[#allocation63_spill] sm:$0xff] }
 0x2a9   :  { %v1143_v22 = vadd.f32 %v11148_v48, %v1090_v38  ;;  %v1145_v14 = vadd.f32 %v11149_v30, %v1092_v15  ;;  %v1144_v34 = vadd.f32 %v11070_v20, %v1091_v16  ;;  %v1146_v40 = vadd.f32 %v11086_v4, %v1093_v49  ;;  %v11154_v16 = vld [vmem:[#allocation60_spill] sm:$0xff]  ;;  %v11155_v49 = vld [vmem:[#allocation65_spill] sm:$0xff] }
 0x2aa   :  { %v1250_v17 = vadd.f32 %v11150_v60, %v1197_v10  ;;  %v1252_v13 = vadd.f32 %v11151_v43, %v1199_v2  ;;  %v1251_v56 = vadd.f32 %v8039_v28, %v1198_v23  ;;  %v1253_v52 = vadd.f32 %v11087_v1, %v1200_v53 }
 0x2ab   :  { %v1286_v41 = vpop.permute.xlu0 %1285 }
 0x2ac   :  { %v1337_v54 = vmul.f32 %v11152_v44, %v1286_v41  ;;  %v1339_v50 = vmul.f32 %v11153_v12, %v1286_v41  ;;  %v1338_v38 = vmul.f32 %v11068_v19, %v1286_v41  ;;  %v1340_v15 = vmul.f32 %v11084_v63, %v1286_v41 }
 0x2ad   :  { %v1424_v21 = vmul.f32 %v11154_v16, %v1286_v41  ;;  %v1426_v42 = vmul.f32 %v11155_v49, %v1286_v41  ;;  %v1425_v10 = vmul.f32 %v11057_v47, %v1286_v41  ;;  %v1427_v2 = vmul.f32 %v11085_v39, %v1286_v41  ;;  %v11157_v41 = vld [vmem:[#allocation69_spill] sm:$0xff] }
 0x2ae   :  { %v1369_v9 = vadd.f32 %v1337_v54, %v1143_v22  ;;  %v1371_v23 = vadd.f32 %v1339_v50, %v1145_v14  ;;  %v1370_v29 = vadd.f32 %v1338_v38, %v1144_v34  ;;  %v1372_v53 = vadd.f32 %v1340_v15, %v1146_v40  ;;  %v11158_v50 = vld [vmem:[#allocation74_spill] sm:$0xff] }
 0x2af   :  { %v1456_v32 = vadd.f32 %v1424_v21, %v1250_v17  ;;  %v8715_v57 = vadd.f32 %v1426_v42, %v1252_v13  ;;  %v8717_v62 = vadd.f32 %v1425_v10, %v1251_v56  ;;  %v8719_v33 = vadd.f32 %v1427_v2, %v1253_v52 }
 0x2b1   :  { %11156 = vst [vmem:[#allocation93_spill] sm:$0xff] %v8719_v33 }
 0x2b6   :  { %v1049_v61 = vpop.permute.xlu1 %1048  ;;  %v8721_v31 = vpop.permute.xlu0 %1503 }
 0x2b7   :  { %v1209_v24 = vmul.f32 %v11146_v26, %v1049_v61  ;;  %v1211_v18 = vmul.f32 %v11147_v37, %v1049_v61  ;;  %v1642_v54 = vmul.f32 %v11157_v41, %v8721_v31  ;;  %v1644_v40 = vmul.f32 %v11158_v50, %v8721_v31 }
 0x2b8   :  { %v1210_v42 = vmul.f32 %v11054_v46, %v1049_v61  ;;  %v1212_v21 = vmul.f32 %v11081_v25, %v1049_v61  ;;  %v1643_v56 = vmul.f32 %v11077_v55, %v8721_v31  ;;  %v1645_v13 = vmul.f32 %v8120_v7, %v8721_v31 }
 0x2b9   :  { %v1262_v52 = vadd.f32 %v11150_v60, %v1209_v24  ;;  %v1102_v17 = vmul.f32 %v11143_v45, %v1049_v61  ;;  %v1264_v34 = vadd.f32 %v11151_v43, %v1211_v18  ;;  %v1555_v22 = vmul.f32 %v11073_v0, %v8721_v31 }
 0x2ba   :  { %v1263_v14 = vadd.f32 %v8039_v28, %v1210_v42  ;;  %v1104_v38 = vmul.f32 %v11144_v11, %v1049_v61  ;;  %v1265_v10 = vadd.f32 %v11087_v1, %v1212_v21  ;;  %v1557_v25 = vmul.f32 %v8107_v27, %v8721_v31 }
 0x2bb   :  { %v8742_v15 = vpop.permute.xlu1 %1297  ;;  %v8744_v24 = vpop.permute.xlu0 %147  ;;  %v1155_v2 = vadd.f32 %v11148_v48, %v1102_v17  ;;  %v1103_v18 = vmul.f32 %v11145_v58, %v1049_v61  ;;  %v1556_v46 = vmul.f32 %v11074_v6, %v8721_v31  ;;  %v1105_v26 = vmul.f32 %v11080_v5, %v1049_v61 }
 0x2bc   :  { %v1436_v42 = vmul.f32 %v11154_v16, %v8742_v15  ;;  %v1438_v28 = vmul.f32 %v11155_v49, %v8742_v15  ;;  %v1437_v43 = vmul.f32 %v11057_v47, %v8742_v15  ;;  %v1439_v21 = vmul.f32 %v11085_v39, %v8742_v15 }
 0x2bd   :  { %v1349_v17 = vmul.f32 %v11152_v44, %v8742_v15  ;;  %v1157_v1 = vadd.f32 %v11149_v30, %v1104_v38  ;;  %v1351_v16 = vmul.f32 %v11153_v12, %v8742_v15  ;;  %v1156_v45 = vadd.f32 %v11070_v20, %v1103_v18 }
 0x2be   :  { %v1468_v60 = vadd.f32 %v1436_v42, %v1262_v52  ;;  %v1470_v37 = vadd.f32 %v1438_v28, %v1264_v34  ;;  %v1469_v49 = vadd.f32 %v1437_v43, %v1263_v14  ;;  %v1471_v58 = vadd.f32 %v1439_v21, %v1265_v10  ;;  %v11160_v21 = vld [vmem:[#allocation82_spill] sm:$0xff] }
 0x2bf   :  { %v265_v47 = vpop.permute.xlu0 %264  ;;  %v1381_v11 = vadd.f32 %v1349_v17, %v1155_v2  ;;  %v1383_v48 = vadd.f32 %v1351_v16, %v1157_v1  ;;  %v1350_v38 = vmul.f32 %v11068_v19, %v8742_v15 }
 0x2c0   :  { %v8768_v39 = vpop.permute.xlu1 %1491  ;;  %v1674_v33 = vadd.f32 %v1642_v54, %v1468_v60  ;;  %v1676_v44 = vadd.f32 %v1644_v40, %v1470_v37  ;;  %v1675_v7 = vadd.f32 %v1643_v56, %v1469_v49  ;;  %v1677_v16 = vadd.f32 %v1645_v13, %v1471_v58  ;;  %v8787_v58 = vld [vmem:[%s10926_s26 + $0x8] sm:$0xff] }
 0x2c1   :  { %v1543_v28 = vmul.f32 %v11073_v0, %v8768_v39  ;;  %v1545_v61 = vmul.f32 %v8107_v27, %v8768_v39  ;;  %v1544_v43 = vmul.f32 %v11074_v6, %v8768_v39  ;;  %v1546_v1 = vmul.f32 %v11088_v8, %v8768_v39  ;;  %v11159_v13 = vld [vmem:[#allocation77_spill] sm:$0xff] }
 0x2c2   :  { %v1587_v52 = vadd.f32 %v1555_v22, %v1381_v11  ;;  %v1630_v60 = vmul.f32 %v11157_v41, %v8768_v39  ;;  %v1589_v37 = vadd.f32 %v1557_v25, %v1383_v48  ;;  %v1632_v10 = vmul.f32 %v11158_v50, %v8768_v39  ;;  %v8793_v25 = vld [vmem:[%s10926_s26 + $0x10] sm:$0xff] }
 0x2c3   :  { %v385_v49 = vpop.permute.xlu0 %384  ;;  %v1575_v54 = vadd.f32 %v1543_v28, %v1369_v9  ;;  %v1577_v40 = vadd.f32 %v1545_v61, %v1371_v23  ;;  %v1576_v56 = vadd.f32 %v1544_v43, %v1370_v29  ;;  %v1578_v34 = vadd.f32 %v1546_v1, %v1372_v53 }
 0x2c4   :  { %v1662_v14 = vadd.f32 %v1630_v60, %v1456_v32  ;;  %v1382_v2 = vadd.f32 %v1350_v38, %v1156_v45  ;;  %v286_v11 = vmul.f32 %v8787_v58, %v265_v47  ;;  %v406_v29 = vmul.f32 %v8793_v25, %v385_v49 }
 0x2c5   :  { %v1698_v18 = vpop.permute.xlu1 %1697  ;;  %v1631_v32 = vmul.f32 %v11077_v55, %v8768_v39  ;;  %v1158_v45 = vadd.f32 %v11086_v4, %v1105_v26  ;;  %v1664_v42 = vadd.f32 %v1632_v10, %v8715_v57  ;;  %v1352_v26 = vmul.f32 %v11084_v63, %v8742_v15  ;;  %v11161_v57 = vld [vmem:[#allocation79_spill] sm:$0xff] }
 0x2c6   :  { %v1749_v9 = vmul.f32 %v8131_v51, %v1698_v18  ;;  %v1751_v48 = vmul.f32 %v8147_v3, %v1698_v18  ;;  %v1750_v23 = vmul.f32 %v8137_v36, %v1698_v18  ;;  %v1752_v47 = vmul.f32 %v11089_v35, %v1698_v18 }
 0x2c7   :  { %v505_v53 = vpop.permute.xlu0 %504  ;;  %v1836_v22 = vmul.f32 %v11159_v13, %v1698_v18  ;;  %v1838_v17 = vmul.f32 %v11160_v21, %v1698_v18  ;;  %v1588_v38 = vadd.f32 %v1556_v46, %v1382_v2  ;;  %v1663_v27 = vadd.f32 %v1631_v32, %v8717_v62 }
 0x2c8   :  { %v1781_v28 = vadd.f32 %v1749_v9, %v1575_v54  ;;  %v1783_v61 = vadd.f32 %v1751_v48, %v1577_v40  ;;  %v1782_v43 = vadd.f32 %v1750_v23, %v1576_v56  ;;  %v1784_v60 = vadd.f32 %v1752_v47, %v1578_v34 }
 0x2c9   :  { %v1710_v1 = vpop.permute.xlu1 %1709  ;;  %v1868_v49 = vadd.f32 %v1836_v22, %v1662_v14  ;;  %v1870_v6 = vadd.f32 %v1838_v17, %v1664_v42  ;;  %v1837_v34 = vmul.f32 %v11161_v57, %v1698_v18  ;;  %v1558_v32 = vmul.f32 %v11088_v8, %v8721_v31 }
 0x2ca   :  { %v1848_v0 = vmul.f32 %v11159_v13, %v1710_v1  ;;  %v1850_v55 = vmul.f32 %v11160_v21, %v1710_v1  ;;  %v1849_v10 = vmul.f32 %v11161_v57, %v1710_v1  ;;  %v1851_v46 = vmul.f32 %v8161_v59, %v1710_v1 }
 0x2cb   :  { %v625_v54 = vpop.permute.xlu0 %624  ;;  %v1761_v40 = vmul.f32 %v8131_v51, %v1710_v1  ;;  %v1763_v56 = vmul.f32 %v8147_v3, %v1710_v1  ;;  %v1762_v15 = vmul.f32 %v8137_v36, %v1710_v1  ;;  %v1869_v36 = vadd.f32 %v1837_v34, %v1663_v27 }
 0x2cc   :  { %v1880_v14 = vadd.f32 %v1848_v0, %v1674_v33  ;;  %v1882_v2 = vadd.f32 %v1850_v55, %v1676_v44  ;;  %v1881_v62 = vadd.f32 %v1849_v10, %v1675_v7  ;;  %v1883_v9 = vadd.f32 %v1851_v46, %v1677_v16  ;;  %v7395_v0 = vld [vmem:[%s10926_s26] sm:$0xff] }
 0x2cd   :  { %v1793_v48 = vadd.f32 %v1761_v40, %v1587_v52  ;;  %v1795_v23 = vadd.f32 %v1763_v56, %v1589_v37  ;;  %v1794_v47 = vadd.f32 %v1762_v15, %v1588_v38  ;;  %v173_v16 = vmul.f32 %v7395_v0, %v8744_v24  ;;  %v11165_v38 = vld [vmem:[#allocation76_spill] sm:$0xff]  ;;  %v11167_v40 = vld [vmem:[#allocation93_spill] sm:$0xff] }
 0x2ce   :  { %v153_v22 = vpop.permute.xlu1 %152  ;;  %v8819_v42 = vadd.f32 %v1880_v14, %v1781_v28  ;;  %v8821_v17 = vadd.f32 %v1882_v2, %v1783_v61  ;;  %v8823_v3 = vadd.f32 %v1881_v62, %v1782_v43  ;;  %v8828_v33 = vadd.f32 %v1883_v9, %v1784_v60  ;;  %v11166_v61 = vld [vmem:[#allocation92_spill] sm:$0xff] }
 0x2cf   :  { %v174_v7 = vmul.f32 %v7395_v0, %v153_v22  ;;  %v745_v55 = vpop.permute.xlu0 %744  ;;  %v8830_v31 = vadd.f32 %v1868_v49, %v1793_v48  ;;  %v8832_v44 = vadd.f32 %v1870_v6, %v1795_v23  ;;  %v8835_v52 = vadd.f32 %v1869_v36, %v1794_v47  ;;  %v7396_v36 = vld [vmem:[%s10926_s26 + $0x20] sm:$0xff]  ;;  %v7398_v48 = vld [vmem:[%s10926_s26 + $0x38] sm:$0xff] }
 0x2d0   :  { %v1384_v37 = vadd.f32 %v1352_v26, %v1158_v45  ;;  %v1633_v27 = vmul.f32 %v11165_v38, %v8768_v39  ;;  %v526_v43 = vmul.f32 %v11166_v61, %v505_v53  ;;  %v1764_v10 = vmul.f32 %v11089_v35, %v1710_v1  ;;  %v11168_v1 = vld [vmem:[#allocation89_spill] sm:$0xff] }
 0x2d1   :  { %11162 = vst [vmem:[#allocation98_spill] sm:$0xff] %v8830_v31  ;;  %11163 = vst [vmem:[#allocation94_spill] sm:$0xff] %v8832_v44  ;;  %v294_v28 = vadd.f32 %v286_v11, %v174_v7  ;;  %v1839_v60 = vmul.f32 %v8161_v59, %v1698_v18  ;;  %v646_v45 = vmul.f32 %v7396_v36, %v625_v54  ;;  %v11201_v44 = vld [vmem:[#allocation15_spill] sm:$0xff] }
 0x2d2   :  { %11164 = vst [vmem:[#allocation95_spill] sm:$0xff] %v8835_v52  ;;  %v260_v46 = vpop.permute.xlu1 %259  ;;  %v1590_v49 = vadd.f32 %v1558_v32, %v1384_v37  ;;  %v1665_v6 = vadd.f32 %v1633_v27, %v11167_v40  ;;  %v766_v34 = vmul.f32 %v11168_v1, %v745_v55  ;;  %v11202_v31 = vld [vmem:[#allocation71_spill] sm:$0xff] }
 0x2d3   :  { %v285_v56 = vmul.f32 %v8787_v58, %v260_v46  ;;  %v414_v24 = vadd.f32 %v406_v29, %v294_v28  ;;  %v865_v39 = vpop.permute.xlu0 %864  ;;  %v7397_v58 = vld [vmem:[%s10926_s26 + $0x30] sm:$0xff] }
 0x2d4   :  { %v1796_v11 = vadd.f32 %v1764_v10, %v1590_v49  ;;  %v1871_v26 = vadd.f32 %v1839_v60, %v1665_v6  ;;  %v886_v29 = vmul.f32 %v7397_v58, %v865_v39  ;;  %v11171_v49 = vmov 3  }
 0x2d5   :  { %v293_v53 = vadd.f32 %v285_v56, %v173_v16  ;;  %v534_v15 = vadd.f32 %v526_v43, %v414_v24  ;;  %v11170_v43 = vmov 1   ;;  %v11172_v24 = vmov 0  }
 0x2d6   :  { %v380_v18 = vpop.permute.xlu1 %379  ;;  %v8848_v14 = vadd.f32 %v1871_v26, %v1796_v11 }
 0x2d7   :  { %v405_v2 = vmul.f32 %v8793_v25, %v380_v18  ;;  %v654_v62 = vadd.f32 %v646_v45, %v534_v15  ;;  %v985_v32 = vpop.permute.xlu0 %984 }
 0x2d8   :  { %11169 = vst [vmem:[#allocation69_spill] sm:$0xff] %v8848_v14  ;;  %v1006_v23 = vmul.f32 %v7398_v48, %v985_v32 }
 0x2d9   :  { %v413_v54 = vadd.f32 %v405_v2, %v293_v53  ;;  %v774_v9 = vadd.f32 %v766_v34, %v654_v62 }
 0x2da   :  { %v500_v47 = vpop.permute.xlu1 %499 }
 0x2db   :  { %v525_v22 = vmul.f32 %v11166_v61, %v500_v47  ;;  %v894_v0 = vadd.f32 %v886_v29, %v774_v9  ;;  %v11175_v47 = vld [vmem:[#allocation97_spill] sm:$0xff] }
 0x2dd   :  { %v533_v7 = vadd.f32 %v525_v22, %v413_v54  ;;  %v1014_v25 = vadd.f32 %v1006_v23, %v894_v0 }
 0x2de   :  { %v620_v55 = vpop.permute.xlu1 %619 }
 0x2df   :  { %v645_v16 = vmul.f32 %v7396_v36, %v620_v55  ;;  %1043 = vperm.xlu0 %7055, %v1014_v25   ;;  %v11173_v36 = vmov 2   ;;  %v11177_v55 = vld [vmem:[#allocation45_spill] sm:$0xff] }
 0x2e1   :  { %v653_v37 = vadd.f32 %v645_v16, %v533_v7  ;;  %v11176_v7 = vld [vmem:[#allocation47_spill] sm:$0xff] }
 0x2e2   :  { %v740_v27 = vpop.permute.xlu1 %739 }
 0x2e3   :  { %v765_v28 = vmul.f32 %v11168_v1, %v740_v27  ;;  %7058 = vset.pattern.permute.xlu0 %v11170_v43 }
 0x2e4   :  { %1293 = vperm.xlu0 %7058, %v1014_v25  }
 0x2e5   :  { %v773_v10 = vadd.f32 %v765_v28, %v653_v37  ;;  %v11178_v37 = vld [vmem:[#allocation43_spill] sm:$0xff] }
 0x2e6   :  { %v860_v60 = vpop.permute.xlu1 %859 }
 0x2e7   :  { %v885_v46 = vmul.f32 %v7397_v58, %v860_v60 }
 0x2e8   :  { %7060 = vset.pattern.permute.xlu0 %v11171_v49 }
 0x2e9   :  { %v893_v40 = vadd.f32 %v885_v46, %v773_v10  ;;  %v11180_v10 = vld [vmem:[#allocation56_spill] sm:$0xff] }
 0x2ea   :  { %v980_v61 = vpop.permute.xlu1 %979 }
 0x2eb   :  { %v1005_v6 = vmul.f32 %v7398_v48, %v980_v61 }
 0x2ed   :  { %v1013_v56 = vadd.f32 %v1005_v6, %v893_v40 }
 0x2ef   :  { %1038 = vperm.xlu1 %7056, %v1013_v56   ;;  %1701 = vperm.xlu0 %7060, %v1013_v56  }
 0x2f3   :  { %7057 = vset.pattern.permute.xlu1 %v11170_v43  ;;  %7062 = vset.pattern.permute.xlu0 %v11172_v24 }
 0x2f4   :  { %1289 = vperm.xlu1 %7057, %v1013_v56  }
 0x2f8   :  { %7059 = vset.pattern.permute.xlu1 %v11173_v36 }
 0x2f9   :  { %1495 = vperm.xlu1 %7059, %v1013_v56  }
 0x2fd   :  { %1499 = vperm.xlu1 %7059, %v1014_v25  }
 0x301   :  { %7061 = vset.pattern.permute.xlu1 %v11171_v49 }
 0x302   :  { %1705 = vperm.xlu1 %7061, %v1014_v25  }
 0x34c   :  { %v2385_v45 = vpop.f32.mrb[4].mxu0  ;;  %v2456_v39 = vpop.f32.mrb[4].mxu1 }
 0x34d   :  { %v2461_v11 = vadd.f32 %v2385_v45, %v8819_v42  ;;  %v2463_v26 = vadd.f32 %v2456_v39, %v8821_v17  ;;  %v2387_v53 = vpop.f32.mrb[5].mxu0  ;;  %v2458_v15 = vpop.f32.mrb[5].mxu1 }
 0x34e   :  { %v2462_v1 = vadd.f32 %v2387_v53, %v8823_v3  ;;  %v2464_v34 = vadd.f32 %v2458_v15, %v8828_v33  ;;  %v11174_v3 = vld [vmem:[#allocation41_spill] sm:$0xff] }
 0x34f   :  { %v2465_v18 = vmul.f32 0.5, %v2461_v11 }
 0x350   :  { %v2469_v2 = vmul.f32 0.5, %v2462_v1  ;;  %v2474_v62 = vmul.f32 0.5, %v2464_v34 }
 0x351   :  { %7211 = vtanh.f32 %v2465_v18  ;;  %v11182_v18 = vld [vmem:[#allocation42_spill] sm:$0xff] }
 0x352   :  { %7213 = vtanh.f32 %v2469_v2 }
 0x353   :  { %7215 = vtanh.f32 %v2463_v26 }
 0x354   :  { %7217 = vtanh.f32 %v2474_v62  ;;  %v11183_v62 = vld [vmem:[#allocation50_spill] sm:$0xff] }
 0x35b   :  { %v7212_v58 = vpop.eup %7211 }
 0x35c   :  { %v7214_v29 = vpop.eup %7213  ;;  %v2467_v32 = vmul.f32 0.5, %v7212_v58 }
 0x35d   :  { %v2471_v54 = vmul.f32 0.5, %v7214_v29  ;;  %v7216_v9 = vpop.eup %7215 }
 0x35e   :  { %v8869_v42 = vpop.permute.xlu0 %1043  ;;  %v2468_v17 = vadd.f32 0.5, %v2467_v32  ;;  %v7218_v56 = vpop.eup %7217  ;;  %v11184_v32 = vld [vmem:[#allocation48_spill] sm:$0xff] }
 0x35f   :  { %v2472_v48 = vadd.f32 0.5, %v2471_v54  ;;  %v1098_v23 = vmul.f32 %v11174_v3, %v8869_v42  ;;  %v1100_v16 = vmul.f32 %v11177_v55, %v8869_v42  ;;  %v1099_v27 = vmul.f32 %v11178_v37, %v8869_v42 }
 0x360   :  { %v2479_v33 = vmul.f32 %v7216_v9, %v2468_v17  ;;  %v1101_v43 = vmul.f32 %v11080_v5, %v8869_v42  ;;  %v2476_v26 = vmul.f32 0.5, %v7218_v56  ;;  %v11185_v17 = vld [vmem:[#allocation44_spill] sm:$0xff] }
 0x361   :  { %v2478_v22 = vmul.f32 %v2472_v48, %v11175_v47  ;;  %v1151_v25 = vadd.f32 %v11176_v7, %v1098_v23  ;;  %v1153_v46 = vadd.f32 %v11149_v30, %v1100_v16  ;;  %v1152_v6 = vadd.f32 %v11070_v20, %v1099_v27  ;;  %v11186_v48 = vld [vmem:[#allocation5_spill] sm:$0xff]  ;;  %v11187_v23 = vld [vmem:[#allocation7_spill] sm:$0xff]  ;;  %v11189_v47 = vld [vmem:[#allocation60_spill] sm:$0xff] }
 0x362   :  { %v1154_v36 = vadd.f32 %v11086_v4, %v1101_v43  ;;  %v2477_v15 = vadd.f32 0.5, %v2476_v26  ;;  %v11191_v27 = vld [vmem:[#allocation65_spill] sm:$0xff]  ;;  %v11194_v56 = vld [vmem:[#allocation52_spill] sm:$0xff]  ;;  %v11196_v26 = vld [vmem:[#allocation62_spill] sm:$0xff] }
 0x363   :  { %v8874_v0 = vpop.permute.xlu0 %1293  ;;  %v8881_v28 = vadd.f32 %v2479_v33, %v2478_v22  ;;  %v11188_v33 = vld [vmem:[#allocation8_spill] sm:$0xff] }
 0x364   :  { %v1345_v60 = vmul.f32 %v11180_v10, %v8874_v0  ;;  %v1347_v49 = vmul.f32 %v11153_v12, %v8874_v0  ;;  %v1346_v24 = vmul.f32 %v11068_v19, %v8874_v0  ;;  %v1348_v45 = vmul.f32 %v11084_v63, %v8874_v0 }
 0x365   :  { %11179 = vst [vmem:[#allocation92_spill] sm:$0xff] %v8881_v28  ;;  %7219 = vtanh.f32 %v8881_v28  ;;  %v11212_v28 = vld [vmem:[#allocation21_spill] sm:$0xff] }
 0x366   :  { %v1377_v40 = vadd.f32 %v1345_v60, %v1151_v25  ;;  %v8891_v61 = vadd.f32 %v1347_v49, %v1153_v46  ;;  %v8899_v39 = vadd.f32 %v1346_v24, %v1152_v6  ;;  %v8901_v11 = vadd.f32 %v1348_v45, %v1154_v36  ;;  %v11190_v25 = vld [vmem:[#allocation54_spill] sm:$0xff]  ;;  %v11195_v45 = vld [vmem:[#allocation9_spill] sm:$0xff] }
 0x367   :  { %v11192_v60 = vld [vmem:[#allocation10_spill] sm:$0xff]  ;;  %v11193_v46 = vmov 0.0  }
 0x36e   :  { %v8903_v53 = vpop.permute.xlu1 %1038 }
 0x36f   :  { %v7220_v1 = vpop.eup %7219  ;;  %v1201_v2 = vmul.f32 %v11182_v18, %v8903_v53  ;;  %v1203_v58 = vmul.f32 %v11183_v62, %v8903_v53  ;;  %v1202_v9 = vmul.f32 %v11185_v17, %v8903_v53 }
 0x370   :  { %v8905_v34 = vmul.f32 %v7220_v1, %v2477_v15  ;;  %v11197_v1 = vld [vmem:[#allocation11_spill] sm:$0xff] }
 0x371   :  { %v1254_v54 = vadd.f32 %v11184_v32, %v1201_v2  ;;  %v1256_v16 = vadd.f32 %v11190_v25, %v1203_v58  ;;  %v1255_v24 = vadd.f32 %v11194_v56, %v1202_v9  ;;  %v11198_v2 = vld [vmem:[#allocation12_spill] sm:$0xff]  ;;  %v11199_v58 = vld [vmem:[#allocation14_spill] sm:$0xff] }
 0x372   :  { %11181 = vst [vmem:[#allocation93_spill] sm:$0xff] %v8905_v34  ;;  %2550 = vmatmul.mubr.f32.vlgmr.msra.gmra.mrb[6].mxu0 %v8905_v34  ;;  %2621 = vmatmul.mubr.f32.vlgmr.msra.gmra.mrb[6].mxu1 %v8905_v34 }
 0x373   :  { %v8913_v29 = vpop.permute.xlu1 %1289  ;;  %6008 = vmatpush1.bf16.msra.mxu0 %v11186_v48  ;;  %6040 = vmatpush1.bf16.msra.mxu1 %v11187_v23 }
 0x374   :  { %6010 = vmatprep.subr.bf16.mxu0 %v11188_v33  ;;  %v1428_v22 = vmul.f32 %v11189_v47, %v8913_v29  ;;  %v1430_v43 = vmul.f32 %v11191_v27, %v8913_v29  ;;  %6042 = vmatprep.subr.bf16.mxu1 %v11192_v60  ;;  %v1429_v15 = vmul.f32 %v11196_v26, %v8913_v29  ;;  %v11210_v60 = vld [vmem:[#allocation19_spill] sm:$0xff] }
 0x375   :  { %2715 = vmatprep.mubr.f32.mxu0 %v11193_v46  ;;  %2786 = vmatprep.mubr.f32.mxu1 %v11193_v46  ;;  %v11209_v46 = vld [vmem:[#allocation20_spill] sm:$0xff] }
 0x376   :  { %v1460_v49 = vadd.f32 %v1428_v22, %v1254_v54  ;;  %v1462_v6 = vadd.f32 %v1430_v43, %v1256_v16  ;;  %v1461_v9 = vadd.f32 %v1429_v15, %v1255_v24  ;;  %v8942_v22 = vpop.permute.xlu0 %1701  ;;  %v11200_v43 = vld [vmem:[#allocation13_spill] sm:$0xff] }
 0x377   :  { %6012 = vmatpush1.bf16.msra.mxu0 %v11195_v45  ;;  %6044 = vmatpush1.bf16.msra.mxu1 %v11197_v1  ;;  %v1840_v1 = vmul.f32 %v11159_v13, %v8942_v22  ;;  %v1842_v24 = vmul.f32 %v11160_v21, %v8942_v22  ;;  %v11204_v15 = vld [vmem:[#allocation17_spill] sm:$0xff]  ;;  %v11205_v45 = vld [vmem:[#allocation64_spill] sm:$0xff] }
 0x378   :  { %v8930_v36 = vpop.permute.xlu1 %1495  ;;  %6014 = vmatprep.subr.bf16.mxu0 %v11198_v2  ;;  %6046 = vmatprep.subr.bf16.mxu1 %v11199_v58  ;;  %v11203_v2 = vld [vmem:[#allocation16_spill] sm:$0xff] }
 0x379   :  { %v1634_v34 = vmul.f32 %v11157_v41, %v8930_v36  ;;  %v1636_v54 = vmul.f32 %v11158_v50, %v8930_v36  ;;  %v1635_v58 = vmul.f32 %v11202_v31, %v8930_v36  ;;  %v1841_v50 = vmul.f32 %v11161_v57, %v8942_v22 }
 0x37b   :  { %6016 = vmatpush1.bf16.msra.mxu0 %v11200_v43  ;;  %v1666_v14 = vadd.f32 %v1634_v34, %v1460_v49  ;;  %v1668_v52 = vadd.f32 %v1636_v54, %v1462_v6  ;;  %6048 = vmatpush1.bf16.msra.mxu1 %v11201_v44  ;;  %v11206_v34 = vld [vmem:[#allocation18_spill] sm:$0xff]  ;;  %v11207_v49 = vld [vmem:[#allocation72_spill] sm:$0xff]  ;;  %v1667_v48 = vadd.f32 %v1635_v58, %v1461_v9  ;;  %v11215_v58 = vld [vmem:[#allocation59_spill] sm:$0xff] }
 0x37c   :  { %v8944_v16 = vpop.permute.xlu1 %1499  ;;  %6018 = vmatprep.subr.bf16.mxu0 %v11203_v2  ;;  %6050 = vmatprep.subr.bf16.mxu1 %v11204_v15  ;;  %v11208_v54 = vld [vmem:[#allocation58_spill] sm:$0xff] }
 0x37d   :  { %v1551_v43 = vmul.f32 %v11205_v45, %v8944_v16  ;;  %v1553_v6 = vmul.f32 %v11207_v49, %v8944_v16  ;;  %v1204_v44 = vmul.f32 %v11208_v54, %v8903_v53  ;;  %v11211_v15 = vld [vmem:[#allocation70_spill] sm:$0xff]  ;;  %v1874_v21 = vadd.f32 %v1842_v24, %v1668_v52  ;;  %v11218_v24 = vld [vmem:[#allocation23_spill] sm:$0xff]  ;;  %v11220_v49 = vld [vmem:[#allocation25_spill] sm:$0xff] }
 0x37e   :  { %v1552_v23 = vmul.f32 %v11211_v15, %v8944_v16 }
 0x37f   :  { %6020 = vmatpush1.bf16.msra.mxu0 %v11206_v34  ;;  %6052 = vmatpush1.bf16.msra.mxu1 %v11209_v46  ;;  %v1583_v33 = vadd.f32 %v1551_v43, %v1377_v40  ;;  %v1872_v34 = vadd.f32 %v1840_v1, %v1666_v14  ;;  %v1585_v63 = vadd.f32 %v1553_v6, %v8891_v61  ;;  %v11213_v46 = vld [vmem:[#allocation80_spill] sm:$0xff]  ;;  %v11214_v43 = vld [vmem:[#allocation22_spill] sm:$0xff]  ;;  %v11216_v14 = vld [vmem:[#allocation67_spill] sm:$0xff] }
 0x380   :  { %6022 = vmatprep.subr.bf16.mxu0 %v11210_v60  ;;  %6054 = vmatprep.subr.bf16.mxu1 %v11212_v28  ;;  %v1584_v40 = vadd.f32 %v1552_v23, %v8899_v39  ;;  %v1257_v9 = vadd.f32 %v11215_v58, %v1204_v44  ;;  %v1431_v52 = vmul.f32 %v11216_v14, %v8913_v29  ;;  %v11217_v1 = vld [vmem:[#allocation24_spill] sm:$0xff]  ;;  %v11219_v61 = vld [vmem:[#allocation78_spill] sm:$0xff] }
 0x381   :  { %v8963_v2 = vpop.permute.xlu1 %1705  ;;  %v1873_v44 = vadd.f32 %v1841_v50, %v1667_v48  ;;  %v1843_v50 = vmul.f32 %v8161_v59, %v8942_v22 }
 0x382   :  { %v1757_v13 = vmul.f32 %v8131_v51, %v8963_v2  ;;  %v1759_v60 = vmul.f32 %v11213_v46, %v8963_v2  ;;  %v1758_v6 = vmul.f32 %v11219_v61, %v8963_v2  ;;  %v1463_v14 = vadd.f32 %v1431_v52, %v1257_v9  ;;  %v11229_v52 = vld [vmem:[#allocation32_spill] sm:$0xff] }
 0x383   :  { %6024 = vmatpush1.bf16.msra.mxu0 %v11214_v43  ;;  %6056 = vmatpush1.bf16.msra.mxu1 %v11217_v1  ;;  %v11223_v43 = vld [vmem:[#allocation26_spill] sm:$0xff]  ;;  %v1554_v1 = vmul.f32 %v11088_v8, %v8944_v16 }
 0x384   :  { %6026 = vmatprep.subr.bf16.mxu0 %v11218_v24  ;;  %v1789_v28 = vadd.f32 %v1757_v13, %v1583_v33  ;;  %v1791_v57 = vadd.f32 %v1759_v60, %v1585_v63  ;;  %6058 = vmatprep.subr.bf16.mxu1 %v11220_v49  ;;  %v1790_v23 = vadd.f32 %v1758_v6, %v1584_v40  ;;  %v11224_v33 = vld [vmem:[#allocation28_spill] sm:$0xff]  ;;  %v11230_v6 = vld [vmem:[#allocation31_spill] sm:$0xff] }
 0x385   :  { %v1637_v63 = vmul.f32 %v11165_v38, %v8930_v36  ;;  %v1760_v13 = vmul.f32 %v11089_v35, %v8963_v2  ;;  %v1586_v48 = vadd.f32 %v1554_v1, %v8901_v11  ;;  %v11235_v11 = vld [vmem:[#allocation6_spill] sm:$0xff]  ;;  %v1205_v1 = vmul.f32 %v11182_v18, %v8869_v42 }
 0x386   :  { %v8987_v46 = vadd.f32 %v1872_v34, %v1789_v28  ;;  %v8989_v39 = vadd.f32 %v1874_v21, %v1791_v57  ;;  %v11225_v28 = vld [vmem:[#allocation27_spill] sm:$0xff]  ;;  %v9000_v21 = vadd.f32 %v1873_v44, %v1790_v23  ;;  %v11227_v57 = vld [vmem:[#allocation29_spill] sm:$0xff]  ;;  %v11228_v34 = vld [vmem:[#allocation30_spill] sm:$0xff]  ;;  %v1207_v18 = vmul.f32 %v11183_v62, %v8869_v42 }
 0x387   :  { %6028 = vmatpush1.bf16.msra.mxu0 %v11223_v43  ;;  %6060 = vmatpush1.bf16.msra.mxu1 %v11224_v33  ;;  %v1669_v60 = vadd.f32 %v1637_v63, %v1463_v14  ;;  %v1792_v40 = vadd.f32 %v1760_v13, %v1586_v48  ;;  %v11232_v44 = vld [vmem:[#allocation34_spill] sm:$0xff]  ;;  %v1094_v14 = vmul.f32 %v11174_v3, %v8903_v53 }
 0x388   :  { %11221 = vst [vmem:[#allocation89_spill] sm:$0xff] %v8987_v46  ;;  %11222 = vst [vmem:[#allocation41_spill] sm:$0xff] %v8989_v39  ;;  %6030 = vmatprep.subr.bf16.mxu0 %v11225_v28  ;;  %6062 = vmatprep.subr.bf16.mxu1 %v11227_v57  ;;  %v11231_v39 = vld [vmem:[#allocation33_spill] sm:$0xff]  ;;  %v11234_v46 = vld [vmem:[#allocation4_spill] sm:$0xff]  ;;  %v1095_v63 = vmul.f32 %v11178_v37, %v8903_v53  ;;  %v1206_v13 = vmul.f32 %v11185_v17, %v8869_v42 }
 0x389   :  { %11226 = vst [vmem:[#allocation97_spill] sm:$0xff] %v9000_v21  ;;  %v1875_v9 = vadd.f32 %v1843_v50, %v1669_v60  ;;  %v11233_v21 = vld [vmem:[#allocation35_spill] sm:$0xff]  ;;  %v1147_v50 = vadd.f32 %v11176_v7, %v1094_v14  ;;  %v1341_v48 = vmul.f32 %v11180_v10, %v8913_v29  ;;  %v1096_v60 = vmul.f32 %v11177_v55, %v8903_v53 }
 0x38a   :  { %v1148_v37 = vadd.f32 %v11070_v20, %v1095_v63  ;;  %v1259_v17 = vadd.f32 %v11194_v56, %v1206_v13  ;;  %v1342_v14 = vmul.f32 %v11068_v19, %v8913_v29  ;;  %v1433_v7 = vmul.f32 %v11196_v26, %v8874_v0 }
 0x38b   :  { %6032 = vmatpush1.bf16.msra.mxu0 %v11228_v34  ;;  %6064 = vmatpush1.bf16.msra.mxu1 %v11229_v52  ;;  %v9010_v23 = vadd.f32 %v1875_v9, %v1792_v40  ;;  %v1258_v40 = vadd.f32 %v11184_v32, %v1205_v1  ;;  %v1432_v9 = vmul.f32 %v11189_v47, %v8874_v0 }
 0x38c   :  { %6034 = vmatprep.subr.bf16.mxu0 %v11230_v6  ;;  %6066 = vmatprep.subr.bf16.mxu1 %v11231_v39  ;;  %v1097_v55 = vmul.f32 %v11080_v5, %v8903_v53  ;;  %v1208_v1 = vmul.f32 %v11208_v54, %v8869_v42  ;;  %v1373_v32 = vadd.f32 %v1341_v48, %v1147_v50 }
 0x38d   :  { %v1547_v62 = vmul.f32 %v11205_v45, %v8930_v36  ;;  %v1149_v63 = vadd.f32 %v11149_v30, %v1096_v60  ;;  %v1343_v13 = vmul.f32 %v11153_v12, %v8913_v29  ;;  %v1464_v56 = vadd.f32 %v1432_v9, %v1258_v40 }
 0x38e   :  { %v1638_v20 = vmul.f32 %v11157_v41, %v8944_v16  ;;  %v1260_v26 = vadd.f32 %v11190_v25, %v1207_v18  ;;  %v1434_v53 = vmul.f32 %v11191_v27, %v8874_v0  ;;  %v1374_v5 = vadd.f32 %v1342_v14, %v1148_v37  ;;  %v11236_v18 = vld [vmem:[#allocation67_spill] sm:$0xff] }
 0x38f   :  { %6036 = vmatpush1.bf16.msra.mxu0 %v11232_v44  ;;  %6068 = vmatpush1.bf16.msra.mxu1 %v11233_v21  ;;  %v1465_v42 = vadd.f32 %v1433_v7, %v1259_v17  ;;  %v1548_v50 = vmul.f32 %v11211_v15, %v8930_v36  ;;  %v1639_v48 = vmul.f32 %v11202_v31, %v8944_v16  ;;  %v11237_v7 = vld [vmem:[#allocation72_spill] sm:$0xff]  ;;  %v11238_v17 = vld [vmem:[#allocation66_spill] sm:$0xff]  ;;  %v11239_v31 = vld [vmem:[#allocation77_spill] sm:$0xff] }
 0x390   :  { %6070 = vmatprep.subr.bf16.mxu0 %v11234_v46  ;;  %6102 = vmatprep.subr.bf16.mxu1 %v11235_v11  ;;  %v1753_v60 = vmul.f32 %v8131_v51, %v8942_v22  ;;  %v1150_v40 = vadd.f32 %v11086_v4, %v1097_v55  ;;  %v1261_v9 = vadd.f32 %v11215_v58, %v1208_v1  ;;  %v11240_v55 = vld [vmem:[#allocation74_spill] sm:$0xff] }
 0x391   :  { %v1435_v54 = vmul.f32 %v11236_v18, %v8874_v0  ;;  %v1579_v25 = vadd.f32 %v1547_v62, %v1373_v32  ;;  %v1375_v27 = vadd.f32 %v1343_v13, %v1149_v63  ;;  %v1549_v37 = vmul.f32 %v11237_v7, %v8930_v36  ;;  %v11241_v62 = vld [vmem:[#allocation79_spill] sm:$0xff]  ;;  %v11242_v63 = vld [vmem:[#allocation80_spill] sm:$0xff] }
 0x392   :  { %v1344_v14 = vmul.f32 %v11238_v17, %v8913_v29  ;;  %v1670_v30 = vadd.f32 %v1638_v20, %v1464_v56  ;;  %v1844_v15 = vmul.f32 %v11239_v31, %v8963_v2  ;;  %v1466_v12 = vadd.f32 %v1434_v53, %v1260_v26 }
 0x393   :  { %v1640_v4 = vmul.f32 %v11240_v55, %v8944_v16  ;;  %v1580_v1 = vadd.f32 %v1548_v50, %v1374_v5  ;;  %v1671_v58 = vadd.f32 %v1639_v48, %v1465_v42  ;;  %v1754_v0 = vmul.f32 %v11219_v61, %v8942_v22  ;;  %v11243_v5 = vld [vmem:[#allocation82_spill] sm:$0xff] }
 0x394   :  { %v1845_v32 = vmul.f32 %v11241_v62, %v8963_v2  ;;  %v1755_v13 = vmul.f32 %v11242_v63, %v8942_v22  ;;  %v1467_v29 = vadd.f32 %v1435_v54, %v1261_v9  ;;  %v1785_v20 = vadd.f32 %v1753_v60, %v1579_v25 }
 0x395   :  { %v1581_v56 = vadd.f32 %v1549_v37, %v1375_v27  ;;  %v1376_v18 = vadd.f32 %v1344_v14, %v1150_v40  ;;  %v1550_v26 = vmul.f32 %v11088_v8, %v8930_v36  ;;  %v1876_v53 = vadd.f32 %v1844_v15, %v1670_v30 }
 0x396   :  { %v1672_v17 = vadd.f32 %v1640_v4, %v1466_v12  ;;  %v1846_v42 = vmul.f32 %v11243_v5, %v8963_v2  ;;  %v1641_v50 = vmul.f32 %v11165_v38, %v8944_v16  ;;  %v1786_v48 = vadd.f32 %v1754_v0, %v1580_v1 }
 0x397   :  { %v1877_v62 = vadd.f32 %v1845_v32, %v1671_v58  ;;  %v1787_v55 = vadd.f32 %v1755_v13, %v1581_v56  ;;  %v1582_v61 = vadd.f32 %v1550_v26, %v1376_v18  ;;  %v1756_v25 = vmul.f32 %v11089_v35, %v8942_v22 }
 0x398   :  { %v1904_v27 = vadd.f32 %v1876_v53, %v1785_v20  ;;  %v1878_v54 = vadd.f32 %v1846_v42, %v1672_v17  ;;  %v1673_v60 = vadd.f32 %v1641_v50, %v1467_v29  ;;  %v1847_v30 = vmul.f32 %v8161_v59, %v8963_v2 }
 0x399   :  { %v1905_v36 = vadd.f32 %v1877_v62, %v1786_v48  ;;  %v1788_v14 = vadd.f32 %v1756_v25, %v1582_v61 }
 0x39a   :  { %v1906_v58 = vadd.f32 %v1878_v54, %v1787_v55  ;;  %v1879_v18 = vadd.f32 %v1847_v30, %v1673_v60  ;;  %v11244_v55 = vld [vmem:[#allocation92_spill] sm:$0xff]  ;;  %v11245_v60 = vld [vmem:[#allocation5_spill] sm:$0xff]  ;;  %v11246_v30 = vld [vmem:[#allocation7_spill] sm:$0xff] }
 0x39c   :  { %v1907_v17 = vadd.f32 %v1879_v18, %v1788_v14  ;;  %v11256_v14 = vld [vmem:[#allocation16_spill] sm:$0xff]  ;;  %v11257_v18 = vld [vmem:[#allocation17_spill] sm:$0xff] }
 0x445   :  { %v2551_v4 = vpop.f32.mrb[6].mxu0  ;;  %v2622_v12 = vpop.f32.mrb[6].mxu1 }
 0x446   :  { %v2627_v15 = vadd.f32 %v2551_v4, %v1904_v27  ;;  %v2553_v40 = vpop.f32.mrb[7].mxu0  ;;  %v2624_v9 = vpop.f32.mrb[7].mxu1  ;;  %v2629_v22 = vadd.f32 %v2622_v12, %v1906_v58  ;;  %v11247_v4 = vld [vmem:[#allocation8_spill] sm:$0xff]  ;;  %v11248_v12 = vld [vmem:[#allocation10_spill] sm:$0xff]  ;;  %v11255_v58 = vld [vmem:[#allocation15_spill] sm:$0xff] }
 0x447   :  { %v2628_v16 = vadd.f32 %v2553_v40, %v1905_v36  ;;  %v2630_v0 = vadd.f32 %v2624_v9, %v1907_v17  ;;  %v11249_v36 = vmov 0.0   ;;  %v11251_v40 = vld [vmem:[#allocation11_spill] sm:$0xff]  ;;  %v11252_v9 = vld [vmem:[#allocation12_spill] sm:$0xff] }
 0x448   :  { %v2631_v37 = vmul.f32 0.5, %v2627_v15  ;;  %v11250_v15 = vld [vmem:[#allocation9_spill] sm:$0xff]  ;;  %v11260_v17 = vld [vmem:[#allocation19_spill] sm:$0xff] }
 0x449   :  { %v2635_v1 = vmul.f32 0.5, %v2628_v16  ;;  %v2640_v32 = vmul.f32 0.5, %v2630_v0  ;;  %v11253_v16 = vld [vmem:[#allocation14_spill] sm:$0xff]  ;;  %v11261_v0 = vld [vmem:[#allocation21_spill] sm:$0xff] }
 0x44a   :  { %7221 = vtanh.f32 %v2631_v37  ;;  %v11254_v37 = vld [vmem:[#allocation13_spill] sm:$0xff] }
 0x44b   :  { %7223 = vtanh.f32 %v2635_v1  ;;  %v11258_v1 = vld [vmem:[#allocation18_spill] sm:$0xff] }
 0x44c   :  { %7225 = vtanh.f32 %v2629_v22  ;;  %v11259_v22 = vld [vmem:[#allocation20_spill] sm:$0xff] }
 0x44d   :  { %7227 = vtanh.f32 %v2640_v32  ;;  %v11262_v32 = vld [vmem:[#allocation22_spill] sm:$0xff] }
 0x454   :  { %v7222_v2 = vpop.eup %7221 }
 0x455   :  { %v7224_v13 = vpop.eup %7223  ;;  %v2633_v29 = vmul.f32 0.5, %v7222_v2  ;;  %v11263_v2 = vld [vmem:[#allocation24_spill] sm:$0xff] }
 0x456   :  { %v2637_v62 = vmul.f32 0.5, %v7224_v13  ;;  %v7226_v56 = vpop.eup %7225 }
 0x457   :  { %v2634_v20 = vadd.f32 0.5, %v2633_v29  ;;  %v7228_v50 = vpop.eup %7227 }
 0x458   :  { %v2638_v26 = vadd.f32 0.5, %v2637_v62  ;;  %v2642_v48 = vmul.f32 0.5, %v7228_v50  ;;  %v11264_v62 = vld [vmem:[#allocation89_spill] sm:$0xff] }
 0x459   :  { %v2645_v53 = vmul.f32 %v7226_v56, %v2634_v20  ;;  %v11265_v56 = vld [vmem:[#allocation41_spill] sm:$0xff] }
 0x45a   :  { %v2644_v61 = vmul.f32 %v2638_v26, %v11244_v55  ;;  %v2643_v25 = vadd.f32 0.5, %v2642_v48 }
 0x45c   :  { %v9089_v42 = vadd.f32 %v2645_v53, %v2644_v61  ;;  %v11266_v61 = vld [vmem:[#allocation97_spill] sm:$0xff] }
 0x45e   :  { %7229 = vtanh.f32 %v9089_v42 }
 0x468   :  { %v7230_v27 = vpop.eup %7229 }
 0x469   :  { %v9092_v54 = vmul.f32 %v7230_v27, %v2643_v25 }
 0x46b   :  { %2716 = vmatmul.mubr.f32.vlgmr.msra.gmra.mrb[8].mxu0 %v9092_v54  ;;  %2787 = vmatmul.mubr.f32.vlgmr.msra.gmra.mrb[8].mxu1 %v9092_v54 }
 0x46c   :  { %6072 = vmatpush1.bf16.msra.mxu0 %v11245_v60  ;;  %6104 = vmatpush1.bf16.msra.mxu1 %v11246_v30 }
 0x46d   :  { %6074 = vmatprep.subr.bf16.mxu0 %v11247_v4  ;;  %6106 = vmatprep.subr.bf16.mxu1 %v11248_v12 }
 0x46e   :  { %2881 = vmatprep.mubr.f32.mxu0 %v11249_v36  ;;  %2952 = vmatprep.mubr.f32.mxu1 %v11249_v36 }
 0x470   :  { %6076 = vmatpush1.bf16.msra.mxu0 %v11250_v15  ;;  %6108 = vmatpush1.bf16.msra.mxu1 %v11251_v40 }
 0x471   :  { %6078 = vmatprep.subr.bf16.mxu0 %v11252_v9  ;;  %6110 = vmatprep.subr.bf16.mxu1 %v11253_v16 }
 0x474   :  { %6080 = vmatpush1.bf16.msra.mxu0 %v11254_v37  ;;  %6112 = vmatpush1.bf16.msra.mxu1 %v11255_v58 }
 0x475   :  { %6082 = vmatprep.subr.bf16.mxu0 %v11256_v14  ;;  %6114 = vmatprep.subr.bf16.mxu1 %v11257_v18 }
 0x478   :  { %6084 = vmatpush1.bf16.msra.mxu0 %v11258_v1  ;;  %6116 = vmatpush1.bf16.msra.mxu1 %v11259_v22 }
 0x479   :  { %6086 = vmatprep.subr.bf16.mxu0 %v11260_v17  ;;  %6118 = vmatprep.subr.bf16.mxu1 %v11261_v0 }
 0x47c   :  { %6088 = vmatpush1.bf16.msra.mxu0 %v11262_v32  ;;  %6120 = vmatpush1.bf16.msra.mxu1 %v11263_v2 }
 0x47d   :  { %6090 = vmatprep.subr.bf16.mxu0 %v11218_v24  ;;  %6122 = vmatprep.subr.bf16.mxu1 %v11220_v49 }
 0x480   :  { %6092 = vmatpush1.bf16.msra.mxu0 %v11223_v43  ;;  %6124 = vmatpush1.bf16.msra.mxu1 %v11224_v33 }
 0x481   :  { %6094 = vmatprep.subr.bf16.mxu0 %v11225_v28  ;;  %6126 = vmatprep.subr.bf16.mxu1 %v11227_v57 }
 0x484   :  { %6096 = vmatpush1.bf16.msra.mxu0 %v11228_v34  ;;  %6128 = vmatpush1.bf16.msra.mxu1 %v11229_v52 }
 0x485   :  { %6098 = vmatprep.subr.bf16.mxu0 %v11230_v6  ;;  %6130 = vmatprep.subr.bf16.mxu1 %v11231_v39 }
 0x488   :  { %6100 = vmatpush1.bf16.msra.mxu0 %v11232_v44  ;;  %6132 = vmatpush1.bf16.msra.mxu1 %v11233_v21 }
 0x489   :  { %6134 = vmatprep.subr.bf16.mxu0 %v11234_v46  ;;  %6166 = vmatprep.subr.bf16.mxu1 %v11235_v11 }
 0x53e   :  { %v2717_v13 = vpop.f32.mrb[8].mxu0  ;;  %v2788_v29 = vpop.f32.mrb[8].mxu1 }
 0x53f   :  { %v2793_v20 = vadd.f32 %v2717_v13, %v11264_v62  ;;  %v2795_v26 = vadd.f32 %v2788_v29, %v11265_v56  ;;  %v2719_v53 = vpop.f32.mrb[9].mxu0  ;;  %v2790_v55 = vpop.f32.mrb[9].mxu1 }
 0x540   :  { %v2794_v50 = vadd.f32 %v2719_v53, %v11266_v61  ;;  %v2796_v48 = vadd.f32 %v2790_v55, %v9010_v23 }
 0x541   :  { %v2797_v25 = vmul.f32 0.5, %v2793_v20 }
 0x542   :  { %v2801_v27 = vmul.f32 0.5, %v2794_v50  ;;  %v2806_v59 = vmul.f32 0.5, %v2796_v48  ;;  %v11269_v48 = vld [vmem:[#allocation95_spill] sm:$0xff] }
 0x543   :  { %7231 = vtanh.f32 %v2797_v25 }
 0x544   :  { %7233 = vtanh.f32 %v2801_v27  ;;  %v11270_v27 = vld [vmem:[#allocation69_spill] sm:$0xff] }
 0x545   :  { %7235 = vtanh.f32 %v2795_v26 }
 0x546   :  { %7237 = vtanh.f32 %v2806_v59 }
 0x54d   :  { %v7232_v35 = vpop.eup %7231 }
 0x54e   :  { %v7234_v38 = vpop.eup %7233  ;;  %v2799_v8 = vmul.f32 0.5, %v7232_v35  ;;  %v11267_v35 = vld [vmem:[#allocation98_spill] sm:$0xff] }
 0x54f   :  { %v2803_v5 = vmul.f32 0.5, %v7234_v38  ;;  %v7236_v62 = vpop.eup %7235 }
 0x550   :  { %v2800_v13 = vadd.f32 0.5, %v2799_v8  ;;  %v7238_v23 = vpop.eup %7237 }
 0x551   :  { %v2804_v29 = vadd.f32 0.5, %v2803_v5  ;;  %v2808_v20 = vmul.f32 0.5, %v7238_v23 }
 0x552   :  { %v2811_v56 = vmul.f32 %v7236_v62, %v2800_v13 }
 0x553   :  { %v2810_v63 = vmul.f32 %v2804_v29, %v9089_v42  ;;  %v2809_v55 = vadd.f32 0.5, %v2808_v20 }
 0x555   :  { %v9135_v53 = vadd.f32 %v2811_v56, %v2810_v63  ;;  %v11268_v63 = vld [vmem:[#allocation94_spill] sm:$0xff] }
 0x557   :  { %7239 = vtanh.f32 %v9135_v53 }
 0x561   :  { %v7240_v26 = vpop.eup %7239 }
 0x562   :  { %v9138_v61 = vmul.f32 %v7240_v26, %v2809_v55 }
 0x564   :  { %2882 = vmatmul.mubr.f32.vlgmr.msra.gmra.mrb[10].mxu0 %v9138_v61  ;;  %2953 = vmatmul.mubr.f32.vlgmr.msra.gmra.mrb[10].mxu1 %v9138_v61 }
 0x565   :  { %6136 = vmatpush1.bf16.msra.mxu0 %v11245_v60  ;;  %6168 = vmatpush1.bf16.msra.mxu1 %v11246_v30 }
 0x566   :  { %6138 = vmatprep.subr.bf16.mxu0 %v11247_v4  ;;  %6170 = vmatprep.subr.bf16.mxu1 %v11248_v12 }
 0x567   :  { %3047 = vmatprep.mubr.f32.mxu0 %v11249_v36  ;;  %3118 = vmatprep.mubr.f32.mxu1 %v11249_v36 }
 0x569   :  { %6140 = vmatpush1.bf16.msra.mxu0 %v11250_v15  ;;  %6172 = vmatpush1.bf16.msra.mxu1 %v11251_v40 }
 0x56a   :  { %6142 = vmatprep.subr.bf16.mxu0 %v11252_v9  ;;  %6174 = vmatprep.subr.bf16.mxu1 %v11253_v16 }
 0x56d   :  { %6144 = vmatpush1.bf16.msra.mxu0 %v11254_v37  ;;  %6176 = vmatpush1.bf16.msra.mxu1 %v11255_v58 }
 0x56e   :  { %6146 = vmatprep.subr.bf16.mxu0 %v11256_v14  ;;  %6178 = vmatprep.subr.bf16.mxu1 %v11257_v18 }
 0x571   :  { %6148 = vmatpush1.bf16.msra.mxu0 %v11258_v1  ;;  %6180 = vmatpush1.bf16.msra.mxu1 %v11259_v22 }
 0x572   :  { %6150 = vmatprep.subr.bf16.mxu0 %v11260_v17  ;;  %6182 = vmatprep.subr.bf16.mxu1 %v11261_v0 }
 0x575   :  { %6152 = vmatpush1.bf16.msra.mxu0 %v11262_v32  ;;  %6184 = vmatpush1.bf16.msra.mxu1 %v11263_v2 }
 0x576   :  { %6154 = vmatprep.subr.bf16.mxu0 %v11218_v24  ;;  %6186 = vmatprep.subr.bf16.mxu1 %v11220_v49 }
 0x579   :  { %6156 = vmatpush1.bf16.msra.mxu0 %v11223_v43  ;;  %6188 = vmatpush1.bf16.msra.mxu1 %v11224_v33 }
 0x57a   :  { %6158 = vmatprep.subr.bf16.mxu0 %v11225_v28  ;;  %6190 = vmatprep.subr.bf16.mxu1 %v11227_v57 }
 0x57d   :  { %6160 = vmatpush1.bf16.msra.mxu0 %v11228_v34  ;;  %6192 = vmatpush1.bf16.msra.mxu1 %v11229_v52 }
 0x57e   :  { %6162 = vmatprep.subr.bf16.mxu0 %v11230_v6  ;;  %6194 = vmatprep.subr.bf16.mxu1 %v11231_v39 }
 0x581   :  { %6164 = vmatpush1.bf16.msra.mxu0 %v11232_v44  ;;  %6196 = vmatpush1.bf16.msra.mxu1 %v11233_v21 }
 0x582   :  { %6198 = vmatprep.subr.bf16.mxu0 %v11234_v46  ;;  %6230 = vmatprep.subr.bf16.mxu1 %v11235_v11 }
 0x637   :  { %v2883_v59 = vpop.f32.mrb[10].mxu0  ;;  %v2954_v8 = vpop.f32.mrb[10].mxu1 }
 0x638   :  { %v2959_v38 = vadd.f32 %v2883_v59, %v11267_v35  ;;  %v2961_v5 = vadd.f32 %v2954_v8, %v11268_v63  ;;  %v2885_v42 = vpop.f32.mrb[11].mxu0  ;;  %v2956_v50 = vpop.f32.mrb[11].mxu1 }
 0x639   :  { %v2960_v25 = vadd.f32 %v2885_v42, %v11269_v48  ;;  %v2962_v13 = vadd.f32 %v2956_v50, %v11270_v27  ;;  %v11276_v27 = vld [vmem:[#allocation90_spill] sm:$0xff] }
 0x63a   :  { %v2963_v62 = vmul.f32 0.5, %v2959_v38 }
 0x63b   :  { %v2967_v29 = vmul.f32 0.5, %v2960_v25  ;;  %v2972_v46 = vmul.f32 0.5, %v2962_v13 }
 0x63c   :  { %7241 = vtanh.f32 %v2963_v62  ;;  %v11277_v62 = vld [vmem:[#allocation93_spill] sm:$0xff] }
 0x63d   :  { %7243 = vtanh.f32 %v2967_v29 }
 0x63e   :  { %7245 = vtanh.f32 %v2961_v5 }
 0x63f   :  { %7247 = vtanh.f32 %v2972_v46 }
 0x646   :  { %v7242_v56 = vpop.eup %7241 }
 0x647   :  { %v7244_v11 = vpop.eup %7243  ;;  %v2965_v23 = vmul.f32 0.5, %v7242_v56 }
 0x648   :  { %v2969_v20 = vmul.f32 0.5, %v7244_v11  ;;  %v7246_v26 = vpop.eup %7245  ;;  %v11278_v11 = vld [vmem:[#allocation46_spill] sm:$0xff] }
 0x649   :  { %v2966_v55 = vadd.f32 0.5, %v2965_v23  ;;  %v7248_v38 = vpop.eup %7247  ;;  %v1110_v23 = vmul.f32 %v11174_v3, %v11278_v11  ;;  %v11287_v3 = vld [vmem:[#allocation43_spill] sm:$0xff] }
 0x64a   :  { %v2970_v59 = vadd.f32 0.5, %v2969_v20  ;;  %v2974_v42 = vmul.f32 0.5, %v7248_v38  ;;  %v11279_v20 = vld [vmem:[#allocation51_spill] sm:$0xff] }
 0x64b   :  { %v2977_v8 = vmul.f32 %v7246_v26, %v2966_v55  ;;  %v11280_v55 = vld [vmem:[#allocation42_spill] sm:$0xff]  ;;  %v11283_v38 = vld [vmem:[#allocation47_spill] sm:$0xff] }
 0x64c   :  { %v2976_v35 = vmul.f32 %v2970_v59, %v9135_v53  ;;  %v2975_v50 = vadd.f32 0.5, %v2974_v42  ;;  %v1189_v26 = vmul.f32 %v11280_v55, %v11279_v20  ;;  %v11281_v59 = vld [vmem:[#allocation68_spill] sm:$0xff]  ;;  %v1163_v42 = vadd.f32 %v11283_v38, %v1110_v23  ;;  %v11301_v23 = vld [vmem:[#allocation71_spill] sm:$0xff] }
 0x64e   :  { %v9181_v63 = vadd.f32 %v2977_v8, %v2976_v35  ;;  %v1357_v8 = vmul.f32 %v11180_v10, %v11281_v59  ;;  %v11282_v35 = vld [vmem:[#allocation73_spill] sm:$0xff] }
 0x64f   :  { %v11288_v10 = vld [vmem:[#allocation45_spill] sm:$0xff] }
 0x650   :  { %7249 = vtanh.f32 %v9181_v63 }
 0x65a   :  { %v7250_v5 = vpop.eup %7249 }
 0x65b   :  { %v9184_v48 = vmul.f32 %v7250_v5, %v2975_v50  ;;  %v11284_v50 = vld [vmem:[#allocation48_spill] sm:$0xff] }
 0x65c   :  { %v1242_v5 = vadd.f32 %v11284_v50, %v1189_v26  ;;  %v11302_v26 = vld [vmem:[#allocation78_spill] sm:$0xff] }
 0x65d   :  { %3048 = vmatmul.mubr.f32.vlgmr.msra.gmra.mrb[12].mxu0 %v9184_v48  ;;  %3119 = vmatmul.mubr.f32.vlgmr.msra.gmra.mrb[12].mxu1 %v9184_v48 }
 0x65e   :  { %6200 = vmatpush1.bf16.msra.mxu0 %v11245_v60  ;;  %6232 = vmatpush1.bf16.msra.mxu1 %v11246_v30  ;;  %v11272_v60 = vld [vmem:[#allocation99_spill] sm:$0xff] }
 0x65f   :  { %6202 = vmatprep.subr.bf16.mxu0 %v11247_v4  ;;  %6234 = vmatprep.subr.bf16.mxu1 %v11248_v12  ;;  %v11273_v4 = vld [vmem:[#allocation91_spill] sm:$0xff]  ;;  %v11274_v12 = vld [vmem:[#allocation88_spill] sm:$0xff] }
 0x660   :  { %3213 = vmatprep.mubr.f32.mxu0 %v11249_v36  ;;  %3284 = vmatprep.mubr.f32.mxu1 %v11249_v36 }
 0x662   :  { %6204 = vmatpush1.bf16.msra.mxu0 %v11250_v15  ;;  %6236 = vmatpush1.bf16.msra.mxu1 %v11251_v40 }
 0x663   :  { %6206 = vmatprep.subr.bf16.mxu0 %v11252_v9  ;;  %6238 = vmatprep.subr.bf16.mxu1 %v11253_v16 }
 0x666   :  { %6208 = vmatpush1.bf16.msra.mxu0 %v11254_v37  ;;  %6240 = vmatpush1.bf16.msra.mxu1 %v11255_v58 }
 0x667   :  { %6210 = vmatprep.subr.bf16.mxu0 %v11256_v14  ;;  %6242 = vmatprep.subr.bf16.mxu1 %v11257_v18 }
 0x66a   :  { %6212 = vmatpush1.bf16.msra.mxu0 %v11258_v1  ;;  %6244 = vmatpush1.bf16.msra.mxu1 %v11259_v22 }
 0x66b   :  { %6214 = vmatprep.subr.bf16.mxu0 %v11260_v17  ;;  %6246 = vmatprep.subr.bf16.mxu1 %v11261_v0  ;;  %v11275_v0 = vlaneseq }
 0x66e   :  { %6216 = vmatpush1.bf16.msra.mxu0 %v11262_v32  ;;  %6248 = vmatpush1.bf16.msra.mxu1 %v11263_v2  ;;  %v9229_v32 = vand.u32 127, %v11275_v0 }
 0x66f   :  { %6218 = vmatprep.subr.bf16.mxu0 %v11218_v24  ;;  %6250 = vmatprep.subr.bf16.mxu1 %v11220_v49  ;;  %v11271_v24 = vld [vmem:[#allocation61_spill] sm:$0xff] }
 0x670   :  { %vm3317_vm0 = vcmp.lt.s32.totalorder %v9229_v32, 64 }
 0x671   :  { %v9244_v29 = vsel %vm3317_vm0, %v11277_v62, %v9184_v48  ;;  %v9251_v46 = vsel %vm3317_vm0, %v9138_v61, %v9092_v54 }
 0x672   :  { %6220 = vmatpush1.bf16.msra.mxu0 %v11223_v43  ;;  %6252 = vmatpush1.bf16.msra.mxu1 %v11224_v33 }
 0x673   :  { %6222 = vmatprep.subr.bf16.mxu0 %v11225_v28  ;;  %6254 = vmatprep.subr.bf16.mxu1 %v11227_v57 }
 0x676   :  { %6224 = vmatpush1.bf16.msra.mxu0 %v11228_v34  ;;  %6256 = vmatpush1.bf16.msra.mxu1 %v11229_v52 }
 0x677   :  { %6226 = vmatprep.subr.bf16.mxu0 %v11230_v6  ;;  %6258 = vmatprep.subr.bf16.mxu1 %v11231_v39 }
 0x67a   :  { %6228 = vmatpush1.bf16.msra.mxu0 %v11232_v44  ;;  %6260 = vmatpush1.bf16.msra.mxu1 %v11233_v21 }
 0x730   :  { %v3049_v49 = vpop.f32.mrb[12].mxu0  ;;  %v3120_v43 = vpop.f32.mrb[12].mxu1 }
 0x731   :  { %v3125_v33 = vadd.f32 %v3049_v49, %v11271_v24  ;;  %v3127_v28 = vadd.f32 %v3120_v43, %v11272_v60  ;;  %v3051_v30 = vpop.f32.mrb[13].mxu0  ;;  %v3122_v57 = vpop.f32.mrb[13].mxu1  ;;  %v11285_v49 = vld [vmem:[#allocation85_spill] sm:$0xff]  ;;  %v1111_v60 = vmul.f32 %v11287_v3, %v11278_v11 }
 0x732   :  { %v3126_v34 = vadd.f32 %v3051_v30, %v11273_v4  ;;  %v3128_v52 = vadd.f32 %v3122_v57, %v11274_v12  ;;  %v1563_v43 = vmul.f32 %v11205_v45, %v11285_v49  ;;  %v11286_v24 = vld [vmem:[#allocation81_spill] sm:$0xff]  ;;  %v1112_v57 = vmul.f32 %v11288_v10, %v11278_v11 }
 0x733   :  { %v3129_v15 = vmul.f32 0.5, %v3125_v33  ;;  %v1622_v33 = vmul.f32 %v11157_v41, %v11286_v24  ;;  %v1358_v45 = vmul.f32 %v11068_v19, %v11281_v59  ;;  %v11291_v41 = vld [vmem:[#allocation87_spill] sm:$0xff]  ;;  %v11297_v19 = vld [vmem:[#allocation53_spill] sm:$0xff]  ;;  %v1623_v55 = vmul.f32 %v11301_v23, %v11286_v24 }
 0x734   :  { %v3133_v6 = vmul.f32 0.5, %v3126_v34  ;;  %v3138_v39 = vmul.f32 0.5, %v3128_v52  ;;  %v11290_v34 = vld [vmem:[#allocation44_spill] sm:$0xff] }
 0x735   :  { %7251 = vtanh.f32 %v3129_v15  ;;  %v1190_v12 = vmul.f32 %v11290_v34, %v11279_v20  ;;  %v11308_v34 = vld [vmem:[#allocation66_spill] sm:$0xff] }
 0x736   :  { %7253 = vtanh.f32 %v3133_v6  ;;  %v1769_v6 = vmul.f32 %v8131_v51, %v11291_v41  ;;  %v11299_v51 = vld [vmem:[#allocation65_spill] sm:$0xff] }
 0x737   :  { %7255 = vtanh.f32 %v3127_v28  ;;  %v1389_v28 = vadd.f32 %v1357_v8, %v1163_v42  ;;  %v1770_v8 = vmul.f32 %v11302_v26, %v11291_v41  ;;  %v11303_v42 = vld [vmem:[#allocation74_spill] sm:$0xff]  ;;  %v11316_v26 = vld [vmem:[#allocation84_spill] sm:$0xff] }
 0x738   :  { %7257 = vtanh.f32 %v3138_v39  ;;  %v11292_v39 = vld [vmem:[#allocation63_spill] sm:$0xff]  ;;  %v1624_v50 = vmul.f32 %v11303_v42, %v11286_v24 }
 0x739   :  { %v1595_v52 = vadd.f32 %v1563_v43, %v1389_v28  ;;  %v11306_v28 = vld [vmem:[#allocation79_spill] sm:$0xff] }
 0x73f   :  { %v7252_v44 = vpop.eup %7251 }
 0x740   :  { %v7254_v21 = vpop.eup %7253  ;;  %v3131_v40 = vmul.f32 0.5, %v7252_v44  ;;  %v1359_v44 = vmul.f32 %v11292_v39, %v11281_v59 }
 0x741   :  { %v3135_v9 = vmul.f32 0.5, %v7254_v21  ;;  %v7256_v37 = vpop.eup %7255  ;;  %v11293_v21 = vld [vmem:[#allocation86_spill] sm:$0xff] }
 0x742   :  { %v3132_v16 = vadd.f32 0.5, %v3131_v40  ;;  %v7258_v22 = vpop.eup %7257  ;;  %v1828_v40 = vmul.f32 %v11239_v31, %v11293_v21 }
 0x743   :  { %v3136_v58 = vadd.f32 0.5, %v3135_v9  ;;  %v3140_v17 = vmul.f32 0.5, %v7258_v22  ;;  %v11294_v9 = vld [vmem:[#allocation49_spill] sm:$0xff]  ;;  %v1165_v22 = vadd.f32 %v11297_v19, %v1112_v57  ;;  %v11313_v19 = vld [vmem:[#allocation59_spill] sm:$0xff] }
 0x744   :  { %v3143_v14 = vmul.f32 %v7256_v37, %v3132_v16  ;;  %v1164_v16 = vadd.f32 %v11294_v9, %v1111_v60  ;;  %v11295_v37 = vld [vmem:[#allocation62_spill] sm:$0xff] }
 0x745   :  { %v3142_v18 = vmul.f32 %v3136_v58, %v9181_v63  ;;  %v3141_v2 = vadd.f32 0.5, %v3140_v17  ;;  %v1416_v63 = vmul.f32 %v11189_v47, %v11282_v35  ;;  %v11289_v47 = vld [vmem:[#allocation50_spill] sm:$0xff]  ;;  %v1417_v58 = vmul.f32 %v11295_v37, %v11282_v35 }
 0x746   :  { %v1191_v4 = vmul.f32 %v11289_v47, %v11279_v20  ;;  %v11298_v17 = vld [vmem:[#allocation54_spill] sm:$0xff]  ;;  %v1391_v38 = vadd.f32 %v1359_v44, %v1165_v22  ;;  %v11310_v44 = vld [vmem:[#allocation57_spill] sm:$0xff] }
 0x747   :  { %v9225_v1 = vadd.f32 %v3143_v14, %v3142_v18  ;;  %v1448_v30 = vadd.f32 %v1416_v63, %v1242_v5  ;;  %v11296_v14 = vld [vmem:[#allocation70_spill] sm:$0xff]  ;;  %v1801_v63 = vadd.f32 %v1769_v6, %v1595_v52  ;;  %v11304_v5 = vld [vmem:[#allocation55_spill] sm:$0xff] }
 0x748   :  { %v1564_v18 = vmul.f32 %v11296_v14, %v11285_v49  ;;  %v1244_v0 = vadd.f32 %v11298_v17, %v1191_v4  ;;  %v1113_v43 = vmul.f32 %v11304_v5, %v11278_v11  ;;  %v11307_v47 = vld [vmem:[#allocation58_spill] sm:$0xff]  ;;  %v11314_v17 = vld [vmem:[#allocation76_spill] sm:$0xff] }
 0x749   :  { %7259 = vtanh.f32 %v9225_v1  ;;  %v1654_v15 = vadd.f32 %v1622_v33, %v1448_v30  ;;  %v11305_v33 = vld [vmem:[#allocation80_spill] sm:$0xff]  ;;  %v1829_v30 = vmul.f32 %v11306_v28, %v11293_v21  ;;  %v1192_v4 = vmul.f32 %v11307_v47, %v11279_v20  ;;  %v11309_v52 = vld [vmem:[#allocation82_spill] sm:$0xff] }
 0x74a   :  { %v1830_v11 = vmul.f32 %v11309_v52, %v11293_v21  ;;  %v1166_v9 = vadd.f32 %v11310_v44, %v1113_v43 }
 0x74b   :  { %v1860_v10 = vadd.f32 %v1828_v40, %v1654_v15  ;;  %v11312_v15 = vld [vmem:[#allocation75_spill] sm:$0xff] }
 0x74c   :  { %v1566_v40 = vmul.f32 %v11312_v15, %v11285_v49 }
 0x753   :  { %v7260_v53 = vpop.eup %7259 }
 0x754   :  { %v3146_v25 = vmul.f32 %v7260_v53, %v3141_v2  ;;  %v1418_v2 = vmul.f32 %v11299_v51, %v11282_v35  ;;  %v1565_v53 = vmul.f32 %v11237_v7, %v11285_v49  ;;  %v1771_v7 = vmul.f32 %v11305_v33, %v11291_v41  ;;  %v11315_v51 = vld [vmem:[#allocation83_spill] sm:$0xff] }
 0x756   :  { %3214 = vmatmul.mubr.f32.vlgmr.msra.gmra.mrb[14].mxu0 %v3146_v25  ;;  %3285 = vmatmul.mubr.f32.vlgmr.msra.gmra.mrb[14].mxu1 %v3146_v25  ;;  %v9235_v13 = vsel %vm3317_vm0, %v11276_v27, %v3146_v25  ;;  %v9257_v56 = vsel %vm3317_vm0, %v3146_v25, %v11276_v27  ;;  %v11300_v25 = vld [vmem:[#allocation52_spill] sm:$0xff]  ;;  %v1390_v27 = vadd.f32 %v1358_v45, %v1164_v16  ;;  %v11311_v16 = vld [vmem:[#allocation67_spill] sm:$0xff] }
 0x757   :  { %3336 = vadd.xlane.f32.xlu0 %v9235_v13  ;;  %3603 = vmatprep.mubr.f32.mxu0 %v11249_v36  ;;  %v1243_v31 = vadd.f32 %v11300_v25, %v1190_v12  ;;  %v1450_v57 = vadd.f32 %v1418_v2, %v1244_v0  ;;  %v1360_v12 = vmul.f32 %v11308_v34, %v11281_v59 }
 0x758   :  { %3716 = vmatprep.mubr.f32.mxu1 %v11249_v36  ;;  %v1596_v60 = vadd.f32 %v1564_v18, %v1390_v27  ;;  %v1597_v45 = vadd.f32 %v1565_v53, %v1391_v38  ;;  %v1419_v37 = vmul.f32 %v11311_v16, %v11282_v35  ;;  %v1245_v59 = vadd.f32 %v11313_v19, %v1192_v4  ;;  %v3460_v19 = vld [vmem:[%s10636_s8 + $0x38] sm:$0xff] }
 0x759   :  { %v1449_v3 = vadd.f32 %v1417_v58, %v1243_v31  ;;  %v1920_v58 = vadd.f32 %v1860_v10, %v1801_v63  ;;  %v1656_v14 = vadd.f32 %v1624_v50, %v1450_v57  ;;  %v1392_v22 = vadd.f32 %v1360_v12, %v1166_v9  ;;  %v11317_v9 = vld [vmem:[#allocation96_spill] sm:$0xff] }
 0x75a   :  { %v1802_v39 = vadd.f32 %v1770_v8, %v1596_v60  ;;  %v1803_v20 = vadd.f32 %v1771_v7, %v1597_v45  ;;  %v1625_v0 = vmul.f32 %v11314_v17, %v11286_v24  ;;  %v1772_v2 = vmul.f32 %v11315_v51, %v11291_v41  ;;  %v3455_v17 = vld [vmem:[%s10636_s8 + $0x10] sm:$0xff]  ;;  %v3462_v51 = vld [vmem:[%s10636_s8 + $0x48] sm:$0xff] }
 0x75b   :  { %3338 = vadd.xlane.f32.xlu0 %v9244_v29  ;;  %v1655_v6 = vadd.f32 %v1623_v55, %v1449_v3  ;;  %v1862_v25 = vadd.f32 %v1830_v11, %v1656_v14  ;;  %v1451_v49 = vadd.f32 %v1419_v37, %v1245_v59  ;;  %v1598_v55 = vadd.f32 %v1566_v40, %v1392_v22 }
 0x75c   :  { %v1831_v8 = vmul.f32 %v11316_v26, %v11293_v21  ;;  %v9350_v40 = vsel %vm3317_vm0, %v9184_v48, %v11277_v62  ;;  %v3458_v48 = vld [vmem:[%s10636_s8 + $0x28] sm:$0xff] }
 0x75d   :  { %v1861_v18 = vadd.f32 %v1829_v30, %v1655_v6  ;;  %v1922_v50 = vadd.f32 %v1862_v25, %v1803_v20  ;;  %v1657_v5 = vadd.f32 %v1625_v0, %v1451_v49  ;;  %v1804_v24 = vadd.f32 %v1772_v2, %v1598_v55  ;;  %v3457_v20 = vld [vmem:[%s10636_s8 + $0x20] sm:$0xff]  ;;  %v3459_v0 = vld [vmem:[%s10636_s8 + $0x30] sm:$0xff]  ;;  %v3468_v49 = vld [vmem:[%s10636_s8 + $0x78] sm:$0xff] }
 0x75e   :  { %v6295_v2 = vpack.c.bf16 %v3459_v0, %v3455_v17  ;;  %v3461_v25 = vld [vmem:[%s10636_s8 + $0x40] sm:$0xff]  ;;  %v3463_v55 = vld [vmem:[%s10636_s8 + $0x50] sm:$0xff]  ;;  %v3484_v17 = vld [vmem:[%s10636_s8 + $0xf8] sm:$0xff] }
 0x75f   :  { %3342 = vadd.xlane.f32.xlu0 %v9251_v46  ;;  %v1921_v35 = vadd.f32 %v1861_v18, %v1802_v39  ;;  %v1863_v33 = vadd.f32 %v1831_v8, %v1657_v5  ;;  %v3456_v18 = vld [vmem:[%s10636_s8 + $0x18] sm:$0xff]  ;;  %v3467_v8 = vld [vmem:[%s10636_s8 + $0x70] sm:$0xff]  ;;  %v3469_v5 = vld [vmem:[%s10636_s8 + $0x80] sm:$0xff] }
 0x760   :  { %v6293_v22 = vpack.c.bf16 %v3460_v19, %v3456_v18  ;;  %v3482_v18 = vld [vmem:[%s10636_s8 + $0xe8] sm:$0xff] }
 0x761   :  { %v1923_v7 = vadd.f32 %v1863_v33, %v1804_v24  ;;  %v3473_v24 = vld [vmem:[%s10636_s8 + $0xa0] sm:$0xff]  ;;  %v3471_v33 = vld [vmem:[%s10636_s8 + $0x90] sm:$0xff] }
 0x762   :  { %6294 = vmatprep.subr.bf16.mxu1 %v6293_v22  ;;  %v3480_v22 = vld [vmem:[%s10636_s8 + $0xd8] sm:$0xff] }
 0x763   :  { %3346 = vadd.xlane.f32.xlu0 %v9257_v56  ;;  %6296 = vmatpush1.bf16.msra.mxu1 %v6295_v2  ;;  %v3479_v2 = vld [vmem:[%s10636_s8 + $0xd0] sm:$0xff] }
 0x7e4   :  { %v3337_v37 = vpop.xlane.xlu0 %3336 }
 0x7e5   :  { %v3352_v15 = vmul.f32 0.0078125, %v3337_v37 }
 0x829   :  { %v3215_v53 = vpop.f32.mrb[14].mxu0  ;;  %v3286_v31 = vpop.f32.mrb[14].mxu1 }
 0x82a   :  { %v3291_v27 = vadd.f32 %v3215_v53, %v1920_v58  ;;  %v3217_v23 = vpop.f32.mrb[15].mxu0  ;;  %v3288_v63 = vpop.f32.mrb[15].mxu1  ;;  %v3293_v41 = vadd.f32 %v3286_v31, %v1922_v50  ;;  %v9354_v58 = vsub.f32 %v9235_v13, %v3352_v15  ;;  %v3453_v13 = vld [vmem:[%s10636_s8] sm:$0xff]  ;;  %v3466_v53 = vld [vmem:[%s10636_s8 + $0x68] sm:$0xff] }
 0x82b   :  { %v3292_v38 = vadd.f32 %v3217_v23, %v1921_v35  ;;  %v3294_v3 = vadd.f32 %v3288_v63, %v1923_v7  ;;  %v6263_v59 = vpack.c.bf16 %v3457_v20, %v3453_v13  ;;  %v3465_v31 = vld [vmem:[%s10636_s8 + $0x60] sm:$0xff]  ;;  %v6265_v35 = vpack.c.bf16 %v3466_v53, %v3462_v51  ;;  %v3464_v23 = vld [vmem:[%s10636_s8 + $0x58] sm:$0xff]  ;;  %v3470_v63 = vld [vmem:[%s10636_s8 + $0x88] sm:$0xff] }
 0x82c   :  { %v3295_v42 = vmul.f32 0.5, %v3291_v27  ;;  %v6267_v27 = vpack.c.bf16 %v3465_v31, %v3461_v25  ;;  %v6297_v26 = vpack.c.bf16 %v3468_v49, %v3464_v23  ;;  %v3475_v7 = vld [vmem:[%s10636_s8 + $0xb0] sm:$0xff]  ;;  %v6305_v51 = vpack.c.bf16 %v3484_v17, %v3480_v22  ;;  %v3486_v31 = vld [vmem:[%s10636_s8 + $0x108] sm:$0xff]  ;;  %v3489_v49 = vld [vmem:[%s10636_s8 + $0x120] sm:$0xff] }
 0x82d   :  { %v3299_v43 = vmul.f32 0.5, %v3292_v38  ;;  %v3304_v60 = vmul.f32 0.5, %v3294_v3  ;;  %v3474_v38 = vld [vmem:[%s10636_s8 + $0xa8] sm:$0xff]  ;;  %v6271_v3 = vpack.c.bf16 %v3473_v24, %v3469_v5  ;;  %v3483_v53 = vld [vmem:[%s10636_s8 + $0xf0] sm:$0xff] }
 0x82e   :  { %7261 = vtanh.f32 %v3295_v42  ;;  %v6299_v42 = vpack.c.bf16 %v3467_v8, %v3463_v55  ;;  %v6269_v50 = vpack.c.bf16 %v3474_v38, %v3470_v63  ;;  %6298 = vmatprep.subr.bf16.mxu1 %v6297_v26  ;;  %v6307_v25 = vpack.c.bf16 %v3483_v53, %v3479_v2  ;;  %v3488_v55 = vld [vmem:[%s10636_s8 + $0x118] sm:$0xff]  ;;  %v3487_v38 = vld [vmem:[%s10636_s8 + $0x110] sm:$0xff]  ;;  %v3494_v5 = vld [vmem:[%s10636_s8 + $0x148] sm:$0xff] }
 0x82f   :  { %7263 = vtanh.f32 %v3299_v43  ;;  %v3472_v43 = vld [vmem:[%s10636_s8 + $0x98] sm:$0xff]  ;;  %v3498_v24 = vld [vmem:[%s10636_s8 + $0x168] sm:$0xff] }
 0x830   :  { %7265 = vtanh.f32 %v3293_v41  ;;  %v3476_v41 = vld [vmem:[%s10636_s8 + $0xb8] sm:$0xff]  ;;  %6300 = vmatpush1.bf16.msra.mxu1 %v6299_v42  ;;  %v3491_v42 = vld [vmem:[%s10636_s8 + $0x130] sm:$0xff]  ;;  %v3766_v22 = vld [vmem:[%s10637_s9 + $0x8] sm:$0xff] }
 0x831   :  { %7267 = vtanh.f32 %v3304_v60  ;;  %v6301_v60 = vpack.c.bf16 %v3476_v41, %v3472_v43  ;;  %v3492_v26 = vld [vmem:[%s10636_s8 + $0x138] sm:$0xff]  ;;  %v3493_v43 = vld [vmem:[%s10636_s8 + $0x140] sm:$0xff]  ;;  %v6281_v41 = vpack.c.bf16 %v3498_v24, %v3494_v5  ;;  %v3770_v17 = vld [vmem:[%s10637_s9 + $0x28] sm:$0xff] }
 0x832   :  { %v6309_v63 = vpack.c.bf16 %v3492_v26, %v3488_v55  ;;  %v3768_v2 = vld [vmem:[%s10637_s9 + $0x18] sm:$0xff] }
 0x833   :  { %6302 = vmatprep.subr.bf16.mxu1 %v6301_v60  ;;  %v3772_v53 = vld [vmem:[%s10637_s9 + $0x38] sm:$0xff] }
 0x838   :  { %v7262_v28 = vpop.eup %7261 }
 0x839   :  { %v7264_v30 = vpop.eup %7263  ;;  %v3297_v10 = vmul.f32 0.5, %v7262_v28  ;;  %v6303_v28 = vpack.c.bf16 %v3475_v7, %v3471_v33  ;;  %v3497_v33 = vld [vmem:[%s10636_s8 + $0x160] sm:$0xff]  ;;  %v3496_v7 = vld [vmem:[%s10636_s8 + $0x158] sm:$0xff] }
 0x83a   :  { %v3301_v57 = vmul.f32 0.5, %v7264_v30  ;;  %v7266_v47 = vpop.eup %7265  ;;  %v3339_v30 = vpop.xlane.xlu0 %3338  ;;  %v6283_v60 = vpack.c.bf16 %v3497_v33, %v3493_v43 }
 0x83b   :  { %v3298_v21 = vadd.f32 0.5, %v3297_v10  ;;  %v7268_v52 = vpop.eup %7267  ;;  %6304 = vmatpush1.bf16.msra.mxu1 %v6303_v28  ;;  %v3353_v10 = vmul.f32 0.0078125, %v3339_v30  ;;  %v3495_v30 = vld [vmem:[%s10636_s8 + $0x150] sm:$0xff] }
 0x83c   :  { %v3302_v4 = vadd.f32 0.5, %v3301_v57  ;;  %v3306_v11 = vmul.f32 0.5, %v7268_v52  ;;  %6306 = vmatprep.subr.bf16.mxu1 %v6305_v51  ;;  %v6325_v51 = vpack.c.bf16 %v3770_v17, %v3766_v22 }
 0x83d   :  { %v3309_v34 = vmul.f32 %v7266_v47, %v3298_v21 }
 0x83e   :  { %v3308_v12 = vmul.f32 %v3302_v4, %v9225_v1  ;;  %v3307_v6 = vadd.f32 0.5, %v3306_v11  ;;  %v9343_v1 = vsel %vm3317_vm0, %v9092_v54, %v9138_v61  ;;  %v3368_v54 = vmul.f32 %v9354_v58, %v9354_v58  ;;  %v3454_v61 = vld [vmem:[%s10636_s8 + $0x8] sm:$0xff]  ;;  %v3343_v57 = vpop.xlane.xlu0 %3342 }
 0x83f   :  { %v6261_v62 = vpack.c.bf16 %v3458_v48, %v3454_v61  ;;  %6308 = vmatpush1.bf16.msra.mxu1 %v6307_v25  ;;  %v6357_v25 = vpack.c.bf16 %v3772_v53, %v3768_v2 }
 0x840   :  { %v3310_v45 = vadd.f32 %v3309_v34, %v3308_v12  ;;  %v9440_v34 = vsub.f32 %v9244_v29, %v3353_v10  ;;  %6310 = vmatprep.subr.bf16.mxu1 %v6309_v63  ;;  %v3499_v10 = vld [vmem:[%s10636_s8 + $0x170] sm:$0xff] }
 0x841   :  { %6262 = vmatprep.subr.bf16.mxu0 %v6261_v62 }
 0x842   :  { %7269 = vtanh.f32 %v3310_v45  ;;  %6264 = vmatpush1.bf16.msra.mxu0 %v6263_v59  ;;  %v3355_v45 = vmul.f32 0.0078125, %v3343_v57  ;;  %v3481_v59 = vld [vmem:[%s10636_s8 + $0xe0] sm:$0xff]  ;;  %v6315_v57 = vpack.c.bf16 %v3499_v10, %v3495_v30 }
 0x843   :  { %6266 = vmatprep.subr.bf16.mxu0 %v6265_v35  ;;  %v3490_v35 = vld [vmem:[%s10636_s8 + $0x128] sm:$0xff] }
 0x844   :  { %v6277_v23 = vpack.c.bf16 %v3490_v35, %v3486_v31 }
 0x846   :  { %6268 = vmatpush1.bf16.msra.mxu0 %v6267_v27  ;;  %v3485_v27 = vld [vmem:[%s10636_s8 + $0x100] sm:$0xff] }
 0x847   :  { %6270 = vmatprep.subr.bf16.mxu0 %v6269_v50  ;;  %v6279_v8 = vpack.c.bf16 %v3489_v49, %v3485_v27  ;;  %v6311_v50 = vpack.c.bf16 %v3491_v42, %v3487_v38 }
 0x849   :  { %6312 = vmatpush1.bf16.msra.mxu1 %v6311_v50 }
 0x84a   :  { %6272 = vmatpush1.bf16.msra.mxu0 %v6271_v3  ;;  %v3500_v3 = vld [vmem:[%s10636_s8 + $0x178] sm:$0xff] }
 0x84b   :  { %v6313_v28 = vpack.c.bf16 %v3500_v3, %v3496_v7 }
 0x84c   :  { %v7270_v39 = vpop.eup %7269 }
 0x84d   :  { %v3312_v44 = vmul.f32 %v7270_v39, %v3307_v6  ;;  %v3347_v6 = vpop.xlane.xlu0 %3346  ;;  %6314 = vmatprep.subr.bf16.mxu1 %v6313_v28 }
 0x84e   :  { %v3357_v29 = vmul.f32 0.0078125, %v3347_v6  ;;  %6316 = vmatpush1.bf16.msra.mxu1 %v6315_v57  ;;  %v3508_v6 = vld [vmem:[%s10636_s8 + $0x1b8] sm:$0xff]  ;;  %v9607_v57 = vld [vmem:[%s10638_s6] ss:$0 sm:$0xff] }
 0x84f   :  { %v9336_v16 = vsel %vm3317_vm0, %v11317_v9, %v3312_v44  ;;  %v9359_v14 = vsel %vm3317_vm0, %v3312_v44, %v11317_v9  ;;  %v3369_v9 = vmul.f32 %v9440_v34, %v9440_v34 }
 0x850   :  { %3334 = vadd.xlane.f32.xlu1 %v9336_v16  ;;  %v9458_v61 = vsub.f32 %v9257_v56, %v3357_v29  ;;  %v3478_v56 = vld [vmem:[%s10636_s8 + $0xc8] sm:$0xff]  ;;  %v3503_v29 = vld [vmem:[%s10636_s8 + $0x190] sm:$0xff] }
 0x851   :  { %v6273_v19 = vpack.c.bf16 %v3482_v18, %v3478_v56  ;;  %v3512_v56 = vld [vmem:[%s10636_s8 + $0x1d8] sm:$0xff] }
 0x852   :  { %v3516_v18 = vld [vmem:[%s10636_s8 + $0x1f8] sm:$0xff] }
 0x853   :  { %6274 = vmatprep.subr.bf16.mxu0 %v6273_v19  ;;  %v6321_v19 = vpack.c.bf16 %v3516_v18, %v3512_v56 }
 0x854   :  { %3340 = vadd.xlane.f32.xlu1 %v9343_v1 }
 0x858   :  { %3344 = vadd.xlane.f32.xlu1 %v9350_v40 }
 0x85c   :  { %3348 = vadd.xlane.f32.xlu1 %v9359_v14 }
 0x860   :  { %3377 = vadd.xlane.f32.xlu1 %v3368_v54 }
 0x8dd   :  { %v3335_v21 = vpop.xlane.xlu1 %3334 }
 0x8de   :  { %v3351_v47 = vmul.f32 0.0078125, %v3335_v21  ;;  %v3502_v21 = vld [vmem:[%s10636_s8 + $0x188] sm:$0xff] }
 0x8e0   :  { %v9437_v4 = vsub.f32 %v9336_v16, %v3351_v47  ;;  %v9450_v16 = vsub.f32 %v9251_v46, %v3355_v45  ;;  %v3506_v47 = vld [vmem:[%s10636_s8 + $0x1a8] sm:$0xff] }
 0x8e1   :  { %v3341_v12 = vpop.xlane.xlu1 %3340  ;;  %v6285_v45 = vpack.c.bf16 %v3506_v47, %v3502_v21 }
 0x8e2   :  { %v3354_v52 = vmul.f32 0.0078125, %v3341_v12  ;;  %v3367_v11 = vmul.f32 %v9437_v4, %v9437_v4  ;;  %v3371_v13 = vmul.f32 %v9450_v16, %v9450_v16  ;;  %v3501_v12 = vld [vmem:[%s10636_s8 + $0x180] sm:$0xff] }
 0x8e4   :  { %v9445_v39 = vsub.f32 %v9343_v1, %v3354_v52  ;;  %3375 = vadd.xlane.f32.xlu0 %v3367_v11  ;;  %v3505_v52 = vld [vmem:[%s10636_s8 + $0x1a0] sm:$0xff]  ;;  %v3504_v11 = vld [vmem:[%s10636_s8 + $0x198] sm:$0xff] }
 0x8e5   :  { %v3345_v44 = vpop.xlane.xlu1 %3344 }
 0x8e6   :  { %v3356_v37 = vmul.f32 0.0078125, %v3345_v44  ;;  %v3370_v15 = vmul.f32 %v9445_v39, %v9445_v39  ;;  %v6287_v44 = vpack.c.bf16 %v3505_v52, %v3501_v12  ;;  %v3765_v12 = vld [vmem:[%s10637_s9] sm:$0xff]  ;;  %v3778_v52 = vld [vmem:[%s10637_s9 + $0x68] sm:$0xff] }
 0x8e8   :  { %v9455_v54 = vsub.f32 %v9350_v40, %v3356_v37  ;;  %3379 = vadd.xlane.f32.xlu0 %v3369_v9  ;;  %3381 = vadd.xlane.f32.xlu1 %v3370_v15  ;;  %v3373_v40 = vmul.f32 %v9458_v61, %v9458_v61  ;;  %v6317_v9 = vpack.c.bf16 %v3508_v6, %v3504_v11  ;;  %v3507_v37 = vld [vmem:[%s10636_s8 + $0x1b0] sm:$0xff]  ;;  %v3510_v15 = vld [vmem:[%s10636_s8 + $0x1c8] sm:$0xff] }
 0x8e9   :  { %v3349_v1 = vpop.xlane.xlu1 %3348  ;;  %v3767_v6 = vld [vmem:[%s10637_s9 + $0x10] sm:$0xff] }
 0x8ea   :  { %v3358_v48 = vmul.f32 0.0078125, %v3349_v1  ;;  %v3372_v46 = vmul.f32 %v9455_v54, %v9455_v54  ;;  %v6319_v1 = vpack.c.bf16 %v3507_v37, %v3503_v29  ;;  %6318 = vmatprep.subr.bf16.mxu1 %v6317_v9 }
 0x8ec   :  { %v9465_v62 = vsub.f32 %v9359_v14, %v3358_v48  ;;  %3383 = vadd.xlane.f32.xlu0 %v3371_v13  ;;  %3385 = vadd.xlane.f32.xlu1 %v3372_v46  ;;  %v3477_v14 = vld [vmem:[%s10636_s8 + $0xc0] sm:$0xff]  ;;  %v3514_v48 = vld [vmem:[%s10636_s8 + $0x1e8] sm:$0xff] }
 0x8ed   :  { %v6275_v0 = vpack.c.bf16 %v3481_v59, %v3477_v14  ;;  %v3509_v13 = vld [vmem:[%s10636_s8 + $0x1c0] sm:$0xff]  ;;  %v3511_v14 = vld [vmem:[%s10636_s8 + $0x1d0] sm:$0xff]  ;;  %6320 = vmatpush1.bf16.msra.mxu1 %v6319_v1  ;;  %v3378_v31 = vpop.xlane.xlu1 %3377 }
 0x8ee   :  { %v3374_v20 = vmul.f32 %v9465_v62, %v9465_v62  ;;  %v3513_v46 = vld [vmem:[%s10636_s8 + $0x1e0] sm:$0xff]  ;;  %v3515_v59 = vld [vmem:[%s10636_s8 + $0x1f0] sm:$0xff]  ;;  %6322 = vmatprep.subr.bf16.mxu1 %v6321_v19  ;;  %v3392_v35 = vmul.f32 0.0078125, %v3378_v31  ;;  %v3786_v19 = vld [vmem:[%s10637_s9 + $0xa8] sm:$0xff] }
 0x8ef   :  { %6276 = vmatpush1.bf16.msra.mxu0 %v6275_v0  ;;  %v6323_v0 = vpack.c.bf16 %v3515_v59, %v3511_v14  ;;  %v3782_v14 = vld [vmem:[%s10637_s9 + $0x88] sm:$0xff]  ;;  %v3776_v59 = vld [vmem:[%s10637_s9 + $0x58] sm:$0xff]  ;;  %v3775_v31 = vld [vmem:[%s10637_s9 + $0x50] sm:$0xff] }
 0x8f0   :  { %3387 = vadd.xlane.f32.xlu0 %v3373_v40  ;;  %3389 = vadd.xlane.f32.xlu1 %v3374_v20  ;;  %v6289_v40 = vpack.c.bf16 %v3514_v48, %v3510_v15  ;;  %v6291_v20 = vpack.c.bf16 %v3513_v46, %v3509_v13  ;;  %v3400_v27 = vadd.f32 1e-05, %v3392_v35  ;;  %v9633_v15 = vld [vmem:[%s10639_s7] ss:$0 sm:$0xff]  ;;  %v6333_v53 = vpack.c.bf16 %v3786_v19, %v3782_v14  ;;  %v3779_v35 = vld [vmem:[%s10637_s9 + $0x70] sm:$0xff] }
 0x8f1   :  { %6278 = vmatprep.subr.bf16.mxu0 %v6277_v23  ;;  %6324 = vmatpush1.bf16.msra.mxu1 %v6323_v0  ;;  %v3773_v46 = vld [vmem:[%s10637_s9 + $0x40] sm:$0xff]  ;;  %v3803_v14 = vld [vmem:[%s10637_s9 + $0x130] sm:$0xff] }
 0x8f2   :  { %6358 = vmatprep.subr.bf16.mxu1 %v6357_v25  ;;  %7271 = vrsqrt.f32 %v3400_v27  ;;  %v3785_v25 = vld [vmem:[%s10637_s9 + $0xa0] sm:$0xff] }
 0x8f3   :  { %6280 = vmatpush1.bf16.msra.mxu0 %v6279_v8  ;;  %v3805_v19 = vld [vmem:[%s10637_s9 + $0x140] sm:$0xff] }
 0x8f4   :  { %6282 = vmatprep.subr.bf16.mxu0 %v6281_v41 }
 0x8f7   :  { %6284 = vmatpush1.bf16.msra.mxu0 %v6283_v60 }
 0x8f8   :  { %6286 = vmatprep.subr.bf16.mxu0 %v6285_v45  ;;  %v3774_v45 = vld [vmem:[%s10637_s9 + $0x48] sm:$0xff] }
 0x8f9   :  { %v6329_v13 = vpack.c.bf16 %v3778_v52, %v3774_v45  ;;  %v3795_v52 = vld [vmem:[%s10637_s9 + $0xf0] sm:$0xff] }
 0x8fb   :  { %6288 = vmatpush1.bf16.msra.mxu0 %v6287_v44  ;;  %v3771_v44 = vld [vmem:[%s10637_s9 + $0x30] sm:$0xff] }
 0x8fc   :  { %6290 = vmatprep.subr.bf16.mxu0 %v6289_v40  ;;  %v7272_v41 = vpop.eup %7271  ;;  %v3777_v40 = vld [vmem:[%s10637_s9 + $0x60] sm:$0xff]  ;;  %v6359_v18 = vpack.c.bf16 %v3771_v44, %v3767_v6 }
 0x8fd   :  { %v3416_v60 = vmul.f32 %v7272_v41, %v9354_v58  ;;  %v3769_v58 = vld [vmem:[%s10637_s9 + $0x20] sm:$0xff]  ;;  %v6331_v0 = vpack.c.bf16 %v3777_v40, %v3773_v46 }
 0x8fe   :  { %v6327_v1 = vpack.c.bf16 %v3769_v58, %v3765_v12  ;;  %v3793_v41 = vld [vmem:[%s10637_s9 + $0xe0] sm:$0xff]  ;;  %v3791_v12 = vld [vmem:[%s10637_s9 + $0xd0] sm:$0xff] }
 0x8ff   :  { %6292 = vmatpush1.bf16.msra.mxu0 %v6291_v20  ;;  %v6371_v46 = vpack.c.bf16 %v3795_v52, %v3791_v12  ;;  %v4114_v12 = vld [vmem:[%s10640_s12 + $0x28] sm:$0xff] }
 0x900   :  { %6326 = vmatprep.subr.bf16.mxu0 %v6325_v51  ;;  %v3781_v51 = vld [vmem:[%s10637_s9 + $0x80] sm:$0xff] }
 0x971   :  { %v3376_v23 = vpop.xlane.xlu0 %3375 }
 0x972   :  { %v3391_v49 = vmul.f32 0.0078125, %v3376_v23 }
 0x974   :  { %v3399_v55 = vadd.f32 1e-05, %v3391_v49 }
 0x975   :  { %v3380_v26 = vpop.xlane.xlu0 %3379  ;;  %v3382_v8 = vpop.xlane.xlu1 %3381 }
 0x976   :  { %7273 = vrsqrt.f32 %v3399_v55  ;;  %v3393_v63 = vmul.f32 0.0078125, %v3380_v26  ;;  %v3394_v38 = vmul.f32 0.0078125, %v3382_v8  ;;  %v3784_v55 = vld [vmem:[%s10637_s9 + $0x98] sm:$0xff]  ;;  %v3790_v8 = vld [vmem:[%s10637_s9 + $0xc8] sm:$0xff] }
 0x977   :  { %v3788_v26 = vld [vmem:[%s10637_s9 + $0xb8] sm:$0xff] }
 0x978   :  { %v3401_v42 = vadd.f32 1e-05, %v3393_v63  ;;  %v3402_v50 = vadd.f32 1e-05, %v3394_v38  ;;  %v6335_v63 = vpack.c.bf16 %v3785_v25, %v3781_v51  ;;  %v6363_v38 = vpack.c.bf16 %v3779_v35, %v3775_v31  ;;  %v3818_v25 = vld [vmem:[%s10637_s9 + $0x1a8] sm:$0xff] }
 0x979   :  { %v3384_v5 = vpop.xlane.xlu0 %3383  ;;  %v3386_v24 = vpop.xlane.xlu1 %3385 }
 0x97a   :  { %7275 = vrsqrt.f32 %v3401_v42  ;;  %v3395_v43 = vmul.f32 0.0078125, %v3384_v5  ;;  %v3396_v7 = vmul.f32 0.0078125, %v3386_v24  ;;  %v3783_v42 = vld [vmem:[%s10637_s9 + $0x90] sm:$0xff] }
 0x97b   :  { %7277 = vrsqrt.f32 %v3402_v50  ;;  %v3787_v24 = vld [vmem:[%s10637_s9 + $0xb0] sm:$0xff] }
 0x97c   :  { %v3403_v33 = vadd.f32 1e-05, %v3395_v43  ;;  %v3404_v30 = vadd.f32 1e-05, %v3396_v7  ;;  %v3789_v43 = vld [vmem:[%s10637_s9 + $0xc0] sm:$0xff] }
 0x97d   :  { %v3388_v3 = vpop.xlane.xlu0 %3387  ;;  %v3390_v21 = vpop.xlane.xlu1 %3389 }
 0x97e   :  { %7279 = vrsqrt.f32 %v3403_v33  ;;  %v3397_v10 = vmul.f32 0.0078125, %v3388_v3  ;;  %v3398_v37 = vmul.f32 0.0078125, %v3390_v21  ;;  %v6365_v3 = vpack.c.bf16 %v3788_v26, %v3784_v55  ;;  %v3811_v55 = vld [vmem:[%s10637_s9 + $0x170] sm:$0xff] }
 0x97f   :  { %7281 = vrsqrt.f32 %v3404_v30  ;;  %v3796_v30 = vld [vmem:[%s10637_s9 + $0xf8] sm:$0xff]  ;;  %v6367_v21 = vpack.c.bf16 %v3787_v24, %v3783_v42  ;;  %v3826_v24 = vld [vmem:[%s10637_s9 + $0x1e8] sm:$0xff] }
 0x980   :  { %v7274_v28 = vpop.eup %7273  ;;  %v3405_v29 = vadd.f32 1e-05, %v3397_v10  ;;  %v3406_v22 = vadd.f32 1e-05, %v3398_v37  ;;  %v3802_v10 = vld [vmem:[%s10637_s9 + $0x128] sm:$0xff]  ;;  %v3800_v37 = vld [vmem:[%s10637_s9 + $0x118] sm:$0xff] }
 0x981   :  { %v3415_v47 = vmul.f32 %v7274_v28, %v9437_v4  ;;  %v3431_v4 = vmul.f32 %v9607_v57, %v3416_v60  ;;  %v3792_v28 = vld [vmem:[%s10637_s9 + $0xd8] sm:$0xff] }
 0x982   :  { %7283 = vrsqrt.f32 %v3405_v29  ;;  %v3816_v42 = vld [vmem:[%s10637_s9 + $0x198] sm:$0xff] }
 0x983   :  { %v3430_v11 = vmul.f32 %v9607_v57, %v3415_v47  ;;  %v9661_v17 = vadd.f32 %v9633_v15, %v3431_v4  ;;  %7285 = vrsqrt.f32 %v3406_v22  ;;  %v6339_v47 = vpack.c.bf16 %v3793_v41, %v3789_v43  ;;  %v3801_v4 = vld [vmem:[%s10637_s9 + $0x120] sm:$0xff] }
 0x984   :  { %v7276_v9 = vpop.eup %7275 }
 0x985   :  { %v9636_v48 = vadd.f32 %v9633_v15, %v3430_v11  ;;  %v3417_v20 = vmul.f32 %v7276_v9, %v9440_v34  ;;  %v7278_v56 = vpop.eup %7277  ;;  %v3780_v34 = vld [vmem:[%s10637_s9 + $0x78] sm:$0xff]  ;;  %v3797_v11 = vld [vmem:[%s10637_s9 + $0x100] sm:$0xff]  ;;  %v6369_v9 = vpack.c.bf16 %v3796_v30, %v3792_v28 }
 0x986   :  { %v3418_v27 = vmul.f32 %v7278_v56, %v9445_v39  ;;  %v6361_v49 = vpack.c.bf16 %v3780_v34, %v3776_v59  ;;  %v3794_v39 = vld [vmem:[%s10637_s9 + $0xe8] sm:$0xff]  ;;  %v6343_v40 = vpack.c.bf16 %v3801_v4, %v3797_v11  ;;  %v3809_v59 = vld [vmem:[%s10637_s9 + $0x160] sm:$0xff] }
 0x987   :  { %3604 = vmatmul.mubr.f32.vlgmr.msra.gmra.mrb[16].mxu0 %v9636_v48  ;;  %3717 = vmatmul.mubr.f32.vlgmr.msra.gmra.mrb[16].mxu1 %v9636_v48  ;;  %v3432_v2 = vmul.f32 %v9607_v57, %v3417_v20  ;;  %v6337_v60 = vpack.c.bf16 %v3794_v39, %v3790_v8  ;;  %v3799_v20 = vld [vmem:[%s10637_s9 + $0x110] sm:$0xff]  ;;  %v6347_v35 = vpack.c.bf16 %v3809_v59, %v3805_v19  ;;  %v3821_v28 = vld [vmem:[%s10637_s9 + $0x1c0] sm:$0xff] }
 0x988   :  { %6328 = vmatpush1.bf16.msra.mxu0 %v6327_v1  ;;  %3609 = vmatprep.mubr.f32.mxu0 %v11249_v36  ;;  %v7280_v23 = vpop.eup %7279  ;;  %v3433_v5 = vmul.f32 %v9607_v57, %v3418_v27  ;;  %v3804_v1 = vld [vmem:[%s10637_s9 + $0x138] sm:$0xff]  ;;  %v6375_v31 = vpack.c.bf16 %v3803_v14, %v3799_v20  ;;  %v4111_v20 = vld [vmem:[%s10640_s12 + $0x10] sm:$0xff]  ;;  %v4117_v59 = vld [vmem:[%s10640_s12 + $0x40] sm:$0xff] }
 0x989   :  { %3722 = vmatprep.mubr.f32.mxu1 %v11249_v36  ;;  %6330 = vmatprep.subr.bf16.mxu0 %v6329_v13  ;;  %v9698_v50 = vadd.f32 %v9633_v15, %v3432_v2  ;;  %v3419_v33 = vmul.f32 %v7280_v23, %v9450_v16  ;;  %v7282_v7 = vpop.eup %7281  ;;  %v3798_v16 = vld [vmem:[%s10637_s9 + $0x108] sm:$0xff]  ;;  %v3808_v2 = vld [vmem:[%s10637_s9 + $0x158] sm:$0xff] }
 0x98a   :  { %6360 = vmatpush1.bf16.msra.mxu1 %v6359_v18  ;;  %v9731_v58 = vadd.f32 %v9633_v15, %v3433_v5  ;;  %v3420_v6 = vmul.f32 %v7282_v7, %v9455_v54  ;;  %v6341_v29 = vpack.c.bf16 %v3802_v10, %v3798_v16  ;;  %v3806_v54 = vld [vmem:[%s10637_s9 + $0x148] sm:$0xff]  ;;  %v3824_v10 = vld [vmem:[%s10637_s9 + $0x1d8] sm:$0xff] }
 0x98b   :  { %3610 = vmatmul.mubr.f32.gmra.mrb[18].mxu0 %v9661_v17  ;;  %3723 = vmatmul.mubr.f32.gmra.mrb[18].mxu1 %v9661_v17  ;;  %v3434_v45 = vmul.f32 %v9607_v57, %v3419_v33  ;;  %v3810_v13 = vld [vmem:[%s10637_s9 + $0x168] sm:$0xff] }
 0x98c   :  { %6332 = vmatpush1.bf16.msra.mxu0 %v6331_v0  ;;  %3615 = vmatprep.mubr.f32.mxu0 %v11249_v36  ;;  %v7284_v44 = vpop.eup %7283  ;;  %v3435_v18 = vmul.f32 %v9607_v57, %v3420_v6  ;;  %v6373_v0 = vpack.c.bf16 %v3804_v1, %v3800_v37  ;;  %v6345_v51 = vpack.c.bf16 %v3810_v13, %v3806_v54  ;;  %v3822_v5 = vld [vmem:[%s10637_s9 + $0x1c8] sm:$0xff]  ;;  %v3823_v6 = vld [vmem:[%s10637_s9 + $0x1d0] sm:$0xff]  ;;  %v4109_v1 = vld [vmem:[%s10640_s12] sm:$0xff] }
 0x98d   :  { %3728 = vmatprep.mubr.f32.mxu1 %v11249_v36  ;;  %6334 = vmatprep.subr.bf16.mxu0 %v6333_v53  ;;  %v9764_v56 = vadd.f32 %v9633_v15, %v3434_v45  ;;  %v3421_v34 = vmul.f32 %v7284_v44, %v9458_v61  ;;  %v7286_v22 = vpop.eup %7285  ;;  %v3812_v53 = vld [vmem:[%s10637_s9 + $0x178] sm:$0xff]  ;;  %v3814_v61 = vld [vmem:[%s10637_s9 + $0x188] sm:$0xff]  ;;  %v6353_v16 = vpack.c.bf16 %v3826_v24, %v3822_v5  ;;  %v3827_v44 = vld [vmem:[%s10637_s9 + $0x1f0] sm:$0xff] }
 0x98e   :  { %6362 = vmatprep.subr.bf16.mxu1 %v6361_v49  ;;  %v9794_v27 = vadd.f32 %v9633_v15, %v3435_v18  ;;  %v3807_v49 = vld [vmem:[%s10637_s9 + $0x150] sm:$0xff]  ;;  %v3422_v26 = vmul.f32 %v7286_v22, %v9465_v62  ;;  %v6377_v8 = vpack.c.bf16 %v3812_v53, %v3808_v2  ;;  %v6349_v39 = vpack.c.bf16 %v3818_v25, %v3814_v61  ;;  %v3820_v62 = vld [vmem:[%s10637_s9 + $0x1b8] sm:$0xff]  ;;  %v4113_v54 = vld [vmem:[%s10640_s12 + $0x20] sm:$0xff] }
 0x98f   :  { %3616 = vmatmul.mubr.f32.gmra.mrb[20].mxu0 %v9698_v50  ;;  %3729 = vmatmul.mubr.f32.gmra.mrb[20].mxu1 %v9698_v50  ;;  %v3436_v23 = vmul.f32 %v9607_v57, %v3421_v34  ;;  %v6379_v43 = vpack.c.bf16 %v3811_v55, %v3807_v49  ;;  %v6381_v30 = vpack.c.bf16 %v3820_v62, %v3816_v42  ;;  %v4115_v18 = vld [vmem:[%s10640_s12 + $0x30] sm:$0xff]  ;;  %v4121_v34 = vld [vmem:[%s10640_s12 + $0x60] sm:$0xff]  ;;  %v4120_v2 = vld [vmem:[%s10640_s12 + $0x58] sm:$0xff] }
 0x990   :  { %6336 = vmatpush1.bf16.msra.mxu0 %v6335_v63  ;;  %6364 = vmatpush1.bf16.msra.mxu1 %v6363_v38  ;;  %v3813_v63 = vld [vmem:[%s10637_s9 + $0x180] sm:$0xff]  ;;  %v3437_v7 = vmul.f32 %v9607_v57, %v3422_v26  ;;  %v6387_v37 = vpack.c.bf16 %v3827_v44, %v3823_v6  ;;  %v9900_v14 = vpack.c.bf16 %v4113_v54, %v4109_v1  ;;  %v4124_v53 = vld [vmem:[%s10640_s12 + $0x78] sm:$0xff]  ;;  %v4131_v42 = vld [vmem:[%s10640_s12 + $0xb0] sm:$0xff] }
 0x991   :  { %3621 = vmatprep.mubr.f32.mxu0 %v11249_v36  ;;  %3734 = vmatprep.mubr.f32.mxu1 %v11249_v36  ;;  %v3817_v38 = vld [vmem:[%s10637_s9 + $0x1a0] sm:$0xff]  ;;  %v9827_v41 = vadd.f32 %v9633_v15, %v3436_v23  ;;  %v9911_v22 = vpack.c.bf16 %v4115_v18, %v4111_v20  ;;  %v9929_v61 = vpack.c.bf16 %v4121_v34, %v4117_v59  ;;  %v4123_v23 = vld [vmem:[%s10640_s12 + $0x70] sm:$0xff]  ;;  %v4128_v55 = vld [vmem:[%s10640_s12 + $0x98] sm:$0xff] }
 0x992   :  { %6366 = vmatprep.subr.bf16.mxu1 %v6365_v3  ;;  %6338 = vmatprep.subr.bf16.mxu0 %v6337_v60  ;;  %v6351_v33 = vpack.c.bf16 %v3817_v38, %v3813_v63  ;;  %v3815_v3 = vld [vmem:[%s10637_s9 + $0x190] sm:$0xff]  ;;  %v3825_v57 = vld [vmem:[%s10637_s9 + $0x1e0] sm:$0xff]  ;;  %v9859_v52 = vadd.f32 %v9633_v15, %v3437_v7  ;;  %v4116_v15 = vld [vmem:[%s10640_s12 + $0x38] sm:$0xff]  ;;  %v9948_v49 = vpack.c.bf16 %v4124_v53, %v4120_v2 }
 0x993   :  { %3622 = vmatmul.mubr.f32.gmra.mrb[22].mxu0 %v9731_v58  ;;  %3735 = vmatmul.mubr.f32.gmra.mrb[22].mxu1 %v9731_v58  ;;  %v3819_v60 = vld [vmem:[%s10637_s9 + $0x1b0] sm:$0xff]  ;;  %v6355_v11 = vpack.c.bf16 %v3825_v57, %v3821_v28  ;;  %v4125_v25 = vld [vmem:[%s10640_s12 + $0x80] sm:$0xff]  ;;  %v4132_v26 = vld [vmem:[%s10640_s12 + $0xb8] sm:$0xff] }
 0x994   :  { %6368 = vmatpush1.bf16.msra.mxu1 %v6367_v21  ;;  %6340 = vmatpush1.bf16.msra.mxu0 %v6339_v47  ;;  %v3828_v21 = vld [vmem:[%s10637_s9 + $0x1f8] sm:$0xff]  ;;  %v4110_v47 = vld [vmem:[%s10640_s12 + $0x8] sm:$0xff]  ;;  %v6383_v45 = vpack.c.bf16 %v3819_v60, %v3815_v3  ;;  %v4133_v62 = vld [vmem:[%s10640_s12 + $0xc0] sm:$0xff]  ;;  %v9985_v24 = vpack.c.bf16 %v4132_v26, %v4128_v55 }
 0x995   :  { %3627 = vmatprep.mubr.f32.mxu0 %v11249_v36  ;;  %3740 = vmatprep.mubr.f32.mxu1 %v11249_v36  ;;  %v6385_v4 = vpack.c.bf16 %v3828_v21, %v3824_v10  ;;  %v4137_v5 = vld [vmem:[%s10640_s12 + $0xe0] sm:$0xff]  ;;  %v4140_v7 = vld [vmem:[%s10640_s12 + $0xf8] sm:$0xff]  ;;  %v4142_v3 = vld [vmem:[%s10640_s12 + $0x108] sm:$0xff] }
 0x996   :  { %6370 = vmatprep.subr.bf16.mxu1 %v6369_v9  ;;  %6342 = vmatprep.subr.bf16.mxu0 %v6341_v29  ;;  %v9867_v9 = vpack.c.bf16 %v4114_v12, %v4110_v47  ;;  %v4112_v29 = vld [vmem:[%s10640_s12 + $0x18] sm:$0xff]  ;;  %v4146_v60 = vld [vmem:[%s10640_s12 + $0x128] sm:$0xff]  ;;  %v4141_v57 = vld [vmem:[%s10640_s12 + $0x100] sm:$0xff] }
 0x997   :  { %3628 = vmatmul.mubr.f32.gmra.mrb[24].mxu0 %v9764_v56  ;;  %3741 = vmatmul.mubr.f32.gmra.mrb[24].mxu1 %v9764_v56  ;;  %v9884_v13 = vpack.c.bf16 %v4116_v15, %v4112_v29  ;;  %v4145_v10 = vld [vmem:[%s10640_s12 + $0x120] sm:$0xff]  ;;  %v10027_v47 = vpack.c.bf16 %v4146_v60, %v4142_v3  ;;  %v4144_v12 = vld [vmem:[%s10640_s12 + $0x118] sm:$0xff]  ;;  %v4147_v29 = vld [vmem:[%s10640_s12 + $0x130] sm:$0xff] }
 0x998   :  { %6372 = vmatpush1.bf16.msra.mxu1 %v6371_v46  ;;  %6344 = vmatpush1.bf16.msra.mxu0 %v6343_v40  ;;  %v4118_v46 = vld [vmem:[%s10640_s12 + $0x48] sm:$0xff]  ;;  %v10047_v44 = vpack.c.bf16 %v4145_v10, %v4141_v57  ;;  %v4149_v1 = vld [vmem:[%s10640_s12 + $0x140] sm:$0xff]  ;;  %v4151_v34 = vld [vmem:[%s10640_s12 + $0x150] sm:$0xff] }
 0x999   :  { %3633 = vmatprep.mubr.f32.mxu0 %v11249_v36  ;;  %3746 = vmatprep.mubr.f32.mxu1 %v11249_v36  ;;  %v4122_v40 = vld [vmem:[%s10640_s12 + $0x68] sm:$0xff]  ;;  %v4153_v54 = vld [vmem:[%s10640_s12 + $0x160] sm:$0xff] }
 0x99a   :  { %6374 = vmatprep.subr.bf16.mxu1 %v6373_v0  ;;  %6346 = vmatprep.subr.bf16.mxu0 %v6345_v51  ;;  %v9902_v19 = vpack.c.bf16 %v4122_v40, %v4118_v46  ;;  %v4126_v0 = vld [vmem:[%s10640_s12 + $0x88] sm:$0xff]  ;;  %v4152_v46 = vld [vmem:[%s10640_s12 + $0x158] sm:$0xff]  ;;  %v4157_v53 = vld [vmem:[%s10640_s12 + $0x180] sm:$0xff] }
 0x99b   :  { %3634 = vmatmul.mubr.f32.gmra.mrb[26].mxu0 %v9794_v27  ;;  %3747 = vmatmul.mubr.f32.gmra.mrb[26].mxu1 %v9794_v27  ;;  %v4130_v51 = vld [vmem:[%s10640_s12 + $0xa8] sm:$0xff]  ;;  %v4156_v40 = vld [vmem:[%s10640_s12 + $0x178] sm:$0xff]  ;;  %v3829_v10 = vld [vmem:[%s10642_s11] sm:$0xf] }
 0x99c   :  { %6376 = vmatpush1.bf16.msra.mxu1 %v6375_v31  ;;  %3639 = vmatprep.mubr.f32.mxu0 %v11249_v36  ;;  %v4129_v31 = vld [vmem:[%s10640_s12 + $0xa0] sm:$0xff]  ;;  %v4158_v20 = vld [vmem:[%s10640_s12 + $0x188] sm:$0xff] }
 0x99d   :  { %3752 = vmatprep.mubr.f32.mxu1 %v11249_v36  ;;  %6348 = vmatpush1.bf16.msra.mxu0 %v6347_v35  ;;  %v4119_v35 = vld [vmem:[%s10640_s12 + $0x50] sm:$0xff]  ;;  %v9966_v63 = vpack.c.bf16 %v4129_v31, %v4125_v25  ;;  %v4162_v18 = vld [vmem:[%s10640_s12 + $0x1a8] sm:$0xff]  ;;  %v4161_v25 = vld [vmem:[%s10640_s12 + $0x1a0] sm:$0xff] }
 0x99e   :  { %6378 = vmatprep.subr.bf16.mxu1 %v6377_v8  ;;  %6350 = vmatprep.subr.bf16.mxu0 %v6349_v39  ;;  %v4134_v8 = vld [vmem:[%s10640_s12 + $0xc8] sm:$0xff]  ;;  %v9968_v38 = vpack.c.bf16 %v4123_v23, %v4119_v35  ;;  %v10101_v2 = vpack.c.bf16 %v4162_v18, %v4158_v20  ;;  %v4160_v31 = vld [vmem:[%s10640_s12 + $0x198] sm:$0xff] }
 0x99f   :  { %3640 = vmatmul.mubr.f32.gmra.mrb[28].mxu0 %v9827_v41  ;;  %3753 = vmatmul.mubr.f32.gmra.mrb[28].mxu1 %v9827_v41  ;;  %v4138_v39 = vld [vmem:[%s10640_s12 + $0xe8] sm:$0xff]  ;;  %v4164_v35 = vld [vmem:[%s10640_s12 + $0x1b8] sm:$0xff] }
 0x9a0   :  { %6380 = vmatpush1.bf16.msra.mxu1 %v6379_v43  ;;  %3645 = vmatprep.mubr.f32.mxu0 %v11249_v36  ;;  %v9987_v43 = vpack.c.bf16 %v4138_v39, %v4134_v8  ;;  %v4166_v23 = vld [vmem:[%s10640_s12 + $0x1c8] sm:$0xff]  ;;  %v4159_v8 = vld [vmem:[%s10640_s12 + $0x190] sm:$0xff] }
 0x9a1   :  { %3758 = vmatprep.mubr.f32.mxu1 %v11249_v36  ;;  %6352 = vmatpush1.bf16.msra.mxu0 %v6351_v33  ;;  %v4136_v33 = vld [vmem:[%s10640_s12 + $0xd8] sm:$0xff]  ;;  %v4170_v55 = vld [vmem:[%s10640_s12 + $0x1e8] sm:$0xff]  ;;  %v4163_v39 = vld [vmem:[%s10640_s12 + $0x1b0] sm:$0xff] }
 0x9a2   :  { %6382 = vmatprep.subr.bf16.mxu1 %v6381_v30  ;;  %6354 = vmatprep.subr.bf16.mxu0 %v6353_v16  ;;  %v10007_v30 = vpack.c.bf16 %v4137_v5, %v4133_v62  ;;  %v4139_v16 = vld [vmem:[%s10640_s12 + $0xf0] sm:$0xff]  ;;  %v10025_v21 = vpack.c.bf16 %v4140_v7, %v4136_v33  ;;  %v10144_v62 = vpack.c.bf16 %v4170_v55, %v4166_v23  ;;  %v4169_v5 = vld [vmem:[%s10640_s12 + $0x1e0] sm:$0xff]  ;;  %v4168_v33 = vld [vmem:[%s10640_s12 + $0x1d8] sm:$0xff] }
 0x9a3   :  { %3646 = vmatmul.mubr.f32.gmra.mrb[30].mxu0 %v9859_v52  ;;  %3759 = vmatmul.mubr.f32.gmra.mrb[30].mxu1 %v9859_v52  ;;  %v4172_v7 = vld [vmem:[%s10640_s12 + $0x1f8] sm:$0xff]  ;;  %v10159_v3 = vpack.c.bf16 %v4163_v39, %v4159_v8 }
 0x9a4   :  { %6384 = vmatpush1.bf16.msra.mxu1 %v6383_v45  ;;  %3915 = vmatprep.mubr.f32.mxu0 %v11249_v36  ;;  %v4148_v45 = vld [vmem:[%s10640_s12 + $0x138] sm:$0xff] }
 0x9a5   :  { %6356 = vmatpush1.bf16.msra.mxu0 %v6355_v11  ;;  %6386 = vmatprep.subr.bf16.mxu1 %v6385_v4  ;;  %v4150_v11 = vld [vmem:[%s10640_s12 + $0x148] sm:$0xff]  ;;  %v10059_v15 = vpack.c.bf16 %v4148_v45, %v4144_v12 }
 0x9a6   :  { %4028 = vmatprep.mubr.f32.mxu1 %v11249_v36  ;;  %6390 = vmatprep.subr.bf16.mxu0 %v9867_v9  ;;  %v4154_v4 = vld [vmem:[%s10640_s12 + $0x168] sm:$0xff] }
 0x9a7   :  { %v11318_v12 = vld [vmem:[#allocation37_spill] sm:$0xff] }
 0x9a8   :  { %6388 = vmatpush1.bf16.msra.mxu1 %v6387_v37  ;;  %v10061_v37 = vpack.c.bf16 %v4154_v4, %v4150_v11  ;;  %v3834_v11 = vrot.slane %v3829_v10, %v11318_v12  ;;  %v11319_v4 = vld [vmem:[#allocation38_spill] sm:$0xff] }
 0x9a9   :  { %6422 = vmatprep.subr.bf16.mxu1 %v9884_v13 }
 0x9ab   :  { %3916 = vmatmul.mubr.f32.vlgmr.msra.gmra.mrb[30].mxu0 %v9636_v48  ;;  %4029 = vmatmul.mubr.f32.vlgmr.msra.gmra.mrb[30].mxu1 %v9636_v48  ;;  %v9936_v48 = vpack.c.bf16 %v4130_v51, %v4126_v0  ;;  %v4155_v0 = vld [vmem:[%s10640_s12 + $0x170] sm:$0xff]  ;;  %v10099_v51 = vpack.c.bf16 %v4156_v40, %v4152_v46 }
 0x9ac   :  { %6392 = vmatpush1.bf16.msra.mxu0 %v9900_v14  ;;  %3921 = vmatprep.mubr.f32.mxu0 %v11249_v36  ;;  %v10125_v26 = vpack.c.bf16 %v4155_v0, %v4151_v34 }
 0x9ad   :  { %4034 = vmatprep.mubr.f32.mxu1 %v11249_v36  ;;  %6394 = vmatprep.subr.bf16.mxu0 %v9902_v19 }
 0x9ae   :  { %6424 = vmatpush1.bf16.msra.mxu1 %v9911_v22 }
 0x9af   :  { %3922 = vmatmul.mubr.f32.gmra.mrb[28].mxu0 %v9661_v17  ;;  %4035 = vmatmul.mubr.f32.gmra.mrb[28].mxu1 %v9661_v17  ;;  %v4127_v17 = vld [vmem:[%s10640_s12 + $0x90] sm:$0xff] }
 0x9b0   :  { %6396 = vmatpush1.bf16.msra.mxu0 %v9929_v61  ;;  %3927 = vmatprep.mubr.f32.mxu0 %v11249_v36  ;;  %v10005_v28 = vpack.c.bf16 %v4131_v42, %v4127_v17  ;;  %v4165_v17 = vld [vmem:[%s10640_s12 + $0x1c0] sm:$0xff]  ;;  %v10142_v42 = vpack.c.bf16 %v4164_v35, %v4160_v31 }
 0x9b1   :  { %4040 = vmatprep.mubr.f32.mxu1 %v11249_v36  ;;  %6398 = vmatprep.subr.bf16.mxu0 %v9936_v48  ;;  %v10163_v60 = vpack.c.bf16 %v4169_v5, %v4165_v17  ;;  %v11321_v31 = vld [vmem:[#allocation40_spill] sm:$0xff] }
 0x9b2   :  { %6426 = vmatprep.subr.bf16.mxu1 %v9948_v49  ;;  %v3846_v23 = vrot.slane %v3829_v10, %v11321_v31 }
 0x9b3   :  { %3928 = vmatmul.mubr.f32.gmra.mrb[26].mxu0 %v9698_v50  ;;  %4041 = vmatmul.mubr.f32.gmra.mrb[26].mxu1 %v9698_v50  ;;  %v4135_v50 = vld [vmem:[%s10640_s12 + $0xd0] sm:$0xff] }
 0x9b4   :  { %6400 = vmatpush1.bf16.msra.mxu0 %v9966_v63  ;;  %6428 = vmatpush1.bf16.msra.mxu1 %v9968_v38  ;;  %v10045_v6 = vpack.c.bf16 %v4139_v16, %v4135_v50  ;;  %v10165_v50 = vpack.c.bf16 %v4172_v7, %v4168_v33  ;;  %v4167_v16 = vld [vmem:[%s10640_s12 + $0x1d0] sm:$0xff] }
 0x9b5   :  { %3933 = vmatprep.mubr.f32.mxu0 %v11249_v36  ;;  %4046 = vmatprep.mubr.f32.mxu1 %v11249_v36 }
 0x9b6   :  { %6430 = vmatprep.subr.bf16.mxu1 %v9985_v24  ;;  %6402 = vmatprep.subr.bf16.mxu0 %v9987_v43 }
 0x9b7   :  { %3934 = vmatmul.mubr.f32.gmra.mrb[24].mxu0 %v9731_v58  ;;  %4047 = vmatmul.mubr.f32.gmra.mrb[24].mxu1 %v9731_v58  ;;  %v4143_v58 = vld [vmem:[%s10640_s12 + $0x110] sm:$0xff] }
 0x9b8   :  { %6432 = vmatpush1.bf16.msra.mxu1 %v10005_v28  ;;  %6404 = vmatpush1.bf16.msra.mxu0 %v10007_v30  ;;  %v10085_v59 = vpack.c.bf16 %v4147_v29, %v4143_v58  ;;  %v3838_v29 = vrot.slane %v3829_v10, %v11319_v4 }
 0x9b9   :  { %3939 = vmatprep.mubr.f32.mxu0 %v11249_v36  ;;  %4052 = vmatprep.mubr.f32.mxu1 %v11249_v36 }
 0x9ba   :  { %6434 = vmatprep.subr.bf16.mxu1 %v10025_v21  ;;  %6406 = vmatprep.subr.bf16.mxu0 %v10027_v47 }
 0x9bb   :  { %3940 = vmatmul.mubr.f32.gmra.mrb[22].mxu0 %v9764_v56  ;;  %4053 = vmatmul.mubr.f32.gmra.mrb[22].mxu1 %v9764_v56  ;;  %v10089_v56 = vpack.c.bf16 %v4153_v54, %v4149_v1  ;;  %v11320_v54 = vld [vmem:[#allocation39_spill] sm:$0xff] }
 0x9bc   :  { %6436 = vmatpush1.bf16.msra.mxu1 %v10045_v6  ;;  %6408 = vmatpush1.bf16.msra.mxu0 %v10047_v44  ;;  %v3842_v40 = vrot.slane %v3829_v10, %v11320_v54 }
 0x9bd   :  { %3945 = vmatprep.mubr.f32.mxu0 %v11249_v36  ;;  %4058 = vmatprep.mubr.f32.mxu1 %v11249_v36 }
 0x9be   :  { %6438 = vmatprep.subr.bf16.mxu1 %v10059_v15  ;;  %6410 = vmatprep.subr.bf16.mxu0 %v10061_v37 }
 0x9bf   :  { %3946 = vmatmul.mubr.f32.gmra.mrb[20].mxu0 %v9794_v27  ;;  %4059 = vmatmul.mubr.f32.gmra.mrb[20].mxu1 %v9794_v27  ;;  %v10129_v27 = vpack.c.bf16 %v4161_v25, %v4157_v53 }
 0x9c0   :  { %6440 = vmatpush1.bf16.msra.mxu1 %v10085_v59  ;;  %3951 = vmatprep.mubr.f32.mxu0 %v11249_v36 }
 0x9c1   :  { %4064 = vmatprep.mubr.f32.mxu1 %v11249_v36  ;;  %6412 = vmatpush1.bf16.msra.mxu0 %v10089_v56 }
 0x9c2   :  { %6442 = vmatprep.subr.bf16.mxu1 %v10099_v51  ;;  %6414 = vmatprep.subr.bf16.mxu0 %v10101_v2 }
 0x9c3   :  { %3952 = vmatmul.mubr.f32.gmra.mrb[18].mxu0 %v9827_v41  ;;  %4065 = vmatmul.mubr.f32.gmra.mrb[18].mxu1 %v9827_v41  ;;  %v4171_v41 = vld [vmem:[%s10640_s12 + $0x1f0] sm:$0xff] }
 0x9c4   :  { %6444 = vmatpush1.bf16.msra.mxu1 %v10125_v26  ;;  %3957 = vmatprep.mubr.f32.mxu0 %v11249_v36  ;;  %v10178_v57 = vpack.c.bf16 %v4171_v41, %v4167_v16 }
 0x9c5   :  { %4070 = vmatprep.mubr.f32.mxu1 %v11249_v36  ;;  %6416 = vmatpush1.bf16.msra.mxu0 %v10129_v27 }
 0x9c6   :  { %6446 = vmatprep.subr.bf16.mxu1 %v10142_v42  ;;  %6418 = vmatprep.subr.bf16.mxu0 %v10144_v62 }
 0x9c7   :  { %3958 = vmatmul.mubr.f32.gmra.mrb[16].mxu0 %v9859_v52  ;;  %4071 = vmatmul.mubr.f32.gmra.mrb[16].mxu1 %v9859_v52  ;;  %v3517_v52 = vld [vmem:[%s10641_s10] sm:$0xf] }
 0x9c8   :  { %6448 = vmatpush1.bf16.msra.mxu1 %v10159_v3  ;;  %4237 = vmatprep.mubr.f32.mxu0 %v11249_v36  ;;  %v3522_v45 = vrot.slane %v3517_v52, %v11318_v12  ;;  %v3526_v58 = vrot.slane %v3517_v52, %v11319_v4  ;;  %v3530_v46 = vrot.slane %v3517_v52, %v11320_v54 }
 0x9c9   :  { %6420 = vmatpush1.bf16.msra.mxu0 %v10163_v60  ;;  %6450 = vmatprep.subr.bf16.mxu1 %v10165_v50  ;;  %v3534_v35 = vrot.slane %v3517_v52, %v11321_v31 }
 0x9ca   :  { %4308 = vmatprep.mubr.f32.mxu1 %v11249_v36  ;;  %6454 = vmatprep.subr.bf16.mxu0 %v9867_v9  ;;  %v10233_v1 = vadd.f32 %v3834_v11, %v3522_v45  ;;  %v10237_v20 = vadd.f32 %v3838_v29, %v3526_v58  ;;  %v10240_v53 = vadd.f32 %v3842_v40, %v3530_v46 }
 0x9cb   :  { %v10246_v33 = vadd.f32 %v3846_v23, %v3534_v35 }
 0x9cc   :  { %6452 = vmatpush1.bf16.msra.mxu1 %v10178_v57 }
 0x9cd   :  { %6486 = vmatprep.subr.bf16.mxu1 %v9884_v13 }
 0x9cf   :  { %4238 = vmatmul.mubr.f32.vlgmr.msra.gmra.mrb[16].mxu0 %v11249_v36  ;;  %4309 = vmatmul.mubr.f32.vlgmr.msra.gmra.mrb[16].mxu1 %v11249_v36 }
 0x9d0   :  { %6456 = vmatpush1.bf16.msra.mxu0 %v9900_v14  ;;  %6488 = vmatpush1.bf16.msra.mxu1 %v9911_v22 }
 0x9d1   :  { %6458 = vmatprep.subr.bf16.mxu0 %v9902_v19  ;;  %6490 = vmatprep.subr.bf16.mxu1 %v9948_v49 }
 0x9d2   :  { %4402 = vmatprep.mubr.f32.mxu0 %v11249_v36  ;;  %4473 = vmatprep.mubr.f32.mxu1 %v11249_v36 }
 0x9d4   :  { %6460 = vmatpush1.bf16.msra.mxu0 %v9929_v61  ;;  %6492 = vmatpush1.bf16.msra.mxu1 %v9968_v38 }
 0x9d5   :  { %6462 = vmatprep.subr.bf16.mxu0 %v9936_v48  ;;  %6494 = vmatprep.subr.bf16.mxu1 %v9985_v24 }
 0x9d8   :  { %6464 = vmatpush1.bf16.msra.mxu0 %v9966_v63  ;;  %6496 = vmatpush1.bf16.msra.mxu1 %v10005_v28 }
 0x9d9   :  { %6466 = vmatprep.subr.bf16.mxu0 %v9987_v43  ;;  %6498 = vmatprep.subr.bf16.mxu1 %v10025_v21 }
 0x9dc   :  { %6468 = vmatpush1.bf16.msra.mxu0 %v10007_v30  ;;  %6500 = vmatpush1.bf16.msra.mxu1 %v10045_v6 }
 0x9dd   :  { %6470 = vmatprep.subr.bf16.mxu0 %v10027_v47  ;;  %6502 = vmatprep.subr.bf16.mxu1 %v10059_v15 }
 0x9e0   :  { %6472 = vmatpush1.bf16.msra.mxu0 %v10047_v44  ;;  %6504 = vmatpush1.bf16.msra.mxu1 %v10085_v59 }
 0x9e1   :  { %6474 = vmatprep.subr.bf16.mxu0 %v10061_v37  ;;  %6506 = vmatprep.subr.bf16.mxu1 %v10099_v51 }
 0x9e4   :  { %6476 = vmatpush1.bf16.msra.mxu0 %v10089_v56  ;;  %6508 = vmatpush1.bf16.msra.mxu1 %v10125_v26 }
 0x9e5   :  { %6478 = vmatprep.subr.bf16.mxu0 %v10101_v2  ;;  %6510 = vmatprep.subr.bf16.mxu1 %v10142_v42 }
 0x9e8   :  { %6480 = vmatpush1.bf16.msra.mxu0 %v10129_v27  ;;  %6512 = vmatpush1.bf16.msra.mxu1 %v10159_v3 }
 0x9e9   :  { %6482 = vmatprep.subr.bf16.mxu0 %v10144_v62  ;;  %6514 = vmatprep.subr.bf16.mxu1 %v10165_v50 }
 0x9ec   :  { %6484 = vmatpush1.bf16.msra.mxu0 %v10163_v60  ;;  %6516 = vmatpush1.bf16.msra.mxu1 %v10178_v57 }
 0x9ed   :  { %6518 = vmatprep.subr.bf16.mxu0 %v9867_v9  ;;  %6550 = vmatprep.subr.bf16.mxu1 %v9884_v13 }
 0xaa2   :  { %v4239_v18 = vpop.f32.mrb[16].mxu0  ;;  %v4310_v34 = vpop.f32.mrb[16].mxu1 }
 0xaa3   :  { %v6902_v0 = vadd.f32 %v10233_v1, %v4239_v18  ;;  %v4241_v25 = vpop.f32.mrb[17].mxu0  ;;  %v4312_v55 = vpop.f32.mrb[17].mxu1  ;;  %v6934_v5 = vadd.f32 %v10240_v53, %v4310_v34 }
 0xaa4   :  { %v6904_v8 = vadd.f32 %v10237_v20, %v4241_v25  ;;  %v6936_v7 = vadd.f32 %v10246_v33, %v4312_v55 }
 0xaa5   :  { %v4319_v39 = vmul.f32 0.5, %v6902_v0 }
 0xaa6   :  { %v4323_v17 = vmul.f32 0.5, %v6904_v8  ;;  %v4328_v16 = vmul.f32 0.5, %v6936_v7 }
 0xaa7   :  { %7287 = vtanh.f32 %v4319_v39 }
 0xaa8   :  { %7289 = vtanh.f32 %v4323_v17 }
 0xaa9   :  { %7291 = vtanh.f32 %v6934_v5 }
 0xaaa   :  { %7293 = vtanh.f32 %v4328_v16 }
 0xab1   :  { %v7288_v41 = vpop.eup %7287 }
 0xab2   :  { %v7290_v12 = vpop.eup %7289  ;;  %v4321_v52 = vmul.f32 0.5, %v7288_v41 }
 0xab3   :  { %v4325_v45 = vmul.f32 0.5, %v7290_v12  ;;  %v7292_v11 = vpop.eup %7291 }
 0xab4   :  { %v4322_v10 = vadd.f32 0.5, %v4321_v52  ;;  %v7294_v46 = vpop.eup %7293 }
 0xab5   :  { %v4326_v4 = vadd.f32 0.5, %v4325_v45  ;;  %v4330_v40 = vmul.f32 0.5, %v7294_v46 }
 0xab6   :  { %v4333_v58 = vmul.f32 %v7292_v11, %v4322_v10 }
 0xab7   :  { %v4332_v29 = vmul.f32 0.0, %v4326_v4  ;;  %v4331_v18 = vadd.f32 0.5, %v4330_v40 }
 0xab9   :  { %v10249_v54 = vadd.f32 %v4333_v58, %v4332_v29 }
 0xabb   :  { %7295 = vtanh.f32 %v10249_v54 }
 0xac5   :  { %v7296_v34 = vpop.eup %7295 }
 0xac6   :  { %v10252_v0 = vmul.f32 %v7296_v34, %v4331_v18 }
 0xac8   :  { %4403 = vmatmul.mubr.f32.vlgmr.msra.gmra.mrb[18].mxu0 %v10252_v0  ;;  %4474 = vmatmul.mubr.f32.vlgmr.msra.gmra.mrb[18].mxu1 %v10252_v0 }
 0xac9   :  { %6520 = vmatpush1.bf16.msra.mxu0 %v9900_v14  ;;  %6552 = vmatpush1.bf16.msra.mxu1 %v9911_v22 }
 0xaca   :  { %6522 = vmatprep.subr.bf16.mxu0 %v9902_v19  ;;  %6554 = vmatprep.subr.bf16.mxu1 %v9948_v49 }
 0xacb   :  { %4567 = vmatprep.mubr.f32.mxu0 %v11249_v36  ;;  %4638 = vmatprep.mubr.f32.mxu1 %v11249_v36 }
 0xacd   :  { %6524 = vmatpush1.bf16.msra.mxu0 %v9929_v61  ;;  %6556 = vmatpush1.bf16.msra.mxu1 %v9968_v38 }
 0xace   :  { %6526 = vmatprep.subr.bf16.mxu0 %v9936_v48  ;;  %6558 = vmatprep.subr.bf16.mxu1 %v9985_v24 }
 0xad1   :  { %6528 = vmatpush1.bf16.msra.mxu0 %v9966_v63  ;;  %6560 = vmatpush1.bf16.msra.mxu1 %v10005_v28 }
 0xad2   :  { %6530 = vmatprep.subr.bf16.mxu0 %v9987_v43  ;;  %6562 = vmatprep.subr.bf16.mxu1 %v10025_v21 }
 0xad5   :  { %6532 = vmatpush1.bf16.msra.mxu0 %v10007_v30  ;;  %6564 = vmatpush1.bf16.msra.mxu1 %v10045_v6 }
 0xad6   :  { %6534 = vmatprep.subr.bf16.mxu0 %v10027_v47  ;;  %6566 = vmatprep.subr.bf16.mxu1 %v10059_v15 }
 0xad9   :  { %6536 = vmatpush1.bf16.msra.mxu0 %v10047_v44  ;;  %6568 = vmatpush1.bf16.msra.mxu1 %v10085_v59 }
 0xada   :  { %6538 = vmatprep.subr.bf16.mxu0 %v10061_v37  ;;  %6570 = vmatprep.subr.bf16.mxu1 %v10099_v51 }
 0xadd   :  { %6540 = vmatpush1.bf16.msra.mxu0 %v10089_v56  ;;  %6572 = vmatpush1.bf16.msra.mxu1 %v10125_v26 }
 0xade   :  { %6542 = vmatprep.subr.bf16.mxu0 %v10101_v2  ;;  %6574 = vmatprep.subr.bf16.mxu1 %v10142_v42 }
 0xae1   :  { %6544 = vmatpush1.bf16.msra.mxu0 %v10129_v27  ;;  %6576 = vmatpush1.bf16.msra.mxu1 %v10159_v3 }
 0xae2   :  { %6546 = vmatprep.subr.bf16.mxu0 %v10144_v62  ;;  %6578 = vmatprep.subr.bf16.mxu1 %v10165_v50 }
 0xae5   :  { %6548 = vmatpush1.bf16.msra.mxu0 %v10163_v60  ;;  %6580 = vmatpush1.bf16.msra.mxu1 %v10178_v57 }
 0xae6   :  { %6582 = vmatprep.subr.bf16.mxu0 %v9867_v9  ;;  %6614 = vmatprep.subr.bf16.mxu1 %v9884_v13 }
 0xb9b   :  { %v4404_v25 = vpop.f32.mrb[18].mxu0  ;;  %v4475_v31 = vpop.f32.mrb[18].mxu1 }
 0xb9c   :  { %v6906_v35 = vadd.f32 %v10233_v1, %v4404_v25  ;;  %v4406_v23 = vpop.f32.mrb[19].mxu0  ;;  %v4477_v55 = vpop.f32.mrb[19].mxu1  ;;  %v6938_v5 = vadd.f32 %v10240_v53, %v4475_v31 }
 0xb9d   :  { %v6908_v8 = vadd.f32 %v10237_v20, %v4406_v23  ;;  %v6940_v7 = vadd.f32 %v10246_v33, %v4477_v55 }
 0xb9e   :  { %v4484_v39 = vmul.f32 0.5, %v6906_v35 }
 0xb9f   :  { %v4488_v17 = vmul.f32 0.5, %v6908_v8  ;;  %v4493_v16 = vmul.f32 0.5, %v6940_v7 }
 0xba0   :  { %7297 = vtanh.f32 %v4484_v39 }
 0xba1   :  { %7299 = vtanh.f32 %v4488_v17 }
 0xba2   :  { %7301 = vtanh.f32 %v6938_v5 }
 0xba3   :  { %7303 = vtanh.f32 %v4493_v16 }
 0xbaa   :  { %v7298_v41 = vpop.eup %7297 }
 0xbab   :  { %v7300_v12 = vpop.eup %7299  ;;  %v4486_v52 = vmul.f32 0.5, %v7298_v41 }
 0xbac   :  { %v4490_v45 = vmul.f32 0.5, %v7300_v12  ;;  %v7302_v11 = vpop.eup %7301 }
 0xbad   :  { %v4487_v10 = vadd.f32 0.5, %v4486_v52  ;;  %v7304_v40 = vpop.eup %7303 }
 0xbae   :  { %v4491_v4 = vadd.f32 0.5, %v4490_v45  ;;  %v4495_v18 = vmul.f32 0.5, %v7304_v40 }
 0xbaf   :  { %v4498_v58 = vmul.f32 %v7302_v11, %v4487_v10 }
 0xbb0   :  { %v4497_v29 = vmul.f32 %v4491_v4, %v10249_v54  ;;  %v4496_v34 = vadd.f32 0.5, %v4495_v18 }
 0xbb2   :  { %v10295_v46 = vadd.f32 %v4498_v58, %v4497_v29 }
 0xbb4   :  { %7305 = vtanh.f32 %v10295_v46 }
 0xbbe   :  { %v7306_v25 = vpop.eup %7305 }
 0xbbf   :  { %v10298_v31 = vmul.f32 %v7306_v25, %v4496_v34 }
 0xbc1   :  { %4568 = vmatmul.mubr.f32.vlgmr.msra.gmra.mrb[20].mxu0 %v10298_v31  ;;  %4639 = vmatmul.mubr.f32.vlgmr.msra.gmra.mrb[20].mxu1 %v10298_v31 }
 0xbc2   :  { %6584 = vmatpush1.bf16.msra.mxu0 %v9900_v14  ;;  %6616 = vmatpush1.bf16.msra.mxu1 %v9911_v22 }
 0xbc3   :  { %6586 = vmatprep.subr.bf16.mxu0 %v9902_v19  ;;  %6618 = vmatprep.subr.bf16.mxu1 %v9948_v49 }
 0xbc4   :  { %4732 = vmatprep.mubr.f32.mxu0 %v11249_v36  ;;  %4803 = vmatprep.mubr.f32.mxu1 %v11249_v36 }
 0xbc6   :  { %6588 = vmatpush1.bf16.msra.mxu0 %v9929_v61  ;;  %6620 = vmatpush1.bf16.msra.mxu1 %v9968_v38 }
 0xbc7   :  { %6590 = vmatprep.subr.bf16.mxu0 %v9936_v48  ;;  %6622 = vmatprep.subr.bf16.mxu1 %v9985_v24 }
 0xbca   :  { %6592 = vmatpush1.bf16.msra.mxu0 %v9966_v63  ;;  %6624 = vmatpush1.bf16.msra.mxu1 %v10005_v28 }
 0xbcb   :  { %6594 = vmatprep.subr.bf16.mxu0 %v9987_v43  ;;  %6626 = vmatprep.subr.bf16.mxu1 %v10025_v21 }
 0xbce   :  { %6596 = vmatpush1.bf16.msra.mxu0 %v10007_v30  ;;  %6628 = vmatpush1.bf16.msra.mxu1 %v10045_v6 }
 0xbcf   :  { %6598 = vmatprep.subr.bf16.mxu0 %v10027_v47  ;;  %6630 = vmatprep.subr.bf16.mxu1 %v10059_v15 }
 0xbd2   :  { %6600 = vmatpush1.bf16.msra.mxu0 %v10047_v44  ;;  %6632 = vmatpush1.bf16.msra.mxu1 %v10085_v59 }
 0xbd3   :  { %6602 = vmatprep.subr.bf16.mxu0 %v10061_v37  ;;  %6634 = vmatprep.subr.bf16.mxu1 %v10099_v51 }
 0xbd6   :  { %6604 = vmatpush1.bf16.msra.mxu0 %v10089_v56  ;;  %6636 = vmatpush1.bf16.msra.mxu1 %v10125_v26 }
 0xbd7   :  { %6606 = vmatprep.subr.bf16.mxu0 %v10101_v2  ;;  %6638 = vmatprep.subr.bf16.mxu1 %v10142_v42 }
 0xbda   :  { %6608 = vmatpush1.bf16.msra.mxu0 %v10129_v27  ;;  %6640 = vmatpush1.bf16.msra.mxu1 %v10159_v3 }
 0xbdb   :  { %6610 = vmatprep.subr.bf16.mxu0 %v10144_v62  ;;  %6642 = vmatprep.subr.bf16.mxu1 %v10165_v50 }
 0xbde   :  { %6612 = vmatpush1.bf16.msra.mxu0 %v10163_v60  ;;  %6644 = vmatpush1.bf16.msra.mxu1 %v10178_v57 }
 0xbdf   :  { %6646 = vmatprep.subr.bf16.mxu0 %v9867_v9  ;;  %6678 = vmatprep.subr.bf16.mxu1 %v9884_v13 }
 0xc94   :  { %v4569_v54 = vpop.f32.mrb[20].mxu0  ;;  %v4640_v35 = vpop.f32.mrb[20].mxu1 }
 0xc95   :  { %v6910_v23 = vadd.f32 %v10233_v1, %v4569_v54  ;;  %v4571_v55 = vpop.f32.mrb[21].mxu0  ;;  %v4642_v8 = vpop.f32.mrb[21].mxu1  ;;  %v6942_v7 = vadd.f32 %v10240_v53, %v4640_v35 }
 0xc96   :  { %v6912_v39 = vadd.f32 %v10237_v20, %v4571_v55  ;;  %v6944_v16 = vadd.f32 %v10246_v33, %v4642_v8 }
 0xc97   :  { %v4649_v17 = vmul.f32 0.5, %v6910_v23 }
 0xc98   :  { %v4653_v5 = vmul.f32 0.5, %v6912_v39  ;;  %v4658_v41 = vmul.f32 0.5, %v6944_v16 }
 0xc99   :  { %7307 = vtanh.f32 %v4649_v17 }
 0xc9a   :  { %7309 = vtanh.f32 %v4653_v5 }
 0xc9b   :  { %7311 = vtanh.f32 %v6942_v7 }
 0xc9c   :  { %7313 = vtanh.f32 %v4658_v41 }
 0xca3   :  { %v7308_v12 = vpop.eup %7307 }
 0xca4   :  { %v7310_v52 = vpop.eup %7309  ;;  %v4651_v45 = vmul.f32 0.5, %v7308_v12 }
 0xca5   :  { %v4655_v10 = vmul.f32 0.5, %v7310_v52  ;;  %v7312_v4 = vpop.eup %7311 }
 0xca6   :  { %v4652_v11 = vadd.f32 0.5, %v4651_v45  ;;  %v7314_v34 = vpop.eup %7313 }
 0xca7   :  { %v4656_v58 = vadd.f32 0.5, %v4655_v10  ;;  %v4660_v25 = vmul.f32 0.5, %v7314_v34 }
 0xca8   :  { %v4663_v29 = vmul.f32 %v7312_v4, %v4652_v11 }
 0xca9   :  { %v4662_v40 = vmul.f32 %v4656_v58, %v10295_v46  ;;  %v4661_v54 = vadd.f32 0.5, %v4660_v25 }
 0xcab   :  { %v10341_v18 = vadd.f32 %v4663_v29, %v4662_v40 }
 0xcad   :  { %7315 = vtanh.f32 %v10341_v18 }
 0xcb7   :  { %v7316_v35 = vpop.eup %7315 }
 0xcb8   :  { %v10344_v23 = vmul.f32 %v7316_v35, %v4661_v54 }
 0xcba   :  { %4733 = vmatmul.mubr.f32.vlgmr.msra.gmra.mrb[22].mxu0 %v10344_v23  ;;  %4804 = vmatmul.mubr.f32.vlgmr.msra.gmra.mrb[22].mxu1 %v10344_v23 }
 0xcbb   :  { %6648 = vmatpush1.bf16.msra.mxu0 %v9900_v14  ;;  %6680 = vmatpush1.bf16.msra.mxu1 %v9911_v22 }
 0xcbc   :  { %6650 = vmatprep.subr.bf16.mxu0 %v9902_v19  ;;  %6682 = vmatprep.subr.bf16.mxu1 %v9948_v49 }
 0xcbd   :  { %4897 = vmatprep.mubr.f32.mxu0 %v11249_v36  ;;  %4968 = vmatprep.mubr.f32.mxu1 %v11249_v36 }
 0xcbf   :  { %6652 = vmatpush1.bf16.msra.mxu0 %v9929_v61  ;;  %6684 = vmatpush1.bf16.msra.mxu1 %v9968_v38 }
 0xcc0   :  { %6654 = vmatprep.subr.bf16.mxu0 %v9936_v48  ;;  %6686 = vmatprep.subr.bf16.mxu1 %v9985_v24 }
 0xcc3   :  { %6656 = vmatpush1.bf16.msra.mxu0 %v9966_v63  ;;  %6688 = vmatpush1.bf16.msra.mxu1 %v10005_v28 }
 0xcc4   :  { %6658 = vmatprep.subr.bf16.mxu0 %v9987_v43  ;;  %6690 = vmatprep.subr.bf16.mxu1 %v10025_v21 }
 0xcc7   :  { %6660 = vmatpush1.bf16.msra.mxu0 %v10007_v30  ;;  %6692 = vmatpush1.bf16.msra.mxu1 %v10045_v6 }
 0xcc8   :  { %6662 = vmatprep.subr.bf16.mxu0 %v10027_v47  ;;  %6694 = vmatprep.subr.bf16.mxu1 %v10059_v15 }
 0xccb   :  { %6664 = vmatpush1.bf16.msra.mxu0 %v10047_v44  ;;  %6696 = vmatpush1.bf16.msra.mxu1 %v10085_v59 }
 0xccc   :  { %6666 = vmatprep.subr.bf16.mxu0 %v10061_v37  ;;  %6698 = vmatprep.subr.bf16.mxu1 %v10099_v51 }
 0xccf   :  { %6668 = vmatpush1.bf16.msra.mxu0 %v10089_v56  ;;  %6700 = vmatpush1.bf16.msra.mxu1 %v10125_v26 }
 0xcd0   :  { %6670 = vmatprep.subr.bf16.mxu0 %v10101_v2  ;;  %6702 = vmatprep.subr.bf16.mxu1 %v10142_v42 }
 0xcd3   :  { %6672 = vmatpush1.bf16.msra.mxu0 %v10129_v27  ;;  %6704 = vmatpush1.bf16.msra.mxu1 %v10159_v3 }
 0xcd4   :  { %6674 = vmatprep.subr.bf16.mxu0 %v10144_v62  ;;  %6706 = vmatprep.subr.bf16.mxu1 %v10165_v50 }
 0xcd7   :  { %6676 = vmatpush1.bf16.msra.mxu0 %v10163_v60  ;;  %6708 = vmatpush1.bf16.msra.mxu1 %v10178_v57 }
 0xcd8   :  { %6710 = vmatprep.subr.bf16.mxu0 %v9867_v9  ;;  %6742 = vmatprep.subr.bf16.mxu1 %v9884_v13 }
 0xd8d   :  { %v4734_v46 = vpop.f32.mrb[22].mxu0  ;;  %v4805_v55 = vpop.f32.mrb[22].mxu1 }
 0xd8e   :  { %v6914_v8 = vadd.f32 %v10233_v1, %v4734_v46  ;;  %v4736_v39 = vpop.f32.mrb[23].mxu0  ;;  %v4807_v17 = vpop.f32.mrb[23].mxu1  ;;  %v6946_v41 = vadd.f32 %v10240_v53, %v4805_v55 }
 0xd8f   :  { %v6916_v5 = vadd.f32 %v10237_v20, %v4736_v39  ;;  %v6948_v12 = vadd.f32 %v10246_v33, %v4807_v17 }
 0xd90   :  { %v4814_v7 = vmul.f32 0.5, %v6914_v8 }
 0xd91   :  { %v4818_v16 = vmul.f32 0.5, %v6916_v5  ;;  %v4823_v52 = vmul.f32 0.5, %v6948_v12 }
 0xd92   :  { %7317 = vtanh.f32 %v4814_v7 }
 0xd93   :  { %7319 = vtanh.f32 %v4818_v16 }
 0xd94   :  { %7321 = vtanh.f32 %v6946_v41 }
 0xd95   :  { %7323 = vtanh.f32 %v4823_v52 }
 0xd9c   :  { %v7318_v45 = vpop.eup %7317 }
 0xd9d   :  { %v7320_v10 = vpop.eup %7319  ;;  %v4816_v11 = vmul.f32 0.5, %v7318_v45 }
 0xd9e   :  { %v4820_v4 = vmul.f32 0.5, %v7320_v10  ;;  %v7322_v29 = vpop.eup %7321 }
 0xd9f   :  { %v4817_v58 = vadd.f32 0.5, %v4816_v11  ;;  %v7324_v35 = vpop.eup %7323 }
 0xda0   :  { %v4821_v40 = vadd.f32 0.5, %v4820_v4  ;;  %v4825_v46 = vmul.f32 0.5, %v7324_v35 }
 0xda1   :  { %v4828_v34 = vmul.f32 %v7322_v29, %v4817_v58 }
 0xda2   :  { %v4827_v25 = vmul.f32 %v4821_v40, %v10341_v18  ;;  %v4826_v55 = vadd.f32 0.5, %v4825_v46 }
 0xda4   :  { %v10387_v54 = vadd.f32 %v4828_v34, %v4827_v25 }
 0xda6   :  { %7325 = vtanh.f32 %v10387_v54 }
 0xdb0   :  { %v7326_v8 = vpop.eup %7325 }
 0xdb1   :  { %v10390_v39 = vmul.f32 %v7326_v8, %v4826_v55 }
 0xdb3   :  { %4898 = vmatmul.mubr.f32.vlgmr.msra.gmra.mrb[24].mxu0 %v10390_v39  ;;  %4969 = vmatmul.mubr.f32.vlgmr.msra.gmra.mrb[24].mxu1 %v10390_v39 }
 0xdb4   :  { %6712 = vmatpush1.bf16.msra.mxu0 %v9900_v14  ;;  %6744 = vmatpush1.bf16.msra.mxu1 %v9911_v22 }
 0xdb5   :  { %6714 = vmatprep.subr.bf16.mxu0 %v9902_v19  ;;  %6746 = vmatprep.subr.bf16.mxu1 %v9948_v49 }
 0xdb6   :  { %5062 = vmatprep.mubr.f32.mxu0 %v11249_v36  ;;  %5133 = vmatprep.mubr.f32.mxu1 %v11249_v36 }
 0xdb8   :  { %6716 = vmatpush1.bf16.msra.mxu0 %v9929_v61  ;;  %6748 = vmatpush1.bf16.msra.mxu1 %v9968_v38 }
 0xdb9   :  { %6718 = vmatprep.subr.bf16.mxu0 %v9936_v48  ;;  %6750 = vmatprep.subr.bf16.mxu1 %v9985_v24 }
 0xdbc   :  { %6720 = vmatpush1.bf16.msra.mxu0 %v9966_v63  ;;  %6752 = vmatpush1.bf16.msra.mxu1 %v10005_v28 }
 0xdbd   :  { %6722 = vmatprep.subr.bf16.mxu0 %v9987_v43  ;;  %6754 = vmatprep.subr.bf16.mxu1 %v10025_v21 }
 0xdc0   :  { %6724 = vmatpush1.bf16.msra.mxu0 %v10007_v30  ;;  %6756 = vmatpush1.bf16.msra.mxu1 %v10045_v6 }
 0xdc1   :  { %6726 = vmatprep.subr.bf16.mxu0 %v10027_v47  ;;  %6758 = vmatprep.subr.bf16.mxu1 %v10059_v15 }
 0xdc4   :  { %6728 = vmatpush1.bf16.msra.mxu0 %v10047_v44  ;;  %6760 = vmatpush1.bf16.msra.mxu1 %v10085_v59 }
 0xdc5   :  { %6730 = vmatprep.subr.bf16.mxu0 %v10061_v37  ;;  %6762 = vmatprep.subr.bf16.mxu1 %v10099_v51 }
 0xdc8   :  { %6732 = vmatpush1.bf16.msra.mxu0 %v10089_v56  ;;  %6764 = vmatpush1.bf16.msra.mxu1 %v10125_v26 }
 0xdc9   :  { %6734 = vmatprep.subr.bf16.mxu0 %v10101_v2  ;;  %6766 = vmatprep.subr.bf16.mxu1 %v10142_v42 }
 0xdcc   :  { %6736 = vmatpush1.bf16.msra.mxu0 %v10129_v27  ;;  %6768 = vmatpush1.bf16.msra.mxu1 %v10159_v3 }
 0xdcd   :  { %6738 = vmatprep.subr.bf16.mxu0 %v10144_v62  ;;  %6770 = vmatprep.subr.bf16.mxu1 %v10165_v50 }
 0xdd0   :  { %6740 = vmatpush1.bf16.msra.mxu0 %v10163_v60  ;;  %6772 = vmatpush1.bf16.msra.mxu1 %v10178_v57 }
 0xdd1   :  { %6774 = vmatprep.subr.bf16.mxu0 %v9867_v9  ;;  %6806 = vmatprep.subr.bf16.mxu1 %v9884_v13 }
 0xe86   :  { %v4899_v18 = vpop.f32.mrb[24].mxu0  ;;  %v4970_v17 = vpop.f32.mrb[24].mxu1 }
 0xe87   :  { %v6918_v5 = vadd.f32 %v10233_v1, %v4899_v18  ;;  %v4901_v7 = vpop.f32.mrb[25].mxu0  ;;  %v4972_v16 = vpop.f32.mrb[25].mxu1  ;;  %v6950_v45 = vadd.f32 %v10240_v53, %v4970_v17 }
 0xe88   :  { %v6920_v41 = vadd.f32 %v10237_v20, %v4901_v7  ;;  %v6952_v10 = vadd.f32 %v10246_v33, %v4972_v16 }
 0xe89   :  { %v4979_v12 = vmul.f32 0.5, %v6918_v5 }
 0xe8a   :  { %v4983_v52 = vmul.f32 0.5, %v6920_v41  ;;  %v4988_v11 = vmul.f32 0.5, %v6952_v10 }
 0xe8b   :  { %7327 = vtanh.f32 %v4979_v12 }
 0xe8c   :  { %7329 = vtanh.f32 %v4983_v52 }
 0xe8d   :  { %7331 = vtanh.f32 %v6950_v45 }
 0xe8e   :  { %7333 = vtanh.f32 %v4988_v11 }
 0xe95   :  { %v7328_v4 = vpop.eup %7327 }
 0xe96   :  { %v7330_v58 = vpop.eup %7329  ;;  %v4981_v29 = vmul.f32 0.5, %v7328_v4 }
 0xe97   :  { %v4985_v40 = vmul.f32 0.5, %v7330_v58  ;;  %v7332_v25 = vpop.eup %7331 }
 0xe98   :  { %v4982_v34 = vadd.f32 0.5, %v4981_v29  ;;  %v7334_v18 = vpop.eup %7333 }
 0xe99   :  { %v4986_v35 = vadd.f32 0.5, %v4985_v40  ;;  %v4990_v17 = vmul.f32 0.5, %v7334_v18 }
 0xe9a   :  { %v4993_v46 = vmul.f32 %v7332_v25, %v4982_v34 }
 0xe9b   :  { %v4992_v55 = vmul.f32 %v4986_v35, %v10387_v54  ;;  %v4991_v5 = vadd.f32 0.5, %v4990_v17 }
 0xe9d   :  { %v10433_v8 = vadd.f32 %v4993_v46, %v4992_v55 }
 0xe9f   :  { %7335 = vtanh.f32 %v10433_v8 }
 0xea9   :  { %v7336_v7 = vpop.eup %7335 }
 0xeaa   :  { %v10436_v16 = vmul.f32 %v7336_v7, %v4991_v5 }
 0xeac   :  { %5063 = vmatmul.mubr.f32.vlgmr.msra.gmra.mrb[26].mxu0 %v10436_v16  ;;  %5134 = vmatmul.mubr.f32.vlgmr.msra.gmra.mrb[26].mxu1 %v10436_v16  ;;  %v10444_v41 = vsel %vm3317_vm0, %v10390_v39, %v10436_v16 }
 0xead   :  { %5515 = vadd.xlane.f32.xlu1 %v10444_v41  ;;  %6776 = vmatpush1.bf16.msra.mxu0 %v9900_v14 }
 0xeae   :  { %6808 = vmatpush1.bf16.msra.mxu1 %v9911_v22  ;;  %6778 = vmatprep.subr.bf16.mxu0 %v9902_v19 }
 0xeaf   :  { %6810 = vmatprep.subr.bf16.mxu1 %v9948_v49  ;;  %5227 = vmatprep.mubr.f32.mxu0 %v11249_v36 }
 0xeb0   :  { %5298 = vmatprep.mubr.f32.mxu1 %v11249_v36 }
 0xeb1   :  { %6780 = vmatpush1.bf16.msra.mxu0 %v9929_v61 }
 0xeb2   :  { %6812 = vmatpush1.bf16.msra.mxu1 %v9968_v38  ;;  %6782 = vmatprep.subr.bf16.mxu0 %v9936_v48 }
 0xeb3   :  { %6814 = vmatprep.subr.bf16.mxu1 %v9985_v24 }
 0xeb5   :  { %6784 = vmatpush1.bf16.msra.mxu0 %v9966_v63 }
 0xeb6   :  { %6816 = vmatpush1.bf16.msra.mxu1 %v10005_v28  ;;  %6786 = vmatprep.subr.bf16.mxu0 %v9987_v43 }
 0xeb7   :  { %6818 = vmatprep.subr.bf16.mxu1 %v10025_v21 }
 0xeb9   :  { %6788 = vmatpush1.bf16.msra.mxu0 %v10007_v30 }
 0xeba   :  { %6820 = vmatpush1.bf16.msra.mxu1 %v10045_v6  ;;  %6790 = vmatprep.subr.bf16.mxu0 %v10027_v47 }
 0xebb   :  { %6822 = vmatprep.subr.bf16.mxu1 %v10059_v15 }
 0xebd   :  { %6792 = vmatpush1.bf16.msra.mxu0 %v10047_v44 }
 0xebe   :  { %6824 = vmatpush1.bf16.msra.mxu1 %v10085_v59  ;;  %6794 = vmatprep.subr.bf16.mxu0 %v10061_v37 }
 0xebf   :  { %6826 = vmatprep.subr.bf16.mxu1 %v10099_v51 }
 0xec1   :  { %6796 = vmatpush1.bf16.msra.mxu0 %v10089_v56 }
 0xec2   :  { %6828 = vmatpush1.bf16.msra.mxu1 %v10125_v26  ;;  %6798 = vmatprep.subr.bf16.mxu0 %v10101_v2 }
 0xec3   :  { %6830 = vmatprep.subr.bf16.mxu1 %v10142_v42 }
 0xec5   :  { %6800 = vmatpush1.bf16.msra.mxu0 %v10129_v27 }
 0xec6   :  { %6832 = vmatpush1.bf16.msra.mxu1 %v10159_v3  ;;  %6802 = vmatprep.subr.bf16.mxu0 %v10144_v62 }
 0xec7   :  { %6834 = vmatprep.subr.bf16.mxu1 %v10165_v50 }
 0xec9   :  { %6804 = vmatpush1.bf16.msra.mxu0 %v10163_v60 }
 0xeca   :  { %6836 = vmatpush1.bf16.msra.mxu1 %v10178_v57  ;;  %6838 = vmatprep.subr.bf16.mxu0 %v9867_v9 }
 0xecb   :  { %6870 = vmatprep.subr.bf16.mxu1 %v9884_v13 }
 0xf7f   :  { %v5064_v54 = vpop.f32.mrb[26].mxu0  ;;  %v5135_v12 = vpop.f32.mrb[26].mxu1 }
 0xf80   :  { %v6922_v52 = vadd.f32 %v10233_v1, %v5064_v54  ;;  %v5066_v45 = vpop.f32.mrb[27].mxu0  ;;  %v5137_v10 = vpop.f32.mrb[27].mxu1  ;;  %v6954_v29 = vadd.f32 %v10240_v53, %v5135_v12 }
 0xf81   :  { %v6924_v11 = vadd.f32 %v10237_v20, %v5066_v45  ;;  %v6956_v40 = vadd.f32 %v10246_v33, %v5137_v10 }
 0xf82   :  { %v5144_v4 = vmul.f32 0.5, %v6922_v52 }
 0xf83   :  { %v5148_v58 = vmul.f32 0.5, %v6924_v11  ;;  %v5153_v9 = vmul.f32 0.5, %v6956_v40 }
 0xf84   :  { %7337 = vtanh.f32 %v5144_v4 }
 0xf85   :  { %7339 = vtanh.f32 %v5148_v58 }
 0xf86   :  { %7341 = vtanh.f32 %v6954_v29 }
 0xf87   :  { %7343 = vtanh.f32 %v5153_v9 }
 0xf8e   :  { %v7338_v34 = vpop.eup %7337 }
 0xf8f   :  { %v7340_v13 = vpop.eup %7339  ;;  %v5146_v25 = vmul.f32 0.5, %v7338_v34 }
 0xf90   :  { %v5150_v35 = vmul.f32 0.5, %v7340_v13  ;;  %v7342_v55 = vpop.eup %7341 }
 0xf91   :  { %v5147_v46 = vadd.f32 0.5, %v5146_v25  ;;  %v7344_v54 = vpop.eup %7343 }
 0xf92   :  { %v5151_v18 = vadd.f32 0.5, %v5150_v35  ;;  %v5155_v12 = vmul.f32 0.5, %v7344_v54 }
 0xf93   :  { %v5158_v17 = vmul.f32 %v7342_v55, %v5147_v46 }
 0xf94   :  { %v5157_v5 = vmul.f32 %v5151_v18, %v10433_v8  ;;  %v5156_v52 = vadd.f32 0.5, %v5155_v12 }
 0xf96   :  { %v10486_v7 = vadd.f32 %v5158_v17, %v5157_v5 }
 0xf98   :  { %7345 = vtanh.f32 %v10486_v7 }
 0xfa2   :  { %v7346_v45 = vpop.eup %7345 }
 0xfa3   :  { %v10489_v10 = vmul.f32 %v7346_v45, %v5156_v52 }
 0xfa5   :  { %5228 = vmatmul.mubr.f32.vlgmr.msra.gmra.mrb[28].mxu0 %v10489_v10  ;;  %5299 = vmatmul.mubr.f32.vlgmr.msra.gmra.mrb[28].mxu1 %v10489_v10  ;;  %v10497_v11 = vsel %vm3317_vm0, %v10344_v23, %v10489_v10 }
 0xfa6   :  { %5513 = vadd.xlane.f32.xlu0 %v10497_v11  ;;  %6840 = vmatpush1.bf16.msra.mxu0 %v9900_v14 }
 0xfa7   :  { %6872 = vmatpush1.bf16.msra.mxu1 %v9911_v22  ;;  %6842 = vmatprep.subr.bf16.mxu0 %v9902_v19 }
 0xfa8   :  { %6874 = vmatprep.subr.bf16.mxu1 %v9948_v49  ;;  %5392 = vmatprep.mubr.f32.mxu0 %v11249_v36 }
 0xfa9   :  { %5463 = vmatprep.mubr.f32.mxu1 %v11249_v36 }
 0xfaa   :  { %6844 = vmatpush1.bf16.msra.mxu0 %v9929_v61 }
 0xfab   :  { %6876 = vmatpush1.bf16.msra.mxu1 %v9968_v38  ;;  %6846 = vmatprep.subr.bf16.mxu0 %v9936_v48 }
 0xfac   :  { %6878 = vmatprep.subr.bf16.mxu1 %v9985_v24 }
 0xfae   :  { %6848 = vmatpush1.bf16.msra.mxu0 %v9966_v63 }
 0xfaf   :  { %6880 = vmatpush1.bf16.msra.mxu1 %v10005_v28  ;;  %6850 = vmatprep.subr.bf16.mxu0 %v9987_v43 }
 0xfb0   :  { %6882 = vmatprep.subr.bf16.mxu1 %v10025_v21 }
 0xfb2   :  { %6852 = vmatpush1.bf16.msra.mxu0 %v10007_v30 }
 0xfb3   :  { %6884 = vmatpush1.bf16.msra.mxu1 %v10045_v6  ;;  %6854 = vmatprep.subr.bf16.mxu0 %v10027_v47 }
 0xfb4   :  { %6886 = vmatprep.subr.bf16.mxu1 %v10059_v15 }
 0xfb6   :  { %6856 = vmatpush1.bf16.msra.mxu0 %v10047_v44 }
 0xfb7   :  { %6888 = vmatpush1.bf16.msra.mxu1 %v10085_v59  ;;  %6858 = vmatprep.subr.bf16.mxu0 %v10061_v37 }
 0xfb8   :  { %6890 = vmatprep.subr.bf16.mxu1 %v10099_v51 }
 0xfba   :  { %6860 = vmatpush1.bf16.msra.mxu0 %v10089_v56 }
 0xfbb   :  { %6892 = vmatpush1.bf16.msra.mxu1 %v10125_v26  ;;  %6862 = vmatprep.subr.bf16.mxu0 %v10101_v2 }
 0xfbc   :  { %6894 = vmatprep.subr.bf16.mxu1 %v10142_v42 }
 0xfbe   :  { %6864 = vmatpush1.bf16.msra.mxu0 %v10129_v27 }
 0xfbf   :  { %6896 = vmatpush1.bf16.msra.mxu1 %v10159_v3  ;;  %6866 = vmatprep.subr.bf16.mxu0 %v10144_v62  ;;  %v5506_v3 = vsel %vm3317_vm0, %v10489_v10, %v10344_v23 }
 0xfc0   :  { %6898 = vmatprep.subr.bf16.mxu1 %v10165_v50 }
 0xfc2   :  { %6868 = vmatpush1.bf16.msra.mxu0 %v10163_v60 }
 0xfc3   :  { %6900 = vmatpush1.bf16.msra.mxu1 %v10178_v57 }
0x1078   :  { %v5229_v36 = vpop.f32.mrb[28].mxu0  ;;  %v5300_v14 = vpop.f32.mrb[28].mxu1 }
0x1079   :  { %v6926_v19 = vadd.f32 %v10233_v1, %v5229_v36  ;;  %v5231_v22 = vpop.f32.mrb[29].mxu0  ;;  %v5302_v61 = vpop.f32.mrb[29].mxu1  ;;  %v6958_v38 = vadd.f32 %v10240_v53, %v5300_v14 }
0x107a   :  { %v6928_v48 = vadd.f32 %v10237_v20, %v5231_v22  ;;  %v6960_v24 = vadd.f32 %v10246_v33, %v5302_v61 }
0x107b   :  { %v5309_v49 = vmul.f32 0.5, %v6926_v19  ;;  %v5514_v19 = vpop.xlane.xlu0 %5513 }
0x107c   :  { %v5313_v63 = vmul.f32 0.5, %v6928_v48  ;;  %v5318_v43 = vmul.f32 0.5, %v6960_v24 }
0x107d   :  { %7347 = vtanh.f32 %v5309_v49 }
0x107e   :  { %7349 = vtanh.f32 %v5313_v63  ;;  %v5527_v63 = vmul.f32 0.0078125, %v5514_v19 }
0x107f   :  { %7351 = vtanh.f32 %v6958_v38 }
0x1080   :  { %7353 = vtanh.f32 %v5318_v43  ;;  %v5505_v43 = vsel %vm3317_vm0, %v10436_v16, %v10390_v39 }
0x1087   :  { %v7348_v28 = vpop.eup %7347 }
0x1088   :  { %v7350_v30 = vpop.eup %7349  ;;  %v5311_v21 = vmul.f32 0.5, %v7348_v28  ;;  %v10566_v28 = vsub.f32 %v10497_v11, %v5527_v63 }
0x1089   :  { %v5315_v47 = vmul.f32 0.5, %v7350_v30  ;;  %v7352_v44 = vpop.eup %7351 }
0x108a   :  { %v5312_v6 = vadd.f32 0.5, %v5311_v21  ;;  %v7354_v51 = vpop.eup %7353  ;;  %v5543_v39 = vmul.f32 %v10566_v28, %v10566_v28 }
0x108b   :  { %v5316_v15 = vadd.f32 0.5, %v5315_v47  ;;  %v5320_v2 = vmul.f32 0.5, %v7354_v51 }
0x108c   :  { %v5323_v37 = vmul.f32 %v7352_v44, %v5312_v6 }
0x108d   :  { %v5322_v59 = vmul.f32 %v5316_v15, %v10486_v7  ;;  %v5321_v26 = vadd.f32 0.5, %v5320_v2  ;;  %v5516_v7 = vpop.xlane.xlu1 %5515 }
0x108e   :  { %v5528_v36 = vmul.f32 0.0078125, %v5516_v7 }
0x108f   :  { %v5324_v56 = vadd.f32 %v5323_v37, %v5322_v59 }
0x1090   :  { %v10557_v49 = vsub.f32 %v10444_v41, %v5528_v36 }
0x1091   :  { %7355 = vtanh.f32 %v5324_v56 }
0x1092   :  { %v5544_v41 = vmul.f32 %v10557_v49, %v10557_v49 }
0x109b   :  { %v7356_v27 = vpop.eup %7355 }
0x109c   :  { %v5326_v42 = vmul.f32 %v7356_v27, %v5321_v26 }
0x109e   :  { %5393 = vmatmul.mubr.f32.vlgmr.msra.gmra.mrb[30].mxu0 %v5326_v42  ;;  %5464 = vmatmul.mubr.f32.vlgmr.msra.gmra.mrb[30].mxu1 %v5326_v42  ;;  %v5498_v62 = vsel %vm3317_vm0, %v10298_v31, %v5326_v42  ;;  %v5507_v30 = vsel %vm3317_vm0, %v5326_v42, %v10298_v31 }
0x109f   :  { %5511 = vadd.xlane.f32.xlu1 %v5498_v62 }
0x10a3   :  { %5519 = vadd.xlane.f32.xlu1 %v5506_v3 }
0x1171   :  { %v5394_v60 = vpop.f32.mrb[30].mxu0  ;;  %v5465_v50 = vpop.f32.mrb[30].mxu1 }
0x1172   :  { %v6930_v57 = vadd.f32 %v10233_v1, %v5394_v60  ;;  %v5396_v8 = vpop.f32.mrb[31].mxu0  ;;  %v5467_v4 = vpop.f32.mrb[31].mxu1  ;;  %v6962_v9 = vadd.f32 %v10240_v53, %v5465_v50 }
0x1173   :  { %v6932_v58 = vadd.f32 %v10237_v20, %v5396_v8  ;;  %v6964_v34 = vadd.f32 %v10246_v33, %v5467_v4  ;;  %v5512_v53 = vpop.xlane.xlu1 %5511 }
0x1174   :  { %v5474_v29 = vmul.f32 0.5, %v6930_v57  ;;  %v5526_v52 = vmul.f32 0.0078125, %v5512_v53 }
0x1175   :  { %v5478_v40 = vmul.f32 0.5, %v6932_v58  ;;  %v5483_v13 = vmul.f32 0.5, %v6964_v34 }
0x1176   :  { %7357 = vtanh.f32 %v5474_v29  ;;  %v10548_v14 = vsub.f32 %v5498_v62, %v5526_v52 }
0x1177   :  { %7359 = vtanh.f32 %v5478_v40  ;;  %v5520_v22 = vpop.xlane.xlu1 %5519 }
0x1178   :  { %7361 = vtanh.f32 %v6962_v9  ;;  %v5530_v38 = vmul.f32 0.0078125, %v5520_v22  ;;  %v5542_v24 = vmul.f32 %v10548_v14, %v10548_v14 }
0x1179   :  { %7363 = vtanh.f32 %v5483_v13 }
0x1180   :  { %v7358_v23 = vpop.eup %7357 }
0x1181   :  { %v7360_v25 = vpop.eup %7359  ;;  %v5476_v35 = vmul.f32 0.5, %v7358_v23 }
0x1182   :  { %v5480_v46 = vmul.f32 0.5, %v7360_v25  ;;  %v7362_v55 = vpop.eup %7361  ;;  %v5745_v25 = vld [vmem:[%s10643_s13] ss:$0 sm:$0xff] }
0x1183   :  { %v5477_v1 = vadd.f32 0.5, %v5476_v35  ;;  %v7364_v54 = vpop.eup %7363 }
0x1184   :  { %v5481_v18 = vadd.f32 0.5, %v5480_v46  ;;  %v5485_v12 = vmul.f32 0.5, %v7364_v54  ;;  %v10602_v46 = vld [vmem:[%s10644_s14] ss:$0 sm:$0xff] }
0x1185   :  { %v5488_v17 = vmul.f32 %v7362_v55, %v5477_v1 }
0x1186   :  { %v5487_v20 = vmul.f32 %v5481_v18, %v5324_v56  ;;  %v5486_v45 = vadd.f32 0.5, %v5485_v12  ;;  %v5747_v18 = vld [vmem:[%s10645_s15] ss:$0 sm:$0xff] }
0x1188   :  { %v5489_v5 = vadd.f32 %v5488_v17, %v5487_v20 }
0x118a   :  { %7365 = vtanh.f32 %v5489_v5 }
0x1194   :  { %v7366_v33 = vpop.eup %7365 }
0x1195   :  { %v5491_v10 = vmul.f32 %v7366_v33, %v5486_v45 }
0x1197   :  { %v5508_v61 = vsel %vm3317_vm0, %v5491_v10, %v10252_v0  ;;  %v5495_v48 = vsel %vm3317_vm0, %v10252_v0, %v5491_v10  ;;  %v10568_v0 = vsub.f32 %v5506_v3, %v5530_v38 }
0x1198   :  { %5523 = vadd.xlane.f32.xlu1 %v5508_v61  ;;  %5509 = vadd.xlane.f32.xlu0 %v5495_v48 }
0x1199   :  { %v5546_v21 = vmul.f32 %v10568_v0, %v10568_v0 }
0x119c   :  { %5551 = vadd.xlane.f32.xlu1 %v5542_v24  ;;  %5517 = vadd.xlane.f32.xlu0 %v5505_v43 }
0x11a0   :  { %5555 = vadd.xlane.f32.xlu1 %v5544_v41  ;;  %5521 = vadd.xlane.f32.xlu0 %v5507_v30 }
0x11a4   :  { %5559 = vadd.xlane.f32.xlu1 %v5546_v21  ;;  %5553 = vadd.xlane.f32.xlu0 %v5543_v39 }
0x1225   :  { %v5524_v16 = vpop.xlane.xlu1 %5523  ;;  %v5510_v11 = vpop.xlane.xlu0 %5509 }
0x1226   :  { %v5532_v47 = vmul.f32 0.0078125, %v5524_v16  ;;  %v5525_v6 = vmul.f32 0.0078125, %v5510_v11 }
0x1228   :  { %v10579_v44 = vsub.f32 %v5508_v61, %v5532_v47  ;;  %v10581_v15 = vsub.f32 %v5495_v48, %v5525_v6  ;;  %v22_v48 = vstv %s10646_s16 }
0x1229   :  { %v5552_v37 = vpop.xlane.xlu1 %5551  ;;  %v5518_v31 = vpop.xlane.xlu0 %5517  ;;  %23 = vst [vmem:[#allocation3] sm:$0x1] %v22_v48 }
0x122a   :  { %v5566_v59 = vmul.f32 0.0078125, %v5552_v37  ;;  %v5529_v56 = vmul.f32 0.0078125, %v5518_v31  ;;  %v5548_v51 = vmul.f32 %v10579_v44, %v10579_v44  ;;  %v5541_v2 = vmul.f32 %v10581_v15, %v10581_v15 }
0x122c   :  { %v5574_v26 = vadd.f32 1e-05, %v5566_v59  ;;  %v10587_v27 = vsub.f32 %v5505_v43, %v5529_v56  ;;  %5563 = vadd.xlane.f32.xlu1 %v5548_v51  ;;  %5549 = vadd.xlane.f32.xlu0 %v5541_v2 }
0x122d   :  { %v5556_v42 = vpop.xlane.xlu1 %5555  ;;  %v5522_v62 = vpop.xlane.xlu0 %5521 }
0x122e   :  { %7367 = vrsqrt.f32 %v5574_v26  ;;  %v5568_v3 = vmul.f32 0.0078125, %v5556_v42  ;;  %v5531_v60 = vmul.f32 0.0078125, %v5522_v62  ;;  %v5545_v50 = vmul.f32 %v10587_v27, %v10587_v27 }
0x1230   :  { %v5576_v57 = vadd.f32 1e-05, %v5568_v3  ;;  %v10591_v8 = vsub.f32 %v5507_v30, %v5531_v60  ;;  %5557 = vadd.xlane.f32.xlu0 %v5545_v50 }
0x1231   :  { %v5560_v4 = vpop.xlane.xlu1 %5559  ;;  %v5554_v58 = vpop.xlane.xlu0 %5553 }
0x1232   :  { %7369 = vrsqrt.f32 %v5576_v57  ;;  %v5570_v29 = vmul.f32 0.0078125, %v5560_v4  ;;  %v5567_v40 = vmul.f32 0.0078125, %v5554_v58  ;;  %v5547_v9 = vmul.f32 %v10591_v8, %v10591_v8 }
0x1234   :  { %v5578_v34 = vadd.f32 1e-05, %v5570_v29  ;;  %v5575_v13 = vadd.f32 1e-05, %v5567_v40  ;;  %5561 = vadd.xlane.f32.xlu0 %v5547_v9  ;;  %v5748_v29 = vld [vmem:[#allocation3] ss:$0 sm:$0xff] }
0x1236   :  { %7371 = vrsqrt.f32 %v5578_v34 }
0x1237   :  { %7373 = vrsqrt.f32 %v5575_v13 }
0x1238   :  { %v7368_v23 = vpop.eup %7367 }
0x1239   :  { %v5590_v35 = vmul.f32 %v7368_v23, %v10548_v14  ;;  %v11322_v23 = vld [vmem:[#allocation36_spill] sm:$0xff] }
0x123b   :  { %v5605_v1 = vmul.f32 %v5745_v25, %v5590_v35 }
0x123c   :  { %v7370_v55 = vpop.eup %7369 }
0x123d   :  { %v5620_v17 = vadd.f32 %v10602_v46, %v5605_v1  ;;  %v5592_v20 = vmul.f32 %v7370_v55, %v10557_v49 }
0x123f   :  { %v5635_v5 = vmul.f32 %v5747_v18, %v5620_v17  ;;  %v5607_v7 = vmul.f32 %v5745_v25, %v5592_v20 }
0x1240   :  { %v7372_v54 = vpop.eup %7371 }
0x1241   :  { %v7374_v53 = vpop.eup %7373  ;;  %5644 = vadd.xlane.f32.xlu1 %v5635_v5  ;;  %v5622_v12 = vadd.f32 %v10602_v46, %v5607_v7  ;;  %v5594_v52 = vmul.f32 %v7372_v54, %v10568_v0 }
0x1242   :  { %v5591_v45 = vmul.f32 %v7374_v53, %v10566_v28 }
0x1243   :  { %v5637_v33 = vmul.f32 %v5747_v18, %v5622_v12  ;;  %v5609_v10 = vmul.f32 %v5745_v25, %v5594_v52 }
0x1244   :  { %v5606_v36 = vmul.f32 %v5745_v25, %v5591_v45 }
0x1245   :  { %5648 = vadd.xlane.f32.xlu1 %v5637_v33  ;;  %v5624_v14 = vadd.f32 %v10602_v46, %v5609_v10 }
0x1246   :  { %v5621_v19 = vadd.f32 %v10602_v46, %v5606_v36 }
0x1247   :  { %v5639_v22 = vmul.f32 %v5747_v18, %v5624_v14 }
0x1248   :  { %v5636_v61 = vmul.f32 %v5747_v18, %v5621_v19 }
0x1249   :  { %5652 = vadd.xlane.f32.xlu1 %v5639_v22 }
0x124a   :  { %5646 = vadd.xlane.f32.xlu0 %v5636_v61 }
0x12b9   :  { %v5564_v49 = vpop.xlane.xlu1 %5563  ;;  %v5550_v63 = vpop.xlane.xlu0 %5549 }
0x12ba   :  { %v5572_v38 = vmul.f32 0.0078125, %v5564_v49  ;;  %v5565_v24 = vmul.f32 0.0078125, %v5550_v63 }
0x12bc   :  { %v5580_v43 = vadd.f32 1e-05, %v5572_v38  ;;  %v5573_v28 = vadd.f32 1e-05, %v5565_v24 }
0x12bd   :  { %v5558_v0 = vpop.xlane.xlu0 %5557 }
0x12be   :  { %7375 = vrsqrt.f32 %v5580_v43  ;;  %v5569_v41 = vmul.f32 0.0078125, %v5558_v0 }
0x12bf   :  { %7377 = vrsqrt.f32 %v5573_v28 }
0x12c0   :  { %v5577_v30 = vadd.f32 1e-05, %v5569_v41 }
0x12c1   :  { %v5562_v21 = vpop.xlane.xlu0 %5561 }
0x12c2   :  { %7379 = vrsqrt.f32 %v5577_v30  ;;  %v5571_v39 = vmul.f32 0.0078125, %v5562_v21 }
0x12c4   :  { %v5579_v16 = vadd.f32 1e-05, %v5571_v39 }
0x12c6   :  { %7381 = vrsqrt.f32 %v5579_v16 }
0x12c8   :  { %v7376_v11 = vpop.eup %7375 }
0x12c9   :  { %v5596_v47 = vmul.f32 %v7376_v11, %v10579_v44  ;;  %v7378_v6 = vpop.eup %7377 }
0x12ca   :  { %v5589_v26 = vmul.f32 %v7378_v6, %v10581_v15 }
0x12cb   :  { %v5611_v37 = vmul.f32 %v5745_v25, %v5596_v47 }
0x12cc   :  { %v7380_v31 = vpop.eup %7379  ;;  %v5604_v44 = vmul.f32 %v5745_v25, %v5589_v26 }
0x12cd   :  { %v5626_v59 = vadd.f32 %v10602_v46, %v5611_v37  ;;  %v5593_v56 = vmul.f32 %v7380_v31, %v10587_v27 }
0x12ce   :  { %v5619_v58 = vadd.f32 %v10602_v46, %v5604_v44  ;;  %v5645_v9 = vpop.xlane.xlu1 %5644 }
0x12cf   :  { %v5641_v51 = vmul.f32 %v5747_v18, %v5626_v59  ;;  %v5608_v2 = vmul.f32 %v5745_v25, %v5593_v56 }
0x12d0   :  { %v7382_v42 = vpop.eup %7381  ;;  %v5634_v27 = vmul.f32 %v5747_v18, %v5619_v58 }
0x12d1   :  { %5656 = vadd.xlane.f32.xlu1 %v5641_v51  ;;  %v5623_v62 = vadd.f32 %v10602_v46, %v5608_v2  ;;  %v5595_v3 = vmul.f32 %v7382_v42, %v10591_v8 }
0x12d2   :  { %v5649_v13 = vpop.xlane.xlu1 %5648 }
0x12d3   :  { %v5638_v60 = vmul.f32 %v5747_v18, %v5623_v62  ;;  %v5610_v50 = vmul.f32 %v5745_v25, %v5595_v3  ;;  %v5686_v25 = vsub.s32 %v9229_v32, %v11322_v23 }
0x12d5   :  { %5650 = vadd.xlane.f32.xlu0 %v5638_v60  ;;  %v5625_v57 = vadd.f32 %v10602_v46, %v5610_v50 }
0x12d6   :  { %v5653_v35 = vpop.xlane.xlu1 %5652 }
0x12d7   :  { %v5640_v4 = vmul.f32 %v5747_v18, %v5625_v57  ;;  %v5647_v15 = vpop.xlane.xlu0 %5646 }
0x12d9   :  { %5654 = vadd.xlane.f32.xlu0 %v5640_v4 }
0x12dd   :  { %5642 = vadd.xlane.f32.xlu0 %v5634_v27 }
0x12f3   :  { %5665 = vperm.xlu0 %7062, %v5748_v29  }
0x135e   :  { %v5657_v12 = vpop.xlane.xlu1 %5656 }
0x1362   :  { %v5651_v40 = vpop.xlane.xlu0 %5650 }
0x1366   :  { %v5655_v34 = vpop.xlane.xlu0 %5654 }
0x136a   :  { %v5643_v8 = vpop.xlane.xlu0 %5642 }
0x1372   :  { %v5666_v1 = vpop.permute.xlu0 %5665 }
0x1373   :  { %v5668_v55 = vadd.f32 %v5666_v1, %v5643_v8  ;;  %v5669_v17 = vadd.f32 %v5666_v1, %v5645_v9  ;;  %v5670_v20 = vadd.f32 %v5666_v1, %v5647_v15  ;;  %v5671_v46 = vadd.f32 %v5666_v1, %v5649_v13 }
0x1374   :  { %v5672_v18 = vadd.f32 %v5666_v1, %v5651_v40  ;;  %v5673_v5 = vadd.f32 %v5666_v1, %v5653_v35  ;;  %v5674_v52 = vadd.f32 %v5666_v1, %v5655_v34  ;;  %v5675_v45 = vadd.f32 %v5666_v1, %v5657_v12 }
0x1375   :  { %v5687_v7 = vrot.slane %v5668_v55, %v5686_v25  ;;  %v5691_v54 = vrot.slane %v5669_v17, %v5686_v25  ;;  %v5695_v53 = vrot.slane %v5670_v20, %v5686_v25  ;;  %v5699_v33 = vrot.slane %v5671_v46, %v5686_v25 }
0x1376   :  { %v5703_v10 = vrot.slane %v5672_v18, %v5686_v25  ;;  %v5707_v14 = vrot.slane %v5673_v5, %v5686_v25  ;;  %v5711_v22 = vrot.slane %v5674_v52, %v5686_v25  ;;  %v5715_v48 = vrot.slane %v5675_v45, %v5686_v25 }
0x1377   :  { %v5717_v32 = vsel %vm5716_vm1, %v5691_v54, %v5687_v7 }
0x1378   :  { %v5719_v36 = vsel %vm5718_vm2, %v5695_v53, %v5717_v32 }
0x1379   :  { %v5721_v19 = vsel %vm5720_vm3, %v5699_v33, %v5719_v36 }
0x137a   :  { %v5723_v61 = vsel %vm5722_vm4, %v5703_v10, %v5721_v19 }
0x137b   :  { %v5725_v49 = vsel %vm5724_vm5, %v5707_v14, %v5723_v61 }
0x137c   :  { %v5727_v63 = vsel %vm5726_vm6, %v5711_v22, %v5725_v49 }
0x137d   :  { %v5729_v38 = vsel %vm5728_vm7, %v5715_v48, %v5727_v63 }
0x137e   :  { %5732 = vst.msk [vmem:[%s10647_s17] sm:$0xff] %vm5731_vm8, %v5729_v38 }

</bundles_post_ra>
